<compile_context>
chip_gen: v7x
topology: tpu7x:2x2x1
jax: 0.10.0
libtpu: 0.0.40
codegen_flags: <defaults>
</compile_context>

<pallas_src>
import functools
import math
import numpy as np
import jax
import jax.numpy as jnp
from jax.experimental import pallas as pl
from jax.experimental.pallas import tpu as pltpu

# ------------------- hyperparameters hard-coded in the module ---------------
SAMPLE_RATE = 16000
HOP = 320
WIN = 1024
N_FFT = 1024
N_FREQ = N_FFT // 2 + 1          # 513
NFREQ_PAD = 640                  # 513 padded to a multiple of 128 (lane aligned)
N_SIN = 512                      # sin lanes for k=0..511 (sin is exactly 0 at k=0,512)
DFT_COLS = NFREQ_PAD + N_SIN     # 1152
N_MELS = 64
NMELS_PAD = 128                  # lane-dense frontend output width
FMIN = 0.0
FMAX = SAMPLE_RATE / 2.0
AMIN = 1e-10
BN_EPS = 1e-5
ENCODER_OUT = 1000               # encoder_out_node
CONV_CH = 32                     # channels of the encoder stand-in conv
CFLAT = N_MELS * CONV_CH         # 2048 flattened (mel, channel) conv-output lanes
OUT_CHANNELS = 10                # classifier out_channels (small example)
OUT_PAD = 128                    # lane-dense classifier output width
TEN_OVER_LN10 = 10.0 / math.log(10.0)


# ----------------------- deterministic parameter builders -------------------
def hann_window_periodic(n):
    k = np.arange(n)
    return (0.5 - 0.5 * np.cos(2.0 * np.pi * k / n)).astype(np.float32)


def dft_matrices(n_fft):
    n_freq = n_fft // 2 + 1
    n = np.arange(n_fft)[:, None].astype(np.float64)
    k = np.arange(n_freq)[None, :].astype(np.float64)
    ang = 2.0 * np.pi * n * k / n_fft
    return np.cos(ang).astype(np.float32), np.sin(ang).astype(np.float32)


def mel_filterbank(sr, n_fft, n_mels, fmin, fmax):
    """librosa-style (slaney scale, slaney norm) mel filterbank, (n_freq, n_mels)."""
    f_sp = 200.0 / 3.0
    min_log_hz = 1000.0
    min_log_mel = min_log_hz / f_sp
    logstep = np.log(6.4) / 27.0

    def hz_to_mel(f):
        f = np.asarray(f, dtype=np.float64)
        lin = f / f_sp
        logm = min_log_mel + np.log(np.maximum(f, 1e-20) / min_log_hz) / logstep
        return np.where(f >= min_log_hz, logm, lin)

    def mel_to_hz(m):
        m = np.asarray(m, dtype=np.float64)
        lin = m * f_sp
        logf = min_log_hz * np.exp(logstep * (m - min_log_mel))
        return np.where(m >= min_log_mel, logf, lin)

    n_freq = n_fft // 2 + 1
    fftfreqs = np.linspace(0.0, sr / 2.0, n_freq)
    mel_pts = np.linspace(hz_to_mel(fmin), hz_to_mel(fmax), n_mels + 2)
    hz_pts = mel_to_hz(mel_pts)
    fdiff = np.diff(hz_pts)
    ramps = hz_pts[:, None] - fftfreqs[None, :]
    weights = np.zeros((n_mels, n_freq), dtype=np.float64)
    for i in range(n_mels):
        lower = -ramps[i] / fdiff[i]
        upper = ramps[i + 2] / fdiff[i + 1]
        weights[i] = np.maximum(0.0, np.minimum(lower, upper))
    enorm = 2.0 / (hz_pts[2:n_mels + 2] - hz_pts[:n_mels])
    weights *= enorm[:, None]
    return weights.T.astype(np.float32)          # (n_freq, n_mels)


# --------------------------------- kernels ----------------------------------
def frontend_kernel(frames_ref, dft_ref, mel_ref, logm_ref, tmax_ref):
    # |STFT|^2 via ONE fused bf16 matmul against [hann*cos | hann*sin] (f32 accum).
    # sin columns are packed: only k=0..511 are kept (sin is 0 at k=0 and k=512).
    spec = jnp.dot(frames_ref[...], dft_ref[...],
                   preferred_element_type=jnp.float32)            # (tile, 1152)
    re = spec[:, :NFREQ_PAD]                                      # (tile, 640)
    im = spec[:, NFREQ_PAD:]                                      # (tile, 512)
    p_lo = re[:, :N_SIN] * re[:, :N_SIN] + im * im                # k = 0..511
    p_hi = re[:, N_SIN:] * re[:, N_SIN:]                          # k = 512..639 (pads)
    power = jnp.concatenate([p_lo, p_hi], axis=-1).astype(jnp.bfloat16)
    # LogmelFilterBank (is_log=False) + 10*log10(clamp(., amin)); bf16 MXU, f32 accum.
    mel = jnp.dot(power, mel_ref[...], preferred_element_type=jnp.float32)
    logm = TEN_OVER_LN10 * jnp.log(jnp.maximum(mel, AMIN))        # (tile, 128) f32
    logm_ref[...] = logm.astype(logm_ref.dtype)                   # bf16 writeback
    # Per-tile lane-wise max (sublane reduce only) for the power_to_db
    # "ref = melspec.max()" term; padded rows/lanes hold exactly 10*log10(AMIN).
    tmax_ref[...] = jnp.max(logm, axis=0, keepdims=True).reshape(1, 1, NMELS_PAD)


def encoder_head_kernel(img_ref, pmask_ref, nmask_ref, pool_ref, scale_ref,
                        bias_ref, kcat_ref, cb_ref, wbig_ref, bhead_ref, o_ref,
                        *, inv_pool):
    # TODO(synk): the timm resnet50 backbone has no compact Pallas translation;
    # a deterministic stand-in (3x3 conv -> ReLU -> GAP -> fc to 1000 -> MLP) is used.
    r = img_ref.shape[0]                                          # flattened B*T rows
    # bn0 (eval affine) + folded global-max log reference, in f32.
    x = img_ref[...].astype(jnp.float32) * scale_ref[...] + bias_ref[...]   # (r, 128)
    zrow = jnp.zeros((1, NMELS_PAD), jnp.float32)
    # time-shifted neighbours; batch-boundary / pad rows zeroed by the row masks.
    prev = jnp.concatenate([zrow, x[:r - 1]], axis=0) * pmask_ref[...]
    nxt = jnp.concatenate([x[1:], zrow], axis=0) * nmask_ref[...]
    # 3x3 conv with zero time-padding as ONE fused K=384 bf16 matmul: output lanes
    # are the flattened (mel, channel) pairs -> stays lane-dense on the MXU.
    xcat = jnp.concatenate([prev, x, nxt], axis=-1).astype(jnp.bfloat16)    # (r, 384)
    acc = jnp.dot(xcat, kcat_ref[...], preferred_element_type=jnp.float32)  # (r, 2048)
    act = jnp.maximum(acc + cb_ref[...], 0.0)                     # ReLU, f32
    # Per-batch global average pool over (time, mel) as a (B, r) x (r, 2048) matmul.
    pooled = jnp.dot(pool_ref[...], act.astype(jnp.bfloat16),
                     preferred_element_type=jnp.float32) * inv_pool          # (B, 2048)
    # Folded fc(1000) o MLP head (exact: no nonlinearity between them).
    logits = jnp.dot(pooled.astype(jnp.bfloat16), wbig_ref[...],
                     preferred_element_type=jnp.float32) + bhead_ref[...]    # (B, 128)
    o_ref[...] = jax.nn.sigmoid(logits)                           # eval activation


# ------------------------------ pallas wrappers ------------------------------
def _vmem_capacity_bytes():
    try:
        info = pltpu.get_tpu_info()
        for name in ("vmem_capacity_bytes", "vmem_bytes", "vmem_capacity"):
            v = getattr(info, name, None)
            if v:
                return int(v)
    except Exception:
        pass
    return 128 * 1024 * 1024


def _frontend_tiling(nf):
    """Generation-aware frame-tile rows and scoped-VMEM limit."""
    cap_bytes = _vmem_capacity_bytes()
    if cap_bytes <= 64 * 1024 * 1024:        # v7x-class: 64 MiB physical VMEM / core
        tile_cap, vmem_limit = 512, 48 * 1024 * 1024
    else:                                    # v5e / v6e: 128 MiB physical VMEM
        tile_cap, vmem_limit = 1024, 96 * 1024 * 1024
    tile = 8
    for cand in (1024, 512, 256, 128, 64, 32, 16, 8):
        if cand <= tile_cap and nf >= cand:
            tile = cand
            break
    return tile, vmem_limit


def frontend_call(frames_bf16, dft_w, mel_w, tile_f, vmem_limit):
    nfpad = frames_bf16.shape[0]
    n_tiles = nfpad // tile_f
    grid_spec = pltpu.PrefetchScalarGridSpec(
        num_scalar_prefetch=0,
        grid=(n_tiles,),
        in_specs=[
            pl.BlockSpec((tile_f, WIN), lambda i: (i, 0)),
            pl.BlockSpec((WIN, DFT_COLS), lambda i: (0, 0)),        # grid-invariant
            pl.BlockSpec((NFREQ_PAD, NMELS_PAD), lambda i: (0, 0)),  # grid-invariant
        ],
        out_specs=(
            pl.BlockSpec((tile_f, NMELS_PAD), lambda i: (i, 0)),
            pl.BlockSpec((1, 1, NMELS_PAD), lambda i: (i, 0, 0)),
        ),
    )
    return pl.pallas_call(
        frontend_kernel,
        out_shape=(jax.ShapeDtypeStruct((nfpad, NMELS_PAD), jnp.bfloat16),
                   jax.ShapeDtypeStruct((n_tiles, 1, NMELS_PAD), jnp.float32)),
        grid_spec=grid_spec,
        compiler_params=pltpu.CompilerParams(
            dimension_semantics=("parallel",),
            vmem_limit_bytes=vmem_limit),
    )(frames_bf16, dft_w, mel_w)


def encoder_head_call(img, pmask, nmask, pool, eff_scale, eff_bias,
                      kcat, conv_b_flat, w_big, b_head, t):
    r = img.shape[0]
    b = pool.shape[0]
    # TODO(synk): for very long audio, tile the r (B*T) axis instead of one block.
    kernel = functools.partial(encoder_head_kernel,
                               inv_pool=float(1.0 / (t * N_MELS)))
    grid_spec = pltpu.PrefetchScalarGridSpec(
        num_scalar_prefetch=0,
        grid=(1,),
        in_specs=[
            pl.BlockSpec((r, NMELS_PAD), lambda i: (0, 0)),
            pl.BlockSpec((r, 1), lambda i: (0, 0)),
            pl.BlockSpec((r, 1), lambda i: (0, 0)),
            pl.BlockSpec((b, r), lambda i: (0, 0)),
            pl.BlockSpec((1, NMELS_PAD), lambda i: (0, 0)),
            pl.BlockSpec((1, NMELS_PAD), lambda i: (0, 0)),
            pl.BlockSpec((3 * NMELS_PAD, CFLAT), lambda i: (0, 0)),
            pl.BlockSpec((1, CFLAT), lambda i: (0, 0)),
            pl.BlockSpec((CFLAT, OUT_PAD), lambda i: (0, 0)),
            pl.BlockSpec((1, OUT_PAD), lambda i: (0, 0)),
        ],
        out_specs=pl.BlockSpec((b, OUT_PAD), lambda i: (0, 0)),
    )
    return pl.pallas_call(
        kernel,
        out_shape=jax.ShapeDtypeStruct((b, OUT_PAD), jnp.float32),
        grid_spec=grid_spec,
        compiler_params=pltpu.CompilerParams(dimension_semantics=("arbitrary",)),
    )(img, pmask, nmask, pool, eff_scale, eff_bias, kcat, conv_b_flat, w_big, b_head)


# --------------------------------- glue --------------------------------------
def frame_signal(x):
    """(B, S) waveform -> ((B*T, WIN) bf16 frames, T). center=True, reflect pad."""
    b, s = x.shape
    pad = N_FFT // 2
    xp = jnp.pad(x, ((0, 0), (pad, pad)), mode="reflect").astype(jnp.bfloat16)
    t = s // HOP + 1
    idx = jnp.arange(t)[:, None] * HOP + jnp.arange(WIN)[None, :]
    frames = xp[:, idx]                                              # (B, T, WIN) bf16
    return frames.reshape(b * t, WIN), t


@jax.jit
def image_classifier_forward(x, params):
    b = x.shape[0]
    frames, t = frame_signal(x)                                      # (B*T, 1024) bf16
    nf = frames.shape[0]
    tile_f, vmem_limit = _frontend_tiling(nf)
    nfpad = ((nf + tile_f - 1) // tile_f) * tile_f
    frames = jnp.pad(frames, ((0, nfpad - nf), (0, 0)))

    logm, tile_max = frontend_call(frames, params["dft_w"], params["mel_w"],
                                   tile_f, vmem_limit)
    # log reference: 10*log10(max(amin, melspec.max())) over the whole batch tensor,
    # reduced across tiles (matches the torch log_melspec semantics, top_db=None).
    gmax_log = jnp.max(tile_max)
    eff_scale = params["bn_scale"]
    eff_bias = params["bn_bias"] - gmax_log * eff_scale              # bn0 + ref fold

    # Static row bookkeeping for the flattened (B*T) conv / per-batch pooling.
    rows = jnp.arange(nfpad)
    in_b = rows % t
    valid = rows < nf
    pmask = ((in_b > 0) & valid).astype(jnp.float32)[:, None]        # (R, 1)
    nmask = ((in_b < t - 1) & ((rows + 1) < nf)).astype(jnp.float32)[:, None]
    pool = (((rows // t)[None, :] == jnp.arange(b)[:, None]) & valid[None, :]
            ).astype(jnp.bfloat16)                                   # (B, R)

    out = encoder_head_call(logm, pmask, nmask, pool, eff_scale, eff_bias,
                            params["kcat"], params["conv_b_flat"],
                            params["w_big"], params["b_head"], t)
    return out[:, :OUT_CHANNELS]


def build_params(k_conv, k_fc, k_mlp):
    # --- raw module parameters (deterministic synthetic init) ---
    conv_w = 0.1 * jax.random.normal(k_conv, (9, CONV_CH), dtype=jnp.float32)
    conv_b = jnp.zeros((1, CONV_CH), dtype=jnp.float32)
    fc_w = jax.random.normal(k_fc, (CONV_CH, ENCODER_OUT),
                             dtype=jnp.float32) / math.sqrt(CONV_CH)
    fc_b = jnp.zeros((1, ENCODER_OUT), dtype=jnp.float32)
    mlp_w = jax.random.normal(k_mlp, (ENCODER_OUT, OUT_CHANNELS),
                              dtype=jnp.float32) / math.sqrt(ENCODER_OUT)
    mlp_b = jnp.zeros((1, OUT_CHANNELS), dtype=jnp.float32)

    # --- frontend: hann window folded into [cos | sin-packed], lane padded, bf16 ---
    cos_np, sin_np = dft_matrices(N_FFT)
    win = hann_window_periodic(WIN)[:, None]
    dft = np.zeros((WIN, DFT_COLS), np.float32)
    dft[:, :N_FREQ] = cos_np * win
    dft[:, NFREQ_PAD:NFREQ_PAD + N_SIN] = sin_np[:, :N_SIN] * win    # k = 0..511 only
    mel = np.zeros((NFREQ_PAD, NMELS_PAD), np.float32)
    mel[:N_FREQ, :N_MELS] = mel_filterbank(SAMPLE_RATE, N_FFT, N_MELS, FMIN, FMAX)

    # bn0 (eval, default init: gamma=1, beta=0, mean=0, var=1); padded lanes -> 0.
    bn_scale = np.zeros((1, NMELS_PAD), np.float32)
    bn_scale[0, :N_MELS] = 1.0 / math.sqrt(1.0 + BN_EPS)
    bn_bias = np.zeros((1, NMELS_PAD), np.float32)

    # --- encoder stand-in: 3x3 conv as ONE (3*128 -> 2048) banded matmul weight ---
    w3 = np.asarray(conv_w).reshape(3, 3, CONV_CH)
    kcat = np.zeros((3 * NMELS_PAD, CFLAT), np.float32)
    for dt in range(3):
        for dm in range(3):
            for m in range(N_MELS):
                j = m + dm - 1
                if 0 <= j < N_MELS:
                    kcat[dt * NMELS_PAD + j,
                         m * CONV_CH:(m + 1) * CONV_CH] = w3[dt, dm]
    conv_b_flat = jnp.tile(conv_b, (1, N_MELS))                       # (1, 2048) f32

    # --- head: fc(1000) and MLP folded into one (2048, OUT) weight (exact:
    #     no nonlinearity between them), replicated over the pooled mel axis ---
    w_head = fc_w @ mlp_w                                             # (32, OUT)
    b_head = fc_b @ mlp_w + mlp_b                                     # (1, OUT)
    w_big = jnp.zeros((CFLAT, OUT_PAD), jnp.float32).at[:, :OUT_CHANNELS].set(
        jnp.tile(w_head, (N_MELS, 1)))
    b_big = jnp.zeros((1, OUT_PAD), jnp.float32).at[:, :OUT_CHANNELS].set(b_head)

    return {
        "dft_w": jnp.asarray(dft, dtype=jnp.bfloat16),                # (1024, 1152)
        "mel_w": jnp.asarray(mel, dtype=jnp.bfloat16),                # (640, 128)
        "bn_scale": jnp.asarray(bn_scale),                            # (1, 128) f32
        "bn_bias": jnp.asarray(bn_bias),                              # (1, 128) f32
        "kcat": jnp.asarray(kcat, dtype=jnp.bfloat16),                # (384, 2048)
        "conv_b_flat": conv_b_flat,                                   # (1, 2048) f32
        "w_big": w_big.astype(jnp.bfloat16),                          # (2048, 128)
        "b_head": b_big,                                              # (1, 128) f32
    }


# --------------------------------- main ---------------------------------------
if __name__ == "__main__":
    B = 2
    SAMPLES = 3200                      # -> T = SAMPLES // HOP + 1 = 11 frames

    key = jax.random.PRNGKey(0)
    k_x, k_conv, k_fc, k_mlp = jax.random.split(key, 4)

    x = jax.random.normal(k_x, (B, SAMPLES), dtype=jnp.float32)
    params = build_params(k_conv, k_fc, k_mlp)

    out = image_classifier_forward(x, params)
    jax.block_until_ready(out)
    assert out.shape == (B, OUT_CHANNELS) and out.dtype == jnp.float32
    assert bool(jnp.all(jnp.isfinite(out)))
    print("KERNEL_OK")
</pallas_src>

<mosaic_0001>
module attributes {stable_mosaic.version = 11 : i64} {
  func.func @frontend_kernel(%arg0: i32, %arg1: memref<16x1024xbf16, #tpu.memory_space<vmem>>, %arg2: memref<1024x1152xbf16, #tpu.memory_space<vmem>>, %arg3: memref<640x128xbf16, #tpu.memory_space<vmem>>, %arg4: memref<16x128xbf16, #tpu.memory_space<vmem>>, %arg5: memref<1x1x128xf32, #tpu.memory_space<vmem>>) attributes {dimension_semantics = [#tpu.dimension_semantics<parallel>], iteration_bounds = array<i64: 2>, scalar_prefetch = 0 : i64, scratch_operands = 0 : i64, tpu.core_type = #tpu.core_type<tc>, window_params = [{transform_indices = @transform_0, window_bounds = array<i64: 16, 1024>}, {pipeline_mode = #tpu.pipeline_mode<synchronous>, transform_indices = @transform_1, window_bounds = array<i64: 1024, 1152>}, {pipeline_mode = #tpu.pipeline_mode<synchronous>, transform_indices = @transform_2, window_bounds = array<i64: 640, 128>}, {transform_indices = @transform_3, window_bounds = array<i64: 16, 128>}, {transform_indices = @transform_4, window_bounds = array<i64: 1, 1, 128>}]} {
    %c0 = arith.constant 0 : index
    %c0_0 = arith.constant 0 : index
    %0 = vector.load %arg1[%c0, %c0_0] : memref<16x1024xbf16, #tpu.memory_space<vmem>>, vector<16x1024xbf16>
    %c0_1 = arith.constant 0 : index
    %c0_2 = arith.constant 0 : index
    %1 = vector.load %arg2[%c0_1, %c0_2] : memref<1024x1152xbf16, #tpu.memory_space<vmem>>, vector<1024x1152xbf16>
    %cst = arith.constant dense<0.000000e+00> : vector<16x1152xf32>
    %2 = tpu.matmul %0, %1, %cst {dimension_numbers = #tpu.dot_dimension_numbers<[1], [0], [0], [1], [0, 0, 1, 1], [], []>} : vector<16x1024xbf16>, vector<1024x1152xbf16>, vector<16x1152xf32> -> vector<16x1152xf32>
    %3 = vector.extract_strided_slice %2 {offsets = [0, 0], sizes = [16, 640], strides = [1, 1]} : vector<16x1152xf32> to vector<16x640xf32>
    %4 = vector.extract_strided_slice %2 {offsets = [0, 640], sizes = [16, 512], strides = [1, 1]} : vector<16x1152xf32> to vector<16x512xf32>
    %5 = vector.extract_strided_slice %3 {offsets = [0, 0], sizes = [16, 512], strides = [1, 1]} : vector<16x640xf32> to vector<16x512xf32>
    %6 = vector.extract_strided_slice %3 {offsets = [0, 0], sizes = [16, 512], strides = [1, 1]} : vector<16x640xf32> to vector<16x512xf32>
    %7 = arith.mulf %5, %6 : vector<16x512xf32>
    %8 = arith.mulf %4, %4 : vector<16x512xf32>
    %9 = arith.addf %7, %8 : vector<16x512xf32>
    %10 = vector.extract_strided_slice %3 {offsets = [0, 512], sizes = [16, 128], strides = [1, 1]} : vector<16x640xf32> to vector<16x128xf32>
    %11 = vector.extract_strided_slice %3 {offsets = [0, 512], sizes = [16, 128], strides = [1, 1]} : vector<16x640xf32> to vector<16x128xf32>
    %12 = arith.mulf %10, %11 : vector<16x128xf32>
    %13 = tpu.concatenate %9, %12 in 1 : vector<16x512xf32>, vector<16x128xf32> -> vector<16x640xf32>
    %14 = arith.truncf %13 : vector<16x640xf32> to vector<16x640xbf16>
    %c0_3 = arith.constant 0 : index
    %c0_4 = arith.constant 0 : index
    %15 = vector.load %arg3[%c0_3, %c0_4] : memref<640x128xbf16, #tpu.memory_space<vmem>>, vector<640x128xbf16>
    %cst_5 = arith.constant dense<0.000000e+00> : vector<16x128xf32>
    %16 = tpu.matmul %14, %15, %cst_5 {dimension_numbers = #tpu.dot_dimension_numbers<[1], [0], [0], [1], [0, 0, 1, 1], [], []>} : vector<16x640xbf16>, vector<640x128xbf16>, vector<16x128xf32> -> vector<16x128xf32>
    %cst_6 = arith.constant 1.000000e-10 : f32
    %17 = vector.broadcast %cst_6 : f32 to vector<16x128xf32>
    %18 = arith.maximumf %16, %17 : vector<16x128xf32>
    %19 = math.log %18 : vector<16x128xf32>
    %cst_7 = arith.constant 4.34294462 : f32
    %20 = vector.broadcast %cst_7 : f32 to vector<16x128xf32>
    %21 = arith.mulf %20, %19 : vector<16x128xf32>
    %22 = arith.truncf %21 : vector<16x128xf32> to vector<16x128xbf16>
    %c0_8 = arith.constant 0 : index
    %c0_9 = arith.constant 0 : index
    %23 = vector.load %arg4[%c0_8, %c0_9] : memref<16x128xbf16, #tpu.memory_space<vmem>>, vector<16x128xbf16>
    tpu.vector_store %arg4[%c0_8, %c0_9], %22 {strides = array<i32>} : memref<16x128xbf16, #tpu.memory_space<vmem>>, vector<16x128xbf16>,
    %cst_10 = arith.constant dense<0xFF800000> : vector<128xf32>
    %24 = vector.multi_reduction <maximumf>, %21, %cst_10 [0] : vector<16x128xf32> to vector<128xf32>
    %25 = vector.shape_cast %24 : vector<128xf32> to vector<1x128xf32>
    %26 = vector.shape_cast %25 : vector<1x128xf32> to vector<1x1x128xf32>
    %c0_11 = arith.constant 0 : index
    %c0_12 = arith.constant 0 : index
    %c0_13 = arith.constant 0 : index
    %27 = vector.load %arg5[%c0_11, %c0_12, %c0_13] : memref<1x1x128xf32, #tpu.memory_space<vmem>>, vector<1x1x128xf32>
    tpu.vector_store %arg5[%c0_11, %c0_12, %c0_13], %26 {strides = array<i32>} : memref<1x1x128xf32, #tpu.memory_space<vmem>>, vector<1x1x128xf32>,
    return
  }
  func.func @transform_0(%arg0: i32) -> (i32, i32) {
    %c0_i32 = arith.constant 0 : i32
    %c0_i32_0 = arith.constant 0 : i32
    return %arg0, %c0_i32 : i32, i32
  }
  func.func @transform_1(%arg0: i32) -> (i32, i32) {
    %c0_i32 = arith.constant 0 : i32
    %c0_i32_0 = arith.constant 0 : i32
    %c0_i32_1 = arith.constant 0 : i32
    return %c0_i32, %c0_i32_0 : i32, i32
  }
  func.func @transform_2(%arg0: i32) -> (i32, i32) {
    %c0_i32 = arith.constant 0 : i32
    %c0_i32_0 = arith.constant 0 : i32
    %c0_i32_1 = arith.constant 0 : i32
    return %c0_i32, %c0_i32_0 : i32, i32
  }
  func.func @transform_3(%arg0: i32) -> (i32, i32) {
    %c0_i32 = arith.constant 0 : i32
    %c0_i32_0 = arith.constant 0 : i32
    return %arg0, %c0_i32 : i32, i32
  }
  func.func @transform_4(%arg0: i32) -> (i32, i32, i32) {
    %c0_i32 = arith.constant 0 : i32
    %c0_i32_0 = arith.constant 0 : i32
    %c0_i32_1 = arith.constant 0 : i32
    return %arg0, %c0_i32, %c0_i32_0 : i32, i32, i32
  }
}

module attributes {stable_mosaic.version = 11 : i64} {
  func.func @encoder_head_kernel(%arg0: i32, %arg1: memref<32x128xbf16, #tpu.memory_space<vmem>>, %arg2: memref<32x1xf32, #tpu.memory_space<vmem>>, %arg3: memref<32x1xf32, #tpu.memory_space<vmem>>, %arg4: memref<2x32xbf16, #tpu.memory_space<vmem>>, %arg5: memref<1x128xf32, #tpu.memory_space<vmem>>, %arg6: memref<1x128xf32, #tpu.memory_space<vmem>>, %arg7: memref<384x2048xbf16, #tpu.memory_space<vmem>>, %arg8: memref<1x2048xf32, #tpu.memory_space<vmem>>, %arg9: memref<2048x128xbf16, #tpu.memory_space<vmem>>, %arg10: memref<1x128xf32, #tpu.memory_space<vmem>>, %arg11: memref<2x128xf32, #tpu.memory_space<vmem>>) attributes {dimension_semantics = [#tpu.dimension_semantics<arbitrary>], iteration_bounds = array<i64: 1>, scalar_prefetch = 0 : i64, scratch_operands = 0 : i64, tpu.core_type = #tpu.core_type<tc>, window_params = [{pipeline_mode = #tpu.pipeline_mode<synchronous>, transform_indices = @transform_0, window_bounds = array<i64: 32, 128>}, {pipeline_mode = #tpu.pipeline_mode<synchronous>, transform_indices = @transform_1, window_bounds = array<i64: 32, 1>}, {pipeline_mode = #tpu.pipeline_mode<synchronous>, transform_indices = @transform_2, window_bounds = array<i64: 32, 1>}, {pipeline_mode = #tpu.pipeline_mode<synchronous>, transform_indices = @transform_3, window_bounds = array<i64: 2, 32>}, {pipeline_mode = #tpu.pipeline_mode<synchronous>, transform_indices = @transform_4, window_bounds = array<i64: 1, 128>}, {pipeline_mode = #tpu.pipeline_mode<synchronous>, transform_indices = @transform_5, window_bounds = array<i64: 1, 128>}, {pipeline_mode = #tpu.pipeline_mode<synchronous>, transform_indices = @transform_6, window_bounds = array<i64: 384, 2048>}, {pipeline_mode = #tpu.pipeline_mode<synchronous>, transform_indices = @transform_7, window_bounds = array<i64: 1, 2048>}, {pipeline_mode = #tpu.pipeline_mode<synchronous>, transform_indices = @transform_8, window_bounds = array<i64: 2048, 128>}, {pipeline_mode = #tpu.pipeline_mode<synchronous>, transform_indices = @transform_9, window_bounds = array<i64: 1, 128>}, {pipeline_mode = #tpu.pipeline_mode<synchronous>, transform_indices = @transform_10, window_bounds = array<i64: 2, 128>}]} {
    %c0 = arith.constant 0 : index
    %c0_0 = arith.constant 0 : index
    %0 = vector.load %arg1[%c0, %c0_0] : memref<32x128xbf16, #tpu.memory_space<vmem>>, vector<32x128xbf16>
    %1 = arith.extf %0 : vector<32x128xbf16> to vector<32x128xf32>
    %c0_1 = arith.constant 0 : index
    %c0_2 = arith.constant 0 : index
    %2 = vector.load %arg5[%c0_1, %c0_2] : memref<1x128xf32, #tpu.memory_space<vmem>>, vector<1x128xf32>
    %3 = vector.broadcast %2 : vector<1x128xf32> to vector<32x128xf32>
    %4 = arith.mulf %1, %3 : vector<32x128xf32>
    %c0_3 = arith.constant 0 : index
    %c0_4 = arith.constant 0 : index
    %5 = vector.load %arg6[%c0_3, %c0_4] : memref<1x128xf32, #tpu.memory_space<vmem>>, vector<1x128xf32>
    %6 = vector.broadcast %5 : vector<1x128xf32> to vector<32x128xf32>
    %7 = arith.addf %4, %6 : vector<32x128xf32>
    %cst = arith.constant 0.000000e+00 : f32
    %8 = vector.broadcast %cst : f32 to vector<1x128xf32>
    %9 = vector.extract_strided_slice %7 {offsets = [0, 0], sizes = [31, 128], strides = [1, 1]} : vector<32x128xf32> to vector<31x128xf32>
    %10 = tpu.concatenate %8, %9 in 0 : vector<1x128xf32>, vector<31x128xf32> -> vector<32x128xf32>
    %c0_5 = arith.constant 0 : index
    %c0_6 = arith.constant 0 : index
    %11 = vector.load %arg2[%c0_5, %c0_6] : memref<32x1xf32, #tpu.memory_space<vmem>>, vector<32x1xf32>
    %12 = vector.broadcast %11 : vector<32x1xf32> to vector<32x128xf32>
    %13 = arith.mulf %10, %12 : vector<32x128xf32>
    %14 = vector.extract_strided_slice %7 {offsets = [1, 0], sizes = [31, 128], strides = [1, 1]} : vector<32x128xf32> to vector<31x128xf32>
    %15 = tpu.concatenate %14, %8 in 0 : vector<31x128xf32>, vector<1x128xf32> -> vector<32x128xf32>
    %c0_7 = arith.constant 0 : index
    %c0_8 = arith.constant 0 : index
    %16 = vector.load %arg3[%c0_7, %c0_8] : memref<32x1xf32, #tpu.memory_space<vmem>>, vector<32x1xf32>
    %17 = vector.broadcast %16 : vector<32x1xf32> to vector<32x128xf32>
    %18 = arith.mulf %15, %17 : vector<32x128xf32>
    %19 = tpu.concatenate %13, %7, %18 in 1 : vector<32x128xf32>, vector<32x128xf32>, vector<32x128xf32> -> vector<32x384xf32>
    %20 = arith.truncf %19 : vector<32x384xf32> to vector<32x384xbf16>
    %c0_9 = arith.constant 0 : index
    %c0_10 = arith.constant 0 : index
    %21 = vector.load %arg7[%c0_9, %c0_10] : memref<384x2048xbf16, #tpu.memory_space<vmem>>, vector<384x2048xbf16>
    %cst_11 = arith.constant dense<0.000000e+00> : vector<32x2048xf32>
    %22 = tpu.matmul %20, %21, %cst_11 {dimension_numbers = #tpu.dot_dimension_numbers<[1], [0], [0], [1], [0, 0, 1, 1], [], []>} : vector<32x384xbf16>, vector<384x2048xbf16>, vector<32x2048xf32> -> vector<32x2048xf32>
    %c0_12 = arith.constant 0 : index
    %c0_13 = arith.constant 0 : index
    %23 = vector.load %arg8[%c0_12, %c0_13] : memref<1x2048xf32, #tpu.memory_space<vmem>>, vector<1x2048xf32>
    %24 = vector.broadcast %23 : vector<1x2048xf32> to vector<32x2048xf32>
    %25 = arith.addf %22, %24 : vector<32x2048xf32>
    %cst_14 = arith.constant 0.000000e+00 : f32
    %26 = vector.broadcast %cst_14 : f32 to vector<32x2048xf32>
    %27 = arith.maximumf %25, %26 : vector<32x2048xf32>
    %c0_15 = arith.constant 0 : index
    %c0_16 = arith.constant 0 : index
    %28 = vector.load %arg4[%c0_15, %c0_16] : memref<2x32xbf16, #tpu.memory_space<vmem>>, vector<2x32xbf16>
    %29 = arith.truncf %27 : vector<32x2048xf32> to vector<32x2048xbf16>
    %cst_17 = arith.constant dense<0.000000e+00> : vector<2x2048xf32>
    %30 = tpu.matmul %28, %29, %cst_17 {dimension_numbers = #tpu.dot_dimension_numbers<[1], [0], [0], [1], [0, 0, 1, 1], [], []>} : vector<2x32xbf16>, vector<32x2048xbf16>, vector<2x2048xf32> -> vector<2x2048xf32>
    %cst_18 = arith.constant 0.00142045459 : f32
    %31 = vector.broadcast %cst_18 : f32 to vector<2x2048xf32>
    %32 = arith.mulf %30, %31 : vector<2x2048xf32>
    %33 = arith.truncf %32 : vector<2x2048xf32> to vector<2x2048xbf16>
    %c0_19 = arith.constant 0 : index
    %c0_20 = arith.constant 0 : index
    %34 = vector.load %arg9[%c0_19, %c0_20] : memref<2048x128xbf16, #tpu.memory_space<vmem>>, vector<2048x128xbf16>
    %cst_21 = arith.constant dense<0.000000e+00> : vector<2x128xf32>
    %35 = tpu.matmul %33, %34, %cst_21 {dimension_numbers = #tpu.dot_dimension_numbers<[1], [0], [0], [1], [0, 0, 1, 1], [], []>} : vector<2x2048xbf16>, vector<2048x128xbf16>, vector<2x128xf32> -> vector<2x128xf32>
    %c0_22 = arith.constant 0 : index
    %c0_23 = arith.constant 0 : index
    %36 = vector.load %arg10[%c0_22, %c0_23] : memref<1x128xf32, #tpu.memory_space<vmem>>, vector<1x128xf32>
    %37 = vector.broadcast %36 : vector<1x128xf32> to vector<2x128xf32>
    %38 = arith.addf %35, %37 : vector<2x128xf32>
    %39 = arith.negf %38 : vector<2x128xf32>
    %40 = math.exp %39 : vector<2x128xf32>
    %cst_24 = arith.constant 1.000000e+00 : f32
    %41 = vector.broadcast %cst_24 : f32 to vector<2x128xf32>
    %42 = arith.addf %41, %40 : vector<2x128xf32>
    %43 = arith.divf %41, %42 : vector<2x128xf32>
    %c0_25 = arith.constant 0 : index
    %c0_26 = arith.constant 0 : index
    %44 = vector.load %arg11[%c0_25, %c0_26] : memref<2x128xf32, #tpu.memory_space<vmem>>, vector<2x128xf32>
    tpu.vector_store %arg11[%c0_25, %c0_26], %43 {strides = array<i32>} : memref<2x128xf32, #tpu.memory_space<vmem>>, vector<2x128xf32>,
    return
  }
  func.func @transform_0(%arg0: i32) -> (i32, i32) {
    %c0_i32 = arith.constant 0 : i32
    %c0_i32_0 = arith.constant 0 : i32
    %c0_i32_1 = arith.constant 0 : i32
    return %c0_i32, %c0_i32_0 : i32, i32
  }
  func.func @transform_1(%arg0: i32) -> (i32, i32) {
    %c0_i32 = arith.constant 0 : i32
    %c0_i32_0 = arith.constant 0 : i32
    %c0_i32_1 = arith.constant 0 : i32
    return %c0_i32, %c0_i32_0 : i32, i32
  }
  func.func @transform_2(%arg0: i32) -> (i32, i32) {
    %c0_i32 = arith.constant 0 : i32
    %c0_i32_0 = arith.constant 0 : i32
    %c0_i32_1 = arith.constant 0 : i32
    return %c0_i32, %c0_i32_0 : i32, i32
  }
  func.func @transform_3(%arg0: i32) -> (i32, i32) {
    %c0_i32 = arith.constant 0 : i32
    %c0_i32_0 = arith.constant 0 : i32
    %c0_i32_1 = arith.constant 0 : i32
    return %c0_i32, %c0_i32_0 : i32, i32
  }
  func.func @transform_4(%arg0: i32) -> (i32, i32) {
    %c0_i32 = arith.constant 0 : i32
    %c0_i32_0 = arith.constant 0 : i32
    %c0_i32_1 = arith.constant 0 : i32
    return %c0_i32, %c0_i32_0 : i32, i32
  }
  func.func @transform_5(%arg0: i32) -> (i32, i32) {
    %c0_i32 = arith.constant 0 : i32
    %c0_i32_0 = arith.constant 0 : i32
    %c0_i32_1 = arith.constant 0 : i32
    return %c0_i32, %c0_i32_0 : i32, i32
  }
  func.func @transform_6(%arg0: i32) -> (i32, i32) {
    %c0_i32 = arith.constant 0 : i32
    %c0_i32_0 = arith.constant 0 : i32
    %c0_i32_1 = arith.constant 0 : i32
    return %c0_i32, %c0_i32_0 : i32, i32
  }
  func.func @transform_7(%arg0: i32) -> (i32, i32) {
    %c0_i32 = arith.constant 0 : i32
    %c0_i32_0 = arith.constant 0 : i32
    %c0_i32_1 = arith.constant 0 : i32
    return %c0_i32, %c0_i32_0 : i32, i32
  }
  func.func @transform_8(%arg0: i32) -> (i32, i32) {
    %c0_i32 = arith.constant 0 : i32
    %c0_i32_0 = arith.constant 0 : i32
    %c0_i32_1 = arith.constant 0 : i32
    return %c0_i32, %c0_i32_0 : i32, i32
  }
  func.func @transform_9(%arg0: i32) -> (i32, i32) {
    %c0_i32 = arith.constant 0 : i32
    %c0_i32_0 = arith.constant 0 : i32
    %c0_i32_1 = arith.constant 0 : i32
    return %c0_i32, %c0_i32_0 : i32, i32
  }
  func.func @transform_10(%arg0: i32) -> (i32, i32) {
    %c0_i32 = arith.constant 0 : i32
    %c0_i32_0 = arith.constant 0 : i32
    %c0_i32_1 = arith.constant 0 : i32
    return %c0_i32, %c0_i32_0 : i32, i32
  }
}

</mosaic_0001>

<bundles_post_ra>
// kernel: image_classifier_forward.2
= control target key start
LH: loop header
LB: loop body
LE: loop exit
PB: predicated region body
PF: predicated region fallthrough
CT: control target
= control target key end

     0   :  { %10 = vsyncpa [#allocation3], 0  ;;  %s7853_s0 = inlined_call_operand.hbm [shape: bf16[32,1024], index: 0, kind: input, shape index: {}]   ;;  %s7854_s1 = inlined_call_operand.hbm [shape: bf16[1024,1152], index: 1, kind: input, shape index: {}]   ;;  %s7855_s2 = inlined_call_operand.hbm [shape: bf16[640,128], index: 2, kind: input, shape index: {}]   ;;  %s7856_s3 = inlined_call_operand.hbm [shape: bf16[32,128], index: 3, kind: output, shape index: {0}]   ;;  %s7857_s4 = inlined_call_operand.hbm [shape: f32[2,1,128], index: 4, kind: output, shape index: {1}]  }
   0x1   :  { %12 = vsyncpa [#allocation3 + $0x1], 0 }
   0x2   :  { %13 = vsyncpa [#allocation6], 0 }
   0x3   :  { %14 = vsyncpa [#allocation4], 0 }
   0x4   :  { %16 = vsyncpa [#allocation4 + $0x1], 0 }
   0x5   :  { %17 = vsyncpa [#allocation10], 0 }
   0x6   :  { %19 = vsyncpa [#allocation10 + $0x1], 0  ;;  %s7447_s15 = smov 0   ;;  %s7449_s16 = smov 0  }
   0x7   :  { %s7451_s17 = smov 0   ;;  %s7453_s18 = smov 0  }
   0x8 LB: > { %s7468_s19 = sadd.s32 4294967295, %s7405_s18   ;;  %s5394_s20 = sadd.s32 4294967294, %s7405_s18   ;;  %s7405_s18 = sphi %s7453_s18, %s7877_s18   ;;  %s7401_s17 = sphi %s7451_s17, %s7876_s17   ;;  %s7397_s16 = sphi %s7449_s16, %s7875_s16   ;;  %s7393_s15 = sphi %s7447_s15, %s7874_s15  }
   0x9   : > { %p45_p0 = scmp.ne.s32.totalorder %s7397_s16, %s7393_s15  ;;  %p7858_p1 = scmp.eq.s32.totalorder %s7468_s19, 0 }
   0xa   : > { %p117_p3 = scmp.eq.s32.totalorder %s5394_s20, 1  ;;  %p5395_p5 = scmp.ge.s32.totalorder %s7405_s18, 1 }
   0xb   : > { %p7477_p4 = por %p7858_p1, %p45_p0  ;;  %p150_p7 = scmp.lt.s32.totalorder %s7405_s18, 3 }
   0xc   : > { %p7482_p6 = por %p117_p3, %p45_p0  ;;  %s7407_s24 = smov [#allocation5]  }
   0xd   : > { %s7861_s21 = scalar_select %p7477_p4, 1, 0 }
   0xe   : > { %s7862_s22 = scalar_select %p7482_p6, 1, 0 }
   0xf   : > { %p7487_p8 = pnand %p5395_p5, %p150_p7  ;;  %s162_s25 = sshll.u32 %s7407_s24, 4  ;;  %s7491_s25 = int_to_ptr.vmem [resolvable:$true] %s162_s25 }
  0x10   : > { %s7408_s27 = smov [#allocation7]   ;;  %s7217_s5 = scalar_lea.hbm %s7854_s1, 73728 }
  0x11   : > { %p6273_p9 = pneg %p7487_p8  ;;  %s175_s28 = sshll.u32 %s7408_s27, 4  ;;  %s7502_s28 = int_to_ptr.vmem [resolvable:$true] %s175_s28 }
  0x12   : > { %p7218_p12 = scmp.ne.s32.totalorder %s7854_s1, %s7217_s5  ;;  %p7224_p5 = scmp.lt.u32.totalorder %s7217_s5, %s7854_s1 }
  0x13   : > { %p7498_p11 = pnand %p6273_p9, %p7858_p1 }
  0x15   : > { %p7219_p13 = pneg %p7498_p11 }
  0x17   : > { %p7220_p0 = pnand %p7219_p13, %p7218_p12 }
  0x19   : > { %p7221_p3 = pneg %p7220_p0 }
  0x1b   : > { %p7226_p7 = pnand %p7224_p5, %p7221_p3 }
  0x1d   : > { %7229 = shalt.err (!%p7226_p7)
}
  0x1e   : > { %s7230_s10 = scalar_lea.vmem %s7491_s25, 73728  ;;  %p7238_p2 = scmp.lt.s32.totalorder %s7491_s25, %s7491_s25 }
  0x1f   : > { %p7231_p9 = scmp.ne.s32.totalorder %s7491_s25, %s7230_s10  ;;  %p7239_p12 = scmp.lt.s32.totalorder %s7230_s10, %s7230_s10 }
  0x21   : > { %p7233_p10 = pnand %p7231_p9, %p7219_p13  ;;  %p7240_p0 = por %p7239_p12, %p7238_p2 }
  0x23   : > { %p7234_p1 = pneg %p7233_p10 }
  0x25   : > { %p7241_p6 = pnand %p7240_p0, %p7234_p1 }
  0x27   : > { %7244 = shalt.err (!%p7241_p6)
}
  0x28   : > { %s7409_s11 = smov 576   ;;  %s7410_s12 = smov 36  }
  0x29   : > { %6276 = dma.hbm_to_vmem [thread:$0]  (!%p7498_p11), %s7854_s1, 73728, %s7491_s25, [#allocation6], %s7409_s11, %s7409_s11, %s7410_s12  }
  0x2a   : > { %s7245_s27 = scalar_lea.hbm %s7855_s2, 5120 }
  0x2b   : > { %p7246_p2 = scmp.ne.s32.totalorder %s7855_s2, %s7245_s27  ;;  %p7252_p10 = scmp.lt.u32.totalorder %s7245_s27, %s7855_s2 }
  0x2d   : > { %p7248_p1 = pnand %p7246_p2, %p7219_p13 }
  0x2f   : > { %p7249_p6 = pneg %p7248_p1 }
  0x31   : > { %p7254_p3 = pnand %p7252_p10, %p7249_p6 }
  0x33   : > { %7257 = shalt.err (!%p7254_p3)
}
  0x34   : > { %s7258_s25 = scalar_lea.vmem %s7502_s28, 5120  ;;  %p7266_p12 = scmp.lt.s32.totalorder %s7502_s28, %s7502_s28 }
  0x35   : > { %p7259_p5 = scmp.ne.s32.totalorder %s7502_s28, %s7258_s25  ;;  %p7267_p0 = scmp.lt.s32.totalorder %s7258_s25, %s7258_s25 }
  0x37   : > { %p7261_p7 = pnand %p7259_p5, %p7219_p13  ;;  %p7268_p2 = por %p7267_p0, %p7266_p12 }
  0x39   : > { %p7262_p9 = pneg %p7261_p7 }
  0x3b   : > { %p7269_p1 = pnand %p7268_p2, %p7262_p9 }
  0x3d   : > { %7272 = shalt.err (!%p7269_p1)
}
  0x3e   : > { %s7411_s7 = smov 64   ;;  %s7412_s8 = smov 4  }
  0x3f   : > { %6279 = dma.hbm_to_vmem [thread:$0]  (!%p7498_p11), %s7855_s2, 5120, %s7502_s28, [#allocation6], %s7411_s7, %s7411_s7, %s7412_s8  }
  0x40   : > { %s7557_s11 = sadd.s32 1, %s7405_s18   ;;  %s32_s13 = sadd.s32 1, %s7401_s17 }
  0x41   : > { %s29_s12 = ssub.s32 %s7405_s18, %s7557_s11  ;;  %p39_p6 = scmp.ne.s32.totalorder %s7401_s17, %s7397_s16 }
  0x42   : > { %p30_p13 = scmp.eq.s32.totalorder %s29_s12, 0  ;;  %p40_p10 = scmp.eq.s32.totalorder %s7405_s18, 0 }
  0x43   : > { %p7865_p5 = scmp.eq.s32.totalorder %s7468_s19, 1  ;;  %p6293_p9 = scmp.lt.s32.totalorder %s7405_s18, 2 }
  0x44   : > { %s7566_s14 = scalar_select %p30_p13, %s7401_s17, %s32_s13  }
  0x45   : > { %p41_p3 = por %p40_p10, %p39_p6  ;;  %p7570_p7 = por %p7865_p5, %p39_p6 }
  0x46   : > { %s189_s26 = sand.u32 1, %s7401_s17   ;;  %s6041_s28 = sshll.u32 %s7405_s18, 10 }
  0x47   : > { %s7866_s20 = scalar_select %p7570_p7, 1, 0 }
  0x48   : > { %s5399_s24 = sshll.u32 %s189_s26, 6  ;;  %s7580_s30 = scalar_lea.hbm %s7853_s0, %s6041_s28 }
  0x49   : > { %s193_s5 = scalar_lea.vmem [#allocation2], %s5399_s24  ;;  %p7584_p11 = pnand %p6293_p9, %p41_p3 }
  0x4a   : > { %s201_s6 = sshll.u32 %s193_s5, 4  ;;  %s7588_s7 = scalar_lea.sflag [#allocation3], %s189_s26  ;;  %s7582_s6 = int_to_ptr.vmem [resolvable:$true] %s201_s6 }
  0x4b   : > { %s7273_s8 = scalar_lea.hbm %s7580_s30, 1024  ;;  %p7275_p0 = pneg %p7584_p11 }
  0x4c   : > { %p7274_p12 = scmp.ne.s32.totalorder %s7580_s30, %s7273_s8  ;;  %s7278_s12 = scalar_lea.hbm %s7853_s0, 2048 }
  0x4d   : > { %p7279_p13 = scmp.lt.u32.totalorder %s7580_s30, %s7853_s0  ;;  %p7280_p6 = scmp.lt.u32.totalorder %s7278_s12, %s7273_s8 }
  0x4e   : > { %p7276_p2 = pnand %p7275_p0, %p7274_p12  ;;  %p7282_p3 = scmp.lt.u32.totalorder %s7273_s8, %s7580_s30 }
  0x4f   : > { %p7281_p10 = por %p7280_p6, %p7279_p13 }
  0x50   : > { %p7277_p1 = pneg %p7276_p2 }
  0x51   : > { %p7283_p5 = por %p7282_p3, %p7281_p10 }
  0x53   : > { %p7284_p9 = pnand %p7283_p5, %p7277_p1 }
  0x55   : > { %7287 = shalt.err (!%p7284_p9)
}
  0x56   : > { %s7288_s26 = scalar_lea.vmem %s7582_s6, 1024  ;;  %s7413_s28 = smov [#allocation2]  }
  0x57   : > { %p7289_p12 = scmp.ne.s32.totalorder %s7582_s6, %s7288_s26  ;;  %s7293_s27 = sshll.u32 %s7413_s28, 4  ;;  %s7294_s27 = int_to_ptr.vmem [resolvable:$false] %s7293_s27 }
  0x58   : > { %s7295_s29 = scalar_lea.vmem %s7294_s27, 2048  ;;  %p7296_p4 = scmp.lt.s32.totalorder %s7582_s6, %s7294_s27 }
  0x59   : > { %p7291_p2 = pnand %p7289_p12, %p7275_p0  ;;  %p7297_p13 = scmp.lt.s32.totalorder %s7295_s29, %s7288_s26 }
  0x5b   : > { %p7292_p7 = pneg %p7291_p2  ;;  %p7298_p6 = por %p7297_p13, %p7296_p4 }
  0x5d   : > { %p7299_p10 = pnand %p7298_p6, %p7292_p7 }
  0x5f   : > { %7302 = shalt.err (!%p7299_p10)
}
  0x60   : > { %s7414_s5 = smov 512   ;;  %s7415_s8 = smov 32  }
  0x61   : > { %6283 = dma.hbm_to_vmem [thread:$0]  (!%p7584_p11), %s7580_s30, 1024, %s7582_s6, %s7588_s7, %s7414_s5, %s7414_s5, %s7415_s8  }
  0x62   : > { %213 = sbr.rel (%p7487_p8) target bundleno = 1194 (0x4aa), region = 32  ;;  %s7619_s9 = sand.u32 (!%p7487_p8), 1, %s7397_s16  }
  0x63   : > { %s5404_s10 = sshll.u32 (!%p7487_p8), %s7619_s9, 6  ;;  %s216_s12 = scalar_lea.sflag (!%p7487_p8), [#allocation3], %s7619_s9 }
  0x64   : > { %s7623_s13 = scalar_lea.vmem (!%p7487_p8), [#allocation2], %s5404_s10  ;;  %p7868_p4 = scmp.ne.s32.totalorder (!%p7487_p8), %s7861_s21, 0 }
  0x69   : > { %7376 = dma.done.wait (%p7868_p4), %s216_s12, 1024  }
  0x6a   : > { %7378 = vsyncadd (%p7868_p4), %s216_s12, 4294966272  ;;  %p7869_p7 = scmp.eq.s32.totalorder %s7468_s19, 0 }
  0x6c   : > { %7380 = dma.done.wait (%p7869_p7), [#allocation6], 78848   ;;  %p7870_p8 = pmov %p7869_p7 }
  0x6d   : > { %v6341_v0 = vld [vmem:[#allocation5 + $0x4] ss:$36 sps:$4 sm:$0xff]   ;;  %v6343_v1 = vld [vmem:[#allocation5 + $0xc] ss:$36 sps:$4 sm:$0xff]   ;;  %v6349_v5 = vld [vmem:[#allocation5 + $0x54] ss:$36 sps:$4 sm:$0xff]  }
  0x6e   : > { %7382 = vsyncadd (%p7870_p8), [#allocation6], 4294888448  ;;  %3891 = vmatprep.subr.bf16.mxu0 %v6341_v0  ;;  %v6345_v2 = vld [vmem:[#allocation5] ss:$36 sps:$4 sm:$0xff]   ;;  %v6346_v3 = vld [vmem:[#allocation5 + $0x8] ss:$36 sps:$4 sm:$0xff]   ;;  %4063 = vmatprep.subr.bf16.mxu1 %v6343_v1 }
  0x6f   : > { %v6347_v4 = vld [vmem:[#allocation5 + $0x4c] ss:$36 sps:$4 sm:$0xff]   ;;  %3892 = vmatpush1.bf16.msra.mxu0 %v6345_v2  ;;  %4064 = vmatpush1.bf16.msra.mxu1 %v6346_v3  ;;  %v6353_v8 = vld [vmem:[#allocation5 + $0x94] ss:$36 sps:$4 sm:$0xff]   ;;  %v6355_v9 = vld [vmem:[#allocation5 + $0x9c] ss:$36 sps:$4 sm:$0xff]  }
  0x70   : > { %v6351_v6 = vld [vmem:[#allocation5 + $0x48] ss:$36 sps:$4 sm:$0xff]   ;;  %3893 = vmatprep.subr.bf16.mxu0 %v6347_v4  ;;  %v6352_v7 = vld [vmem:[#allocation5 + $0x50] ss:$36 sps:$4 sm:$0xff]   ;;  %4065 = vmatprep.subr.bf16.mxu1 %v6349_v5  ;;  %v6358_v11 = vld [vmem:[#allocation5 + $0x98] ss:$36 sps:$4 sm:$0xff]  }
  0x71   : > { %v6357_v10 = vld [vmem:[#allocation5 + $0x90] ss:$36 sps:$4 sm:$0xff]   ;;  %v6359_v12 = vld [vmem:[#allocation5 + $0xdc] ss:$36 sps:$4 sm:$0xff]   ;;  %v6361_v13 = vld [vmem:[#allocation5 + $0xe4] ss:$36 sps:$4 sm:$0xff]  }
  0x72   : > { %v6363_v14 = vld [vmem:[#allocation5 + $0xd8] ss:$36 sps:$4 sm:$0xff]   ;;  %v6364_v15 = vld [vmem:[#allocation5 + $0xe0] ss:$36 sps:$4 sm:$0xff]   ;;  %v6367_v17 = vld [vmem:[#allocation5 + $0x12c] ss:$36 sps:$4 sm:$0xff]  }
  0x73   : > { %3894 = vmatpush1.bf16.msra.mxu0 %v6351_v6  ;;  %4066 = vmatpush1.bf16.msra.mxu1 %v6352_v7  ;;  %v6365_v16 = vld [vmem:[#allocation5 + $0x124] ss:$36 sps:$4 sm:$0xff]   ;;  %v6371_v20 = vld [vmem:[#allocation5 + $0x16c] ss:$36 sps:$4 sm:$0xff]   ;;  %v6373_v21 = vld [vmem:[#allocation5 + $0x174] ss:$36 sps:$4 sm:$0xff]  }
  0x74   : > { %3895 = vmatprep.subr.bf16.mxu0 %v6353_v8  ;;  %4067 = vmatprep.subr.bf16.mxu1 %v6355_v9  ;;  %v6369_v18 = vld [vmem:[#allocation5 + $0x120] ss:$36 sps:$4 sm:$0xff]   ;;  %v6370_v19 = vld [vmem:[#allocation5 + $0x128] ss:$36 sps:$4 sm:$0xff]   ;;  %v6376_v23 = vld [vmem:[#allocation5 + $0x170] ss:$36 sps:$4 sm:$0xff]  }
  0x75   : > { %v6375_v22 = vld [vmem:[#allocation5 + $0x168] ss:$36 sps:$4 sm:$0xff]   ;;  %v6377_v24 = vld [vmem:[#allocation5 + $0x1b4] ss:$36 sps:$4 sm:$0xff]   ;;  %v6379_v25 = vld [vmem:[#allocation5 + $0x1bc] ss:$36 sps:$4 sm:$0xff]  }
  0x76   : > { %v6381_v26 = vld [vmem:[#allocation5 + $0x1b0] ss:$36 sps:$4 sm:$0xff]   ;;  %v6382_v27 = vld [vmem:[#allocation5 + $0x1b8] ss:$36 sps:$4 sm:$0xff]   ;;  %v6385_v29 = vld [vmem:[#allocation5 + $0x204] ss:$36 sps:$4 sm:$0xff]  }
  0x77   : > { %3896 = vmatpush1.bf16.msra.mxu0 %v6357_v10  ;;  %4068 = vmatpush1.bf16.msra.mxu1 %v6358_v11  ;;  %v6383_v28 = vld [vmem:[#allocation5 + $0x1fc] ss:$36 sps:$4 sm:$0xff]   ;;  %v6389_v32 = vld [vmem:[#allocation5 + $0x244] ss:$36 sps:$4 sm:$0xff]   ;;  %v6391_v33 = vld [vmem:[#allocation5 + $0x24c] ss:$36 sps:$4 sm:$0xff]  }
  0x78   : > { %3897 = vmatprep.subr.bf16.mxu0 %v6359_v12  ;;  %4069 = vmatprep.subr.bf16.mxu1 %v6361_v13  ;;  %v6387_v30 = vld [vmem:[#allocation5 + $0x1f8] ss:$36 sps:$4 sm:$0xff]   ;;  %v6388_v31 = vld [vmem:[#allocation5 + $0x200] ss:$36 sps:$4 sm:$0xff]   ;;  %v6394_v35 = vld [vmem:[#allocation5 + $0x248] ss:$36 sps:$4 sm:$0xff]  }
  0x79   : > { %v6393_v34 = vld [vmem:[#allocation5 + $0x240] ss:$36 sps:$4 sm:$0xff]   ;;  %v6395_v36 = vld [vmem:[#allocation5 + $0x28c] ss:$36 sps:$4 sm:$0xff]   ;;  %v6397_v37 = vld [vmem:[#allocation5 + $0x294] ss:$36 sps:$4 sm:$0xff]  }
  0x7a   : > { %v6399_v38 = vld [vmem:[#allocation5 + $0x288] ss:$36 sps:$4 sm:$0xff]   ;;  %v6400_v39 = vld [vmem:[#allocation5 + $0x290] ss:$36 sps:$4 sm:$0xff]   ;;  %v6403_v41 = vld [vmem:[#allocation5 + $0x2dc] ss:$36 sps:$4 sm:$0xff]  }
  0x7b   : > { %3898 = vmatpush1.bf16.msra.mxu0 %v6363_v14  ;;  %4070 = vmatpush1.bf16.msra.mxu1 %v6364_v15  ;;  %v6401_v40 = vld [vmem:[#allocation5 + $0x2d4] ss:$36 sps:$4 sm:$0xff]   ;;  %v6407_v44 = vld [vmem:[#allocation5 + $0x31c] ss:$36 sps:$4 sm:$0xff]   ;;  %v6409_v45 = vld [vmem:[#allocation5 + $0x324] ss:$36 sps:$4 sm:$0xff]  }
  0x7c   : > { %3899 = vmatprep.subr.bf16.mxu0 %v6365_v16  ;;  %4071 = vmatprep.subr.bf16.mxu1 %v6367_v17  ;;  %v6405_v42 = vld [vmem:[#allocation5 + $0x2d0] ss:$36 sps:$4 sm:$0xff]   ;;  %v6406_v43 = vld [vmem:[#allocation5 + $0x2d8] ss:$36 sps:$4 sm:$0xff]   ;;  %v259_v46 = vld [vmem:[%s7623_s13] sm:$0xff]  ;;  %vm7417_vm0 = vmmov 0  }
  0x7d   : > { %v263_v47 = vld [vmem:[%s7623_s13 + $0x20] sm:$0xff]  ;;  %v6411_v48 = vld [vmem:[#allocation5 + $0x318] ss:$36 sps:$4 sm:$0xff]   ;;  %v6415_v52 = vld [vmem:[#allocation5 + $0x36c] ss:$36 sps:$4 sm:$0xff]   ;;  %s5407_s21 = sshll.u32 %s7619_s9, 3 }
  0x7e   : > { %v6412_v49 = vld [vmem:[#allocation5 + $0x320] ss:$36 sps:$4 sm:$0xff]   ;;  %v7635_v50 = vcombine.high %v259_v46, %v263_v47  ;;  %v6418_v54 = vld [vmem:[#allocation5 + $0x368] ss:$36 sps:$4 sm:$0xff]   ;;  %v6421_v56 = vld [vmem:[#allocation5 + $0x3b4] ss:$36 sps:$4 sm:$0xff]   ;;  %v7639_v5 = vcombine.low %v259_v46, %v263_v47 }
  0x7f   : > { %3900 = vmatpush1.bf16.msra.mxu0 %v6369_v18  ;;  %4072 = vmatpush1.bf16.msra.mxu1 %v6370_v19  ;;  %v6413_v51 = vld [vmem:[#allocation5 + $0x364] ss:$36 sps:$4 sm:$0xff]   ;;  %v6419_v55 = vld [vmem:[#allocation5 + $0x3ac] ss:$36 sps:$4 sm:$0xff]   ;;  %v6425_v59 = vld [vmem:[#allocation5 + $0x3f4] ss:$36 sps:$4 sm:$0xff]  }
  0x80   : > { %3901 = vmatprep.subr.bf16.mxu0 %v6371_v20  ;;  %4073 = vmatprep.subr.bf16.mxu1 %v6373_v21  ;;  %v6417_v53 = vld [vmem:[#allocation5 + $0x360] ss:$36 sps:$4 sm:$0xff]   ;;  %v6423_v57 = vld [vmem:[#allocation5 + $0x3a8] ss:$36 sps:$4 sm:$0xff]   ;;  %v6424_v58 = vld [vmem:[#allocation5 + $0x3b0] ss:$36 sps:$4 sm:$0xff]  }
  0x81   : > { %3923 = vmatprep.mubr.bf16.mxu0 %v7635_v50  ;;  %4095 = vmatprep.mubr.bf16.mxu1 %v7635_v50  ;;  %v6427_v60 = vld [vmem:[#allocation5 + $0x3fc] ss:$36 sps:$4 sm:$0xff]   ;;  %v6429_v61 = vld [vmem:[#allocation5 + $0x3f0] ss:$36 sps:$4 sm:$0xff]   ;;  %v6433_v0 = vld [vmem:[#allocation5 + $0x444] ss:$36 sps:$4 sm:$0xff]  }
  0x82   : > { %v6430_v62 = vld [vmem:[#allocation5 + $0x3f8] ss:$36 sps:$4 sm:$0xff]   ;;  %v6436_v2 = vld [vmem:[#allocation5 + $0x440] ss:$36 sps:$4 sm:$0xff]   ;;  %v6442_v4 = vld [vmem:[#allocation5 + $0x48c] ss:$36 sps:$4 sm:$0xff]  }
  0x83   : > { %3902 = vmatpush1.bf16.msra.mxu0 %v6375_v22  ;;  %4074 = vmatpush1.bf16.msra.mxu1 %v6376_v23  ;;  %v6431_v63 = vld [vmem:[#allocation5 + $0x43c] ss:$36 sps:$4 sm:$0xff]   ;;  %v6439_v3 = vld [vmem:[#allocation5 + $0x484] ss:$36 sps:$4 sm:$0xff]   ;;  %v6445_v8 = vld [vmem:[#allocation5 + $0x4cc] ss:$36 sps:$4 sm:$0xff]  }
  0x84   : > { %3903 = vmatprep.subr.bf16.mxu0 %v6377_v24  ;;  %4075 = vmatprep.subr.bf16.mxu1 %v6379_v25  ;;  %v6435_v1 = vld [vmem:[#allocation5 + $0x438] ss:$36 sps:$4 sm:$0xff]   ;;  %v6437_v6 = vld [vmem:[#allocation5 + $0x480] ss:$36 sps:$4 sm:$0xff]   ;;  %v6440_v7 = vld [vmem:[#allocation5 + $0x488] ss:$36 sps:$4 sm:$0xff]  }
  0x85   : > { %v6448_v9 = vld [vmem:[#allocation5 + $0x4d4] ss:$36 sps:$4 sm:$0xff]   ;;  %v6443_v10 = vld [vmem:[#allocation5 + $0x4c8] ss:$36 sps:$4 sm:$0xff]   ;;  %v6454_v13 = vld [vmem:[#allocation5 + $0x51c] ss:$36 sps:$4 sm:$0xff]  }
  0x86   : > { %v6446_v11 = vld [vmem:[#allocation5 + $0x4d0] ss:$36 sps:$4 sm:$0xff]   ;;  %v6452_v15 = vld [vmem:[#allocation5 + $0x518] ss:$36 sps:$4 sm:$0xff]   ;;  %v6460_v17 = vld [vmem:[#allocation5 + $0x564] ss:$36 sps:$4 sm:$0xff]  }
  0x87   : > { %3904 = vmatpush1.bf16.msra.mxu0 %v6381_v26  ;;  %4076 = vmatpush1.bf16.msra.mxu1 %v6382_v27  ;;  %v6451_v12 = vld [vmem:[#allocation5 + $0x514] ss:$36 sps:$4 sm:$0xff]   ;;  %v6457_v16 = vld [vmem:[#allocation5 + $0x55c] ss:$36 sps:$4 sm:$0xff]   ;;  %v6463_v20 = vld [vmem:[#allocation5 + $0x5a4] ss:$36 sps:$4 sm:$0xff]  }
  0x88   : > { %3905 = vmatprep.subr.bf16.mxu0 %v6383_v28  ;;  %4077 = vmatprep.subr.bf16.mxu1 %v6385_v29  ;;  %v6449_v14 = vld [vmem:[#allocation5 + $0x510] ss:$36 sps:$4 sm:$0xff]   ;;  %v6455_v18 = vld [vmem:[#allocation5 + $0x558] ss:$36 sps:$4 sm:$0xff]   ;;  %v6458_v19 = vld [vmem:[#allocation5 + $0x560] ss:$36 sps:$4 sm:$0xff]  }
  0x89   : > { %v6466_v21 = vld [vmem:[#allocation5 + $0x5ac] ss:$36 sps:$4 sm:$0xff]   ;;  %v6461_v22 = vld [vmem:[#allocation5 + $0x5a0] ss:$36 sps:$4 sm:$0xff]   ;;  %v6472_v25 = vld [vmem:[#allocation5 + $0x5f4] ss:$36 sps:$4 sm:$0xff]  }
  0x8a   : > { %v6464_v23 = vld [vmem:[#allocation5 + $0x5a8] ss:$36 sps:$4 sm:$0xff]   ;;  %v6470_v27 = vld [vmem:[#allocation5 + $0x5f0] ss:$36 sps:$4 sm:$0xff]   ;;  %v6478_v29 = vld [vmem:[#allocation5 + $0x63c] ss:$36 sps:$4 sm:$0xff]  }
  0x8b   : > { %3906 = vmatpush1.bf16.msra.mxu0 %v6387_v30  ;;  %4078 = vmatpush1.bf16.msra.mxu1 %v6388_v31  ;;  %v6469_v24 = vld [vmem:[#allocation5 + $0x5ec] ss:$36 sps:$4 sm:$0xff]   ;;  %v6475_v28 = vld [vmem:[#allocation5 + $0x634] ss:$36 sps:$4 sm:$0xff]   ;;  %s6044_s23 = sshll.u32 %s7468_s19, 7  ;;  %s249_s30 = scalar_lea.vmem [#allocation8], %s5407_s21 }
  0x8c   : > { %3907 = vmatprep.subr.bf16.mxu0 %v6389_v32  ;;  %4079 = vmatprep.subr.bf16.mxu1 %v6391_v33  ;;  %v6467_v26 = vld [vmem:[#allocation5 + $0x5e8] ss:$36 sps:$4 sm:$0xff]   ;;  %v6473_v32 = vld [vmem:[#allocation5 + $0x630] ss:$36 sps:$4 sm:$0xff]   ;;  %v6476_v33 = vld [vmem:[#allocation5 + $0x638] ss:$36 sps:$4 sm:$0xff]   ;;  %s7776_s24 = scalar_lea.hbm %s7856_s3, %s6044_s23 }
  0x8d   : > { %v7644_v30 = vld [vmem:[%s7623_s13 + $0x8] sm:$0xff]  ;;  %v6494_v46 = vld [vmem:[#allocation5 + $0x710] ss:$36 sps:$4 sm:$0xff]   ;;  %s5261_s6 = sshll.u32 %s249_s30, 4  ;;  %s5244_s26 = scalar_lea.sflag [#allocation4], %s7619_s9  ;;  %s7778_s6 = int_to_ptr.vmem [resolvable:$true] %s5261_s6 }
  0x8e   : > { %v7647_v31 = vld [vmem:[%s7623_s13 + $0x28] sm:$0xff]  ;;  %v6499_v47 = vld [vmem:[#allocation5 + $0x754] ss:$36 sps:$4 sm:$0xff]   ;;  %s7303_s28 = scalar_lea.vmem %s7778_s6, 128  ;;  %p7871_p0 = scmp.ne.s32.totalorder %s7866_s20, 0 }
  0x8f   : > { %3908 = vmatpush1.bf16.msra.mxu0 %v6393_v34  ;;  %4080 = vmatpush1.bf16.msra.mxu1 %v6394_v35  ;;  %v7651_v34 = vcombine.high %v7644_v30, %v7647_v31  ;;  %v6481_v35 = vld [vmem:[#allocation5 + $0x67c] ss:$36 sps:$4 sm:$0xff]   ;;  %p7304_p11 = scmp.ne.s32.totalorder %s7778_s6, %s7303_s28  ;;  %s7418_s27 = smov [#allocation8]  }
  0x90   : > { %3909 = vmatprep.subr.bf16.mxu0 %v6395_v36  ;;  %4081 = vmatprep.subr.bf16.mxu1 %v6397_v37  ;;  %v6484_v36 = vld [vmem:[#allocation5 + $0x684] ss:$36 sps:$4 sm:$0xff]   ;;  %v6479_v37 = vld [vmem:[#allocation5 + $0x678] ss:$36 sps:$4 sm:$0xff]   ;;  %s7307_s29 = sshll.u32 %s7418_s27, 4  ;;  %s7308_s29 = int_to_ptr.vmem [resolvable:$false] %s7307_s29 }
  0x91   : > { %p7305_p1 = pnand %p7304_p11, %p7871_p0  ;;  %s7309_s5 = scalar_lea.vmem %s7308_s29, 256 }
  0x92   : > { %p7310_p5 = scmp.lt.s32.totalorder %s7778_s6, %s7308_s29  ;;  %p7311_p9 = scmp.lt.s32.totalorder %s7309_s5, %s7303_s28 }
  0x93   : > { %3910 = vmatpush1.bf16.msra.mxu0 %v6399_v38  ;;  %4082 = vmatpush1.bf16.msra.mxu1 %v6400_v39  ;;  %v6482_v38 = vld [vmem:[#allocation5 + $0x680] ss:$36 sps:$4 sm:$0xff]   ;;  %p7306_p3 = pneg %p7305_p1 }
  0x94   : > { %3911 = vmatprep.subr.bf16.mxu0 %v6401_v40  ;;  %4083 = vmatprep.subr.bf16.mxu1 %v6403_v41  ;;  %v6487_v39 = vld [vmem:[#allocation5 + $0x6c4] ss:$36 sps:$4 sm:$0xff]   ;;  %v6490_v40 = vld [vmem:[#allocation5 + $0x6cc] ss:$36 sps:$4 sm:$0xff]   ;;  %p7312_p12 = por %p7311_p9, %p7310_p5 }
  0x95   : > { %v6485_v41 = vld [vmem:[#allocation5 + $0x6c0] ss:$36 sps:$4 sm:$0xff]  }
  0x96   : > { %p7313_p2 = pnand %p7312_p12, %p7306_p3 }
  0x97   : > { %3912 = vmatpush1.bf16.msra.mxu0 %v6405_v42  ;;  %4084 = vmatpush1.bf16.msra.mxu1 %v6406_v43  ;;  %v6488_v42 = vld [vmem:[#allocation5 + $0x6c8] ss:$36 sps:$4 sm:$0xff]  }
  0x98   : > { %3913 = vmatprep.subr.bf16.mxu0 %v6407_v44  ;;  %4085 = vmatprep.subr.bf16.mxu1 %v6409_v45  ;;  %v6493_v43 = vld [vmem:[#allocation5 + $0x70c] ss:$36 sps:$4 sm:$0xff]   ;;  %v6496_v44 = vld [vmem:[#allocation5 + $0x714] ss:$36 sps:$4 sm:$0xff]  }
  0x99   : > { %v6491_v45 = vld [vmem:[#allocation5 + $0x708] ss:$36 sps:$4 sm:$0xff]  }
  0x9b   : > { %3914 = vmatpush1.bf16.msra.mxu0 %v6411_v48  ;;  %4086 = vmatpush1.bf16.msra.mxu1 %v6412_v49  ;;  %v6502_v48 = vld [vmem:[#allocation5 + $0x75c] ss:$36 sps:$4 sm:$0xff]   ;;  %v6497_v49 = vld [vmem:[#allocation5 + $0x750] ss:$36 sps:$4 sm:$0xff]  }
  0x9c   : > { %3915 = vmatprep.subr.bf16.mxu0 %v6413_v51  ;;  %4087 = vmatprep.subr.bf16.mxu1 %v6415_v52  ;;  %v6500_v51 = vld [vmem:[#allocation5 + $0x758] ss:$36 sps:$4 sm:$0xff]  }
  0x9d   : > { %v6505_v52 = vld [vmem:[#allocation5 + $0x79c] ss:$36 sps:$4 sm:$0xff]  }
  0x9f   : > { %3916 = vmatpush1.bf16.msra.mxu0 %v6417_v53  ;;  %4088 = vmatpush1.bf16.msra.mxu1 %v6418_v54  ;;  %v6508_v53 = vld [vmem:[#allocation5 + $0x7a4] ss:$36 sps:$4 sm:$0xff]   ;;  %v6503_v54 = vld [vmem:[#allocation5 + $0x798] ss:$36 sps:$4 sm:$0xff]  }
  0xa0   : > { %3917 = vmatprep.subr.bf16.mxu0 %v6419_v55  ;;  %4089 = vmatprep.subr.bf16.mxu1 %v6421_v56  ;;  %v6506_v55 = vld [vmem:[#allocation5 + $0x7a0] ss:$36 sps:$4 sm:$0xff]  }
  0xa1   : > { %v6511_v56 = vld [vmem:[#allocation5 + $0x7e4] ss:$36 sps:$4 sm:$0xff]  }
  0xa3   : > { %3918 = vmatpush1.bf16.msra.mxu0 %v6423_v57  ;;  %4090 = vmatpush1.bf16.msra.mxu1 %v6424_v58  ;;  %v6514_v57 = vld [vmem:[#allocation5 + $0x7ec] ss:$36 sps:$4 sm:$0xff]   ;;  %v6509_v58 = vld [vmem:[#allocation5 + $0x7e0] ss:$36 sps:$4 sm:$0xff]  }
  0xa4   : > { %3919 = vmatprep.subr.bf16.mxu0 %v6425_v59  ;;  %4091 = vmatprep.subr.bf16.mxu1 %v6427_v60  ;;  %v6512_v59 = vld [vmem:[#allocation5 + $0x7e8] ss:$36 sps:$4 sm:$0xff]  }
  0xa5   : > { %v6517_v60 = vld [vmem:[#allocation5 + $0x82c] ss:$36 sps:$4 sm:$0xff]  }
  0xa7   : > { %3920 = vmatpush1.bf16.msra.mxu0 %v6429_v61  ;;  %4092 = vmatpush1.bf16.msra.mxu1 %v6430_v62  ;;  %v6520_v61 = vld [vmem:[#allocation5 + $0x834] ss:$36 sps:$4 sm:$0xff]   ;;  %v6515_v62 = vld [vmem:[#allocation5 + $0x828] ss:$36 sps:$4 sm:$0xff]  }
  0xa8   : > { %3921 = vmatprep.subr.bf16.mxu0 %v6431_v63  ;;  %4093 = vmatprep.subr.bf16.mxu1 %v6433_v0  ;;  %v6518_v63 = vld [vmem:[#allocation5 + $0x830] ss:$36 sps:$4 sm:$0xff]  }
  0xa9   : > { %v6523_v0 = vld [vmem:[#allocation5 + $0x874] ss:$36 sps:$4 sm:$0xff]  }
  0xab   : > { %3922 = vmatpush1.bf16.msra.mxu0 %v6435_v1  ;;  %4094 = vmatpush1.bf16.msra.mxu1 %v6436_v2  ;;  %v6526_v1 = vld [vmem:[#allocation5 + $0x87c] ss:$36 sps:$4 sm:$0xff]   ;;  %v6521_v2 = vld [vmem:[#allocation5 + $0x870] ss:$36 sps:$4 sm:$0xff]  }
  0xac   : > { %3934 = vmatprep.subr.bf16.mxu0 %v6439_v3  ;;  %4106 = vmatprep.subr.bf16.mxu1 %v6442_v4  ;;  %v6524_v3 = vld [vmem:[#allocation5 + $0x878] ss:$36 sps:$4 sm:$0xff]  }
  0xad   : > { %v6529_v4 = vld [vmem:[#allocation5 + $0x8bc] ss:$36 sps:$4 sm:$0xff]  }
  0xae   : > { %3924 = vmatmul.mubr.bf16.vlgmr.msra.gmra.mrb[0].mxu0 %v7639_v5  ;;  %4096 = vmatmul.mubr.bf16.vlgmr.msra.gmra.mrb[0].mxu1 %v7639_v5 }
  0xaf   : > { %3935 = vmatpush1.bf16.msra.mxu0 %v6437_v6  ;;  %4107 = vmatpush1.bf16.msra.mxu1 %v6440_v7  ;;  %v6532_v6 = vld [vmem:[#allocation5 + $0x8c4] ss:$36 sps:$4 sm:$0xff]   ;;  %v6527_v7 = vld [vmem:[#allocation5 + $0x8b8] ss:$36 sps:$4 sm:$0xff]  }
  0xb0   : > { %3936 = vmatprep.subr.bf16.mxu0 %v6445_v8  ;;  %4108 = vmatprep.subr.bf16.mxu1 %v6448_v9  ;;  %v6530_v8 = vld [vmem:[#allocation5 + $0x8c0] ss:$36 sps:$4 sm:$0xff]  }
  0xb1   : > { %3966 = vmatprep.mubr.bf16.mxu0 %v7651_v34  ;;  %4138 = vmatprep.mubr.bf16.mxu1 %v7651_v34  ;;  %v6535_v9 = vld [vmem:[#allocation5 + $0x904] ss:$36 sps:$4 sm:$0xff]  }
  0xb3   : > { %3937 = vmatpush1.bf16.msra.mxu0 %v6443_v10  ;;  %4109 = vmatpush1.bf16.msra.mxu1 %v6446_v11  ;;  %v6538_v10 = vld [vmem:[#allocation5 + $0x90c] ss:$36 sps:$4 sm:$0xff]   ;;  %v6533_v11 = vld [vmem:[#allocation5 + $0x900] ss:$36 sps:$4 sm:$0xff]  }
  0xb4   : > { %3938 = vmatprep.subr.bf16.mxu0 %v6451_v12  ;;  %4110 = vmatprep.subr.bf16.mxu1 %v6454_v13  ;;  %v6536_v12 = vld [vmem:[#allocation5 + $0x908] ss:$36 sps:$4 sm:$0xff]   ;;  %v7657_v13 = vcombine.low %v7644_v30, %v7647_v31  ;;  %v6557_v31 = vld [vmem:[#allocation5 + $0xa20] ss:$36 sps:$4 sm:$0xff]  }
  0xb5   : > { %v6562_v30 = vld [vmem:[#allocation5 + $0xa2c] ss:$36 sps:$4 sm:$0xff]  }
  0xb7   : > { %3939 = vmatpush1.bf16.msra.mxu0 %v6449_v14  ;;  %4111 = vmatpush1.bf16.msra.mxu1 %v6452_v15  ;;  %v6541_v14 = vld [vmem:[#allocation5 + $0x94c] ss:$36 sps:$4 sm:$0xff]   ;;  %v6544_v15 = vld [vmem:[#allocation5 + $0x954] ss:$36 sps:$4 sm:$0xff]  }
  0xb8   : > { %3940 = vmatprep.subr.bf16.mxu0 %v6457_v16  ;;  %4112 = vmatprep.subr.bf16.mxu1 %v6460_v17  ;;  %v7660_v16 = vld [vmem:[%s7623_s13 + $0x10] sm:$0xff] }
  0xb9   : > { %v7663_v17 = vld [vmem:[%s7623_s13 + $0x30] sm:$0xff] }
  0xbb   : > { %3941 = vmatpush1.bf16.msra.mxu0 %v6455_v18  ;;  %4113 = vmatpush1.bf16.msra.mxu1 %v6458_v19  ;;  %v7667_v18 = vcombine.high %v7660_v16, %v7663_v17  ;;  %v6539_v19 = vld [vmem:[#allocation5 + $0x948] ss:$36 sps:$4 sm:$0xff]  }
  0xbc   : > { %3942 = vmatprep.subr.bf16.mxu0 %v6463_v20  ;;  %4114 = vmatprep.subr.bf16.mxu1 %v6466_v21  ;;  %v6542_v20 = vld [vmem:[#allocation5 + $0x950] ss:$36 sps:$4 sm:$0xff]  }
  0xbd   : > { %v6547_v21 = vld [vmem:[#allocation5 + $0x994] ss:$36 sps:$4 sm:$0xff]  }
  0xbf   : > { %3943 = vmatpush1.bf16.msra.mxu0 %v6461_v22  ;;  %4115 = vmatpush1.bf16.msra.mxu1 %v6464_v23  ;;  %v6550_v22 = vld [vmem:[#allocation5 + $0x99c] ss:$36 sps:$4 sm:$0xff]   ;;  %v6545_v23 = vld [vmem:[#allocation5 + $0x990] ss:$36 sps:$4 sm:$0xff]  }
  0xc0   : > { %3944 = vmatprep.subr.bf16.mxu0 %v6469_v24  ;;  %4116 = vmatprep.subr.bf16.mxu1 %v6472_v25  ;;  %v6548_v24 = vld [vmem:[#allocation5 + $0x998] ss:$36 sps:$4 sm:$0xff]  }
  0xc1   : > { %v6553_v25 = vld [vmem:[#allocation5 + $0x9dc] ss:$36 sps:$4 sm:$0xff]  }
  0xc3   : > { %3945 = vmatpush1.bf16.msra.mxu0 %v6467_v26  ;;  %4117 = vmatpush1.bf16.msra.mxu1 %v6470_v27  ;;  %v6556_v26 = vld [vmem:[#allocation5 + $0x9e4] ss:$36 sps:$4 sm:$0xff]   ;;  %v6551_v27 = vld [vmem:[#allocation5 + $0x9d8] ss:$36 sps:$4 sm:$0xff]  }
  0xc4   : > { %3946 = vmatprep.subr.bf16.mxu0 %v6475_v28  ;;  %4118 = vmatprep.subr.bf16.mxu1 %v6478_v29  ;;  %v6554_v28 = vld [vmem:[#allocation5 + $0x9e0] ss:$36 sps:$4 sm:$0xff]  }
  0xc5   : > { %v6559_v29 = vld [vmem:[#allocation5 + $0xa24] ss:$36 sps:$4 sm:$0xff]  }
  0xc7   : > { %3947 = vmatpush1.bf16.msra.mxu0 %v6473_v32  ;;  %4119 = vmatpush1.bf16.msra.mxu1 %v6476_v33  ;;  %v6560_v32 = vld [vmem:[#allocation5 + $0xa28] ss:$36 sps:$4 sm:$0xff]  }
  0xc8   : > { %3948 = vmatprep.subr.bf16.mxu0 %v6481_v35  ;;  %4120 = vmatprep.subr.bf16.mxu1 %v6484_v36  ;;  %v6565_v33 = vld [vmem:[#allocation5 + $0xa6c] ss:$36 sps:$4 sm:$0xff]   ;;  %v6568_v35 = vld [vmem:[#allocation5 + $0xa74] ss:$36 sps:$4 sm:$0xff]  }
  0xc9   : > { %v6563_v36 = vld [vmem:[#allocation5 + $0xa68] ss:$36 sps:$4 sm:$0xff]  }
  0xcb   : > { %3949 = vmatpush1.bf16.msra.mxu0 %v6479_v37  ;;  %4121 = vmatpush1.bf16.msra.mxu1 %v6482_v38  ;;  %v6566_v37 = vld [vmem:[#allocation5 + $0xa70] ss:$36 sps:$4 sm:$0xff]  }
  0xcc   : > { %3950 = vmatprep.subr.bf16.mxu0 %v6487_v39  ;;  %4122 = vmatprep.subr.bf16.mxu1 %v6490_v40  ;;  %v6571_v38 = vld [vmem:[#allocation5 + $0xab4] ss:$36 sps:$4 sm:$0xff]   ;;  %v6574_v39 = vld [vmem:[#allocation5 + $0xabc] ss:$36 sps:$4 sm:$0xff]  }
  0xcd   : > { %v6569_v40 = vld [vmem:[#allocation5 + $0xab0] ss:$36 sps:$4 sm:$0xff]  }
  0xcf   : > { %3951 = vmatpush1.bf16.msra.mxu0 %v6485_v41  ;;  %4123 = vmatpush1.bf16.msra.mxu1 %v6488_v42  ;;  %v6572_v41 = vld [vmem:[#allocation5 + $0xab8] ss:$36 sps:$4 sm:$0xff]  }
  0xd0   : > { %3952 = vmatprep.subr.bf16.mxu0 %v6493_v43  ;;  %4124 = vmatprep.subr.bf16.mxu1 %v6496_v44  ;;  %v6577_v42 = vld [vmem:[#allocation5 + $0xafc] ss:$36 sps:$4 sm:$0xff]   ;;  %v6580_v43 = vld [vmem:[#allocation5 + $0xb04] ss:$36 sps:$4 sm:$0xff]  }
  0xd1   : > { %v6575_v44 = vld [vmem:[#allocation5 + $0xaf8] ss:$36 sps:$4 sm:$0xff]  }
  0xd3   : > { %3953 = vmatpush1.bf16.msra.mxu0 %v6491_v45  ;;  %4125 = vmatpush1.bf16.msra.mxu1 %v6494_v46  ;;  %v6578_v45 = vld [vmem:[#allocation5 + $0xb00] ss:$36 sps:$4 sm:$0xff]  }
  0xd4   : > { %3954 = vmatprep.subr.bf16.mxu0 %v6499_v47  ;;  %4126 = vmatprep.subr.bf16.mxu1 %v6502_v48  ;;  %v6583_v46 = vld [vmem:[#allocation5 + $0xb44] ss:$36 sps:$4 sm:$0xff]   ;;  %v6586_v47 = vld [vmem:[#allocation5 + $0xb4c] ss:$36 sps:$4 sm:$0xff]  }
  0xd5   : > { %v6581_v48 = vld [vmem:[#allocation5 + $0xb40] ss:$36 sps:$4 sm:$0xff]  }
  0xd7   : > { %3955 = vmatpush1.bf16.msra.mxu0 %v6497_v49  ;;  %4127 = vmatpush1.bf16.msra.mxu1 %v6500_v51  ;;  %v6584_v49 = vld [vmem:[#allocation5 + $0xb48] ss:$36 sps:$4 sm:$0xff]  }
  0xd8   : > { %3956 = vmatprep.subr.bf16.mxu0 %v6505_v52  ;;  %4128 = vmatprep.subr.bf16.mxu1 %v6508_v53  ;;  %v6589_v51 = vld [vmem:[#allocation5 + $0xb8c] ss:$36 sps:$4 sm:$0xff]   ;;  %v6592_v52 = vld [vmem:[#allocation5 + $0xb94] ss:$36 sps:$4 sm:$0xff]  }
  0xd9   : > { %v6587_v53 = vld [vmem:[#allocation5 + $0xb88] ss:$36 sps:$4 sm:$0xff]  }
  0xdb   : > { %3957 = vmatpush1.bf16.msra.mxu0 %v6503_v54  ;;  %4129 = vmatpush1.bf16.msra.mxu1 %v6506_v55  ;;  %v6590_v54 = vld [vmem:[#allocation5 + $0xb90] ss:$36 sps:$4 sm:$0xff]  }
  0xdc   : > { %3958 = vmatprep.subr.bf16.mxu0 %v6511_v56  ;;  %4130 = vmatprep.subr.bf16.mxu1 %v6514_v57  ;;  %v6595_v55 = vld [vmem:[#allocation5 + $0xbd4] ss:$36 sps:$4 sm:$0xff]   ;;  %v6598_v56 = vld [vmem:[#allocation5 + $0xbdc] ss:$36 sps:$4 sm:$0xff]  }
  0xdd   : > { %v6593_v57 = vld [vmem:[#allocation5 + $0xbd0] ss:$36 sps:$4 sm:$0xff]  }
  0xdf   : > { %3959 = vmatpush1.bf16.msra.mxu0 %v6509_v58  ;;  %4131 = vmatpush1.bf16.msra.mxu1 %v6512_v59  ;;  %v6596_v58 = vld [vmem:[#allocation5 + $0xbd8] ss:$36 sps:$4 sm:$0xff]  }
  0xe0   : > { %3960 = vmatprep.subr.bf16.mxu0 %v6517_v60  ;;  %4132 = vmatprep.subr.bf16.mxu1 %v6520_v61  ;;  %v6601_v59 = vld [vmem:[#allocation5 + $0xc1c] ss:$36 sps:$4 sm:$0xff]   ;;  %v6604_v60 = vld [vmem:[#allocation5 + $0xc24] ss:$36 sps:$4 sm:$0xff]  }
  0xe1   : > { %v6599_v61 = vld [vmem:[#allocation5 + $0xc18] ss:$36 sps:$4 sm:$0xff]  }
  0xe3   : > { %3961 = vmatpush1.bf16.msra.mxu0 %v6515_v62  ;;  %4133 = vmatpush1.bf16.msra.mxu1 %v6518_v63  ;;  %v6602_v62 = vld [vmem:[#allocation5 + $0xc20] ss:$36 sps:$4 sm:$0xff]  }
  0xe4   : > { %3962 = vmatprep.subr.bf16.mxu0 %v6523_v0  ;;  %4134 = vmatprep.subr.bf16.mxu1 %v6526_v1  ;;  %v6607_v63 = vld [vmem:[#allocation5 + $0xc64] ss:$36 sps:$4 sm:$0xff]   ;;  %v6610_v0 = vld [vmem:[#allocation5 + $0xc6c] ss:$36 sps:$4 sm:$0xff]  }
  0xe5   : > { %v6605_v1 = vld [vmem:[#allocation5 + $0xc60] ss:$36 sps:$4 sm:$0xff]  }
  0xe7   : > { %3963 = vmatpush1.bf16.msra.mxu0 %v6521_v2  ;;  %4135 = vmatpush1.bf16.msra.mxu1 %v6524_v3  ;;  %v6608_v2 = vld [vmem:[#allocation5 + $0xc68] ss:$36 sps:$4 sm:$0xff]  }
  0xe8   : > { %3964 = vmatprep.subr.bf16.mxu0 %v6529_v4  ;;  %4136 = vmatprep.subr.bf16.mxu1 %v6532_v6  ;;  %v6613_v3 = vld [vmem:[#allocation5 + $0xcac] ss:$36 sps:$4 sm:$0xff]   ;;  %v6616_v4 = vld [vmem:[#allocation5 + $0xcb4] ss:$36 sps:$4 sm:$0xff]  }
  0xe9   : > { %v6611_v6 = vld [vmem:[#allocation5 + $0xca8] ss:$36 sps:$4 sm:$0xff]  }
  0xeb   : > { %3965 = vmatpush1.bf16.msra.mxu0 %v6527_v7  ;;  %4137 = vmatpush1.bf16.msra.mxu1 %v6530_v8  ;;  %v6614_v7 = vld [vmem:[#allocation5 + $0xcb0] ss:$36 sps:$4 sm:$0xff]  }
  0xec   : > { %3977 = vmatprep.subr.bf16.mxu0 %v6535_v9  ;;  %4149 = vmatprep.subr.bf16.mxu1 %v6538_v10  ;;  %v6619_v8 = vld [vmem:[#allocation5 + $0xcf4] ss:$36 sps:$4 sm:$0xff]   ;;  %v6622_v9 = vld [vmem:[#allocation5 + $0xcfc] ss:$36 sps:$4 sm:$0xff]  }
  0xed   : > { %v6617_v10 = vld [vmem:[#allocation5 + $0xcf0] ss:$36 sps:$4 sm:$0xff]  }
  0xee   : > { %3967 = vmatmul.mubr.bf16.vlgmr.msra.gmra.mrb[0].mxu0 %v7657_v13  ;;  %4139 = vmatmul.mubr.bf16.vlgmr.msra.gmra.mrb[0].mxu1 %v7657_v13 }
  0xef   : > { %3978 = vmatpush1.bf16.msra.mxu0 %v6533_v11  ;;  %4150 = vmatpush1.bf16.msra.mxu1 %v6536_v12  ;;  %v6620_v11 = vld [vmem:[#allocation5 + $0xcf8] ss:$36 sps:$4 sm:$0xff]  }
  0xf0   : > { %3979 = vmatprep.subr.bf16.mxu0 %v6541_v14  ;;  %4151 = vmatprep.subr.bf16.mxu1 %v6544_v15  ;;  %v6625_v12 = vld [vmem:[#allocation5 + $0xd3c] ss:$36 sps:$4 sm:$0xff]   ;;  %v6628_v14 = vld [vmem:[#allocation5 + $0xd44] ss:$36 sps:$4 sm:$0xff]  }
  0xf1   : > { %4009 = vmatprep.mubr.bf16.mxu0 %v7667_v18  ;;  %4181 = vmatprep.mubr.bf16.mxu1 %v7667_v18  ;;  %v6623_v15 = vld [vmem:[#allocation5 + $0xd38] ss:$36 sps:$4 sm:$0xff]  }
  0xf3   : > { %3980 = vmatpush1.bf16.msra.mxu0 %v6539_v19  ;;  %4152 = vmatpush1.bf16.msra.mxu1 %v6542_v20  ;;  %v6626_v19 = vld [vmem:[#allocation5 + $0xd40] ss:$36 sps:$4 sm:$0xff]  }
  0xf4   : > { %3981 = vmatprep.subr.bf16.mxu0 %v6547_v21  ;;  %4153 = vmatprep.subr.bf16.mxu1 %v6550_v22  ;;  %v6631_v20 = vld [vmem:[#allocation5 + $0xd84] ss:$36 sps:$4 sm:$0xff]   ;;  %v6634_v21 = vld [vmem:[#allocation5 + $0xd8c] ss:$36 sps:$4 sm:$0xff]  }
  0xf5   : > { %v6629_v22 = vld [vmem:[#allocation5 + $0xd80] ss:$36 sps:$4 sm:$0xff]  }
  0xf7   : > { %3982 = vmatpush1.bf16.msra.mxu0 %v6545_v23  ;;  %4154 = vmatpush1.bf16.msra.mxu1 %v6548_v24  ;;  %v6632_v23 = vld [vmem:[#allocation5 + $0xd88] ss:$36 sps:$4 sm:$0xff]   ;;  %v7675_v24 = vcombine.low %v7660_v16, %v7663_v17  ;;  %v6638_v17 = vld [vmem:[#allocation5 + $0xdd0] ss:$36 sps:$4 sm:$0xff]  }
  0xf8   : > { %3983 = vmatprep.subr.bf16.mxu0 %v6553_v25  ;;  %4155 = vmatprep.subr.bf16.mxu1 %v6556_v26  ;;  %v7678_v25 = vld [vmem:[%s7623_s13 + $0x18] sm:$0xff]  ;;  %v6635_v16 = vld [vmem:[#allocation5 + $0xdc8] ss:$36 sps:$4 sm:$0xff]  }
  0xf9   : > { %v7681_v26 = vld [vmem:[%s7623_s13 + $0x38] sm:$0xff] }
  0xfb   : > { %3984 = vmatpush1.bf16.msra.mxu0 %v6551_v27  ;;  %4156 = vmatpush1.bf16.msra.mxu1 %v6554_v28  ;;  %v6637_v27 = vld [vmem:[#allocation5 + $0xdcc] ss:$36 sps:$4 sm:$0xff]   ;;  %v6640_v28 = vld [vmem:[#allocation5 + $0xdd4] ss:$36 sps:$4 sm:$0xff]  }
  0xfc   : > { %3985 = vmatprep.subr.bf16.mxu0 %v6559_v29  ;;  %4157 = vmatprep.subr.bf16.mxu1 %v6562_v30  ;;  %v7685_v29 = vcombine.high %v7678_v25, %v7681_v26  ;;  %v6643_v30 = vld [vmem:[#allocation5 + $0xe14] ss:$36 sps:$4 sm:$0xff]  }
  0xff   : > { %3986 = vmatpush1.bf16.msra.mxu0 %v6557_v31  ;;  %4158 = vmatpush1.bf16.msra.mxu1 %v6560_v32  ;;  %v6646_v31 = vld [vmem:[#allocation5 + $0xe1c] ss:$36 sps:$4 sm:$0xff]   ;;  %v6641_v32 = vld [vmem:[#allocation5 + $0xe10] ss:$36 sps:$4 sm:$0xff]  }
 0x100   : > { %3987 = vmatprep.subr.bf16.mxu0 %v6565_v33  ;;  %4159 = vmatprep.subr.bf16.mxu1 %v6568_v35  ;;  %v6644_v33 = vld [vmem:[#allocation5 + $0xe18] ss:$36 sps:$4 sm:$0xff]  }
 0x101   : > { %v6649_v35 = vld [vmem:[#allocation5 + $0xe5c] ss:$36 sps:$4 sm:$0xff]  }
 0x103   : > { %3988 = vmatpush1.bf16.msra.mxu0 %v6563_v36  ;;  %4160 = vmatpush1.bf16.msra.mxu1 %v6566_v37  ;;  %v6652_v36 = vld [vmem:[#allocation5 + $0xe64] ss:$36 sps:$4 sm:$0xff]   ;;  %v6647_v37 = vld [vmem:[#allocation5 + $0xe58] ss:$36 sps:$4 sm:$0xff]  }
 0x104   : > { %3989 = vmatprep.subr.bf16.mxu0 %v6571_v38  ;;  %4161 = vmatprep.subr.bf16.mxu1 %v6574_v39  ;;  %v6650_v38 = vld [vmem:[#allocation5 + $0xe60] ss:$36 sps:$4 sm:$0xff]  }
 0x105   : > { %v6655_v39 = vld [vmem:[#allocation5 + $0xea4] ss:$36 sps:$4 sm:$0xff]  }
 0x107   : > { %3990 = vmatpush1.bf16.msra.mxu0 %v6569_v40  ;;  %4162 = vmatpush1.bf16.msra.mxu1 %v6572_v41  ;;  %v6658_v40 = vld [vmem:[#allocation5 + $0xeac] ss:$36 sps:$4 sm:$0xff]   ;;  %v6653_v41 = vld [vmem:[#allocation5 + $0xea0] ss:$36 sps:$4 sm:$0xff]  }
 0x108   : > { %3991 = vmatprep.subr.bf16.mxu0 %v6577_v42  ;;  %4163 = vmatprep.subr.bf16.mxu1 %v6580_v43  ;;  %v6656_v42 = vld [vmem:[#allocation5 + $0xea8] ss:$36 sps:$4 sm:$0xff]  }
 0x109   : > { %v6661_v43 = vld [vmem:[#allocation5 + $0xeec] ss:$36 sps:$4 sm:$0xff]  }
 0x10b   : > { %3992 = vmatpush1.bf16.msra.mxu0 %v6575_v44  ;;  %4164 = vmatpush1.bf16.msra.mxu1 %v6578_v45  ;;  %v6664_v44 = vld [vmem:[#allocation5 + $0xef4] ss:$36 sps:$4 sm:$0xff]   ;;  %v6659_v45 = vld [vmem:[#allocation5 + $0xee8] ss:$36 sps:$4 sm:$0xff]  }
 0x10c   : > { %3993 = vmatprep.subr.bf16.mxu0 %v6583_v46  ;;  %4165 = vmatprep.subr.bf16.mxu1 %v6586_v47  ;;  %v6662_v46 = vld [vmem:[#allocation5 + $0xef0] ss:$36 sps:$4 sm:$0xff]  }
 0x10d   : > { %v6667_v47 = vld [vmem:[#allocation5 + $0xf34] ss:$36 sps:$4 sm:$0xff]  }
 0x10f   : > { %3994 = vmatpush1.bf16.msra.mxu0 %v6581_v48  ;;  %4166 = vmatpush1.bf16.msra.mxu1 %v6584_v49  ;;  %v6670_v48 = vld [vmem:[#allocation5 + $0xf3c] ss:$36 sps:$4 sm:$0xff]   ;;  %v6665_v49 = vld [vmem:[#allocation5 + $0xf30] ss:$36 sps:$4 sm:$0xff]  }
 0x110   : > { %3995 = vmatprep.subr.bf16.mxu0 %v6589_v51  ;;  %4167 = vmatprep.subr.bf16.mxu1 %v6592_v52  ;;  %v6668_v51 = vld [vmem:[#allocation5 + $0xf38] ss:$36 sps:$4 sm:$0xff]  }
 0x111   : > { %v6673_v52 = vld [vmem:[#allocation5 + $0xf7c] ss:$36 sps:$4 sm:$0xff]  }
 0x113   : > { %3996 = vmatpush1.bf16.msra.mxu0 %v6587_v53  ;;  %4168 = vmatpush1.bf16.msra.mxu1 %v6590_v54  ;;  %v6676_v53 = vld [vmem:[#allocation5 + $0xf84] ss:$36 sps:$4 sm:$0xff]   ;;  %v6671_v54 = vld [vmem:[#allocation5 + $0xf78] ss:$36 sps:$4 sm:$0xff]  }
 0x114   : > { %3997 = vmatprep.subr.bf16.mxu0 %v6595_v55  ;;  %4169 = vmatprep.subr.bf16.mxu1 %v6598_v56  ;;  %v6674_v55 = vld [vmem:[#allocation5 + $0xf80] ss:$36 sps:$4 sm:$0xff]  }
 0x115   : > { %v6679_v56 = vld [vmem:[#allocation5 + $0xfc4] ss:$36 sps:$4 sm:$0xff]  }
 0x117   : > { %3998 = vmatpush1.bf16.msra.mxu0 %v6593_v57  ;;  %4170 = vmatpush1.bf16.msra.mxu1 %v6596_v58  ;;  %v6682_v57 = vld [vmem:[#allocation5 + $0xfcc] ss:$36 sps:$4 sm:$0xff]   ;;  %v6677_v58 = vld [vmem:[#allocation5 + $0xfc0] ss:$36 sps:$4 sm:$0xff]  }
 0x118   : > { %3999 = vmatprep.subr.bf16.mxu0 %v6601_v59  ;;  %4171 = vmatprep.subr.bf16.mxu1 %v6604_v60  ;;  %v6680_v59 = vld [vmem:[#allocation5 + $0xfc8] ss:$36 sps:$4 sm:$0xff]  }
 0x119   : > { %v6685_v60 = vld [vmem:[#allocation5 + $0x100c] ss:$36 sps:$4 sm:$0xff]  }
 0x11b   : > { %4000 = vmatpush1.bf16.msra.mxu0 %v6599_v61  ;;  %4172 = vmatpush1.bf16.msra.mxu1 %v6602_v62  ;;  %v6688_v61 = vld [vmem:[#allocation5 + $0x1014] ss:$36 sps:$4 sm:$0xff]   ;;  %v6683_v62 = vld [vmem:[#allocation5 + $0x1008] ss:$36 sps:$4 sm:$0xff]  }
 0x11c   : > { %4001 = vmatprep.subr.bf16.mxu0 %v6607_v63  ;;  %4173 = vmatprep.subr.bf16.mxu1 %v6610_v0  ;;  %v6686_v63 = vld [vmem:[#allocation5 + $0x1010] ss:$36 sps:$4 sm:$0xff]  }
 0x11d   : > { %v6691_v0 = vld [vmem:[#allocation5 + $0x1054] ss:$36 sps:$4 sm:$0xff]  }
 0x11f   : > { %4002 = vmatpush1.bf16.msra.mxu0 %v6605_v1  ;;  %4174 = vmatpush1.bf16.msra.mxu1 %v6608_v2  ;;  %v6694_v1 = vld [vmem:[#allocation5 + $0x105c] ss:$36 sps:$4 sm:$0xff]   ;;  %v6689_v2 = vld [vmem:[#allocation5 + $0x1050] ss:$36 sps:$4 sm:$0xff]  }
 0x120   : > { %4003 = vmatprep.subr.bf16.mxu0 %v6613_v3  ;;  %4175 = vmatprep.subr.bf16.mxu1 %v6616_v4  ;;  %v6692_v3 = vld [vmem:[#allocation5 + $0x1058] ss:$36 sps:$4 sm:$0xff]  }
 0x121   : > { %v6697_v4 = vld [vmem:[#allocation5 + $0x109c] ss:$36 sps:$4 sm:$0xff]  }
 0x123   : > { %4004 = vmatpush1.bf16.msra.mxu0 %v6611_v6  ;;  %4176 = vmatpush1.bf16.msra.mxu1 %v6614_v7  ;;  %v6700_v6 = vld [vmem:[#allocation5 + $0x10a4] ss:$36 sps:$4 sm:$0xff]   ;;  %v6695_v7 = vld [vmem:[#allocation5 + $0x1098] ss:$36 sps:$4 sm:$0xff]  }
 0x124   : > { %4005 = vmatprep.subr.bf16.mxu0 %v6619_v8  ;;  %4177 = vmatprep.subr.bf16.mxu1 %v6622_v9  ;;  %v6698_v8 = vld [vmem:[#allocation5 + $0x10a0] ss:$36 sps:$4 sm:$0xff]  }
 0x125   : > { %v6703_v9 = vld [vmem:[#allocation5 + $0x10e4] ss:$36 sps:$4 sm:$0xff]  }
 0x127   : > { %4006 = vmatpush1.bf16.msra.mxu0 %v6617_v10  ;;  %4178 = vmatpush1.bf16.msra.mxu1 %v6620_v11  ;;  %v6706_v10 = vld [vmem:[#allocation5 + $0x10ec] ss:$36 sps:$4 sm:$0xff]   ;;  %v6701_v11 = vld [vmem:[#allocation5 + $0x10e0] ss:$36 sps:$4 sm:$0xff]  }
 0x128   : > { %4007 = vmatprep.subr.bf16.mxu0 %v6625_v12  ;;  %4179 = vmatprep.subr.bf16.mxu1 %v6628_v14  ;;  %v6704_v12 = vld [vmem:[#allocation5 + $0x10e8] ss:$36 sps:$4 sm:$0xff]  }
 0x129   : > { %v6709_v14 = vld [vmem:[#allocation5 + $0x112c] ss:$36 sps:$4 sm:$0xff]  }
 0x12b   : > { %4008 = vmatpush1.bf16.msra.mxu0 %v6623_v15  ;;  %4180 = vmatpush1.bf16.msra.mxu1 %v6626_v19  ;;  %v6712_v15 = vld [vmem:[#allocation5 + $0x1134] ss:$36 sps:$4 sm:$0xff]   ;;  %v6707_v19 = vld [vmem:[#allocation5 + $0x1128] ss:$36 sps:$4 sm:$0xff]  }
 0x12c   : > { %4020 = vmatprep.subr.bf16.mxu0 %v6631_v20  ;;  %4192 = vmatprep.subr.bf16.mxu1 %v6634_v21  ;;  %v6710_v20 = vld [vmem:[#allocation5 + $0x1130] ss:$36 sps:$4 sm:$0xff]  }
 0x12d   : > { %v6715_v21 = vld [vmem:[#allocation5 + $0x1174] ss:$36 sps:$4 sm:$0xff]  }
 0x12e   : > { %4010 = vmatmul.mubr.bf16.vlgmr.msra.gmra.mrb[0].mxu0 %v7675_v24  ;;  %4182 = vmatmul.mubr.bf16.vlgmr.msra.gmra.mrb[0].mxu1 %v7675_v24 }
 0x12f   : > { %4021 = vmatpush1.bf16.msra.mxu0 %v6629_v22  ;;  %4193 = vmatpush1.bf16.msra.mxu1 %v6632_v23  ;;  %v6718_v22 = vld [vmem:[#allocation5 + $0x117c] ss:$36 sps:$4 sm:$0xff]   ;;  %v6713_v23 = vld [vmem:[#allocation5 + $0x1170] ss:$36 sps:$4 sm:$0xff]  }
 0x130   : > { %4022 = vmatprep.subr.bf16.mxu0 %v6637_v27  ;;  %4194 = vmatprep.subr.bf16.mxu1 %v6640_v28  ;;  %v6716_v27 = vld [vmem:[#allocation5 + $0x1178] ss:$36 sps:$4 sm:$0xff]  }
 0x131   : > { %4052 = vmatprep.mubr.bf16.mxu0 %v7685_v29  ;;  %4224 = vmatprep.mubr.bf16.mxu1 %v7685_v29  ;;  %v6721_v28 = vld [vmem:[#allocation5 + $0x11bc] ss:$36 sps:$4 sm:$0xff]  }
 0x133   : > { %4023 = vmatpush1.bf16.msra.mxu0 %v6635_v16  ;;  %4195 = vmatpush1.bf16.msra.mxu1 %v6638_v17  ;;  %v6724_v16 = vld [vmem:[#allocation5 + $0x11c4] ss:$36 sps:$4 sm:$0xff]   ;;  %v6719_v17 = vld [vmem:[#allocation5 + $0x11b8] ss:$36 sps:$4 sm:$0xff]  }
 0x134   : > { %4024 = vmatprep.subr.bf16.mxu0 %v6643_v30  ;;  %4196 = vmatprep.subr.bf16.mxu1 %v6646_v31  ;;  %v6722_v30 = vld [vmem:[#allocation5 + $0x11c0] ss:$36 sps:$4 sm:$0xff]   ;;  %v6727_v31 = vld [vmem:[#allocation5 + $0x14] ss:$36 sps:$4 sm:$0xff]  }
 0x137   : > { %4025 = vmatpush1.bf16.msra.mxu0 %v6641_v32  ;;  %4197 = vmatpush1.bf16.msra.mxu1 %v6644_v33  ;;  %v6730_v32 = vld [vmem:[#allocation5 + $0x1c] ss:$36 sps:$4 sm:$0xff]   ;;  %v7693_v33 = vcombine.low %v7678_v25, %v7681_v26  ;;  %v6742_v25 = vld [vmem:[#allocation5 + $0xac] ss:$36 sps:$4 sm:$0xff]  }
 0x138   : > { %4026 = vmatprep.subr.bf16.mxu0 %v6649_v35  ;;  %4198 = vmatprep.subr.bf16.mxu1 %v6652_v36  ;;  %v6725_v35 = vld [vmem:[#allocation5 + $0x10] ss:$36 sps:$4 sm:$0xff]   ;;  %v6728_v36 = vld [vmem:[#allocation5 + $0x18] ss:$36 sps:$4 sm:$0xff]   ;;  %v6737_v26 = vld [vmem:[#allocation5 + $0xa0] ss:$36 sps:$4 sm:$0xff]  }
 0x13b   : > { %4027 = vmatpush1.bf16.msra.mxu0 %v6647_v37  ;;  %4199 = vmatpush1.bf16.msra.mxu1 %v6650_v38  ;;  %v6733_v37 = vld [vmem:[#allocation5 + $0x5c] ss:$36 sps:$4 sm:$0xff]   ;;  %v6736_v38 = vld [vmem:[#allocation5 + $0x64] ss:$36 sps:$4 sm:$0xff]  }
 0x13c   : > { %4028 = vmatprep.subr.bf16.mxu0 %v6655_v39  ;;  %4200 = vmatprep.subr.bf16.mxu1 %v6658_v40  ;;  %v6731_v39 = vld [vmem:[#allocation5 + $0x58] ss:$36 sps:$4 sm:$0xff]   ;;  %v6734_v40 = vld [vmem:[#allocation5 + $0x60] ss:$36 sps:$4 sm:$0xff]  }
 0x13f   : > { %4029 = vmatpush1.bf16.msra.mxu0 %v6653_v41  ;;  %4201 = vmatpush1.bf16.msra.mxu1 %v6656_v42  ;;  %v6739_v41 = vld [vmem:[#allocation5 + $0xa4] ss:$36 sps:$4 sm:$0xff]  }
 0x140   : > { %4030 = vmatprep.subr.bf16.mxu0 %v6661_v43  ;;  %4202 = vmatprep.subr.bf16.mxu1 %v6664_v44  ;;  %v6740_v42 = vld [vmem:[#allocation5 + $0xa8] ss:$36 sps:$4 sm:$0xff]   ;;  %v6748_v44 = vld [vmem:[#allocation5 + $0xf4] ss:$36 sps:$4 sm:$0xff]  }
 0x141   : > { %v6745_v43 = vld [vmem:[#allocation5 + $0xec] ss:$36 sps:$4 sm:$0xff]  }
 0x143   : > { %4031 = vmatpush1.bf16.msra.mxu0 %v6659_v45  ;;  %4203 = vmatpush1.bf16.msra.mxu1 %v6662_v46  ;;  %v6743_v45 = vld [vmem:[#allocation5 + $0xe8] ss:$36 sps:$4 sm:$0xff]   ;;  %v6746_v46 = vld [vmem:[#allocation5 + $0xf0] ss:$36 sps:$4 sm:$0xff]  }
 0x144   : > { %4032 = vmatprep.subr.bf16.mxu0 %v6667_v47  ;;  %4204 = vmatprep.subr.bf16.mxu1 %v6670_v48  ;;  %v6751_v47 = vld [vmem:[#allocation5 + $0x134] ss:$36 sps:$4 sm:$0xff]   ;;  %v6754_v48 = vld [vmem:[#allocation5 + $0x13c] ss:$36 sps:$4 sm:$0xff]  }
 0x147   : > { %4033 = vmatpush1.bf16.msra.mxu0 %v6665_v49  ;;  %4205 = vmatpush1.bf16.msra.mxu1 %v6668_v51  ;;  %v6749_v49 = vld [vmem:[#allocation5 + $0x130] ss:$36 sps:$4 sm:$0xff]   ;;  %v6752_v51 = vld [vmem:[#allocation5 + $0x138] ss:$36 sps:$4 sm:$0xff]  }
 0x148   : > { %4034 = vmatprep.subr.bf16.mxu0 %v6673_v52  ;;  %4206 = vmatprep.subr.bf16.mxu1 %v6676_v53  ;;  %v6757_v52 = vld [vmem:[#allocation5 + $0x17c] ss:$36 sps:$4 sm:$0xff]   ;;  %v6760_v53 = vld [vmem:[#allocation5 + $0x184] ss:$36 sps:$4 sm:$0xff]  }
 0x14b   : > { %4035 = vmatpush1.bf16.msra.mxu0 %v6671_v54  ;;  %4207 = vmatpush1.bf16.msra.mxu1 %v6674_v55  ;;  %v6755_v54 = vld [vmem:[#allocation5 + $0x178] ss:$36 sps:$4 sm:$0xff]   ;;  %v6758_v55 = vld [vmem:[#allocation5 + $0x180] ss:$36 sps:$4 sm:$0xff]  }
 0x14c   : > { %4036 = vmatprep.subr.bf16.mxu0 %v6679_v56  ;;  %4208 = vmatprep.subr.bf16.mxu1 %v6682_v57  ;;  %v6763_v56 = vld [vmem:[#allocation5 + $0x1c4] ss:$36 sps:$4 sm:$0xff]   ;;  %v6766_v57 = vld [vmem:[#allocation5 + $0x1cc] ss:$36 sps:$4 sm:$0xff]  }
 0x14f   : > { %4037 = vmatpush1.bf16.msra.mxu0 %v6677_v58  ;;  %4209 = vmatpush1.bf16.msra.mxu1 %v6680_v59  ;;  %v6761_v58 = vld [vmem:[#allocation5 + $0x1c0] ss:$36 sps:$4 sm:$0xff]   ;;  %v6764_v59 = vld [vmem:[#allocation5 + $0x1c8] ss:$36 sps:$4 sm:$0xff]  }
 0x150   : > { %4038 = vmatprep.subr.bf16.mxu0 %v6685_v60  ;;  %4210 = vmatprep.subr.bf16.mxu1 %v6688_v61  ;;  %v6769_v60 = vld [vmem:[#allocation5 + $0x20c] ss:$36 sps:$4 sm:$0xff]   ;;  %v6772_v61 = vld [vmem:[#allocation5 + $0x214] ss:$36 sps:$4 sm:$0xff]  }
 0x153   : > { %4039 = vmatpush1.bf16.msra.mxu0 %v6683_v62  ;;  %4211 = vmatpush1.bf16.msra.mxu1 %v6686_v63  ;;  %v6767_v62 = vld [vmem:[#allocation5 + $0x208] ss:$36 sps:$4 sm:$0xff]   ;;  %v6770_v63 = vld [vmem:[#allocation5 + $0x210] ss:$36 sps:$4 sm:$0xff]  }
 0x154   : > { %4040 = vmatprep.subr.bf16.mxu0 %v6691_v0  ;;  %4212 = vmatprep.subr.bf16.mxu1 %v6694_v1  ;;  %v6775_v0 = vld [vmem:[#allocation5 + $0x254] ss:$36 sps:$4 sm:$0xff]   ;;  %v6778_v1 = vld [vmem:[#allocation5 + $0x25c] ss:$36 sps:$4 sm:$0xff]  }
 0x157   : > { %4041 = vmatpush1.bf16.msra.mxu0 %v6689_v2  ;;  %4213 = vmatpush1.bf16.msra.mxu1 %v6692_v3  ;;  %v6773_v2 = vld [vmem:[#allocation5 + $0x250] ss:$36 sps:$4 sm:$0xff]   ;;  %v6776_v3 = vld [vmem:[#allocation5 + $0x258] ss:$36 sps:$4 sm:$0xff]  }
 0x158   : > { %4042 = vmatprep.subr.bf16.mxu0 %v6697_v4  ;;  %4214 = vmatprep.subr.bf16.mxu1 %v6700_v6  ;;  %v6781_v4 = vld [vmem:[#allocation5 + $0x29c] ss:$36 sps:$4 sm:$0xff]   ;;  %v6784_v6 = vld [vmem:[#allocation5 + $0x2a4] ss:$36 sps:$4 sm:$0xff]  }
 0x15b   : > { %4043 = vmatpush1.bf16.msra.mxu0 %v6695_v7  ;;  %4215 = vmatpush1.bf16.msra.mxu1 %v6698_v8  ;;  %v6779_v7 = vld [vmem:[#allocation5 + $0x298] ss:$36 sps:$4 sm:$0xff]   ;;  %v6782_v8 = vld [vmem:[#allocation5 + $0x2a0] ss:$36 sps:$4 sm:$0xff]  }
 0x15c   : > { %4044 = vmatprep.subr.bf16.mxu0 %v6703_v9  ;;  %4216 = vmatprep.subr.bf16.mxu1 %v6706_v10  ;;  %v6787_v9 = vld [vmem:[#allocation5 + $0x2e4] ss:$36 sps:$4 sm:$0xff]   ;;  %v6790_v10 = vld [vmem:[#allocation5 + $0x2ec] ss:$36 sps:$4 sm:$0xff]  }
 0x15f   : > { %4045 = vmatpush1.bf16.msra.mxu0 %v6701_v11  ;;  %4217 = vmatpush1.bf16.msra.mxu1 %v6704_v12  ;;  %v6785_v11 = vld [vmem:[#allocation5 + $0x2e0] ss:$36 sps:$4 sm:$0xff]   ;;  %v6788_v12 = vld [vmem:[#allocation5 + $0x2e8] ss:$36 sps:$4 sm:$0xff]  }
 0x160   : > { %4046 = vmatprep.subr.bf16.mxu0 %v6709_v14  ;;  %4218 = vmatprep.subr.bf16.mxu1 %v6712_v15  ;;  %v6793_v14 = vld [vmem:[#allocation5 + $0x32c] ss:$36 sps:$4 sm:$0xff]   ;;  %v6796_v15 = vld [vmem:[#allocation5 + $0x334] ss:$36 sps:$4 sm:$0xff]  }
 0x163   : > { %4047 = vmatpush1.bf16.msra.mxu0 %v6707_v19  ;;  %4219 = vmatpush1.bf16.msra.mxu1 %v6710_v20  ;;  %v6791_v19 = vld [vmem:[#allocation5 + $0x328] ss:$36 sps:$4 sm:$0xff]   ;;  %v6794_v20 = vld [vmem:[#allocation5 + $0x330] ss:$36 sps:$4 sm:$0xff]  }
 0x164   : > { %4048 = vmatprep.subr.bf16.mxu0 %v6715_v21  ;;  %4220 = vmatprep.subr.bf16.mxu1 %v6718_v22  ;;  %v6799_v21 = vld [vmem:[#allocation5 + $0x374] ss:$36 sps:$4 sm:$0xff]   ;;  %v6802_v22 = vld [vmem:[#allocation5 + $0x37c] ss:$36 sps:$4 sm:$0xff]  }
 0x167   : > { %4049 = vmatpush1.bf16.msra.mxu0 %v6713_v23  ;;  %4221 = vmatpush1.bf16.msra.mxu1 %v6716_v27  ;;  %v6797_v23 = vld [vmem:[#allocation5 + $0x370] ss:$36 sps:$4 sm:$0xff]   ;;  %v6800_v27 = vld [vmem:[#allocation5 + $0x378] ss:$36 sps:$4 sm:$0xff]  }
 0x168   : > { %4050 = vmatprep.subr.bf16.mxu0 %v6721_v28  ;;  %4222 = vmatprep.subr.bf16.mxu1 %v6724_v16  ;;  %v6805_v28 = vld [vmem:[#allocation5 + $0x3bc] ss:$36 sps:$4 sm:$0xff]   ;;  %v6808_v16 = vld [vmem:[#allocation5 + $0x3c4] ss:$36 sps:$4 sm:$0xff]  }
 0x16b   : > { %4051 = vmatpush1.bf16.msra.mxu0 %v6719_v17  ;;  %4223 = vmatpush1.bf16.msra.mxu1 %v6722_v30  ;;  %v6803_v17 = vld [vmem:[#allocation5 + $0x3b8] ss:$36 sps:$4 sm:$0xff]   ;;  %v6806_v30 = vld [vmem:[#allocation5 + $0x3c0] ss:$36 sps:$4 sm:$0xff]  }
 0x16c   : > { %4235 = vmatprep.subr.bf16.mxu0 %v6727_v31  ;;  %4407 = vmatprep.subr.bf16.mxu1 %v6730_v32  ;;  %v6811_v31 = vld [vmem:[#allocation5 + $0x404] ss:$36 sps:$4 sm:$0xff]   ;;  %v6814_v32 = vld [vmem:[#allocation5 + $0x40c] ss:$36 sps:$4 sm:$0xff]  }
 0x16e   : > { %4053 = vmatmul.mubr.bf16.vlgmr.msra.gmra.mrb[0].mxu0 %v7693_v33  ;;  %4225 = vmatmul.mubr.bf16.vlgmr.msra.gmra.mrb[0].mxu1 %v7693_v33 }
 0x16f   : > { %4236 = vmatpush1.bf16.msra.mxu0 %v6725_v35  ;;  %4408 = vmatpush1.bf16.msra.mxu1 %v6728_v36  ;;  %v6809_v35 = vld [vmem:[#allocation5 + $0x400] ss:$36 sps:$4 sm:$0xff]   ;;  %v6812_v36 = vld [vmem:[#allocation5 + $0x408] ss:$36 sps:$4 sm:$0xff]  }
 0x170   : > { %4237 = vmatprep.subr.bf16.mxu0 %v6733_v37  ;;  %4409 = vmatprep.subr.bf16.mxu1 %v6736_v38  ;;  %v6817_v37 = vld [vmem:[#allocation5 + $0x44c] ss:$36 sps:$4 sm:$0xff]   ;;  %v6820_v38 = vld [vmem:[#allocation5 + $0x454] ss:$36 sps:$4 sm:$0xff]  }
 0x171   : > { %4267 = vmatprep.mubr.bf16.mxu0 %v7635_v50  ;;  %4439 = vmatprep.mubr.bf16.mxu1 %v7635_v50 }
 0x173   : > { %4238 = vmatpush1.bf16.msra.mxu0 %v6731_v39  ;;  %4410 = vmatpush1.bf16.msra.mxu1 %v6734_v40  ;;  %v6815_v39 = vld [vmem:[#allocation5 + $0x448] ss:$36 sps:$4 sm:$0xff]   ;;  %v6818_v40 = vld [vmem:[#allocation5 + $0x450] ss:$36 sps:$4 sm:$0xff]  }
 0x174   : > { %4239 = vmatprep.subr.bf16.mxu0 %v6739_v41  ;;  %4411 = vmatprep.subr.bf16.mxu1 %v6742_v25  ;;  %v6823_v41 = vld [vmem:[#allocation5 + $0x494] ss:$36 sps:$4 sm:$0xff]   ;;  %v6826_v25 = vld [vmem:[#allocation5 + $0x49c] ss:$36 sps:$4 sm:$0xff]  }
 0x177   : > { %4240 = vmatpush1.bf16.msra.mxu0 %v6737_v26  ;;  %4412 = vmatpush1.bf16.msra.mxu1 %v6740_v42  ;;  %v6821_v26 = vld [vmem:[#allocation5 + $0x490] ss:$36 sps:$4 sm:$0xff]   ;;  %v6824_v42 = vld [vmem:[#allocation5 + $0x498] ss:$36 sps:$4 sm:$0xff]  }
 0x178   : > { %4241 = vmatprep.subr.bf16.mxu0 %v6745_v43  ;;  %4413 = vmatprep.subr.bf16.mxu1 %v6748_v44  ;;  %v6829_v43 = vld [vmem:[#allocation5 + $0x4dc] ss:$36 sps:$4 sm:$0xff]   ;;  %v6832_v44 = vld [vmem:[#allocation5 + $0x4e4] ss:$36 sps:$4 sm:$0xff]  }
 0x17b   : > { %4242 = vmatpush1.bf16.msra.mxu0 %v6743_v45  ;;  %4414 = vmatpush1.bf16.msra.mxu1 %v6746_v46  ;;  %v6827_v45 = vld [vmem:[#allocation5 + $0x4d8] ss:$36 sps:$4 sm:$0xff]   ;;  %v6830_v46 = vld [vmem:[#allocation5 + $0x4e0] ss:$36 sps:$4 sm:$0xff]  }
 0x17c   : > { %4243 = vmatprep.subr.bf16.mxu0 %v6751_v47  ;;  %4415 = vmatprep.subr.bf16.mxu1 %v6754_v48  ;;  %v6835_v47 = vld [vmem:[#allocation5 + $0x524] ss:$36 sps:$4 sm:$0xff]   ;;  %v6838_v48 = vld [vmem:[#allocation5 + $0x52c] ss:$36 sps:$4 sm:$0xff]  }
 0x17f   : > { %4244 = vmatpush1.bf16.msra.mxu0 %v6749_v49  ;;  %4416 = vmatpush1.bf16.msra.mxu1 %v6752_v51  ;;  %v6833_v49 = vld [vmem:[#allocation5 + $0x520] ss:$36 sps:$4 sm:$0xff]   ;;  %v6836_v51 = vld [vmem:[#allocation5 + $0x528] ss:$36 sps:$4 sm:$0xff]  }
 0x180   : > { %4245 = vmatprep.subr.bf16.mxu0 %v6757_v52  ;;  %4417 = vmatprep.subr.bf16.mxu1 %v6760_v53  ;;  %v6841_v52 = vld [vmem:[#allocation5 + $0x56c] ss:$36 sps:$4 sm:$0xff]   ;;  %v6844_v53 = vld [vmem:[#allocation5 + $0x574] ss:$36 sps:$4 sm:$0xff]  }
 0x183   : > { %4246 = vmatpush1.bf16.msra.mxu0 %v6755_v54  ;;  %4418 = vmatpush1.bf16.msra.mxu1 %v6758_v55  ;;  %v6839_v54 = vld [vmem:[#allocation5 + $0x568] ss:$36 sps:$4 sm:$0xff]   ;;  %v6842_v55 = vld [vmem:[#allocation5 + $0x570] ss:$36 sps:$4 sm:$0xff]  }
 0x184   : > { %4247 = vmatprep.subr.bf16.mxu0 %v6763_v56  ;;  %4419 = vmatprep.subr.bf16.mxu1 %v6766_v57  ;;  %v6847_v56 = vld [vmem:[#allocation5 + $0x5b4] ss:$36 sps:$4 sm:$0xff]   ;;  %v6850_v57 = vld [vmem:[#allocation5 + $0x5bc] ss:$36 sps:$4 sm:$0xff]  }
 0x187   : > { %4248 = vmatpush1.bf16.msra.mxu0 %v6761_v58  ;;  %4420 = vmatpush1.bf16.msra.mxu1 %v6764_v59  ;;  %v6845_v58 = vld [vmem:[#allocation5 + $0x5b0] ss:$36 sps:$4 sm:$0xff]   ;;  %v6848_v59 = vld [vmem:[#allocation5 + $0x5b8] ss:$36 sps:$4 sm:$0xff]  }
 0x188   : > { %4249 = vmatprep.subr.bf16.mxu0 %v6769_v60  ;;  %4421 = vmatprep.subr.bf16.mxu1 %v6772_v61  ;;  %v6853_v60 = vld [vmem:[#allocation5 + $0x5fc] ss:$36 sps:$4 sm:$0xff]   ;;  %v6856_v61 = vld [vmem:[#allocation5 + $0x604] ss:$36 sps:$4 sm:$0xff]  }
 0x18b   : > { %4250 = vmatpush1.bf16.msra.mxu0 %v6767_v62  ;;  %4422 = vmatpush1.bf16.msra.mxu1 %v6770_v63  ;;  %v6851_v62 = vld [vmem:[#allocation5 + $0x5f8] ss:$36 sps:$4 sm:$0xff]   ;;  %v6854_v63 = vld [vmem:[#allocation5 + $0x600] ss:$36 sps:$4 sm:$0xff]  }
 0x18c   : > { %4251 = vmatprep.subr.bf16.mxu0 %v6775_v0  ;;  %4423 = vmatprep.subr.bf16.mxu1 %v6778_v1  ;;  %v6859_v0 = vld [vmem:[#allocation5 + $0x644] ss:$36 sps:$4 sm:$0xff]   ;;  %v6862_v1 = vld [vmem:[#allocation5 + $0x64c] ss:$36 sps:$4 sm:$0xff]  }
 0x18f   : > { %4252 = vmatpush1.bf16.msra.mxu0 %v6773_v2  ;;  %4424 = vmatpush1.bf16.msra.mxu1 %v6776_v3  ;;  %v6857_v2 = vld [vmem:[#allocation5 + $0x640] ss:$36 sps:$4 sm:$0xff]   ;;  %v6860_v3 = vld [vmem:[#allocation5 + $0x648] ss:$36 sps:$4 sm:$0xff]  }
 0x190   : > { %4253 = vmatprep.subr.bf16.mxu0 %v6781_v4  ;;  %4425 = vmatprep.subr.bf16.mxu1 %v6784_v6  ;;  %v6865_v4 = vld [vmem:[#allocation5 + $0x68c] ss:$36 sps:$4 sm:$0xff]   ;;  %v6868_v6 = vld [vmem:[#allocation5 + $0x694] ss:$36 sps:$4 sm:$0xff]  }
 0x193   : > { %4254 = vmatpush1.bf16.msra.mxu0 %v6779_v7  ;;  %4426 = vmatpush1.bf16.msra.mxu1 %v6782_v8  ;;  %v6863_v7 = vld [vmem:[#allocation5 + $0x688] ss:$36 sps:$4 sm:$0xff]   ;;  %v6866_v8 = vld [vmem:[#allocation5 + $0x690] ss:$36 sps:$4 sm:$0xff]  }
 0x194   : > { %4255 = vmatprep.subr.bf16.mxu0 %v6787_v9  ;;  %4427 = vmatprep.subr.bf16.mxu1 %v6790_v10  ;;  %v6871_v9 = vld [vmem:[#allocation5 + $0x6d4] ss:$36 sps:$4 sm:$0xff]   ;;  %v6874_v10 = vld [vmem:[#allocation5 + $0x6dc] ss:$36 sps:$4 sm:$0xff]  }
 0x197   : > { %4256 = vmatpush1.bf16.msra.mxu0 %v6785_v11  ;;  %4428 = vmatpush1.bf16.msra.mxu1 %v6788_v12  ;;  %v6869_v11 = vld [vmem:[#allocation5 + $0x6d0] ss:$36 sps:$4 sm:$0xff]   ;;  %v6872_v12 = vld [vmem:[#allocation5 + $0x6d8] ss:$36 sps:$4 sm:$0xff]  }
 0x198   : > { %4257 = vmatprep.subr.bf16.mxu0 %v6793_v14  ;;  %4429 = vmatprep.subr.bf16.mxu1 %v6796_v15  ;;  %v6877_v14 = vld [vmem:[#allocation5 + $0x71c] ss:$36 sps:$4 sm:$0xff]   ;;  %v6880_v15 = vld [vmem:[#allocation5 + $0x724] ss:$36 sps:$4 sm:$0xff]  }
 0x19b   : > { %4258 = vmatpush1.bf16.msra.mxu0 %v6791_v19  ;;  %4430 = vmatpush1.bf16.msra.mxu1 %v6794_v20  ;;  %v6875_v19 = vld [vmem:[#allocation5 + $0x718] ss:$36 sps:$4 sm:$0xff]   ;;  %v6878_v20 = vld [vmem:[#allocation5 + $0x720] ss:$36 sps:$4 sm:$0xff]  }
 0x19c   : > { %4259 = vmatprep.subr.bf16.mxu0 %v6799_v21  ;;  %4431 = vmatprep.subr.bf16.mxu1 %v6802_v22  ;;  %v6883_v21 = vld [vmem:[#allocation5 + $0x764] ss:$36 sps:$4 sm:$0xff]   ;;  %v6886_v22 = vld [vmem:[#allocation5 + $0x76c] ss:$36 sps:$4 sm:$0xff]  }
 0x19f   : > { %4260 = vmatpush1.bf16.msra.mxu0 %v6797_v23  ;;  %4432 = vmatpush1.bf16.msra.mxu1 %v6800_v27  ;;  %v6881_v23 = vld [vmem:[#allocation5 + $0x760] ss:$36 sps:$4 sm:$0xff]   ;;  %v6884_v27 = vld [vmem:[#allocation5 + $0x768] ss:$36 sps:$4 sm:$0xff]  }
 0x1a0   : > { %4261 = vmatprep.subr.bf16.mxu0 %v6805_v28  ;;  %4433 = vmatprep.subr.bf16.mxu1 %v6808_v16  ;;  %v6889_v28 = vld [vmem:[#allocation5 + $0x7ac] ss:$36 sps:$4 sm:$0xff]   ;;  %v6892_v16 = vld [vmem:[#allocation5 + $0x7b4] ss:$36 sps:$4 sm:$0xff]  }
 0x1a3   : > { %4262 = vmatpush1.bf16.msra.mxu0 %v6803_v17  ;;  %4434 = vmatpush1.bf16.msra.mxu1 %v6806_v30  ;;  %v6887_v17 = vld [vmem:[#allocation5 + $0x7a8] ss:$36 sps:$4 sm:$0xff]   ;;  %v6890_v30 = vld [vmem:[#allocation5 + $0x7b0] ss:$36 sps:$4 sm:$0xff]  }
 0x1a4   : > { %4263 = vmatprep.subr.bf16.mxu0 %v6811_v31  ;;  %4435 = vmatprep.subr.bf16.mxu1 %v6814_v32  ;;  %v6895_v31 = vld [vmem:[#allocation5 + $0x7f4] ss:$36 sps:$4 sm:$0xff]   ;;  %v6898_v32 = vld [vmem:[#allocation5 + $0x7fc] ss:$36 sps:$4 sm:$0xff]  }
 0x1a7   : > { %4264 = vmatpush1.bf16.msra.mxu0 %v6809_v35  ;;  %4436 = vmatpush1.bf16.msra.mxu1 %v6812_v36  ;;  %v6893_v35 = vld [vmem:[#allocation5 + $0x7f0] ss:$36 sps:$4 sm:$0xff]   ;;  %v6896_v36 = vld [vmem:[#allocation5 + $0x7f8] ss:$36 sps:$4 sm:$0xff]  }
 0x1a8   : > { %4265 = vmatprep.subr.bf16.mxu0 %v6817_v37  ;;  %4437 = vmatprep.subr.bf16.mxu1 %v6820_v38  ;;  %v6901_v37 = vld [vmem:[#allocation5 + $0x83c] ss:$36 sps:$4 sm:$0xff]   ;;  %v6904_v38 = vld [vmem:[#allocation5 + $0x844] ss:$36 sps:$4 sm:$0xff]  }
 0x1ab   : > { %4266 = vmatpush1.bf16.msra.mxu0 %v6815_v39  ;;  %4438 = vmatpush1.bf16.msra.mxu1 %v6818_v40  ;;  %v6899_v39 = vld [vmem:[#allocation5 + $0x838] ss:$36 sps:$4 sm:$0xff]   ;;  %v6902_v40 = vld [vmem:[#allocation5 + $0x840] ss:$36 sps:$4 sm:$0xff]  }
 0x1ac   : > { %4278 = vmatprep.subr.bf16.mxu0 %v6823_v41  ;;  %4450 = vmatprep.subr.bf16.mxu1 %v6826_v25  ;;  %v6907_v41 = vld [vmem:[#allocation5 + $0x884] ss:$36 sps:$4 sm:$0xff]   ;;  %v6910_v25 = vld [vmem:[#allocation5 + $0x88c] ss:$36 sps:$4 sm:$0xff]  }
 0x1ae   : > { %4268 = vmatmul.mubr.bf16.vlgmr.msra.gmra.mrb[4].mxu0 %v7639_v5  ;;  %4440 = vmatmul.mubr.bf16.vlgmr.msra.gmra.mrb[4].mxu1 %v7639_v5 }
 0x1af   : > { %4279 = vmatpush1.bf16.msra.mxu0 %v6821_v26  ;;  %4451 = vmatpush1.bf16.msra.mxu1 %v6824_v42  ;;  %v6905_v26 = vld [vmem:[#allocation5 + $0x880] ss:$36 sps:$4 sm:$0xff]   ;;  %v6908_v42 = vld [vmem:[#allocation5 + $0x888] ss:$36 sps:$4 sm:$0xff]  }
 0x1b0   : > { %4280 = vmatprep.subr.bf16.mxu0 %v6829_v43  ;;  %4452 = vmatprep.subr.bf16.mxu1 %v6832_v44  ;;  %v6913_v43 = vld [vmem:[#allocation5 + $0x8cc] ss:$36 sps:$4 sm:$0xff]   ;;  %v6916_v44 = vld [vmem:[#allocation5 + $0x8d4] ss:$36 sps:$4 sm:$0xff]  }
 0x1b1   : > { %4310 = vmatprep.mubr.bf16.mxu0 %v7651_v34  ;;  %4482 = vmatprep.mubr.bf16.mxu1 %v7651_v34 }
 0x1b3   : > { %4281 = vmatpush1.bf16.msra.mxu0 %v6827_v45  ;;  %4453 = vmatpush1.bf16.msra.mxu1 %v6830_v46  ;;  %v6911_v45 = vld [vmem:[#allocation5 + $0x8c8] ss:$36 sps:$4 sm:$0xff]   ;;  %v6914_v46 = vld [vmem:[#allocation5 + $0x8d0] ss:$36 sps:$4 sm:$0xff]  }
 0x1b4   : > { %4282 = vmatprep.subr.bf16.mxu0 %v6835_v47  ;;  %4454 = vmatprep.subr.bf16.mxu1 %v6838_v48  ;;  %v6919_v47 = vld [vmem:[#allocation5 + $0x914] ss:$36 sps:$4 sm:$0xff]   ;;  %v6922_v48 = vld [vmem:[#allocation5 + $0x91c] ss:$36 sps:$4 sm:$0xff]  }
 0x1b7   : > { %4283 = vmatpush1.bf16.msra.mxu0 %v6833_v49  ;;  %4455 = vmatpush1.bf16.msra.mxu1 %v6836_v51  ;;  %v6917_v49 = vld [vmem:[#allocation5 + $0x910] ss:$36 sps:$4 sm:$0xff]   ;;  %v6920_v51 = vld [vmem:[#allocation5 + $0x918] ss:$36 sps:$4 sm:$0xff]  }
 0x1b8   : > { %4284 = vmatprep.subr.bf16.mxu0 %v6841_v52  ;;  %4456 = vmatprep.subr.bf16.mxu1 %v6844_v53  ;;  %v6925_v52 = vld [vmem:[#allocation5 + $0x95c] ss:$36 sps:$4 sm:$0xff]   ;;  %v6928_v53 = vld [vmem:[#allocation5 + $0x964] ss:$36 sps:$4 sm:$0xff]  }
 0x1bb   : > { %4285 = vmatpush1.bf16.msra.mxu0 %v6839_v54  ;;  %4457 = vmatpush1.bf16.msra.mxu1 %v6842_v55  ;;  %v6923_v54 = vld [vmem:[#allocation5 + $0x958] ss:$36 sps:$4 sm:$0xff]   ;;  %v6926_v55 = vld [vmem:[#allocation5 + $0x960] ss:$36 sps:$4 sm:$0xff]  }
 0x1bc   : > { %4286 = vmatprep.subr.bf16.mxu0 %v6847_v56  ;;  %4458 = vmatprep.subr.bf16.mxu1 %v6850_v57  ;;  %v6931_v56 = vld [vmem:[#allocation5 + $0x9a4] ss:$36 sps:$4 sm:$0xff]   ;;  %v6934_v57 = vld [vmem:[#allocation5 + $0x9ac] ss:$36 sps:$4 sm:$0xff]  }
 0x1bf   : > { %4287 = vmatpush1.bf16.msra.mxu0 %v6845_v58  ;;  %4459 = vmatpush1.bf16.msra.mxu1 %v6848_v59  ;;  %v6929_v58 = vld [vmem:[#allocation5 + $0x9a0] ss:$36 sps:$4 sm:$0xff]   ;;  %v6932_v59 = vld [vmem:[#allocation5 + $0x9a8] ss:$36 sps:$4 sm:$0xff]  }
 0x1c0   : > { %4288 = vmatprep.subr.bf16.mxu0 %v6853_v60  ;;  %4460 = vmatprep.subr.bf16.mxu1 %v6856_v61  ;;  %v6937_v60 = vld [vmem:[#allocation5 + $0x9ec] ss:$36 sps:$4 sm:$0xff]   ;;  %v6940_v61 = vld [vmem:[#allocation5 + $0x9f4] ss:$36 sps:$4 sm:$0xff]  }
 0x1c3   : > { %4289 = vmatpush1.bf16.msra.mxu0 %v6851_v62  ;;  %4461 = vmatpush1.bf16.msra.mxu1 %v6854_v63  ;;  %v6935_v62 = vld [vmem:[#allocation5 + $0x9e8] ss:$36 sps:$4 sm:$0xff]   ;;  %v6938_v63 = vld [vmem:[#allocation5 + $0x9f0] ss:$36 sps:$4 sm:$0xff]  }
 0x1c4   : > { %4290 = vmatprep.subr.bf16.mxu0 %v6859_v0  ;;  %4462 = vmatprep.subr.bf16.mxu1 %v6862_v1  ;;  %v6943_v0 = vld [vmem:[#allocation5 + $0xa34] ss:$36 sps:$4 sm:$0xff]   ;;  %v6946_v1 = vld [vmem:[#allocation5 + $0xa3c] ss:$36 sps:$4 sm:$0xff]  }
 0x1c7   : > { %4291 = vmatpush1.bf16.msra.mxu0 %v6857_v2  ;;  %4463 = vmatpush1.bf16.msra.mxu1 %v6860_v3  ;;  %v6941_v2 = vld [vmem:[#allocation5 + $0xa30] ss:$36 sps:$4 sm:$0xff]   ;;  %v6944_v3 = vld [vmem:[#allocation5 + $0xa38] ss:$36 sps:$4 sm:$0xff]  }
 0x1c8   : > { %4292 = vmatprep.subr.bf16.mxu0 %v6865_v4  ;;  %4464 = vmatprep.subr.bf16.mxu1 %v6868_v6  ;;  %v6949_v4 = vld [vmem:[#allocation5 + $0xa7c] ss:$36 sps:$4 sm:$0xff]   ;;  %v6952_v6 = vld [vmem:[#allocation5 + $0xa84] ss:$36 sps:$4 sm:$0xff]  }
 0x1cb   : > { %4293 = vmatpush1.bf16.msra.mxu0 %v6863_v7  ;;  %4465 = vmatpush1.bf16.msra.mxu1 %v6866_v8  ;;  %v6947_v7 = vld [vmem:[#allocation5 + $0xa78] ss:$36 sps:$4 sm:$0xff]   ;;  %v6950_v8 = vld [vmem:[#allocation5 + $0xa80] ss:$36 sps:$4 sm:$0xff]  }
 0x1cc   : > { %4294 = vmatprep.subr.bf16.mxu0 %v6871_v9  ;;  %4466 = vmatprep.subr.bf16.mxu1 %v6874_v10  ;;  %v6955_v9 = vld [vmem:[#allocation5 + $0xac4] ss:$36 sps:$4 sm:$0xff]   ;;  %v6958_v10 = vld [vmem:[#allocation5 + $0xacc] ss:$36 sps:$4 sm:$0xff]  }
 0x1cf   : > { %4295 = vmatpush1.bf16.msra.mxu0 %v6869_v11  ;;  %4467 = vmatpush1.bf16.msra.mxu1 %v6872_v12  ;;  %v6953_v11 = vld [vmem:[#allocation5 + $0xac0] ss:$36 sps:$4 sm:$0xff]   ;;  %v6956_v12 = vld [vmem:[#allocation5 + $0xac8] ss:$36 sps:$4 sm:$0xff]  }
 0x1d0   : > { %4296 = vmatprep.subr.bf16.mxu0 %v6877_v14  ;;  %4468 = vmatprep.subr.bf16.mxu1 %v6880_v15  ;;  %v6961_v14 = vld [vmem:[#allocation5 + $0xb0c] ss:$36 sps:$4 sm:$0xff]   ;;  %v6964_v15 = vld [vmem:[#allocation5 + $0xb14] ss:$36 sps:$4 sm:$0xff]  }
 0x1d3   : > { %4297 = vmatpush1.bf16.msra.mxu0 %v6875_v19  ;;  %4469 = vmatpush1.bf16.msra.mxu1 %v6878_v20  ;;  %v6959_v19 = vld [vmem:[#allocation5 + $0xb08] ss:$36 sps:$4 sm:$0xff]   ;;  %v6962_v20 = vld [vmem:[#allocation5 + $0xb10] ss:$36 sps:$4 sm:$0xff]  }
 0x1d4   : > { %4298 = vmatprep.subr.bf16.mxu0 %v6883_v21  ;;  %4470 = vmatprep.subr.bf16.mxu1 %v6886_v22  ;;  %v6967_v21 = vld [vmem:[#allocation5 + $0xb54] ss:$36 sps:$4 sm:$0xff]   ;;  %v6970_v22 = vld [vmem:[#allocation5 + $0xb5c] ss:$36 sps:$4 sm:$0xff]  }
 0x1d7   : > { %4299 = vmatpush1.bf16.msra.mxu0 %v6881_v23  ;;  %4471 = vmatpush1.bf16.msra.mxu1 %v6884_v27  ;;  %v6965_v23 = vld [vmem:[#allocation5 + $0xb50] ss:$36 sps:$4 sm:$0xff]   ;;  %v6968_v27 = vld [vmem:[#allocation5 + $0xb58] ss:$36 sps:$4 sm:$0xff]  }
 0x1d8   : > { %4300 = vmatprep.subr.bf16.mxu0 %v6889_v28  ;;  %4472 = vmatprep.subr.bf16.mxu1 %v6892_v16  ;;  %v6973_v28 = vld [vmem:[#allocation5 + $0xb9c] ss:$36 sps:$4 sm:$0xff]   ;;  %v6976_v16 = vld [vmem:[#allocation5 + $0xba4] ss:$36 sps:$4 sm:$0xff]  }
 0x1db   : > { %4301 = vmatpush1.bf16.msra.mxu0 %v6887_v17  ;;  %4473 = vmatpush1.bf16.msra.mxu1 %v6890_v30  ;;  %v6971_v17 = vld [vmem:[#allocation5 + $0xb98] ss:$36 sps:$4 sm:$0xff]   ;;  %v6974_v30 = vld [vmem:[#allocation5 + $0xba0] ss:$36 sps:$4 sm:$0xff]  }
 0x1dc   : > { %4302 = vmatprep.subr.bf16.mxu0 %v6895_v31  ;;  %4474 = vmatprep.subr.bf16.mxu1 %v6898_v32  ;;  %v6979_v31 = vld [vmem:[#allocation5 + $0xbe4] ss:$36 sps:$4 sm:$0xff]   ;;  %v6982_v32 = vld [vmem:[#allocation5 + $0xbec] ss:$36 sps:$4 sm:$0xff]  }
 0x1df   : > { %4303 = vmatpush1.bf16.msra.mxu0 %v6893_v35  ;;  %4475 = vmatpush1.bf16.msra.mxu1 %v6896_v36  ;;  %v6977_v35 = vld [vmem:[#allocation5 + $0xbe0] ss:$36 sps:$4 sm:$0xff]   ;;  %v6980_v36 = vld [vmem:[#allocation5 + $0xbe8] ss:$36 sps:$4 sm:$0xff]  }
 0x1e0   : > { %4304 = vmatprep.subr.bf16.mxu0 %v6901_v37  ;;  %4476 = vmatprep.subr.bf16.mxu1 %v6904_v38  ;;  %v6985_v37 = vld [vmem:[#allocation5 + $0xc2c] ss:$36 sps:$4 sm:$0xff]   ;;  %v6988_v38 = vld [vmem:[#allocation5 + $0xc34] ss:$36 sps:$4 sm:$0xff]  }
 0x1e3   : > { %4305 = vmatpush1.bf16.msra.mxu0 %v6899_v39  ;;  %4477 = vmatpush1.bf16.msra.mxu1 %v6902_v40  ;;  %v6983_v39 = vld [vmem:[#allocation5 + $0xc28] ss:$36 sps:$4 sm:$0xff]   ;;  %v6986_v40 = vld [vmem:[#allocation5 + $0xc30] ss:$36 sps:$4 sm:$0xff]  }
 0x1e4   : > { %4306 = vmatprep.subr.bf16.mxu0 %v6907_v41  ;;  %4478 = vmatprep.subr.bf16.mxu1 %v6910_v25  ;;  %v6991_v41 = vld [vmem:[#allocation5 + $0xc74] ss:$36 sps:$4 sm:$0xff]   ;;  %v6994_v25 = vld [vmem:[#allocation5 + $0xc7c] ss:$36 sps:$4 sm:$0xff]  }
 0x1e7   : > { %4307 = vmatpush1.bf16.msra.mxu0 %v6905_v26  ;;  %4479 = vmatpush1.bf16.msra.mxu1 %v6908_v42  ;;  %v6989_v26 = vld [vmem:[#allocation5 + $0xc70] ss:$36 sps:$4 sm:$0xff]   ;;  %v6992_v42 = vld [vmem:[#allocation5 + $0xc78] ss:$36 sps:$4 sm:$0xff]  }
 0x1e8   : > { %4308 = vmatprep.subr.bf16.mxu0 %v6913_v43  ;;  %4480 = vmatprep.subr.bf16.mxu1 %v6916_v44  ;;  %v6997_v43 = vld [vmem:[#allocation5 + $0xcbc] ss:$36 sps:$4 sm:$0xff]   ;;  %v7000_v44 = vld [vmem:[#allocation5 + $0xcc4] ss:$36 sps:$4 sm:$0xff]  }
 0x1eb   : > { %4309 = vmatpush1.bf16.msra.mxu0 %v6911_v45  ;;  %4481 = vmatpush1.bf16.msra.mxu1 %v6914_v46  ;;  %v6995_v45 = vld [vmem:[#allocation5 + $0xcb8] ss:$36 sps:$4 sm:$0xff]   ;;  %v6998_v46 = vld [vmem:[#allocation5 + $0xcc0] ss:$36 sps:$4 sm:$0xff]  }
 0x1ec   : > { %4321 = vmatprep.subr.bf16.mxu0 %v6919_v47  ;;  %4493 = vmatprep.subr.bf16.mxu1 %v6922_v48  ;;  %v7003_v47 = vld [vmem:[#allocation5 + $0xd04] ss:$36 sps:$4 sm:$0xff]   ;;  %v7006_v48 = vld [vmem:[#allocation5 + $0xd0c] ss:$36 sps:$4 sm:$0xff]  }
 0x1ee   : > { %4311 = vmatmul.mubr.bf16.vlgmr.msra.gmra.mrb[4].mxu0 %v7657_v13  ;;  %4483 = vmatmul.mubr.bf16.vlgmr.msra.gmra.mrb[4].mxu1 %v7657_v13 }
 0x1ef   : > { %4322 = vmatpush1.bf16.msra.mxu0 %v6917_v49  ;;  %4494 = vmatpush1.bf16.msra.mxu1 %v6920_v51  ;;  %v7001_v49 = vld [vmem:[#allocation5 + $0xd00] ss:$36 sps:$4 sm:$0xff]   ;;  %v7004_v51 = vld [vmem:[#allocation5 + $0xd08] ss:$36 sps:$4 sm:$0xff]  }
 0x1f0   : > { %4323 = vmatprep.subr.bf16.mxu0 %v6925_v52  ;;  %4495 = vmatprep.subr.bf16.mxu1 %v6928_v53  ;;  %v7009_v52 = vld [vmem:[#allocation5 + $0xd4c] ss:$36 sps:$4 sm:$0xff]   ;;  %v7012_v53 = vld [vmem:[#allocation5 + $0xd54] ss:$36 sps:$4 sm:$0xff]  }
 0x1f1   : > { %4353 = vmatprep.mubr.bf16.mxu0 %v7667_v18  ;;  %4525 = vmatprep.mubr.bf16.mxu1 %v7667_v18 }
 0x1f3   : > { %4324 = vmatpush1.bf16.msra.mxu0 %v6923_v54  ;;  %4496 = vmatpush1.bf16.msra.mxu1 %v6926_v55  ;;  %v7007_v54 = vld [vmem:[#allocation5 + $0xd48] ss:$36 sps:$4 sm:$0xff]   ;;  %v7010_v55 = vld [vmem:[#allocation5 + $0xd50] ss:$36 sps:$4 sm:$0xff]  }
 0x1f4   : > { %4325 = vmatprep.subr.bf16.mxu0 %v6931_v56  ;;  %4497 = vmatprep.subr.bf16.mxu1 %v6934_v57  ;;  %v7015_v56 = vld [vmem:[#allocation5 + $0xd94] ss:$36 sps:$4 sm:$0xff]   ;;  %v7018_v57 = vld [vmem:[#allocation5 + $0xd9c] ss:$36 sps:$4 sm:$0xff]  }
 0x1f7   : > { %4326 = vmatpush1.bf16.msra.mxu0 %v6929_v58  ;;  %4498 = vmatpush1.bf16.msra.mxu1 %v6932_v59  ;;  %v7013_v58 = vld [vmem:[#allocation5 + $0xd90] ss:$36 sps:$4 sm:$0xff]   ;;  %v7016_v59 = vld [vmem:[#allocation5 + $0xd98] ss:$36 sps:$4 sm:$0xff]  }
 0x1f8   : > { %4327 = vmatprep.subr.bf16.mxu0 %v6937_v60  ;;  %4499 = vmatprep.subr.bf16.mxu1 %v6940_v61  ;;  %v7021_v60 = vld [vmem:[#allocation5 + $0xddc] ss:$36 sps:$4 sm:$0xff]   ;;  %v7024_v61 = vld [vmem:[#allocation5 + $0xde4] ss:$36 sps:$4 sm:$0xff]  }
 0x1fb   : > { %4328 = vmatpush1.bf16.msra.mxu0 %v6935_v62  ;;  %4500 = vmatpush1.bf16.msra.mxu1 %v6938_v63  ;;  %v7019_v62 = vld [vmem:[#allocation5 + $0xdd8] ss:$36 sps:$4 sm:$0xff]   ;;  %v7022_v63 = vld [vmem:[#allocation5 + $0xde0] ss:$36 sps:$4 sm:$0xff]  }
 0x1fc   : > { %4329 = vmatprep.subr.bf16.mxu0 %v6943_v0  ;;  %4501 = vmatprep.subr.bf16.mxu1 %v6946_v1  ;;  %v7027_v0 = vld [vmem:[#allocation5 + $0xe24] ss:$36 sps:$4 sm:$0xff]   ;;  %v7030_v1 = vld [vmem:[#allocation5 + $0xe2c] ss:$36 sps:$4 sm:$0xff]  }
 0x1ff   : > { %4330 = vmatpush1.bf16.msra.mxu0 %v6941_v2  ;;  %4502 = vmatpush1.bf16.msra.mxu1 %v6944_v3  ;;  %v7025_v2 = vld [vmem:[#allocation5 + $0xe20] ss:$36 sps:$4 sm:$0xff]   ;;  %v7028_v3 = vld [vmem:[#allocation5 + $0xe28] ss:$36 sps:$4 sm:$0xff]  }
 0x200   : > { %4331 = vmatprep.subr.bf16.mxu0 %v6949_v4  ;;  %4503 = vmatprep.subr.bf16.mxu1 %v6952_v6  ;;  %v7033_v4 = vld [vmem:[#allocation5 + $0xe6c] ss:$36 sps:$4 sm:$0xff]   ;;  %v7036_v6 = vld [vmem:[#allocation5 + $0xe74] ss:$36 sps:$4 sm:$0xff]  }
 0x203   : > { %4332 = vmatpush1.bf16.msra.mxu0 %v6947_v7  ;;  %4504 = vmatpush1.bf16.msra.mxu1 %v6950_v8  ;;  %v7031_v7 = vld [vmem:[#allocation5 + $0xe68] ss:$36 sps:$4 sm:$0xff]   ;;  %v7034_v8 = vld [vmem:[#allocation5 + $0xe70] ss:$36 sps:$4 sm:$0xff]  }
 0x204   : > { %4333 = vmatprep.subr.bf16.mxu0 %v6955_v9  ;;  %4505 = vmatprep.subr.bf16.mxu1 %v6958_v10  ;;  %v7039_v9 = vld [vmem:[#allocation5 + $0xeb4] ss:$36 sps:$4 sm:$0xff]   ;;  %v7042_v10 = vld [vmem:[#allocation5 + $0xebc] ss:$36 sps:$4 sm:$0xff]  }
 0x207   : > { %4334 = vmatpush1.bf16.msra.mxu0 %v6953_v11  ;;  %4506 = vmatpush1.bf16.msra.mxu1 %v6956_v12  ;;  %v7037_v11 = vld [vmem:[#allocation5 + $0xeb0] ss:$36 sps:$4 sm:$0xff]   ;;  %v7040_v12 = vld [vmem:[#allocation5 + $0xeb8] ss:$36 sps:$4 sm:$0xff]  }
 0x208   : > { %4335 = vmatprep.subr.bf16.mxu0 %v6961_v14  ;;  %4507 = vmatprep.subr.bf16.mxu1 %v6964_v15  ;;  %v7045_v14 = vld [vmem:[#allocation5 + $0xefc] ss:$36 sps:$4 sm:$0xff]   ;;  %v7048_v15 = vld [vmem:[#allocation5 + $0xf04] ss:$36 sps:$4 sm:$0xff]  }
 0x20b   : > { %4336 = vmatpush1.bf16.msra.mxu0 %v6959_v19  ;;  %4508 = vmatpush1.bf16.msra.mxu1 %v6962_v20  ;;  %v7043_v19 = vld [vmem:[#allocation5 + $0xef8] ss:$36 sps:$4 sm:$0xff]   ;;  %v7046_v20 = vld [vmem:[#allocation5 + $0xf00] ss:$36 sps:$4 sm:$0xff]  }
 0x20c   : > { %4337 = vmatprep.subr.bf16.mxu0 %v6967_v21  ;;  %4509 = vmatprep.subr.bf16.mxu1 %v6970_v22  ;;  %v7051_v21 = vld [vmem:[#allocation5 + $0xf44] ss:$36 sps:$4 sm:$0xff]   ;;  %v7054_v22 = vld [vmem:[#allocation5 + $0xf4c] ss:$36 sps:$4 sm:$0xff]  }
 0x20f   : > { %4338 = vmatpush1.bf16.msra.mxu0 %v6965_v23  ;;  %4510 = vmatpush1.bf16.msra.mxu1 %v6968_v27 }
 0x210   : > { %4339 = vmatprep.subr.bf16.mxu0 %v6973_v28  ;;  %4511 = vmatprep.subr.bf16.mxu1 %v6976_v16 }
 0x213   : > { %4340 = vmatpush1.bf16.msra.mxu0 %v6971_v17  ;;  %4512 = vmatpush1.bf16.msra.mxu1 %v6974_v30 }
 0x214   : > { %4341 = vmatprep.subr.bf16.mxu0 %v6979_v31  ;;  %4513 = vmatprep.subr.bf16.mxu1 %v6982_v32  ;;  %v7049_v31 = vld [vmem:[#allocation5 + $0xf40] ss:$36 sps:$4 sm:$0xff]   ;;  %v7052_v32 = vld [vmem:[#allocation5 + $0xf48] ss:$36 sps:$4 sm:$0xff]  }
 0x217   : > { %4342 = vmatpush1.bf16.msra.mxu0 %v6977_v35  ;;  %4514 = vmatpush1.bf16.msra.mxu1 %v6980_v36 }
 0x218   : > { %4343 = vmatprep.subr.bf16.mxu0 %v6985_v37  ;;  %4515 = vmatprep.subr.bf16.mxu1 %v6988_v38  ;;  %v7057_v37 = vld [vmem:[#allocation5 + $0xf8c] ss:$36 sps:$4 sm:$0xff]   ;;  %v7060_v38 = vld [vmem:[#allocation5 + $0xf94] ss:$36 sps:$4 sm:$0xff]  }
 0x21b   : > { %4344 = vmatpush1.bf16.msra.mxu0 %v6983_v39  ;;  %4516 = vmatpush1.bf16.msra.mxu1 %v6986_v40  ;;  %v7055_v39 = vld [vmem:[#allocation5 + $0xf88] ss:$36 sps:$4 sm:$0xff]   ;;  %v7058_v40 = vld [vmem:[#allocation5 + $0xf90] ss:$36 sps:$4 sm:$0xff]  }
 0x21c   : > { %4345 = vmatprep.subr.bf16.mxu0 %v6991_v41  ;;  %4517 = vmatprep.subr.bf16.mxu1 %v6994_v25  ;;  %v7063_v41 = vld [vmem:[#allocation5 + $0xfd4] ss:$36 sps:$4 sm:$0xff]   ;;  %v7066_v25 = vld [vmem:[#allocation5 + $0xfdc] ss:$36 sps:$4 sm:$0xff]  }
 0x21f   : > { %4346 = vmatpush1.bf16.msra.mxu0 %v6989_v26  ;;  %4518 = vmatpush1.bf16.msra.mxu1 %v6992_v42  ;;  %v7061_v26 = vld [vmem:[#allocation5 + $0xfd0] ss:$36 sps:$4 sm:$0xff]   ;;  %v7064_v42 = vld [vmem:[#allocation5 + $0xfd8] ss:$36 sps:$4 sm:$0xff]  }
 0x220   : > { %4347 = vmatprep.subr.bf16.mxu0 %v6997_v43  ;;  %4519 = vmatprep.subr.bf16.mxu1 %v7000_v44  ;;  %v7069_v43 = vld [vmem:[#allocation5 + $0x101c] ss:$36 sps:$4 sm:$0xff]   ;;  %v7072_v44 = vld [vmem:[#allocation5 + $0x1024] ss:$36 sps:$4 sm:$0xff]  }
 0x223   : > { %4348 = vmatpush1.bf16.msra.mxu0 %v6995_v45  ;;  %4520 = vmatpush1.bf16.msra.mxu1 %v6998_v46  ;;  %v7067_v45 = vld [vmem:[#allocation5 + $0x1018] ss:$36 sps:$4 sm:$0xff]   ;;  %v7070_v46 = vld [vmem:[#allocation5 + $0x1020] ss:$36 sps:$4 sm:$0xff]  }
 0x224   : > { %4349 = vmatprep.subr.bf16.mxu0 %v7003_v47  ;;  %4521 = vmatprep.subr.bf16.mxu1 %v7006_v48  ;;  %v7075_v47 = vld [vmem:[#allocation5 + $0x1064] ss:$36 sps:$4 sm:$0xff]   ;;  %v7078_v48 = vld [vmem:[#allocation5 + $0x106c] ss:$36 sps:$4 sm:$0xff]  }
 0x227   : > { %4350 = vmatpush1.bf16.msra.mxu0 %v7001_v49  ;;  %4522 = vmatpush1.bf16.msra.mxu1 %v7004_v51  ;;  %v7073_v49 = vld [vmem:[#allocation5 + $0x1060] ss:$36 sps:$4 sm:$0xff]   ;;  %v7076_v51 = vld [vmem:[#allocation5 + $0x1068] ss:$36 sps:$4 sm:$0xff]  }
 0x228   : > { %4351 = vmatprep.subr.bf16.mxu0 %v7009_v52  ;;  %4523 = vmatprep.subr.bf16.mxu1 %v7012_v53  ;;  %v7081_v52 = vld [vmem:[#allocation5 + $0x10ac] ss:$36 sps:$4 sm:$0xff]   ;;  %v7084_v53 = vld [vmem:[#allocation5 + $0x10b4] ss:$36 sps:$4 sm:$0xff]  }
 0x22b   : > { %4352 = vmatpush1.bf16.msra.mxu0 %v7007_v54  ;;  %4524 = vmatpush1.bf16.msra.mxu1 %v7010_v55  ;;  %v7079_v54 = vld [vmem:[#allocation5 + $0x10a8] ss:$36 sps:$4 sm:$0xff]   ;;  %v7082_v55 = vld [vmem:[#allocation5 + $0x10b0] ss:$36 sps:$4 sm:$0xff]  }
 0x22c   : > { %4364 = vmatprep.subr.bf16.mxu0 %v7015_v56  ;;  %4536 = vmatprep.subr.bf16.mxu1 %v7018_v57  ;;  %v7087_v56 = vld [vmem:[#allocation5 + $0x10f4] ss:$36 sps:$4 sm:$0xff]   ;;  %v7090_v57 = vld [vmem:[#allocation5 + $0x10fc] ss:$36 sps:$4 sm:$0xff]  }
 0x22e   : > { %4354 = vmatmul.mubr.bf16.vlgmr.msra.gmra.mrb[4].mxu0 %v7675_v24  ;;  %4526 = vmatmul.mubr.bf16.vlgmr.msra.gmra.mrb[4].mxu1 %v7675_v24 }
 0x22f   : > { %4365 = vmatpush1.bf16.msra.mxu0 %v7013_v58  ;;  %4537 = vmatpush1.bf16.msra.mxu1 %v7016_v59  ;;  %v7085_v58 = vld [vmem:[#allocation5 + $0x10f0] ss:$36 sps:$4 sm:$0xff]   ;;  %v7088_v59 = vld [vmem:[#allocation5 + $0x10f8] ss:$36 sps:$4 sm:$0xff]  }
 0x230   : > { %4366 = vmatprep.subr.bf16.mxu0 %v7021_v60  ;;  %4538 = vmatprep.subr.bf16.mxu1 %v7024_v61  ;;  %v7093_v60 = vld [vmem:[#allocation5 + $0x113c] ss:$36 sps:$4 sm:$0xff]   ;;  %v7096_v61 = vld [vmem:[#allocation5 + $0x1144] ss:$36 sps:$4 sm:$0xff]  }
 0x231   : > { %4396 = vmatprep.mubr.bf16.mxu0 %v7685_v29  ;;  %4568 = vmatprep.mubr.bf16.mxu1 %v7685_v29 }
 0x233   : > { %4367 = vmatpush1.bf16.msra.mxu0 %v7019_v62  ;;  %4539 = vmatpush1.bf16.msra.mxu1 %v7022_v63  ;;  %v7091_v62 = vld [vmem:[#allocation5 + $0x1138] ss:$36 sps:$4 sm:$0xff]   ;;  %v7094_v63 = vld [vmem:[#allocation5 + $0x1140] ss:$36 sps:$4 sm:$0xff]  }
 0x234   : > { %4368 = vmatprep.subr.bf16.mxu0 %v7027_v0  ;;  %4540 = vmatprep.subr.bf16.mxu1 %v7030_v1  ;;  %v7099_v0 = vld [vmem:[#allocation5 + $0x1184] ss:$36 sps:$4 sm:$0xff]   ;;  %v7102_v1 = vld [vmem:[#allocation5 + $0x118c] ss:$36 sps:$4 sm:$0xff]  }
 0x237   : > { %4369 = vmatpush1.bf16.msra.mxu0 %v7025_v2  ;;  %4541 = vmatpush1.bf16.msra.mxu1 %v7028_v3  ;;  %v7097_v2 = vld [vmem:[#allocation5 + $0x1180] ss:$36 sps:$4 sm:$0xff]   ;;  %v7100_v3 = vld [vmem:[#allocation5 + $0x1188] ss:$36 sps:$4 sm:$0xff]  }
 0x238   : > { %4370 = vmatprep.subr.bf16.mxu0 %v7033_v4  ;;  %4542 = vmatprep.subr.bf16.mxu1 %v7036_v6  ;;  %v7105_v4 = vld [vmem:[#allocation5 + $0x11cc] ss:$36 sps:$4 sm:$0xff]   ;;  %v7108_v6 = vld [vmem:[#allocation5 + $0x11d4] ss:$36 sps:$4 sm:$0xff]  }
 0x23b   : > { %4371 = vmatpush1.bf16.msra.mxu0 %v7031_v7  ;;  %4543 = vmatpush1.bf16.msra.mxu1 %v7034_v8  ;;  %v7103_v7 = vld [vmem:[#allocation5 + $0x11c8] ss:$36 sps:$4 sm:$0xff]   ;;  %v7106_v8 = vld [vmem:[#allocation5 + $0x11d0] ss:$36 sps:$4 sm:$0xff]  }
 0x23c   : > { %4372 = vmatprep.subr.bf16.mxu0 %v7039_v9  ;;  %4544 = vmatprep.subr.bf16.mxu1 %v7042_v10  ;;  %v7109_v9 = vld [vmem:[#allocation5 + $0x260] ss:$36 sps:$4 sm:$0xff]  }
 0x23d   : > { %v7110_v10 = vld [vmem:[#allocation5 + $0x6e0] ss:$36 sps:$4 sm:$0xff]  }
 0x23f   : > { %4373 = vmatpush1.bf16.msra.mxu0 %v7037_v11  ;;  %4545 = vmatpush1.bf16.msra.mxu1 %v7040_v12  ;;  %v7111_v11 = vld [vmem:[#allocation5 + $0x20] ss:$36 sps:$4 sm:$0xff]  }
 0x240   : > { %4374 = vmatprep.subr.bf16.mxu0 %v7045_v14  ;;  %4546 = vmatprep.subr.bf16.mxu1 %v7048_v15  ;;  %v7112_v12 = vld [vmem:[#allocation5 + $0x4a0] ss:$36 sps:$4 sm:$0xff]   ;;  %v7113_v14 = vld [vmem:[#allocation5 + $0x2a8] ss:$36 sps:$4 sm:$0xff]  }
 0x241   : > { %v7711_v23 = vpop.f32.mrb[0].mxu0  ;;  %v7713_v27 = vpop.f32.mrb[0].mxu1  ;;  %v7114_v15 = vld [vmem:[#allocation5 + $0x728] ss:$36 sps:$4 sm:$0xff]  }
 0x242   : > { %v7715_v28 = vpop.f32.mrb[1].mxu0  ;;  %v7717_v16 = vpop.f32.mrb[1].mxu1 }
 0x243   : > { %v7719_v17 = vpop.f32.mrb[2].mxu0  ;;  %v7721_v30 = vpop.f32.mrb[2].mxu1  ;;  %4375 = vmatpush1.bf16.msra.mxu0 %v7043_v19  ;;  %4547 = vmatpush1.bf16.msra.mxu1 %v7046_v20  ;;  %v7115_v19 = vld [vmem:[#allocation5 + $0x68] ss:$36 sps:$4 sm:$0xff]  }
 0x244   : > { %v7723_v35 = vpop.f32.mrb[3].mxu0  ;;  %v7725_v36 = vpop.f32.mrb[3].mxu1  ;;  %4376 = vmatprep.subr.bf16.mxu0 %v7051_v21  ;;  %4548 = vmatprep.subr.bf16.mxu1 %v7054_v22  ;;  %v7116_v20 = vld [vmem:[#allocation5 + $0x4e8] ss:$36 sps:$4 sm:$0xff]   ;;  %v7117_v21 = vld [vmem:[#allocation5 + $0x2f0] ss:$36 sps:$4 sm:$0xff]  }
 0x245   : > { %v7118_v22 = vld [vmem:[#allocation5 + $0x770] ss:$36 sps:$4 sm:$0xff]  }
 0x247   : > { %4377 = vmatpush1.bf16.msra.mxu0 %v7049_v31  ;;  %4549 = vmatpush1.bf16.msra.mxu1 %v7052_v32  ;;  %v7119_v31 = vld [vmem:[#allocation5 + $0xb0] ss:$36 sps:$4 sm:$0xff]  }
 0x248   : > { %4378 = vmatprep.subr.bf16.mxu0 %v7057_v37  ;;  %4550 = vmatprep.subr.bf16.mxu1 %v7060_v38  ;;  %v7120_v32 = vld [vmem:[#allocation5 + $0x530] ss:$36 sps:$4 sm:$0xff]   ;;  %v7121_v37 = vld [vmem:[#allocation5 + $0x338] ss:$36 sps:$4 sm:$0xff]  }
 0x249   : > { %v7122_v38 = vld [vmem:[#allocation5 + $0x7b8] ss:$36 sps:$4 sm:$0xff]  }
 0x24b   : > { %4379 = vmatpush1.bf16.msra.mxu0 %v7055_v39  ;;  %4551 = vmatpush1.bf16.msra.mxu1 %v7058_v40  ;;  %v7123_v39 = vld [vmem:[#allocation5 + $0xf8] ss:$36 sps:$4 sm:$0xff]  }
 0x24c   : > { %4380 = vmatprep.subr.bf16.mxu0 %v7063_v41  ;;  %4552 = vmatprep.subr.bf16.mxu1 %v7066_v25  ;;  %v7124_v40 = vld [vmem:[#allocation5 + $0x578] ss:$36 sps:$4 sm:$0xff]   ;;  %v7125_v41 = vld [vmem:[#allocation5 + $0x380] ss:$36 sps:$4 sm:$0xff]  }
 0x24d   : > { %v7126_v25 = vld [vmem:[#allocation5 + $0x800] ss:$36 sps:$4 sm:$0xff]  }
 0x24f   : > { %4381 = vmatpush1.bf16.msra.mxu0 %v7061_v26  ;;  %4553 = vmatpush1.bf16.msra.mxu1 %v7064_v42  ;;  %v7129_v26 = vld [vmem:[#allocation5 + $0x3c8] ss:$36 sps:$4 sm:$0xff]  }
 0x250   : > { %4382 = vmatprep.subr.bf16.mxu0 %v7069_v43  ;;  %4554 = vmatprep.subr.bf16.mxu1 %v7072_v44  ;;  %v7130_v42 = vld [vmem:[#allocation5 + $0x848] ss:$36 sps:$4 sm:$0xff]  }
 0x251   : > { %v7131_v43 = vld [vmem:[#allocation5 + $0x188] ss:$36 sps:$4 sm:$0xff]  }
 0x252   : > { %v7132_v44 = vld [vmem:[#allocation5 + $0x608] ss:$36 sps:$4 sm:$0xff]  }
 0x253   : > { %4383 = vmatpush1.bf16.msra.mxu0 %v7067_v45  ;;  %4555 = vmatpush1.bf16.msra.mxu1 %v7070_v46  ;;  %v7133_v45 = vld [vmem:[#allocation5 + $0x410] ss:$36 sps:$4 sm:$0xff]  }
 0x254   : > { %4384 = vmatprep.subr.bf16.mxu0 %v7075_v47  ;;  %4556 = vmatprep.subr.bf16.mxu1 %v7078_v48  ;;  %v7134_v46 = vld [vmem:[#allocation5 + $0x890] ss:$36 sps:$4 sm:$0xff]  }
 0x255   : > { %v7135_v47 = vld [vmem:[#allocation5 + $0x1d0] ss:$36 sps:$4 sm:$0xff]  }
 0x256   : > { %v7136_v48 = vld [vmem:[#allocation5 + $0x650] ss:$36 sps:$4 sm:$0xff]  }
 0x257   : > { %4385 = vmatpush1.bf16.msra.mxu0 %v7073_v49  ;;  %4557 = vmatpush1.bf16.msra.mxu1 %v7076_v51  ;;  %v7137_v49 = vld [vmem:[#allocation5 + $0x458] ss:$36 sps:$4 sm:$0xff]  }
 0x258   : > { %4386 = vmatprep.subr.bf16.mxu0 %v7081_v52  ;;  %4558 = vmatprep.subr.bf16.mxu1 %v7084_v53  ;;  %v7138_v51 = vld [vmem:[#allocation5 + $0x8d8] ss:$36 sps:$4 sm:$0xff]  }
 0x259   : > { %v7139_v52 = vld [vmem:[#allocation5 + $0x218] ss:$36 sps:$4 sm:$0xff]  }
 0x25a   : > { %v7140_v53 = vld [vmem:[#allocation5 + $0x698] ss:$36 sps:$4 sm:$0xff]  }
 0x25b   : > { %4387 = vmatpush1.bf16.msra.mxu0 %v7079_v54  ;;  %4559 = vmatpush1.bf16.msra.mxu1 %v7082_v55  ;;  %v7141_v54 = vld [vmem:[#allocation5 + $0xb60] ss:$36 sps:$4 sm:$0xff]  }
 0x25c   : > { %4388 = vmatprep.subr.bf16.mxu0 %v7087_v56  ;;  %4560 = vmatprep.subr.bf16.mxu1 %v7090_v57  ;;  %v7142_v55 = vld [vmem:[#allocation5 + $0xfe0] ss:$36 sps:$4 sm:$0xff]  }
 0x25d   : > { %v7143_v56 = vld [vmem:[#allocation5 + $0x920] ss:$36 sps:$4 sm:$0xff]  }
 0x25e   : > { %v7144_v57 = vld [vmem:[#allocation5 + $0xda0] ss:$36 sps:$4 sm:$0xff]  }
 0x25f   : > { %4389 = vmatpush1.bf16.msra.mxu0 %v7085_v58  ;;  %4561 = vmatpush1.bf16.msra.mxu1 %v7088_v59  ;;  %v7145_v58 = vld [vmem:[#allocation5 + $0xba8] ss:$36 sps:$4 sm:$0xff]  }
 0x260   : > { %4390 = vmatprep.subr.bf16.mxu0 %v7093_v60  ;;  %4562 = vmatprep.subr.bf16.mxu1 %v7096_v61  ;;  %v7146_v59 = vld [vmem:[#allocation5 + $0x1028] ss:$36 sps:$4 sm:$0xff]  }
 0x261   : > { %v7147_v60 = vld [vmem:[#allocation5 + $0x968] ss:$36 sps:$4 sm:$0xff]  }
 0x262   : > { %v7148_v61 = vld [vmem:[#allocation5 + $0xde8] ss:$36 sps:$4 sm:$0xff]  }
 0x263   : > { %4391 = vmatpush1.bf16.msra.mxu0 %v7091_v62  ;;  %4563 = vmatpush1.bf16.msra.mxu1 %v7094_v63  ;;  %v7149_v62 = vld [vmem:[#allocation5 + $0xbf0] ss:$36 sps:$4 sm:$0xff]  }
 0x264   : > { %4392 = vmatprep.subr.bf16.mxu0 %v7099_v0  ;;  %4564 = vmatprep.subr.bf16.mxu1 %v7102_v1  ;;  %v7150_v63 = vld [vmem:[#allocation5 + $0x1070] ss:$36 sps:$4 sm:$0xff]  }
 0x265   : > { %v7151_v0 = vld [vmem:[#allocation5 + $0x9b0] ss:$36 sps:$4 sm:$0xff]  }
 0x266   : > { %v7152_v1 = vld [vmem:[#allocation5 + $0xe30] ss:$36 sps:$4 sm:$0xff]  }
 0x267   : > { %4393 = vmatpush1.bf16.msra.mxu0 %v7097_v2  ;;  %4565 = vmatpush1.bf16.msra.mxu1 %v7100_v3  ;;  %v7155_v2 = vld [vmem:[#allocation5 + $0x9f8] ss:$36 sps:$4 sm:$0xff]  }
 0x268   : > { %4394 = vmatprep.subr.bf16.mxu0 %v7105_v4  ;;  %4566 = vmatprep.subr.bf16.mxu1 %v7108_v6  ;;  %v7156_v3 = vld [vmem:[#allocation5 + $0xe78] ss:$36 sps:$4 sm:$0xff]   ;;  %v7157_v4 = vld [vmem:[#allocation5 + $0xc80] ss:$36 sps:$4 sm:$0xff]  }
 0x269   : > { %v7158_v6 = vld [vmem:[#allocation5 + $0x1100] ss:$36 sps:$4 sm:$0xff]  }
 0x26b   : > { %4395 = vmatpush1.bf16.msra.mxu0 %v7103_v7  ;;  %4567 = vmatpush1.bf16.msra.mxu1 %v7106_v8  ;;  %v7161_v7 = vld [vmem:[#allocation5 + $0xcc8] ss:$36 sps:$4 sm:$0xff]  }
 0x26c   : > { %6050 = vmatprep.subr.bf16.mxu0 %v7109_v9  ;;  %6072 = vmatprep.subr.bf16.mxu1 %v7110_v10  ;;  %v7162_v8 = vld [vmem:[#allocation5 + $0x1148] ss:$36 sps:$4 sm:$0xff]  }
 0x26d   : > { %v7163_v9 = vld [vmem:[#allocation5 + $0xa88] ss:$36 sps:$4 sm:$0xff]  }
 0x26e   : > { %4397 = vmatmul.mubr.bf16.vlgmr.msra.gmra.mrb[4].mxu0 %v7693_v33  ;;  %4569 = vmatmul.mubr.bf16.vlgmr.msra.gmra.mrb[4].mxu1 %v7693_v33  ;;  %v7164_v10 = vld [vmem:[#allocation5 + $0xf08] ss:$36 sps:$4 sm:$0xff]  }
 0x26f   : > { %6051 = vmatpush3.bf16.msra.mxu0 %v7111_v11  ;;  %6073 = vmatpush3.bf16.msra.mxu1 %v7112_v12  ;;  %v7165_v11 = vld [vmem:[#allocation5 + $0xd10] ss:$36 sps:$4 sm:$0xff]  }
 0x270   : > { %6052 = vmatprep.subr.bf16.mxu0 %v7113_v14  ;;  %6074 = vmatprep.subr.bf16.mxu1 %v7114_v15  ;;  %v7166_v12 = vld [vmem:[#allocation5 + $0x1190] ss:$36 sps:$4 sm:$0xff]  }
 0x271   : > { %4611 = vmatprep.mubr.bf16.mxu0 %v7635_v50  ;;  %4652 = vmatprep.mubr.bf16.mxu1 %v7651_v34  ;;  %v7127_v50 = vld [vmem:[#allocation5 + $0x140] ss:$36 sps:$4 sm:$0xff]   ;;  %v7167_v14 = vld [vmem:[#allocation5 + $0xad0] ss:$36 sps:$4 sm:$0xff]  }
 0x272   : > { %v7128_v34 = vld [vmem:[#allocation5 + $0x5c0] ss:$36 sps:$4 sm:$0xff]   ;;  %v7168_v15 = vld [vmem:[#allocation5 + $0xf50] ss:$36 sps:$4 sm:$0xff]  }
 0x273   : > { %6053 = vmatpush3.bf16.msra.mxu0 %v7115_v19  ;;  %6075 = vmatpush3.bf16.msra.mxu1 %v7116_v20  ;;  %v7169_v19 = vld [vmem:[#allocation5 + $0xd58] ss:$36 sps:$4 sm:$0xff]  }
 0x274   : > { %6054 = vmatprep.subr.bf16.mxu0 %v7117_v21  ;;  %6076 = vmatprep.subr.bf16.mxu1 %v7118_v22  ;;  %v7170_v20 = vld [vmem:[#allocation5 + $0x11d8] ss:$36 sps:$4 sm:$0xff]  }
 0x275   : > { %v7171_v21 = vld [vmem:[#allocation5 + $0xb18] ss:$36 sps:$4 sm:$0xff]  }
 0x276   : > { %v7172_v22 = vld [vmem:[#allocation5 + $0xf98] ss:$36 sps:$4 sm:$0xff]  }
 0x277   : > { %6055 = vmatpush3.bf16.msra.mxu0 %v7119_v31  ;;  %6077 = vmatpush3.bf16.msra.mxu1 %v7120_v32  ;;  %v7173_v31 = vld [vmem:[#allocation7 + $0x40] sm:$0xff]  }
 0x278   : > { %6056 = vmatprep.subr.bf16.mxu0 %v7121_v37  ;;  %6078 = vmatprep.subr.bf16.mxu1 %v7122_v38  ;;  %v7174_v32 = vld [vmem:[#allocation7] sm:$0xff]   ;;  %v7175_v37 = vld [vmem:[#allocation7 + $0x48] sm:$0xff]  }
 0x279   : > { %v7176_v38 = vld [vmem:[#allocation7 + $0x8] sm:$0xff]  }
 0x27b   : > { %6057 = vmatpush3.bf16.msra.mxu0 %v7123_v39  ;;  %6079 = vmatpush3.bf16.msra.mxu1 %v7124_v40  ;;  %v7177_v39 = vld [vmem:[#allocation7 + $0x50] sm:$0xff]  }
 0x27c   : > { %6058 = vmatprep.subr.bf16.mxu0 %v7125_v41  ;;  %6080 = vmatprep.subr.bf16.mxu1 %v7126_v25  ;;  %v7178_v40 = vld [vmem:[#allocation7 + $0x10] sm:$0xff]   ;;  %v7179_v41 = vld [vmem:[#allocation7 + $0x58] sm:$0xff]  }
 0x27d   : > { %v7180_v25 = vld [vmem:[#allocation7 + $0x18] sm:$0xff]  }
 0x27f   : > { %6059 = vmatpush3.bf16.msra.mxu0 %v7127_v50  ;;  %6081 = vmatpush3.bf16.msra.mxu1 %v7128_v34  ;;  %v7181_v50 = vld [vmem:[#allocation7 + $0x60] sm:$0xff]  }
 0x280   : > { %6060 = vmatprep.subr.bf16.mxu0 %v7129_v26  ;;  %6082 = vmatprep.subr.bf16.mxu1 %v7130_v42  ;;  %v7182_v34 = vld [vmem:[#allocation7 + $0x20] sm:$0xff]   ;;  %v7183_v26 = vld [vmem:[#allocation7 + $0x68] sm:$0xff]   ;;  %v7186_v42 = vld [vmem:[#allocation7 + $0x30] sm:$0xff]  }
 0x283   : > { %6061 = vmatpush3.bf16.msra.mxu0 %v7131_v43  ;;  %6083 = vmatpush3.bf16.msra.mxu1 %v7132_v44  ;;  %v7187_v43 = vld [vmem:[#allocation7 + $0x78] sm:$0xff]  }
 0x284   : > { %6062 = vmatprep.subr.bf16.mxu0 %v7133_v45  ;;  %6084 = vmatprep.subr.bf16.mxu1 %v7134_v46  ;;  %v7188_v44 = vld [vmem:[#allocation7 + $0x38] sm:$0xff]   ;;  %v7416_v45 = vmov 0.0   ;;  %v7197_v46 = vld [vmem:[#allocation7 + $0xc0] sm:$0xff]  }
 0x287   : > { %6063 = vmatpush3.bf16.msra.mxu0 %v7135_v47  ;;  %6085 = vmatpush3.bf16.msra.mxu1 %v7136_v48  ;;  %v7198_v47 = vld [vmem:[#allocation7 + $0x80] sm:$0xff]   ;;  %v7199_v48 = vld [vmem:[#allocation7 + $0xc8] sm:$0xff]  }
 0x288   : > { %6064 = vmatprep.subr.bf16.mxu0 %v7137_v49  ;;  %6086 = vmatprep.subr.bf16.mxu1 %v7138_v51  ;;  %v7200_v49 = vld [vmem:[#allocation7 + $0x88] sm:$0xff]   ;;  %v7201_v51 = vld [vmem:[#allocation7 + $0xd0] sm:$0xff]  }
 0x28b   : > { %6065 = vmatpush3.bf16.msra.mxu0 %v7139_v52  ;;  %6087 = vmatpush3.bf16.msra.mxu1 %v7140_v53  ;;  %v7202_v52 = vld [vmem:[#allocation7 + $0x90] sm:$0xff]   ;;  %v7203_v53 = vld [vmem:[#allocation7 + $0xd8] sm:$0xff]  }
 0x28c   : > { %6094 = vmatprep.subr.bf16.mxu0 %v7141_v54  ;;  %6116 = vmatprep.subr.bf16.mxu1 %v7142_v55  ;;  %v7204_v54 = vld [vmem:[#allocation7 + $0x98] sm:$0xff]   ;;  %v7205_v55 = vld [vmem:[#allocation7 + $0xe0] sm:$0xff]  }
 0x28e   : > { %4612 = vmatmul.mubr.bf16.vlgmr.msra.gmra.mrb[8].mxu0 %v7639_v5  ;;  %4653 = vmatmul.mubr.bf16.vlgmr.msra.gmra.mrb[8].mxu1 %v7657_v13  ;;  %v7153_v5 = vld [vmem:[#allocation5 + $0xc38] ss:$36 sps:$4 sm:$0xff]  }
 0x28f   : > { %6095 = vmatpush3.bf16.msra.mxu0 %v7143_v56  ;;  %6117 = vmatpush3.bf16.msra.mxu1 %v7144_v57  ;;  %v7154_v13 = vld [vmem:[#allocation5 + $0x10b8] ss:$36 sps:$4 sm:$0xff]   ;;  %v7206_v56 = vld [vmem:[#allocation7 + $0xa0] sm:$0xff]   ;;  %v7207_v57 = vld [vmem:[#allocation7 + $0xe8] sm:$0xff]  }
 0x290   : > { %6096 = vmatprep.subr.bf16.mxu0 %v7145_v58  ;;  %6118 = vmatprep.subr.bf16.mxu1 %v7146_v59  ;;  %v7208_v58 = vld [vmem:[#allocation7 + $0xa8] sm:$0xff]   ;;  %v7209_v59 = vld [vmem:[#allocation7 + $0xf0] sm:$0xff]  }
 0x291   : > { %4693 = vmatprep.mubr.bf16.mxu0 %v7667_v18  ;;  %4734 = vmatprep.mubr.bf16.mxu1 %v7685_v29  ;;  %v7159_v18 = vld [vmem:[#allocation5 + $0xa40] ss:$36 sps:$4 sm:$0xff]  }
 0x292   : > { %v7160_v29 = vld [vmem:[#allocation5 + $0xec0] ss:$36 sps:$4 sm:$0xff]  }
 0x293   : > { %6097 = vmatpush3.bf16.msra.mxu0 %v7147_v60  ;;  %6119 = vmatpush3.bf16.msra.mxu1 %v7148_v61  ;;  %v7210_v60 = vld [vmem:[#allocation7 + $0xb0] sm:$0xff]   ;;  %v7211_v61 = vld [vmem:[#allocation7 + $0xf8] sm:$0xff]  }
 0x294   : > { %6098 = vmatprep.subr.bf16.mxu0 %v7149_v62  ;;  %6120 = vmatprep.subr.bf16.mxu1 %v7150_v63  ;;  %v7212_v62 = vld [vmem:[#allocation7 + $0xb8] sm:$0xff]   ;;  %v4743_v63 = vmul.f32 %v7711_v23, %v7711_v23  ;;  %v4748_v23 = vmul.f32 %v7723_v35, %v7723_v35 }
 0x297   : > { %6099 = vmatpush3.bf16.msra.mxu0 %v7151_v0  ;;  %6121 = vmatpush3.bf16.msra.mxu1 %v7152_v1 }
 0x298   : > { %6100 = vmatprep.subr.bf16.mxu0 %v7153_v5  ;;  %6122 = vmatprep.subr.bf16.mxu1 %v7154_v13  ;;  %v4745_v5 = vmul.f32 %v7713_v27, %v7713_v27  ;;  %v4744_v13 = vmul.f32 %v7715_v28, %v7715_v28 }
 0x29b   : > { %6101 = vmatpush3.bf16.msra.mxu0 %v7155_v2  ;;  %6123 = vmatpush3.bf16.msra.mxu1 %v7156_v3  ;;  %v4747_v2 = vmul.f32 %v7719_v17, %v7719_v17 }
 0x29c   : > { %6102 = vmatprep.subr.bf16.mxu0 %v7157_v4  ;;  %6124 = vmatprep.subr.bf16.mxu1 %v7158_v6 }
 0x29f   : > { %6103 = vmatpush3.bf16.msra.mxu0 %v7159_v18  ;;  %6125 = vmatpush3.bf16.msra.mxu1 %v7160_v29  ;;  %v4749_v18 = vmul.f32 %v7721_v30, %v7721_v30 }
 0x2a0   : > { %6104 = vmatprep.subr.bf16.mxu0 %v7161_v7  ;;  %6126 = vmatprep.subr.bf16.mxu1 %v7162_v8 }
 0x2a3   : > { %6105 = vmatpush3.bf16.msra.mxu0 %v7163_v9  ;;  %6127 = vmatpush3.bf16.msra.mxu1 %v7164_v10 }
 0x2a4   : > { %6106 = vmatprep.subr.bf16.mxu0 %v7165_v11  ;;  %6128 = vmatprep.subr.bf16.mxu1 %v7166_v12 }
 0x2a7   : > { %6107 = vmatpush3.bf16.msra.mxu0 %v7167_v14  ;;  %6129 = vmatpush3.bf16.msra.mxu1 %v7168_v15 }
 0x2a8   : > { %6108 = vmatprep.subr.bf16.mxu0 %v7169_v19  ;;  %6130 = vmatprep.subr.bf16.mxu1 %v7170_v20 }
 0x2ab   : > { %6109 = vmatpush3.bf16.msra.mxu0 %v7171_v21  ;;  %6131 = vmatpush3.bf16.msra.mxu1 %v7172_v22 }
 0x2ac   : > { %6138 = vmatprep.subr.bf16.mxu0 %v7173_v31  ;;  %6160 = vmatprep.subr.bf16.mxu1 %v7197_v46 }
 0x2ae   : > { %4694 = vmatmul.mubr.bf16.vlgmr.msra.gmra.mrb[12].mxu0 %v7675_v24  ;;  %4735 = vmatmul.mubr.bf16.vlgmr.msra.gmra.mrb[12].mxu1 %v7693_v33  ;;  %v7184_v24 = vld [vmem:[#allocation7 + $0x28] sm:$0xff]   ;;  %v7185_v33 = vld [vmem:[#allocation7 + $0x70] sm:$0xff]  }
 0x2af   : > { %6139 = vmatpush3.bf16.msra.mxu0 %v7174_v32  ;;  %6161 = vmatpush3.bf16.msra.mxu1 %v7198_v47  ;;  %v7189_v32 = vld [vmem:[#allocation7 + $0x100] sm:$0xff]  }
 0x2b0   : > { %6140 = vmatprep.subr.bf16.mxu0 %v7175_v37  ;;  %6162 = vmatprep.subr.bf16.mxu1 %v7199_v48 }
 0x2b3   : > { %6141 = vmatpush3.bf16.msra.mxu0 %v7176_v38  ;;  %6163 = vmatpush3.bf16.msra.mxu1 %v7200_v49 }
 0x2b4   : > { %6142 = vmatprep.subr.bf16.mxu0 %v7177_v39  ;;  %6164 = vmatprep.subr.bf16.mxu1 %v7201_v51  ;;  %v7190_v39 = vld [vmem:[#allocation7 + $0x108] sm:$0xff]   ;;  %v7196_v51 = vld [vmem:[#allocation7 + $0x138] sm:$0xff]  }
 0x2b7   : > { %6143 = vmatpush3.bf16.msra.mxu0 %v7178_v40  ;;  %6165 = vmatpush3.bf16.msra.mxu1 %v7202_v52  ;;  %v7191_v40 = vld [vmem:[#allocation7 + $0x110] sm:$0xff]  }
 0x2b8   : > { %6144 = vmatprep.subr.bf16.mxu0 %v7179_v41  ;;  %6166 = vmatprep.subr.bf16.mxu1 %v7203_v53  ;;  %v7192_v41 = vld [vmem:[#allocation7 + $0x118] sm:$0xff]  }
 0x2bb   : > { %6145 = vmatpush3.bf16.msra.mxu0 %v7180_v25  ;;  %6167 = vmatpush3.bf16.msra.mxu1 %v7204_v54  ;;  %v7193_v25 = vld [vmem:[#allocation7 + $0x120] sm:$0xff]  }
 0x2bc   : > { %6146 = vmatprep.subr.bf16.mxu0 %v7181_v50  ;;  %6168 = vmatprep.subr.bf16.mxu1 %v7205_v55  ;;  %v7194_v50 = vld [vmem:[#allocation7 + $0x128] sm:$0xff]  }
 0x2bf   : > { %6147 = vmatpush3.bf16.msra.mxu0 %v7182_v34  ;;  %6169 = vmatpush3.bf16.msra.mxu1 %v7206_v56  ;;  %v7195_v34 = vld [vmem:[#allocation7 + $0x130] sm:$0xff]  }
 0x2c0   : > { %6148 = vmatprep.subr.bf16.mxu0 %v7183_v26  ;;  %6170 = vmatprep.subr.bf16.mxu1 %v7207_v57 }
 0x2c3   : > { %6149 = vmatpush3.bf16.msra.mxu0 %v7184_v24  ;;  %6171 = vmatpush3.bf16.msra.mxu1 %v7208_v58 }
 0x2c4   : > { %6150 = vmatprep.subr.bf16.mxu0 %v7185_v33  ;;  %6172 = vmatprep.subr.bf16.mxu1 %v7209_v59 }
 0x2c7   : > { %6151 = vmatpush3.bf16.msra.mxu0 %v7186_v42  ;;  %6173 = vmatpush3.bf16.msra.mxu1 %v7210_v60 }
 0x2c8   : > { %6152 = vmatprep.subr.bf16.mxu0 %v7187_v43  ;;  %6174 = vmatprep.subr.bf16.mxu1 %v7211_v61 }
 0x2cb   : > { %6153 = vmatpush3.bf16.msra.mxu0 %v7188_v44  ;;  %6175 = vmatpush3.bf16.msra.mxu1 %v7212_v62 }
 0x2cc   : > { %6191 = vmatprep.subr.bf16.mxu0 %v7416_v45 }
 0x341   : > { %v4398_v0 = vpop.f32.mrb[4].mxu0  ;;  %v4570_v1 = vpop.f32.mrb[4].mxu1 }
 0x342   : > { %v4752_v3 = vmul.f32 %v4570_v1, %v4570_v1  ;;  %v4400_v4 = vpop.f32.mrb[5].mxu0  ;;  %v4572_v6 = vpop.f32.mrb[5].mxu1  ;;  %v4767_v27 = vmul.f32 %v4398_v0, %v4398_v0 }
 0x343   : > { %v4751_v29 = vmul.f32 %v4400_v4, %v4400_v4  ;;  %v4753_v7 = vmul.f32 %v4572_v6, %v4572_v6  ;;  %v4402_v8 = vpop.f32.mrb[6].mxu0  ;;  %v4574_v9 = vpop.f32.mrb[6].mxu1 }
 0x344   : > { %v4760_v10 = vadd.f32 %v4752_v3, %v4744_v13  ;;  %v4768_v11 = vmul.f32 %v4402_v8, %v4402_v8  ;;  %v4756_v28 = vmul.f32 %v4574_v9, %v4574_v9  ;;  %v4404_v12 = vpop.f32.mrb[7].mxu0  ;;  %v4576_v14 = vpop.f32.mrb[7].mxu1 }
 0x345   : > { %v4759_v17 = vadd.f32 %v4751_v29, %v4743_v63  ;;  %v7750_v15 = vadd.f32 %v4753_v7, %v4745_v5  ;;  %v4755_v19 = vmul.f32 %v4404_v12, %v4404_v12  ;;  %v4757_v20 = vmul.f32 %v4576_v14, %v4576_v14 }
 0x346   : > { %v4773_v21 = vpack.c.bf16 %v4768_v11, %v4767_v27  ;;  %v4764_v30 = vadd.f32 %v4756_v28, %v4748_v23  ;;  %v4750_v23 = vmul.f32 %v7725_v36, %v7725_v36 }
 0x347   : > { %v4763_v22 = vadd.f32 %v4755_v19, %v4747_v2  ;;  %v7752_v31 = vadd.f32 %v4757_v20, %v4749_v18 }
 0x348   : > { %v4770_v35 = vpack.c.bf16 %v4764_v30, %v4760_v10 }
 0x349   : > { %v4769_v37 = vpack.c.bf16 %v4763_v22, %v4759_v17  ;;  %v4771_v38 = vpack.c.bf16 %v7752_v31, %v7750_v15 }
 0x34a   : > { %5126 = vmatprep.mubr.bf16.mxu0 %v4770_v35 }
 0x34b   : > { %5127 = vmatmul.mubr.bf16.vlgmr.msra.gmra.mrb[16].mxu0 %v4769_v37 }
 0x34c   : > { %6192 = vmatpush3.bf16.msra.mxu0 %v7189_v32  ;;  %6207 = vmatprep.mubr.msk.bf16.mxu0 %vm7417_vm0, %v7416_v45 }
 0x34d   : > { %6193 = vmatprep.subr.bf16.mxu0 %v7416_v45 }
 0x350   : > { %6194 = vmatpush3.bf16.msra.mxu0 %v7190_v39 }
 0x351   : > { %6195 = vmatprep.subr.bf16.mxu0 %v7416_v45 }
 0x354   : > { %6196 = vmatpush3.bf16.msra.mxu0 %v7191_v40 }
 0x355   : > { %6197 = vmatprep.subr.bf16.mxu0 %v7416_v45 }
 0x358   : > { %6198 = vmatpush3.bf16.msra.mxu0 %v7192_v41 }
 0x359   : > { %6199 = vmatprep.subr.bf16.mxu0 %v7416_v45 }
 0x35c   : > { %6200 = vmatpush3.bf16.msra.mxu0 %v7193_v25 }
 0x35d   : > { %6201 = vmatprep.subr.bf16.mxu0 %v7416_v45 }
 0x360   : > { %6202 = vmatpush3.bf16.msra.mxu0 %v7194_v50 }
 0x361   : > { %v6066_v26 = vpop.f32.mrb[8].mxu0  ;;  %v6088_v24 = vpop.f32.mrb[8].mxu1  ;;  %6203 = vmatprep.subr.bf16.mxu0 %v7416_v45 }
 0x362   : > { %v6067_v33 = vpop.f32.mrb[9].mxu0  ;;  %v6089_v42 = vpop.f32.mrb[9].mxu1 }
 0x363   : > { %v6068_v43 = vadd.f32 %v6067_v33, %v6066_v26  ;;  %v6090_v44 = vadd.f32 %v6089_v42, %v6088_v24  ;;  %v6069_v46 = vpop.f32.mrb[10].mxu0  ;;  %v6091_v47 = vpop.f32.mrb[10].mxu1 }
 0x364   : > { %6204 = vmatpush3.bf16.msra.mxu0 %v7195_v34  ;;  %v6070_v48 = vpop.f32.mrb[11].mxu0  ;;  %v6092_v49 = vpop.f32.mrb[11].mxu1 }
 0x365   : > { %v4655_v52 = vadd.f32 %v6090_v44, %v6068_v43  ;;  %v6071_v53 = vadd.f32 %v6070_v48, %v6069_v46  ;;  %v6093_v54 = vadd.f32 %v6092_v49, %v6091_v47  ;;  %6205 = vmatprep.subr.bf16.mxu0 %v7416_v45  ;;  %v4746_v45 = vmul.f32 %v7717_v16, %v7717_v16 }
 0x367   : > { %v4658_v55 = vadd.f32 %v6093_v54, %v6071_v53 }
 0x368   : > { %6206 = vmatpush3.bf16.msra.mxu0 %v7196_v51 }
 0x36b   : > { %6208 = vmatmul.mubr.bf16.vlgmr.msra.gmra.mrb[20].mxu0 %v4773_v21 }
 0x381   : > { %v6110_v56 = vpop.f32.mrb[12].mxu0  ;;  %v6132_v57 = vpop.f32.mrb[12].mxu1 }
 0x382   : > { %v6111_v58 = vpop.f32.mrb[13].mxu0  ;;  %v6133_v59 = vpop.f32.mrb[13].mxu1 }
 0x383   : > { %v6112_v60 = vadd.f32 %v6111_v58, %v6110_v56  ;;  %v6134_v61 = vadd.f32 %v6133_v59, %v6132_v57  ;;  %v6113_v62 = vpop.f32.mrb[14].mxu0  ;;  %v6135_v63 = vpop.f32.mrb[14].mxu1 }
 0x384   : > { %v6114_v0 = vpop.f32.mrb[15].mxu0  ;;  %v6136_v1 = vpop.f32.mrb[15].mxu1 }
 0x385   : > { %v4696_v5 = vadd.f32 %v6112_v60, %v4655_v52  ;;  %v6115_v13 = vadd.f32 %v6114_v0, %v6113_v62  ;;  %v6137_v2 = vadd.f32 %v6136_v1, %v6135_v63 }
 0x387   : > { %v4737_v3 = vadd.f32 %v6134_v61, %v4696_v5  ;;  %v4699_v4 = vadd.f32 %v6115_v13, %v4658_v55 }
 0x389   : > { %v4754_v6 = vmul.f32 %v4737_v3, %v4737_v3  ;;  %v4740_v18 = vadd.f32 %v6137_v2, %v4699_v4 }
 0x38b   : > { %v4762_v29 = vadd.f32 %v4754_v6, %v4746_v45  ;;  %v4758_v7 = vmul.f32 %v4740_v18, %v4740_v18 }
 0x38d   : > { %v4766_v8 = vadd.f32 %v4758_v7, %v4750_v23 }
 0x38f   : > { %v4772_v9 = vpack.c.bf16 %v4766_v8, %v4762_v29 }
 0x391   : > { %5167 = vmatprep.mubr.bf16.mxu1 %v4772_v9 }
 0x392   : > { %5168 = vmatmul.mubr.bf16.vlgmr.msra.gmra.mrb[16].mxu1 %v4771_v38 }
 0x41e   : > { %v6154_v27 = vpop.f32.mrb[16].mxu0 }
 0x41f   : > { %v6155_v10 = vpop.f32.mrb[17].mxu0 }
 0x420   : > { %v6156_v11 = vadd.f32 %v6155_v10, %v6154_v27  ;;  %v6157_v28 = vpop.f32.mrb[18].mxu0 }
 0x421   : > { %v6158_v12 = vpop.f32.mrb[19].mxu0 }
 0x422   : > { %v6159_v16 = vadd.f32 %v6158_v12, %v6157_v28 }
 0x43e   : > { %v5210_v14 = vpop.f32.mrb[20].mxu0 }
 0x43f   : > { %v6209_v17 = vpop.f32.mrb[21].mxu0 }
 0x440   : > { %v5213_v19 = vpop.f32.mrb[22].mxu0 }
 0x441   : > { %v6210_v36 = vpop.f32.mrb[23].mxu0 }
 0x465   : > { %v6176_v20 = vpop.f32.mrb[16].mxu1 }
 0x466   : > { %v6177_v21 = vpop.f32.mrb[17].mxu1 }
 0x467   : > { %v6178_v30 = vadd.f32 %v6177_v21, %v6176_v20  ;;  %v6179_v22 = vpop.f32.mrb[18].mxu1 }
 0x468   : > { %v6180_v35 = vpop.f32.mrb[19].mxu1 }
 0x469   : > { %v5170_v32 = vadd.f32 %v6178_v30, %v6156_v11  ;;  %v6181_v15 = vadd.f32 %v6180_v35, %v6179_v22 }
 0x46b   : > { %v5211_v31 = vadd.f32 %v5210_v14, %v5170_v32  ;;  %v5173_v37 = vadd.f32 %v6181_v15, %v6159_v16 }
 0x46d   : > { %v5217_v38 = vmax.f32 %v5211_v31, 1e-10  ;;  %v5214_v39 = vadd.f32 %v5213_v19, %v5173_v37 }
 0x46f   : > { %7213 = vlog2.f32 %v5217_v38  ;;  %v5218_v40 = vmax.f32 %v5214_v39, 1e-10 }
 0x471   : > { %7215 = vlog2.f32 %v5218_v40 }
 0x479   : > { %v7214_v41 = vpop.eup %7213 }
 0x47a   : > { %v5220_v25 = vmul.f32 0.6931472, %v7214_v41 }
 0x47b   : > { %v7216_v50 = vpop.eup %7215 }
 0x47c   : > { %v5222_v34 = vmul.f32 0.6931472, %v7216_v50  ;;  %v5223_v26 = vmul.f32 4.3429446, %v5220_v25 }
 0x47e   : > { %v5224_v24 = vmul.f32 4.3429446, %v5222_v34 }
 0x480   : > { %v6048_v33 = vpack.c.bf16 %v5224_v24, %v5223_v26  ;;  %v5235_v42 = vmax.f32 %v5223_v26, %v5224_v24 }
 0x482   : > { %v5236_v43 = vrot.slane %v5235_v42, 4  ;;  %6049 = vst [vmem:[%s249_s30] sm:$0xff] %v6048_v33  }
 0x483   : > { %7316 = shalt.err (!%p7313_p2)
}
 0x484   : > { %s7317_s8 = scalar_lea.hbm %s7776_s24, 128  ;;  %s7321_s13 = scalar_lea.hbm %s7856_s3, 256 }
 0x485   : > { %p7318_p13 = scmp.ne.s32.totalorder %s7776_s24, %s7317_s8  ;;  %p7322_p4 = scmp.lt.u32.totalorder %s7776_s24, %s7856_s3 }
 0x486   : > { %p7323_p7 = scmp.lt.u32.totalorder %s7321_s13, %s7317_s8  ;;  %p7325_p11 = scmp.lt.u32.totalorder %s7317_s8, %s7776_s24 }
 0x487   : > { %p7319_p6 = pnand %p7318_p13, %p7871_p0 }
 0x488   : > { %p7324_p8 = por %p7323_p7, %p7322_p4 }
 0x489   : > { %p7320_p10 = pneg %p7319_p6 }
 0x48a   : > { %p7326_p1 = por %p7325_p11, %p7324_p8 }
 0x48c   : > { %p7327_p3 = pnand %p7326_p1, %p7320_p10 }
 0x48e   : > { %7330 = shalt.err (!%p7327_p3)
}
 0x48f   : > { %s7419_s30 = smov 64   ;;  %s7420_s25 = smov 4   ;;  %v5237_v44 = vmax.f32 %v5235_v42, %v5236_v43 }
 0x490   : > { %6269 = dma.vmem_to_hbm [thread:$0]  (%p7871_p0), %s7778_s6, 128, %s7776_s24, %s5244_s26, %s7419_s30, %s7419_s30, %s7420_s25  }
 0x491   : > { %v5238_v46 = vrot.slane %v5237_v44, 2  ;;  %s6037_s7 = sshll.u32 %s7468_s19, 4  ;;  %s255_s28 = scalar_lea.vmem [#allocation9], %s7619_s9 }
 0x492   : > { %s5277_s27 = sshll.u32 %s255_s28, 4  ;;  %s7809_s8 = scalar_lea.hbm %s7857_s4, %s6037_s7  ;;  %s7811_s27 = int_to_ptr.vmem [resolvable:$true] %s5277_s27 }
 0x493   : > { %v5239_v47 = vmax.f32 %v5237_v44, %v5238_v46  ;;  %s5249_s6 = scalar_lea.sflag [#allocation10], %s7619_s9  ;;  %s7331_s24 = scalar_lea.vmem %s7811_s27, 16 }
 0x494   : > { %p7332_p5 = scmp.ne.s32.totalorder %s7811_s27, %s7331_s24  ;;  %s7421_s19 = smov [#allocation9]  }
 0x495   : > { %v5240_v48 = vrot.slane %v5239_v47, 1  ;;  %s7335_s26 = sshll.u32 %s7421_s19, 4  ;;  %s7336_s26 = int_to_ptr.vmem [resolvable:$false] %s7335_s26 }
 0x496   : > { %p7333_p9 = pnand %p7332_p5, %p7871_p0  ;;  %s7337_s10 = scalar_lea.vmem %s7336_s26, 32 }
 0x497   : > { %v5241_v49 = vmax.f32 %v5239_v47, %v5240_v48  ;;  %p7338_p2 = scmp.lt.s32.totalorder %s7811_s27, %s7336_s26  ;;  %p7339_p13 = scmp.lt.s32.totalorder %s7337_s10, %s7331_s24 }
 0x498   : > { %p7334_p12 = pneg %p7333_p9 }
 0x499   : > { %5242 = vst [vmem:[%s255_s28] sm:$0x1] %v5241_v49  ;;  %p7340_p6 = por %p7339_p13, %p7338_p2 }
 0x49b   : > { %p7341_p10 = pnand %p7340_p6, %p7334_p12 }
 0x49d   : > { %7344 = shalt.err (!%p7341_p10)
}
 0x49e   : > { %s7345_s9 = scalar_lea.hbm %s7809_s8, 16  ;;  %s7349_s21 = scalar_lea.hbm %s7857_s4, 32 }
 0x49f   : > { %p7346_p4 = scmp.ne.s32.totalorder %s7809_s8, %s7345_s9  ;;  %p7350_p11 = scmp.lt.u32.totalorder %s7809_s8, %s7857_s4 }
 0x4a0   : > { %p7351_p1 = scmp.lt.u32.totalorder %s7349_s21, %s7345_s9  ;;  %p7353_p5 = scmp.lt.u32.totalorder %s7345_s9, %s7809_s8 }
 0x4a1   : > { %p7347_p7 = pnand %p7346_p4, %p7871_p0 }
 0x4a2   : > { %p7352_p3 = por %p7351_p1, %p7350_p11 }
 0x4a3   : > { %p7348_p8 = pneg %p7347_p7 }
 0x4a4   : > { %p7354_p9 = por %p7353_p5, %p7352_p3 }
 0x4a6   : > { %p7355_p12 = pnand %p7354_p9, %p7348_p8 }
 0x4a8   : > { %7358 = shalt.err (!%p7355_p12)
}
 0x4a9   : > { %6270 = dma.vmem_to_hbm [thread:$0]  (%p7871_p0), %s7811_s27, 16, %s7809_s8, %s5249_s6  }
 0x4aa PF: > { %s5289_s25 = sand.u32 1, %s7393_s15   ;;  %p7872_p2 = scmp.ne.s32.totalorder %s7862_s22, 0 }
 0x4ab   : > { %p7873_p13 = scmp.ge.s32.totalorder %s7405_s18, 2  ;;  %s5290_s7 = scalar_lea.sflag [#allocation4], %s5289_s25 }
 0x4ad   : > { %p6285_p6 = pnand %p7873_p13, %p7872_p2 }
 0x4af   : > { %7384 = dma.done.wait (!%p6285_p6), %s5290_s7, 128  }
 0x4b0   : > { %7386 = vsyncadd (!%p6285_p6), %s5290_s7, 4294967168  ;;  %s5299_s28 = scalar_lea.sflag [#allocation10], %s5289_s25 }
 0x4b1   : > { %7388 = dma.done.wait (!%p6285_p6), %s5299_s28, 16  }
 0x4b2   : > { %7390 = vsyncadd (!%p6285_p6), %s5299_s28, 4294967280  ;;  %p22_p0 = scmp.ge.s32.totalorder %s7557_s11, 4   ;;  %s7874_s15 = smov %s7397_s16 }
 0x4b3   : > { %s7875_s16 = smov %s7401_s17  ;;  %s7876_s17 = smov %s7566_s14 }
 0x4b4   : > { %s7877_s18 = smov %s7557_s11  ;;  %24 = sbr.rel (!%p22_p0) target bundleno = 8 (0x8), region = 102 }
 0x4bb   :  { %5303 = vsyncpa [#allocation3], 1 }
 0x4bc   :  { %5305 = vsyncpa [#allocation3 + $0x1], 1 }
 0x4bd   :  { %5306 = vsyncpa [#allocation6], 1 }
 0x4be   :  { %5307 = vsyncpa [#allocation4], 1 }
 0x4bf   :  { %5309 = vsyncpa [#allocation4 + $0x1], 1 }
 0x4c0   :  { %5310 = vsyncpa [#allocation10], 1 }
 0x4c1   :  { %5312 = vsyncpa [#allocation10 + $0x1], 1 }

// kernel: image_classifier_forward.3
= control target key start
LH: loop header
LB: loop body
LE: loop exit
PB: predicated region body
PF: predicated region fallthrough
CT: control target
= control target key end

     0   :  { %15 = vsyncpa [#allocation3], 0  ;;  %s6981_s0 = inlined_call_operand.hbm [shape: bf16[32,128], index: 0, kind: input, shape index: {}]   ;;  %s6982_s1 = inlined_call_operand.vmem [shape: f32[32,1], index: 1, kind: input, shape index: {}]   ;;  %s6983_s2 = inlined_call_operand.vmem [shape: f32[32,1], index: 2, kind: input, shape index: {}]   ;;  %s6984_s3 = inlined_call_operand.vmem [shape: bf16[2,32], index: 3, kind: input, shape index: {}]   ;;  %s6985_s4 = inlined_call_operand.hbm [shape: f32[1,128], index: 4, kind: input, shape index: {}]   ;;  %s6986_s5 = inlined_call_operand.vmem [shape: f32[1,128], index: 5, kind: input, shape index: {}]   ;;  %s6987_s6 = inlined_call_operand.hbm [shape: bf16[384,2048], index: 6, kind: input, shape index: {}]   ;;  %s6988_s7 = inlined_call_operand.hbm [shape: f32[1,2048], index: 7, kind: input, shape index: {}]   ;;  %s6989_s8 = inlined_call_operand.hbm [shape: bf16[2048,128], index: 8, kind: input, shape index: {}]   ;;  %s6990_s9 = inlined_call_operand.hbm [shape: f32[1,128], index: 9, kind: input, shape index: {}]   ;;  %s6991_s10 = inlined_call_operand.hbm [shape: f32[2,128], index: 10, kind: output, shape index: {}]  }
   0x1   :  { %16 = vsyncpa [#allocation6], 0 }
   0x2   :  { %17 = vsyncpa [#allocation9], 0 }
   0x3   :  { %18 = vsyncpa [#allocation12], 0 }
   0x4   :  { %19 = vsyncpa [#allocation4], 0  ;;  %s6454_s13 = smov [#allocation5]   ;;  %s6455_s15 = smov [#allocation8]  }
   0x5   :  { %s44_s14 = sshll.u32 %s6454_s13, 4  ;;  %s68_s16 = sshll.u32 %s6455_s15, 4  ;;  %s45_s14 = int_to_ptr.vmem [resolvable:$true] %s44_s14  ;;  %s69_s16 = int_to_ptr.vmem [resolvable:$true] %s68_s16 }
   0x6   :  { %s6290_s19 = scalar_lea.hbm %s6985_s4, 16 }
   0x7   :  { %p6291_p0 = scmp.ne.s32.totalorder %s6985_s4, %s6290_s19  ;;  %p6294_p1 = scmp.lt.u32.totalorder %s6290_s19, %s6985_s4 }
   0x9   :  { %p6296_p2 = pnand %p6294_p1, %p6291_p0 }
   0xb   :  { %6299 = shalt.err (!%p6296_p2)
}
   0xc   :  { %s6300_s24 = scalar_lea.vmem %s45_s14, 16  ;;  %s6304_s25 = scalar_lea.vmem %s45_s14, 32 }
   0xd   :  { %p6301_p3 = scmp.ne.s32.totalorder %s45_s14, %s6300_s24  ;;  %p6305_p4 = scmp.lt.s32.totalorder %s45_s14, %s45_s14 }
   0xe   :  { %p6306_p5 = scmp.lt.s32.totalorder %s6304_s25, %s6300_s24 }
  0x10   :  { %p6307_p6 = por %p6306_p5, %p6305_p4 }
  0x12   :  { %p6308_p7 = pnand %p6307_p6, %p6301_p3 }
  0x14   :  { %6311 = shalt.err (!%p6308_p7)
}
  0x15   :  { %47 = dma.hbm_to_vmem [thread:$0]  %s6985_s4, 16, %s45_s14, [#allocation6]  }
  0x16   :  { %s6312_s30 = scalar_lea.hbm %s6988_s7, 256 }
  0x17   :  { %p6313_p8 = scmp.ne.s32.totalorder %s6988_s7, %s6312_s30  ;;  %p6316_p9 = scmp.lt.u32.totalorder %s6312_s30, %s6988_s7 }
  0x19   :  { %p6318_p10 = pnand %p6316_p9, %p6313_p8 }
  0x1b   :  { %6321 = shalt.err (!%p6318_p10)
}
  0x1c   :  { %s6322_s17 = scalar_lea.vmem %s69_s16, 256  ;;  %p6327_p12 = scmp.lt.s32.totalorder %s69_s16, %s69_s16 }
  0x1d   :  { %p6323_p11 = scmp.ne.s32.totalorder %s69_s16, %s6322_s17  ;;  %p6328_p13 = scmp.lt.s32.totalorder %s6322_s17, %s6322_s17 }
  0x1f   :  { %p6329_p0 = por %p6328_p13, %p6327_p12 }
  0x21   :  { %p6330_p1 = pnand %p6329_p0, %p6323_p11 }
  0x23   :  { %6333 = shalt.err (!%p6330_p1)
}
  0x24   :  { %71 = dma.hbm_to_vmem [thread:$0]  %s6988_s7, 256, %s69_s16, [#allocation9]  }
  0x25   :  { %s6456_s18 = smov [#allocation2]   ;;  %s6334_s22 = scalar_lea.hbm %s6981_s0, 256 }
  0x26   :  { %s25_s19 = sshll.u32 %s6456_s18, 4  ;;  %p6335_p2 = scmp.ne.s32.totalorder %s6981_s0, %s6334_s22  ;;  %s26_s19 = int_to_ptr.vmem [resolvable:$true] %s25_s19 }
  0x27   :  { %p6338_p3 = scmp.lt.u32.totalorder %s6334_s22, %s6981_s0 }
  0x29   :  { %p6340_p4 = pnand %p6338_p3, %p6335_p2 }
  0x2b   :  { %6343 = shalt.err (!%p6340_p4)
}
  0x2c   :  { %s6344_s27 = scalar_lea.vmem %s26_s19, 256  ;;  %p6349_p6 = scmp.lt.s32.totalorder %s26_s19, %s26_s19 }
  0x2d   :  { %p6345_p5 = scmp.ne.s32.totalorder %s26_s19, %s6344_s27  ;;  %p6350_p7 = scmp.lt.s32.totalorder %s6344_s27, %s6344_s27 }
  0x2f   :  { %p6351_p8 = por %p6350_p7, %p6349_p6 }
  0x31   :  { %p6352_p9 = pnand %p6351_p8, %p6345_p5 }
  0x33   :  { %6355 = shalt.err (!%p6352_p9)
}
  0x34   :  { %s6457_s7 = smov 64   ;;  %s6458_s16 = smov 4  }
  0x35   :  { %31 = dma.hbm_to_vmem [thread:$0]  %s6981_s0, 256, %s26_s19, [#allocation3], %s6457_s7, %s6457_s7, %s6458_s16  }
  0x36   :  { %s6459_s30 = smov [#allocation7]   ;;  %s6356_s15 = scalar_lea.hbm %s6987_s6, 49152 }
  0x37   :  { %s55_s11 = sshll.u32 %s6459_s30, 4  ;;  %p6357_p10 = scmp.ne.s32.totalorder %s6987_s6, %s6356_s15  ;;  %s56_s11 = int_to_ptr.vmem [resolvable:$true] %s55_s11 }
  0x38   :  { %p6360_p11 = scmp.lt.u32.totalorder %s6356_s15, %s6987_s6 }
  0x3a   :  { %p6362_p12 = pnand %p6360_p11, %p6357_p10 }
  0x3c   :  { %6365 = shalt.err (!%p6362_p12)
}
  0x3d   :  { %s6366_s20 = scalar_lea.vmem %s56_s11, 49152  ;;  %p6371_p0 = scmp.lt.s32.totalorder %s56_s11, %s56_s11 }
  0x3e   :  { %p6367_p13 = scmp.ne.s32.totalorder %s56_s11, %s6366_s20  ;;  %p6372_p1 = scmp.lt.s32.totalorder %s6366_s20, %s6366_s20 }
  0x40   :  { %p6373_p2 = por %p6372_p1, %p6371_p0 }
  0x42   :  { %p6374_p3 = pnand %p6373_p2, %p6367_p13 }
  0x44   :  { %6377 = shalt.err (!%p6374_p3)
}
  0x45   :  { %s6460_s0 = smov 1024   ;;  %s6461_s22 = smov [#allocation10]  }
  0x46   :  { %61 = dma.hbm_to_vmem [thread:$0]  %s6987_s6, 49152, %s56_s11, [#allocation6], %s6460_s0, %s6460_s0, %s6457_s7  }
  0x47   :  { %s77_s23 = sshll.u32 %s6461_s22, 4  ;;  %s6462_s24 = smov [#allocation11]   ;;  %s78_s23 = int_to_ptr.vmem [resolvable:$true] %s77_s23 }
  0x48   :  { %s90_s25 = sshll.u32 %s6462_s24, 4  ;;  %s6378_s28 = scalar_lea.hbm %s6989_s8, 16384  ;;  %s91_s25 = int_to_ptr.vmem [resolvable:$true] %s90_s25 }
  0x49   :  { %p6379_p4 = scmp.ne.s32.totalorder %s6989_s8, %s6378_s28  ;;  %p6382_p5 = scmp.lt.u32.totalorder %s6378_s28, %s6989_s8 }
  0x4b   :  { %p6384_p6 = pnand %p6382_p5, %p6379_p4 }
  0x4d   :  { %6387 = shalt.err (!%p6384_p6)
}
  0x4e   :  { %s6388_s6 = scalar_lea.vmem %s78_s23, 16384  ;;  %p6393_p8 = scmp.lt.s32.totalorder %s78_s23, %s78_s23 }
  0x4f   :  { %p6389_p7 = scmp.ne.s32.totalorder %s78_s23, %s6388_s6  ;;  %p6394_p9 = scmp.lt.s32.totalorder %s6388_s6, %s6388_s6 }
  0x51   :  { %p6395_p10 = por %p6394_p9, %p6393_p8 }
  0x53   :  { %p6396_p11 = pnand %p6395_p10, %p6389_p7 }
  0x55   :  { %6399 = shalt.err (!%p6396_p11)
}
  0x56   :  { %83 = dma.hbm_to_vmem [thread:$0]  %s6989_s8, 16384, %s78_s23, [#allocation9], %s6457_s7, %s6457_s7, %s6458_s16  }
  0x57   :  { %s6400_s14 = scalar_lea.hbm %s6990_s9, 16 }
  0x58   :  { %p6401_p12 = scmp.ne.s32.totalorder %s6990_s9, %s6400_s14  ;;  %p6404_p13 = scmp.lt.u32.totalorder %s6400_s14, %s6990_s9 }
  0x5a   :  { %p6406_p0 = pnand %p6404_p13, %p6401_p12 }
  0x5c   :  { %6409 = shalt.err (!%p6406_p0)
}
  0x5d   :  { %s6410_s21 = scalar_lea.vmem %s91_s25, 16  ;;  %s6414_s22 = scalar_lea.vmem %s91_s25, 32 }
  0x5e   :  { %p6411_p1 = scmp.ne.s32.totalorder %s91_s25, %s6410_s21  ;;  %p6415_p2 = scmp.lt.s32.totalorder %s91_s25, %s91_s25 }
  0x5f   :  { %p6416_p3 = scmp.lt.s32.totalorder %s6414_s22, %s6410_s21 }
  0x61   :  { %p6417_p4 = por %p6416_p3, %p6415_p2 }
  0x63   :  { %p6418_p5 = pnand %p6417_p4, %p6411_p1 }
  0x65   :  { %6421 = shalt.err (!%p6418_p5)
}
  0x66   :  { %93 = dma.hbm_to_vmem [thread:$0]  %s6990_s9, 16, %s91_s25, [#allocation12]  }
  0x67   :  { %6444 = dma.done.wait [#allocation3], 256  }
  0x68   :  { %6445 = vsyncadd [#allocation3], 4294967040 }
  0x69   :  { %6446 = dma.done.wait [#allocation6], 49168  }
  0x6a   :  { %6447 = vsyncadd [#allocation6], 4294918128 }
  0x6b   :  { %6448 = dma.done.wait [#allocation9], 16640  }
  0x6c   :  { %6449 = vsyncadd [#allocation9], 4294950656 }
  0x6d   :  { %6450 = dma.done.wait [#allocation12], 16  }
  0x6e   :  { %6451 = vsyncadd [#allocation12], 4294967280  ;;  %v6463_v0 = vmov 0   ;;  %v162_v1 = vld [vmem:[%s6982_s1 + $0x10] sm:$0xff]  ;;  %v160_v2 = vld [vmem:[%s6982_s1] sm:$0xff]  ;;  %vm147_vm0 = vcmask 1040384  }
  0x6f   :  { %6157 = vset.pattern.permute.xlu1 %v6463_v0  ;;  %6156 = vset.pattern.permute.xlu0 %v6463_v0  ;;  %v163_v3 = vld [vmem:[%s6982_s1 + $0x18] sm:$0xff]  ;;  %v161_v4 = vld [vmem:[%s6982_s1 + $0x8] sm:$0xff]  ;;  %v201_v21 = vld [vmem:[%s6983_s2] sm:$0xff]  ;;  %vm188_vm1 = vcmask 1046528   ;;  %vm3568_vm2 = vcmask 261120  }
  0x70   :  { %176 = vperm.xlu1 %6157, %v162_v1   ;;  %166 = vperm.xlu0 %6156, %v160_v2   ;;  %v235_v5 = vld [vmem:[#allocation7] sm:$0xff]  ;;  %v236_v7 = vld [vmem:[#allocation7 + $0x8] sm:$0xff]  ;;  %v202_v9 = vld [vmem:[%s6983_s2 + $0x8] sm:$0xff] }
  0x71   :  { %v243_v6 = vld [vmem:[#allocation7 + $0x40] sm:$0xff]  ;;  %v244_v8 = vld [vmem:[#allocation7 + $0x48] sm:$0xff] }
  0x72   :  { %v5311_v10 = vcombine.high %v235_v5, %v243_v6  ;;  %v5313_v11 = vcombine.high %v236_v7, %v244_v8  ;;  %v5310_v12 = vcombine.low %v235_v5, %v243_v6  ;;  %v5312_v13 = vcombine.low %v236_v7, %v244_v8  ;;  %v251_v14 = vld [vmem:[#allocation7 + $0x80] sm:$0xff]  ;;  %v252_v16 = vld [vmem:[#allocation7 + $0x88] sm:$0xff]  ;;  %v5840_v5 = vld [vmem:[#allocation2 + $0x8] sm:$0xff]  }
  0x73   :  { %v259_v15 = vld [vmem:[#allocation7 + $0xc0] sm:$0xff]  ;;  %v260_v18 = vld [vmem:[#allocation7 + $0xc8] sm:$0xff]  ;;  %v5308_v6 = vld [vmem:[#allocation5] ss:$0 sm:$0xff] }
  0x74   :  { %181 = vperm.xlu1 %6157, %v163_v3   ;;  %171 = vperm.xlu0 %6156, %v161_v4   ;;  %v5327_v17 = vcombine.high %v251_v14, %v259_v15  ;;  %v267_v19 = vld [vmem:[#allocation7 + $0x100] sm:$0xff]  ;;  %v5329_v22 = vcombine.high %v252_v16, %v260_v18  ;;  %v268_v23 = vld [vmem:[#allocation7 + $0x108] sm:$0xff]  ;;  %v5326_v25 = vcombine.low %v251_v14, %v259_v15 }
  0x75   :  { %v275_v20 = vld [vmem:[#allocation7 + $0x140] sm:$0xff]  ;;  %2623 = vmatprep.subr.bf16.mxu0 %v5311_v10  ;;  %2729 = vmatprep.subr.bf16.mxu1 %v5313_v11  ;;  %v276_v24 = vld [vmem:[#allocation7 + $0x148] sm:$0xff]  ;;  %v5328_v26 = vcombine.low %v252_v16, %v260_v18  ;;  %v5838_v10 = vunpack.c.l.bf16 %v5840_v5 }
  0x76   :  { %2624 = vmatpush1.bf16.msra.mxu0 %v5310_v12  ;;  %2730 = vmatpush1.bf16.msra.mxu1 %v5312_v13  ;;  %v5343_v27 = vcombine.high %v267_v19, %v275_v20  ;;  %v5345_v28 = vcombine.high %v268_v23, %v276_v24  ;;  %v283_v29 = vld [vmem:[#allocation7 + $0x180] sm:$0xff]  ;;  %v284_v31 = vld [vmem:[#allocation7 + $0x188] sm:$0xff]  ;;  %v5342_v35 = vcombine.low %v267_v19, %v275_v20  ;;  %v5839_v12 = vunpack.c.h.bf16 %v5840_v5 }
  0x77   :  { %2625 = vmatprep.subr.bf16.mxu0 %v5327_v17  ;;  %2731 = vmatprep.subr.bf16.mxu1 %v5329_v22  ;;  %v291_v30 = vld [vmem:[#allocation7 + $0x1c0] sm:$0xff]  ;;  %v292_v32 = vld [vmem:[#allocation7 + $0x1c8] sm:$0xff]  ;;  %v5344_v36 = vcombine.low %v268_v23, %v276_v24 }
  0x78   :  { %212 = vperm.xlu1 %6157, %v202_v9   ;;  %207 = vperm.xlu0 %6156, %v201_v21   ;;  %v204_v33 = vld [vmem:[%s6983_s2 + $0x18] sm:$0xff]  ;;  %v203_v34 = vld [vmem:[%s6983_s2 + $0x10] sm:$0xff]  ;;  %v5359_v37 = vcombine.high %v283_v29, %v291_v30  ;;  %v5361_v38 = vcombine.high %v284_v31, %v292_v32  ;;  %v5358_v43 = vcombine.low %v283_v29, %v291_v30  ;;  %v5833_v63 = vld [vmem:[#allocation2] sm:$0xff]  }
  0x79   :  { %v299_v39 = vld [vmem:[#allocation7 + $0x200] sm:$0xff]  ;;  %v300_v41 = vld [vmem:[#allocation7 + $0x208] sm:$0xff]  ;;  %v5360_v44 = vcombine.low %v284_v31, %v292_v32  ;;  %v5835_v4 = vunpack.c.h.bf16 %v5833_v63  ;;  %v5834_v7 = vunpack.c.l.bf16 %v5833_v63  ;;  %v130_v21 = vmul.f32 %v5838_v10, %v5308_v6 }
  0x7a   :  { %2626 = vmatpush1.bf16.msra.mxu0 %v5326_v25  ;;  %2732 = vmatpush1.bf16.msra.mxu1 %v5328_v26  ;;  %v307_v40 = vld [vmem:[#allocation7 + $0x240] sm:$0xff]  ;;  %v308_v42 = vld [vmem:[#allocation7 + $0x248] sm:$0xff]  ;;  %v131_v22 = vmul.f32 %v5839_v12, %v5308_v6 }
  0x7b   :  { %2627 = vmatprep.subr.bf16.mxu0 %v5343_v27  ;;  %2733 = vmatprep.subr.bf16.mxu1 %v5345_v28  ;;  %v5375_v45 = vcombine.high %v299_v39, %v307_v40  ;;  %v5377_v46 = vcombine.high %v300_v41, %v308_v42  ;;  %v315_v47 = vld [vmem:[#allocation7 + $0x280] sm:$0xff]  ;;  %v316_v49 = vld [vmem:[#allocation7 + $0x288] sm:$0xff]  ;;  %v5374_v51 = vcombine.low %v299_v39, %v307_v40 }
  0x7c   :  { %222 = vperm.xlu1 %6157, %v204_v33   ;;  %217 = vperm.xlu0 %6156, %v203_v34   ;;  %v323_v48 = vld [vmem:[#allocation7 + $0x2c0] sm:$0xff]  ;;  %v324_v50 = vld [vmem:[#allocation7 + $0x2c8] sm:$0xff]  ;;  %v5376_v52 = vcombine.low %v300_v41, %v308_v42  ;;  %v129_v15 = vmul.f32 %v5835_v4, %v5308_v6  ;;  %v128_v16 = vmul.f32 %v5834_v7, %v5308_v6 }
  0x7d   :  { %v5391_v53 = vcombine.high %v315_v47, %v323_v48  ;;  %v5393_v54 = vcombine.high %v316_v49, %v324_v50  ;;  %v331_v55 = vld [vmem:[#allocation7 + $0x300] sm:$0xff]  ;;  %v332_v57 = vld [vmem:[#allocation7 + $0x308] sm:$0xff]  ;;  %v5390_v60 = vcombine.low %v315_v47, %v323_v48  ;;  %v5392_v1 = vcombine.low %v316_v49, %v324_v50 }
  0x7e   :  { %2628 = vmatpush1.bf16.msra.mxu0 %v5342_v35  ;;  %2734 = vmatpush1.bf16.msra.mxu1 %v5344_v36  ;;  %v339_v56 = vld [vmem:[#allocation7 + $0x340] sm:$0xff]  ;;  %v340_v58 = vld [vmem:[#allocation7 + $0x348] sm:$0xff] }
  0x7f   :  { %2629 = vmatprep.subr.bf16.mxu0 %v5359_v37  ;;  %2735 = vmatprep.subr.bf16.mxu1 %v5361_v38  ;;  %v6625_v59 = vld [vmem:[#allocation7 + $0x380] sm:$0xff]  ;;  %v6629_v62 = vld [vmem:[#allocation7 + $0x388] sm:$0xff]  ;;  %v5407_v2 = vcombine.high %v331_v55, %v339_v56  ;;  %v5409_v8 = vcombine.high %v332_v57, %v340_v58  ;;  %v5406_v9 = vcombine.low %v331_v55, %v339_v56 }
  0x80   :  { %v6627_v61 = vld [vmem:[#allocation7 + $0x3c0] sm:$0xff]  ;;  %v6631_v3 = vld [vmem:[#allocation7 + $0x3c8] sm:$0xff]  ;;  %v5408_v13 = vcombine.low %v332_v57, %v340_v58 }
  0x81   :  { %v5309_v11 = vld [vmem:[%s6986_s5] ss:$0 sm:$0xff]  ;;  %v5423_v14 = vcombine.high %v6625_v59, %v6627_v61  ;;  %v6638_v17 = vld [vmem:[#allocation7 + $0x800] sm:$0xff]  ;;  %v5425_v19 = vcombine.high %v6629_v62, %v6631_v3  ;;  %v5422_v20 = vcombine.low %v6625_v59, %v6627_v61  ;;  %v5424_v30 = vcombine.low %v6629_v62, %v6631_v3 }
  0x82   :  { %2630 = vmatpush1.bf16.msra.mxu0 %v5358_v43  ;;  %2736 = vmatpush1.bf16.msra.mxu1 %v5360_v44  ;;  %v6640_v18 = vld [vmem:[#allocation7 + $0x840] sm:$0xff]  ;;  %v6646_v23 = vld [vmem:[#allocation7 + $0x808] sm:$0xff]  ;;  %v140_v27 = vadd.f32 %v5309_v11, %v129_v15  ;;  %v6650_v28 = vadd.f32 %v5309_v11, %v128_v16  ;;  %v141_v33 = vadd.f32 %v5309_v11, %v130_v21 }
  0x83   :  { %2631 = vmatprep.subr.bf16.mxu0 %v5375_v45  ;;  %2737 = vmatprep.subr.bf16.mxu1 %v5377_v46  ;;  %v6648_v24 = vld [vmem:[#allocation7 + $0x848] sm:$0xff]  ;;  %v363_v25 = vld [vmem:[#allocation7 + $0x400] sm:$0xff]  ;;  %v5566_v29 = vcombine.low %v6638_v17, %v6640_v18  ;;  %v6656_v34 = vadd.f32 %v5309_v11, %v131_v22 }
  0x84   :  { %v371_v26 = vld [vmem:[#allocation7 + $0x440] sm:$0xff]  ;;  %v364_v31 = vld [vmem:[#allocation7 + $0x408] sm:$0xff]  ;;  %v149_v35 = vrot.slane %v140_v27, 7  ;;  %v148_v36 = vrot.slane %v6650_v28, 7  ;;  %v6660_v37 = vpack.c.bf16 %v140_v27, %v6650_v28  ;;  %v5568_v38 = vcombine.low %v6646_v23, %v6648_v24 }
  0x85   :  { %v372_v32 = vld [vmem:[#allocation7 + $0x448] sm:$0xff]  ;;  %v5439_v39 = vcombine.high %v363_v25, %v371_v26  ;;  %v151_v40 = vrot.slane %v141_v33, 7  ;;  %v153_v41 = vrot.slane %v6656_v34, 7  ;;  %v6666_v42 = vpack.c.bf16 %v6656_v34, %v141_v33  ;;  %v379_v47 = vld [vmem:[#allocation7 + $0x480] sm:$0xff] }
  0x86   :  { %2632 = vmatpush1.bf16.msra.mxu0 %v5374_v51  ;;  %2738 = vmatpush1.bf16.msra.mxu1 %v5376_v52  ;;  %v5441_v43 = vcombine.high %v364_v31, %v372_v32  ;;  %v6671_v44 = vsel %vm147_vm0, %v148_v36, %v149_v35  ;;  %v190_v45 = vrot.slane %v140_v27, 1  ;;  %v192_v46 = vrot.slane %v141_v33, 1  ;;  %v387_v52 = vld [vmem:[#allocation7 + $0x4c0] sm:$0xff]  ;;  %v396_v62 = vld [vmem:[#allocation7 + $0x508] sm:$0xff] }
  0x87   :  { %2633 = vmatprep.subr.bf16.mxu0 %v5391_v53  ;;  %2739 = vmatprep.subr.bf16.mxu1 %v5393_v54  ;;  %v6674_v48 = vsel %vm147_vm0, %v149_v35, %v151_v40  ;;  %v6677_v49 = vsel %vm147_vm0, %v151_v40, %v153_v41  ;;  %v189_v50 = vrot.slane %v6650_v28, 1  ;;  %v194_v51 = vrot.slane %v6656_v34, 1  ;;  %v380_v53 = vld [vmem:[#allocation7 + $0x488] sm:$0xff]  ;;  %v403_v61 = vld [vmem:[#allocation7 + $0x540] sm:$0xff] }
  0x88   :  { %v388_v54 = vld [vmem:[#allocation7 + $0x4c8] sm:$0xff]  ;;  %v6682_v55 = vsel %vm188_vm1, %v190_v45, %v192_v46  ;;  %2655 = vmatprep.mubr.bf16.mxu0 %v6660_v37  ;;  %2761 = vmatprep.mubr.bf16.mxu1 %v6660_v37  ;;  %v5438_v58 = vcombine.low %v363_v25, %v371_v26  ;;  %v5440_v59 = vcombine.low %v364_v31, %v372_v32  ;;  %v411_v5 = vld [vmem:[#allocation7 + $0x580] sm:$0xff] }
  0x89   :  { %v6687_v56 = vsel %vm188_vm1, %v189_v50, %v190_v45  ;;  %v6692_v57 = vsel %vm188_vm1, %v192_v46, %v194_v51  ;;  %v404_v63 = vld [vmem:[#allocation7 + $0x548] sm:$0xff]  ;;  %v5454_v3 = vcombine.low %v379_v47, %v387_v52  ;;  %v5456_v4 = vcombine.low %v380_v53, %v388_v54  ;;  %v419_v6 = vld [vmem:[#allocation7 + $0x5c0] sm:$0xff] }
  0x8a   :  { %2634 = vmatpush1.bf16.msra.mxu0 %v5390_v60  ;;  %2740 = vmatpush1.bf16.msra.mxu1 %v5392_v1  ;;  %v395_v60 = vld [vmem:[#allocation7 + $0x500] sm:$0xff]  ;;  %v5455_v1 = vcombine.high %v379_v47, %v387_v52  ;;  %v412_v7 = vld [vmem:[#allocation7 + $0x588] sm:$0xff]  ;;  %v5473_v10 = vcombine.high %v396_v62, %v404_v63  ;;  %v5472_v12 = vcombine.low %v396_v62, %v404_v63 }
  0x8b   :  { %2635 = vmatprep.subr.bf16.mxu0 %v5407_v2  ;;  %2741 = vmatprep.subr.bf16.mxu1 %v5409_v8  ;;  %v5457_v2 = vcombine.high %v380_v53, %v388_v54  ;;  %v420_v8 = vld [vmem:[#allocation7 + $0x5c8] sm:$0xff]  ;;  %v5470_v11 = vcombine.low %v395_v60, %v403_v61  ;;  %v5486_v21 = vcombine.low %v411_v5, %v419_v6  ;;  %v443_v25 = vld [vmem:[#allocation7 + $0x680] sm:$0xff] }
  0x8c   :  { %v428_v15 = vld [vmem:[#allocation7 + $0x608] sm:$0xff]  ;;  %v5488_v22 = vcombine.low %v412_v7, %v420_v8  ;;  %v451_v26 = vld [vmem:[#allocation7 + $0x6c0] sm:$0xff] }
  0x8d   :  { %v436_v16 = vld [vmem:[#allocation7 + $0x648] sm:$0xff]  ;;  %v467_v40 = vld [vmem:[#allocation7 + $0x740] sm:$0xff]  ;;  %v5519_v45 = vcombine.high %v443_v25, %v451_v26  ;;  %v5518_v47 = vcombine.low %v443_v25, %v451_v26 }
  0x8e   :  { %2636 = vmatpush1.bf16.msra.mxu0 %v5406_v9  ;;  %2742 = vmatpush1.bf16.msra.mxu1 %v5408_v13  ;;  %v5471_v9 = vcombine.high %v395_v60, %v403_v61  ;;  %v427_v13 = vld [vmem:[#allocation7 + $0x600] sm:$0xff]  ;;  %v444_v27 = vld [vmem:[#allocation7 + $0x688] sm:$0xff]  ;;  %v5505_v32 = vcombine.high %v428_v15, %v436_v16  ;;  %v5504_v35 = vcombine.low %v428_v15, %v436_v16 }
  0x8f   :  { %2637 = vmatprep.subr.bf16.mxu0 %v5423_v14  ;;  %2743 = vmatprep.subr.bf16.mxu1 %v5425_v19  ;;  %v435_v14 = vld [vmem:[#allocation7 + $0x640] sm:$0xff]  ;;  %v5487_v19 = vcombine.high %v411_v5, %v419_v6  ;;  %v460_v41 = vld [vmem:[#allocation7 + $0x708] sm:$0xff]  ;;  %v5569_v5 = vcombine.high %v6646_v23, %v6648_v24 }
  0x90   :  { %v5503_v31 = vcombine.high %v427_v13, %v435_v14  ;;  %v5502_v33 = vcombine.low %v427_v13, %v435_v14  ;;  %v475_v52 = vld [vmem:[#allocation7 + $0x780] sm:$0xff]  ;;  %v476_v54 = vld [vmem:[#allocation7 + $0x788] sm:$0xff] }
  0x91   :  { %v483_v53 = vld [vmem:[#allocation7 + $0x7c0] sm:$0xff]  ;;  %v516_v13 = vld [vmem:[#allocation7 + $0x8c8] sm:$0xff] }
  0x92   :  { %2638 = vmatpush1.bf16.msra.mxu0 %v5422_v20  ;;  %2744 = vmatpush1.bf16.msra.mxu1 %v5424_v30  ;;  %v5489_v20 = vcombine.high %v412_v7, %v420_v8  ;;  %v452_v30 = vld [vmem:[#allocation7 + $0x6c8] sm:$0xff]  ;;  %v5551_v63 = vcombine.high %v475_v52, %v483_v53  ;;  %v159_v8 = vsel %vm147_vm0, 0.0, %v148_v36 }
  0x93   :  { %2639 = vmatprep.subr.bf16.mxu0 %v5439_v39  ;;  %2745 = vmatprep.subr.bf16.mxu1 %v5441_v43  ;;  %v459_v39 = vld [vmem:[#allocation7 + $0x700] sm:$0xff]  ;;  %v468_v43 = vld [vmem:[#allocation7 + $0x748] sm:$0xff]  ;;  %v5521_v46 = vcombine.high %v444_v27, %v452_v30  ;;  %v5520_v50 = vcombine.low %v444_v27, %v452_v30 }
  0x94   :  { %v5537_v60 = vcombine.high %v460_v41, %v468_v43  ;;  %v5534_v61 = vcombine.low %v459_v39, %v467_v40  ;;  %v5536_v62 = vcombine.low %v460_v41, %v468_v43  ;;  %v524_v25 = vld [vmem:[#allocation7 + $0x908] sm:$0xff] }
  0x95   :  { %v532_v30 = vld [vmem:[#allocation7 + $0x948] sm:$0xff] }
  0x96   :  { %2640 = vmatpush1.bf16.msra.mxu0 %v5438_v58  ;;  %2746 = vmatpush1.bf16.msra.mxu1 %v5440_v59  ;;  %v484_v58 = vld [vmem:[#allocation7 + $0x7c8] sm:$0xff]  ;;  %v5535_v59 = vcombine.high %v459_v39, %v467_v40 }
  0x97   :  { %2641 = vmatprep.subr.bf16.mxu0 %v5455_v1  ;;  %2747 = vmatprep.subr.bf16.mxu1 %v5457_v2  ;;  %v5553_v1 = vcombine.high %v476_v54, %v484_v58  ;;  %v5550_v2 = vcombine.low %v475_v52, %v483_v53  ;;  %v540_v39 = vld [vmem:[#allocation7 + $0x988] sm:$0xff] }
  0x98   :  { %v564_v53 = vld [vmem:[#allocation7 + $0xa48] sm:$0xff] }
  0x9a   :  { %2642 = vmatpush1.bf16.msra.mxu0 %v5454_v3  ;;  %2748 = vmatpush1.bf16.msra.mxu1 %v5456_v4  ;;  %v5552_v3 = vcombine.low %v476_v54, %v484_v58  ;;  %v5567_v4 = vcombine.high %v6638_v17, %v6640_v18  ;;  %v5601_v17 = vcombine.high %v524_v25, %v532_v30  ;;  %v548_v18 = vld [vmem:[#allocation7 + $0x9c8] sm:$0xff]  ;;  %v571_v58 = vld [vmem:[#allocation7 + $0xa80] sm:$0xff] }
  0x9b   :  { %2643 = vmatprep.subr.bf16.mxu0 %v5471_v9  ;;  %2749 = vmatprep.subr.bf16.mxu1 %v5473_v10  ;;  %v507_v9 = vld [vmem:[#allocation7 + $0x880] sm:$0xff]  ;;  %v5617_v52 = vcombine.high %v540_v39, %v548_v18  ;;  %v5616_v54 = vcombine.low %v540_v39, %v548_v18  ;;  %v269_v18 = vld [vmem:[#allocation7 + $0x110] sm:$0xff] }
  0x9c   :  { %v515_v10 = vld [vmem:[#allocation7 + $0x8c0] sm:$0xff] }
  0x9d   :  { %v5583_v36 = vcombine.high %v507_v9, %v515_v10 }
  0x9e   :  { %2644 = vmatpush1.bf16.msra.mxu0 %v5470_v11  ;;  %2750 = vmatpush1.bf16.msra.mxu1 %v5472_v12  ;;  %v508_v11 = vld [vmem:[#allocation7 + $0x888] sm:$0xff] }
  0x9f   :  { %2645 = vmatprep.subr.bf16.mxu0 %v5487_v19  ;;  %2751 = vmatprep.subr.bf16.mxu1 %v5489_v20  ;;  %v5585_v27 = vcombine.high %v508_v11, %v516_v13 }
  0xa2   :  { %2646 = vmatpush1.bf16.msra.mxu0 %v5486_v21  ;;  %2752 = vmatpush1.bf16.msra.mxu1 %v5488_v22  ;;  %v523_v21 = vld [vmem:[#allocation7 + $0x900] sm:$0xff] }
  0xa3   :  { %2647 = vmatprep.subr.bf16.mxu0 %v5503_v31  ;;  %2753 = vmatprep.subr.bf16.mxu1 %v5505_v32  ;;  %v531_v22 = vld [vmem:[#allocation7 + $0x940] sm:$0xff] }
  0xa4   :  { %v5599_v41 = vcombine.high %v523_v21, %v531_v22  ;;  %v5598_v34 = vcombine.low %v523_v21, %v531_v22  ;;  %v237_v21 = vld [vmem:[#allocation7 + $0x10] sm:$0xff] }
  0xa5   :  { %v245_v22 = vld [vmem:[#allocation7 + $0x50] sm:$0xff] }
  0xa6   :  { %2648 = vmatpush1.bf16.msra.mxu0 %v5502_v33  ;;  %2754 = vmatpush1.bf16.msra.mxu1 %v5504_v35  ;;  %v539_v35 = vld [vmem:[#allocation7 + $0x980] sm:$0xff] }
  0xa7   :  { %2649 = vmatprep.subr.bf16.mxu0 %v5519_v45  ;;  %2755 = vmatprep.subr.bf16.mxu1 %v5521_v46  ;;  %v563_v45 = vld [vmem:[#allocation7 + $0xa40] sm:$0xff]  ;;  %v556_v46 = vld [vmem:[#allocation7 + $0xa08] sm:$0xff] }
  0xaa   :  { %2650 = vmatpush1.bf16.msra.mxu0 %v5518_v47  ;;  %2756 = vmatpush1.bf16.msra.mxu1 %v5520_v50 }
  0xab   :  { %2651 = vmatprep.subr.bf16.mxu0 %v5535_v59  ;;  %2757 = vmatprep.subr.bf16.mxu1 %v5537_v60  ;;  %v579_v59 = vld [vmem:[#allocation7 + $0xac0] sm:$0xff]  ;;  %v572_v60 = vld [vmem:[#allocation7 + $0xa88] sm:$0xff] }
  0xae   :  { %2652 = vmatpush1.bf16.msra.mxu0 %v5534_v61  ;;  %2758 = vmatpush1.bf16.msra.mxu1 %v5536_v62  ;;  %v5633_v62 = vcombine.high %v556_v46, %v564_v53 }
  0xaf   :  { %2653 = vmatprep.subr.bf16.mxu0 %v5551_v63  ;;  %2759 = vmatprep.subr.bf16.mxu1 %v5553_v1  ;;  %v580_v63 = vld [vmem:[#allocation7 + $0xac8] sm:$0xff] }
  0xb2   :  { %2654 = vmatpush1.bf16.msra.mxu0 %v5550_v2  ;;  %2760 = vmatpush1.bf16.msra.mxu1 %v5552_v3  ;;  %v5632_v2 = vcombine.low %v556_v46, %v564_v53  ;;  %v587_v3 = vld [vmem:[#allocation7 + $0xb00] sm:$0xff]  ;;  %v293_v46 = vld [vmem:[#allocation7 + $0x1d0] sm:$0xff] }
  0xb3   :  { %2676 = vmatprep.subr.bf16.mxu0 %v5567_v4  ;;  %2782 = vmatprep.subr.bf16.mxu1 %v5569_v5  ;;  %v595_v4 = vld [vmem:[#allocation7 + $0xb40] sm:$0xff]  ;;  %v588_v5 = vld [vmem:[#allocation7 + $0xb08] sm:$0xff] }
  0xef   :  { %v177_v6 = vpop.permute.xlu1 %176  ;;  %v167_v7 = vpop.permute.xlu0 %166 }
  0xf0   :  { %v186_v12 = vmul.f32 %v177_v6, %v6674_v48  ;;  %v184_v16 = vmul.f32 %v167_v7, %v159_v8  ;;  %v5647_v6 = vcombine.high %v571_v58, %v579_v59  ;;  %v5649_v7 = vcombine.high %v572_v60, %v580_v63  ;;  %v596_v8 = vld [vmem:[#allocation7 + $0xb48] sm:$0xff] }
  0xf3   :  { %v182_v14 = vpop.permute.xlu1 %181  ;;  %v172_v15 = vpop.permute.xlu0 %171 }
  0xf4   :  { %v187_v19 = vmul.f32 %v182_v14, %v6677_v49  ;;  %v185_v20 = vmul.f32 %v172_v15, %v6671_v44  ;;  %v200_v44 = vsel %vm188_vm1, %v194_v51, 0.0  ;;  %v5582_v49 = vcombine.low %v507_v9, %v515_v10  ;;  %v555_v51 = vld [vmem:[#allocation7 + $0xa00] sm:$0xff] }
  0xf5   :  { %v5631_v61 = vcombine.high %v555_v51, %v563_v45  ;;  %v5630_v1 = vcombine.low %v555_v51, %v563_v45  ;;  %v5646_v9 = vcombine.low %v571_v58, %v579_v59  ;;  %v5648_v10 = vcombine.low %v572_v60, %v580_v63  ;;  %v285_v45 = vld [vmem:[#allocation7 + $0x190] sm:$0xff] }
  0xf6   :  { %v6704_v26 = vpack.c.bf16 %v187_v19, %v186_v12  ;;  %v6706_v28 = vpack.c.bf16 %v185_v20, %v184_v16  ;;  %v611_v12 = vld [vmem:[#allocation7 + $0xbc0] sm:$0xff]  ;;  %v5663_v14 = vcombine.high %v587_v3, %v595_v4  ;;  %v5665_v15 = vcombine.high %v588_v5, %v596_v8  ;;  %v612_v16 = vld [vmem:[#allocation7 + $0xbc8] sm:$0xff]  ;;  %v301_v59 = vld [vmem:[#allocation7 + $0x210] sm:$0xff] }
  0xf7   :  { %v213_v31 = vpop.permute.xlu1 %212  ;;  %v208_v48 = vpop.permute.xlu0 %207  ;;  %v5662_v19 = vcombine.low %v587_v3, %v595_v4  ;;  %v5664_v20 = vcombine.low %v588_v5, %v596_v8  ;;  %v309_v60 = vld [vmem:[#allocation7 + $0x250] sm:$0xff]  ;;  %v5362_v63 = vcombine.low %v285_v45, %v293_v46 }
  0xf8   :  { %v226_v32 = vmul.f32 %v213_v31, %v6682_v55  ;;  %v225_v33 = vmul.f32 %v208_v48, %v6687_v56  ;;  %2656 = vmatmul.mubr.bf16.vlgmr.msra.gmra.mrb[0].mxu0 %v6706_v28  ;;  %2762 = vmatmul.mubr.bf16.vlgmr.msra.gmra.mrb[0].mxu1 %v6706_v28  ;;  %v5584_v55 = vcombine.low %v508_v11, %v516_v13  ;;  %v547_v56 = vld [vmem:[#allocation7 + $0x9c0] sm:$0xff]  ;;  %v604_v13 = vld [vmem:[#allocation7 + $0xb88] sm:$0xff]  ;;  %v317_v4 = vld [vmem:[#allocation7 + $0x290] sm:$0xff] }
  0xf9   :  { %2677 = vmatpush1.bf16.msra.mxu0 %v5566_v29  ;;  %2783 = vmatpush1.bf16.msra.mxu1 %v5568_v38  ;;  %v5600_v38 = vcombine.low %v524_v25, %v532_v30  ;;  %v5615_v50 = vcombine.high %v539_v35, %v547_v56  ;;  %v603_v11 = vld [vmem:[#allocation7 + $0xb80] sm:$0xff]  ;;  %v238_v25 = vld [vmem:[#allocation7 + $0x18] sm:$0xff]  ;;  %v5680_v48 = vcombine.low %v604_v13, %v612_v16  ;;  %v325_v5 = vld [vmem:[#allocation7 + $0x2d0] sm:$0xff] }
  0xfa   :  { %v6721_v40 = vpack.c.bf16 %v226_v32, %v225_v33  ;;  %2678 = vmatprep.subr.bf16.mxu0 %v5583_v36  ;;  %2784 = vmatprep.subr.bf16.mxu1 %v5585_v27  ;;  %v5679_v36 = vcombine.high %v603_v11, %v611_v12  ;;  %v5681_v27 = vcombine.high %v604_v13, %v612_v16  ;;  %v246_v30 = vld [vmem:[#allocation7 + $0x58] sm:$0xff]  ;;  %v341_v13 = vld [vmem:[#allocation7 + $0x350] sm:$0xff] }
  0xfb   :  { %v223_v29 = vpop.permute.xlu1 %222  ;;  %v218_v43 = vpop.permute.xlu0 %217  ;;  %2665 = vmatprep.mubr.bf16.mxu0 %v6666_v42  ;;  %2771 = vmatprep.mubr.bf16.mxu1 %v6666_v42  ;;  %v5678_v31 = vcombine.low %v603_v11, %v611_v12  ;;  %v5315_v32 = vcombine.high %v237_v21, %v245_v22  ;;  %v5317_v33 = vcombine.high %v238_v25, %v246_v30  ;;  %v333_v12 = vld [vmem:[#allocation7 + $0x310] sm:$0xff] }
  0xfc   :  { %v228_v23 = vmul.f32 %v223_v29, %v200_v44  ;;  %v227_v24 = vmul.f32 %v218_v43, %v6692_v57  ;;  %v5614_v57 = vcombine.low %v539_v35, %v547_v56  ;;  %v253_v44 = vld [vmem:[#allocation7 + $0x90] sm:$0xff]  ;;  %v262_v35 = vld [vmem:[#allocation7 + $0xd8] sm:$0xff]  ;;  %v5314_v56 = vcombine.low %v237_v21, %v245_v22 }
  0xfd   :  { %2679 = vmatpush1.bf16.msra.mxu0 %v5582_v49  ;;  %2785 = vmatpush1.bf16.msra.mxu1 %v5584_v55  ;;  %v261_v49 = vld [vmem:[#allocation7 + $0xd0] sm:$0xff]  ;;  %v254_v55 = vld [vmem:[#allocation7 + $0x98] sm:$0xff]  ;;  %v5316_v39 = vcombine.low %v238_v25, %v246_v30  ;;  %v5378_v8 = vcombine.low %v301_v59, %v309_v60  ;;  %v5394_v16 = vcombine.low %v317_v4, %v325_v5 }
  0xfe   :  { %v6726_v47 = vpack.c.bf16 %v228_v23, %v227_v24  ;;  %2680 = vmatprep.subr.bf16.mxu0 %v5599_v41  ;;  %2786 = vmatprep.subr.bf16.mxu1 %v5601_v17  ;;  %v5331_v41 = vcombine.high %v253_v44, %v261_v49  ;;  %v5333_v17 = vcombine.high %v254_v55, %v262_v35  ;;  %v277_v29 = vld [vmem:[#allocation7 + $0x150] sm:$0xff]  ;;  %v270_v43 = vld [vmem:[#allocation7 + $0x118] sm:$0xff] }
  0xff   :  { %v278_v23 = vld [vmem:[#allocation7 + $0x158] sm:$0xff]  ;;  %v5330_v24 = vcombine.low %v253_v44, %v261_v49  ;;  %v5346_v53 = vcombine.low %v269_v18, %v277_v29  ;;  %v349_v22 = vld [vmem:[#allocation7 + $0x390] sm:$0xff]  ;;  %v5410_v30 = vcombine.low %v333_v12, %v341_v13 }
 0x100   :  { %2666 = vmatmul.mubr.bf16.gmra.mrb[4].mxu0 %v6704_v26  ;;  %2772 = vmatmul.mubr.bf16.gmra.mrb[4].mxu1 %v6704_v26  ;;  %v5349_v51 = vcombine.high %v270_v43, %v278_v23  ;;  %v357_v25 = vld [vmem:[#allocation7 + $0x3d0] sm:$0xff]  ;;  %v366_v49 = vld [vmem:[#allocation7 + $0x418] sm:$0xff] }
 0x101   :  { %2681 = vmatpush1.bf16.msra.mxu0 %v5598_v34  ;;  %2787 = vmatpush1.bf16.msra.mxu1 %v5600_v38  ;;  %v5332_v34 = vcombine.low %v254_v55, %v262_v35  ;;  %v5347_v38 = vcombine.high %v269_v18, %v277_v29  ;;  %v373_v44 = vld [vmem:[#allocation7 + $0x450] sm:$0xff]  ;;  %v374_v55 = vld [vmem:[#allocation7 + $0x458] sm:$0xff]  ;;  %v5426_v35 = vcombine.low %v349_v22, %v357_v25 }
 0x102   :  { %2682 = vmatprep.subr.bf16.mxu0 %v5615_v50  ;;  %2788 = vmatprep.subr.bf16.mxu1 %v5617_v52  ;;  %v286_v50 = vld [vmem:[#allocation7 + $0x198] sm:$0xff]  ;;  %v389_v18 = vld [vmem:[#allocation7 + $0x4d0] sm:$0xff] }
 0x103   :  { %2708 = vmatprep.mubr.bf16.mxu0 %v6463_v0  ;;  %2814 = vmatprep.mubr.bf16.mxu1 %v6463_v0  ;;  %v294_v52 = vld [vmem:[#allocation7 + $0x1d8] sm:$0xff] }
 0x104   :  { %v5365_v58 = vcombine.high %v286_v50, %v294_v52  ;;  %v382_v29 = vld [vmem:[#allocation7 + $0x498] sm:$0xff] }
 0x105   :  { %2683 = vmatpush1.bf16.msra.mxu0 %v5614_v57  ;;  %2789 = vmatpush1.bf16.msra.mxu1 %v5616_v54  ;;  %v5348_v57 = vcombine.low %v270_v43, %v278_v23  ;;  %v5363_v54 = vcombine.high %v285_v45, %v293_v46  ;;  %v390_v43 = vld [vmem:[#allocation7 + $0x4d8] sm:$0xff]  ;;  %v405_v45 = vld [vmem:[#allocation7 + $0x550] sm:$0xff] }
 0x106   :  { %2684 = vmatprep.subr.bf16.mxu0 %v5631_v61  ;;  %2790 = vmatprep.subr.bf16.mxu1 %v5633_v62  ;;  %v302_v61 = vld [vmem:[#allocation7 + $0x218] sm:$0xff] }
 0x107   :  { %v310_v62 = vld [vmem:[#allocation7 + $0x258] sm:$0xff] }
 0x108   :  { %v5381_v3 = vcombine.high %v302_v61, %v310_v62  ;;  %v398_v46 = vld [vmem:[#allocation7 + $0x518] sm:$0xff] }
 0x109   :  { %2685 = vmatpush1.bf16.msra.mxu0 %v5630_v1  ;;  %2791 = vmatpush1.bf16.msra.mxu1 %v5632_v2  ;;  %v5364_v1 = vcombine.low %v286_v50, %v294_v52  ;;  %v5379_v2 = vcombine.high %v301_v59, %v309_v60  ;;  %v406_v50 = vld [vmem:[#allocation7 + $0x558] sm:$0xff]  ;;  %v421_v59 = vld [vmem:[#allocation7 + $0x5d0] sm:$0xff] }
 0x10a   :  { %2686 = vmatprep.subr.bf16.mxu0 %v5647_v6  ;;  %2792 = vmatprep.subr.bf16.mxu1 %v5649_v7  ;;  %v318_v6 = vld [vmem:[#allocation7 + $0x298] sm:$0xff] }
 0x10b   :  { %v326_v7 = vld [vmem:[#allocation7 + $0x2d8] sm:$0xff] }
 0x10c   :  { %v5397_v11 = vcombine.high %v318_v6, %v326_v7  ;;  %v414_v60 = vld [vmem:[#allocation7 + $0x598] sm:$0xff] }
 0x10d   :  { %2687 = vmatpush1.bf16.msra.mxu0 %v5646_v9  ;;  %2793 = vmatpush1.bf16.msra.mxu1 %v5648_v10  ;;  %v5380_v9 = vcombine.low %v302_v61, %v310_v62  ;;  %v5395_v10 = vcombine.high %v317_v4, %v325_v5  ;;  %v422_v61 = vld [vmem:[#allocation7 + $0x5d8] sm:$0xff]  ;;  %v437_v4 = vld [vmem:[#allocation7 + $0x650] sm:$0xff] }
 0x10e   :  { %2688 = vmatprep.subr.bf16.mxu0 %v5663_v14  ;;  %2794 = vmatprep.subr.bf16.mxu1 %v5665_v15  ;;  %v334_v14 = vld [vmem:[#allocation7 + $0x318] sm:$0xff] }
 0x10f   :  { %v342_v15 = vld [vmem:[#allocation7 + $0x358] sm:$0xff] }
 0x110   :  { %v5413_v21 = vcombine.high %v334_v14, %v342_v15  ;;  %v430_v5 = vld [vmem:[#allocation7 + $0x618] sm:$0xff] }
 0x111   :  { %2689 = vmatpush1.bf16.msra.mxu0 %v5662_v19  ;;  %2795 = vmatpush1.bf16.msra.mxu1 %v5664_v20  ;;  %v5396_v19 = vcombine.low %v318_v6, %v326_v7  ;;  %v5411_v20 = vcombine.high %v333_v12, %v341_v13  ;;  %v438_v6 = vld [vmem:[#allocation7 + $0x658] sm:$0xff]  ;;  %v453_v12 = vld [vmem:[#allocation7 + $0x6d0] sm:$0xff] }
 0x112   :  { %2690 = vmatprep.subr.bf16.mxu0 %v5679_v36  ;;  %2796 = vmatprep.subr.bf16.mxu1 %v5681_v27  ;;  %v350_v36 = vld [vmem:[#allocation7 + $0x398] sm:$0xff] }
 0x113   :  { %v358_v27 = vld [vmem:[#allocation7 + $0x3d8] sm:$0xff] }
 0x114   :  { %v446_v13 = vld [vmem:[#allocation7 + $0x698] sm:$0xff] }
 0x115   :  { %2691 = vmatpush1.bf16.msra.mxu0 %v5678_v31  ;;  %2797 = vmatpush1.bf16.msra.mxu1 %v5680_v48  ;;  %v5412_v31 = vcombine.low %v334_v14, %v342_v15  ;;  %v5427_v48 = vcombine.high %v349_v22, %v357_v25  ;;  %v454_v14 = vld [vmem:[#allocation7 + $0x6d8] sm:$0xff]  ;;  %v469_v22 = vld [vmem:[#allocation7 + $0x750] sm:$0xff] }
 0x116   :  { %2835 = vmatprep.subr.bf16.mxu0 %v5315_v32  ;;  %2941 = vmatprep.subr.bf16.mxu1 %v5317_v33  ;;  %v5429_v32 = vcombine.high %v350_v36, %v358_v27  ;;  %v365_v33 = vld [vmem:[#allocation7 + $0x410] sm:$0xff]  ;;  %v462_v25 = vld [vmem:[#allocation7 + $0x718] sm:$0xff] }
 0x117   :  { %v5442_v23 = vcombine.low %v365_v33, %v373_v44 }
 0x118   :  { %2709 = vmatmul.mubr.bf16.vlgmr.msra.gmra.mrb[0].mxu0 %v6721_v40  ;;  %2815 = vmatmul.mubr.bf16.vlgmr.msra.gmra.mrb[0].mxu1 %v6721_v40 }
 0x119   :  { %2836 = vmatpush1.bf16.msra.mxu0 %v5314_v56  ;;  %2942 = vmatpush1.bf16.msra.mxu1 %v5316_v39  ;;  %v5428_v56 = vcombine.low %v350_v36, %v358_v27  ;;  %v5443_v39 = vcombine.high %v365_v33, %v373_v44  ;;  %v470_v36 = vld [vmem:[#allocation7 + $0x758] sm:$0xff]  ;;  %v485_v33 = vld [vmem:[#allocation7 + $0x7d0] sm:$0xff] }
 0x11a   :  { %2837 = vmatprep.subr.bf16.mxu0 %v5331_v41  ;;  %2943 = vmatprep.subr.bf16.mxu1 %v5333_v17  ;;  %v5445_v41 = vcombine.high %v366_v49, %v374_v55  ;;  %v381_v17 = vld [vmem:[#allocation7 + $0x490] sm:$0xff]  ;;  %v478_v44 = vld [vmem:[#allocation7 + $0x798] sm:$0xff] }
 0x11b   :  { %2718 = vmatprep.mubr.bf16.mxu0 %v6463_v0  ;;  %2824 = vmatprep.mubr.bf16.mxu1 %v6463_v0  ;;  %v5458_v52 = vcombine.low %v381_v17, %v389_v18 }
 0x11d   :  { %2838 = vmatpush1.bf16.msra.mxu0 %v5330_v24  ;;  %2944 = vmatpush1.bf16.msra.mxu1 %v5332_v34  ;;  %v5444_v24 = vcombine.low %v366_v49, %v374_v55  ;;  %v5459_v34 = vcombine.high %v381_v17, %v389_v18  ;;  %v486_v49 = vld [vmem:[#allocation7 + $0x7d8] sm:$0xff]  ;;  %v501_v17 = vld [vmem:[#allocation7 + $0x850] sm:$0xff] }
 0x11e   :  { %2839 = vmatprep.subr.bf16.mxu0 %v5347_v38  ;;  %2945 = vmatprep.subr.bf16.mxu1 %v5349_v51  ;;  %v5461_v38 = vcombine.high %v382_v29, %v390_v43  ;;  %v397_v51 = vld [vmem:[#allocation7 + $0x510] sm:$0xff]  ;;  %v494_v18 = vld [vmem:[#allocation7 + $0x818] sm:$0xff] }
 0x11f   :  { %v5474_v62 = vcombine.low %v397_v51, %v405_v45 }
 0x120   :  { %2719 = vmatmul.mubr.bf16.gmra.mrb[4].mxu0 %v6726_v47  ;;  %2825 = vmatmul.mubr.bf16.gmra.mrb[4].mxu1 %v6726_v47 }
 0x121   :  { %2840 = vmatpush1.bf16.msra.mxu0 %v5346_v53  ;;  %2946 = vmatpush1.bf16.msra.mxu1 %v5348_v57  ;;  %v5460_v53 = vcombine.low %v382_v29, %v390_v43  ;;  %v5475_v57 = vcombine.high %v397_v51, %v405_v45  ;;  %v502_v29 = vld [vmem:[#allocation7 + $0x858] sm:$0xff]  ;;  %v517_v51 = vld [vmem:[#allocation7 + $0x8d0] sm:$0xff] }
 0x122   :  { %2841 = vmatprep.subr.bf16.mxu0 %v5363_v54  ;;  %2947 = vmatprep.subr.bf16.mxu1 %v5365_v58  ;;  %v5477_v54 = vcombine.high %v398_v46, %v406_v50  ;;  %v413_v58 = vld [vmem:[#allocation7 + $0x590] sm:$0xff]  ;;  %v510_v45 = vld [vmem:[#allocation7 + $0x898] sm:$0xff] }
 0x123   :  { %2867 = vmatprep.mubr.bf16.mxu0 %v6660_v37  ;;  %2973 = vmatprep.mubr.bf16.mxu1 %v6660_v37  ;;  %v5490_v7 = vcombine.low %v413_v58, %v421_v59 }
 0x125   :  { %2842 = vmatpush1.bf16.msra.mxu0 %v5362_v63  ;;  %2948 = vmatpush1.bf16.msra.mxu1 %v5364_v1  ;;  %v5476_v63 = vcombine.low %v398_v46, %v406_v50  ;;  %v5491_v1 = vcombine.high %v413_v58, %v421_v59  ;;  %v518_v46 = vld [vmem:[#allocation7 + $0x8d8] sm:$0xff]  ;;  %v533_v58 = vld [vmem:[#allocation7 + $0x950] sm:$0xff] }
 0x126   :  { %2843 = vmatprep.subr.bf16.mxu0 %v5379_v2  ;;  %2949 = vmatprep.subr.bf16.mxu1 %v5381_v3  ;;  %v5493_v2 = vcombine.high %v414_v60, %v422_v61  ;;  %v429_v3 = vld [vmem:[#allocation7 + $0x610] sm:$0xff]  ;;  %v526_v59 = vld [vmem:[#allocation7 + $0x918] sm:$0xff] }
 0x127   :  { %v5506_v15 = vcombine.low %v429_v3, %v437_v4 }
 0x129   :  { %2844 = vmatpush1.bf16.msra.mxu0 %v5378_v8  ;;  %2950 = vmatpush1.bf16.msra.mxu1 %v5380_v9  ;;  %v5492_v8 = vcombine.low %v414_v60, %v422_v61  ;;  %v5507_v9 = vcombine.high %v429_v3, %v437_v4  ;;  %v534_v60 = vld [vmem:[#allocation7 + $0x958] sm:$0xff]  ;;  %v549_v3 = vld [vmem:[#allocation7 + $0x9d0] sm:$0xff] }
 0x12a   :  { %2845 = vmatprep.subr.bf16.mxu0 %v5395_v10  ;;  %2951 = vmatprep.subr.bf16.mxu1 %v5397_v11  ;;  %v5509_v10 = vcombine.high %v430_v5, %v438_v6  ;;  %v445_v11 = vld [vmem:[#allocation7 + $0x690] sm:$0xff]  ;;  %v542_v4 = vld [vmem:[#allocation7 + $0x998] sm:$0xff] }
 0x12b   :  { %v5522_v27 = vcombine.low %v445_v11, %v453_v12 }
 0x12d   :  { %2846 = vmatpush1.bf16.msra.mxu0 %v5394_v16  ;;  %2952 = vmatpush1.bf16.msra.mxu1 %v5396_v19  ;;  %v5508_v16 = vcombine.low %v430_v5, %v438_v6  ;;  %v5523_v19 = vcombine.high %v445_v11, %v453_v12  ;;  %v550_v5 = vld [vmem:[#allocation7 + $0x9d8] sm:$0xff]  ;;  %v565_v11 = vld [vmem:[#allocation7 + $0xa50] sm:$0xff] }
 0x12e   :  { %2847 = vmatprep.subr.bf16.mxu0 %v5411_v20  ;;  %2953 = vmatprep.subr.bf16.mxu1 %v5413_v21  ;;  %v5525_v20 = vcombine.high %v446_v13, %v454_v14  ;;  %v461_v21 = vld [vmem:[#allocation7 + $0x710] sm:$0xff]  ;;  %v558_v12 = vld [vmem:[#allocation7 + $0xa18] sm:$0xff] }
 0x12f   :  { %v5538_v55 = vcombine.low %v461_v21, %v469_v22 }
 0x131   :  { %2848 = vmatpush1.bf16.msra.mxu0 %v5410_v30  ;;  %2954 = vmatpush1.bf16.msra.mxu1 %v5412_v31  ;;  %v5524_v30 = vcombine.low %v446_v13, %v454_v14  ;;  %v5539_v31 = vcombine.high %v461_v21, %v469_v22  ;;  %v566_v13 = vld [vmem:[#allocation7 + $0xa58] sm:$0xff]  ;;  %v581_v21 = vld [vmem:[#allocation7 + $0xad0] sm:$0xff] }
 0x132   :  { %2849 = vmatprep.subr.bf16.mxu0 %v5427_v48  ;;  %2955 = vmatprep.subr.bf16.mxu1 %v5429_v32  ;;  %v5541_v48 = vcombine.high %v462_v25, %v470_v36  ;;  %v477_v32 = vld [vmem:[#allocation7 + $0x790] sm:$0xff]  ;;  %v574_v22 = vld [vmem:[#allocation7 + $0xa98] sm:$0xff] }
 0x133   :  { %v5554_v43 = vcombine.low %v477_v32, %v485_v33 }
 0x135   :  { %2850 = vmatpush1.bf16.msra.mxu0 %v5426_v35  ;;  %2956 = vmatpush1.bf16.msra.mxu1 %v5428_v56  ;;  %v5540_v35 = vcombine.low %v462_v25, %v470_v36  ;;  %v5555_v56 = vcombine.high %v477_v32, %v485_v33  ;;  %v582_v25 = vld [vmem:[#allocation7 + $0xad8] sm:$0xff]  ;;  %v597_v32 = vld [vmem:[#allocation7 + $0xb50] sm:$0xff] }
 0x136   :  { %2851 = vmatprep.subr.bf16.mxu0 %v5443_v39  ;;  %2957 = vmatprep.subr.bf16.mxu1 %v5445_v41  ;;  %v5557_v39 = vcombine.high %v478_v44, %v486_v49  ;;  %v493_v41 = vld [vmem:[#allocation7 + $0x810] sm:$0xff]  ;;  %v590_v33 = vld [vmem:[#allocation7 + $0xb18] sm:$0xff] }
 0x137   :  { %v5570_v50 = vcombine.low %v493_v41, %v501_v17 }
 0x139   :  { %2852 = vmatpush1.bf16.msra.mxu0 %v5442_v23  ;;  %2958 = vmatpush1.bf16.msra.mxu1 %v5444_v24  ;;  %v5556_v23 = vcombine.low %v478_v44, %v486_v49  ;;  %v5571_v24 = vcombine.high %v493_v41, %v501_v17  ;;  %v598_v44 = vld [vmem:[#allocation7 + $0xb58] sm:$0xff]  ;;  %v613_v41 = vld [vmem:[#allocation7 + $0xbd0] sm:$0xff] }
 0x13a   :  { %2853 = vmatprep.subr.bf16.mxu0 %v5459_v34  ;;  %2959 = vmatprep.subr.bf16.mxu1 %v5461_v38  ;;  %v5573_v34 = vcombine.high %v494_v18, %v502_v29  ;;  %v509_v38 = vld [vmem:[#allocation7 + $0x890] sm:$0xff]  ;;  %v606_v17 = vld [vmem:[#allocation7 + $0xb98] sm:$0xff] }
 0x13b   :  { %v5586_v61 = vcombine.low %v509_v38, %v517_v51 }
 0x13d   :  { %2854 = vmatpush1.bf16.msra.mxu0 %v5458_v52  ;;  %2960 = vmatpush1.bf16.msra.mxu1 %v5460_v53  ;;  %v5572_v52 = vcombine.low %v494_v18, %v502_v29  ;;  %v5587_v53 = vcombine.high %v509_v38, %v517_v51  ;;  %v614_v18 = vld [vmem:[#allocation7 + $0xbd8] sm:$0xff]  ;;  %v247_v38 = vld [vmem:[#allocation7 + $0x60] sm:$0xff]  ;;  %v240_v51 = vld [vmem:[#allocation7 + $0x28] sm:$0xff] }
 0x13e   :  { %2855 = vmatprep.subr.bf16.mxu0 %v5475_v57  ;;  %2961 = vmatprep.subr.bf16.mxu1 %v5477_v54  ;;  %v5589_v57 = vcombine.high %v510_v45, %v518_v46  ;;  %v525_v54 = vld [vmem:[#allocation7 + $0x910] sm:$0xff] }
 0x13f   :  { %v5602_v6 = vcombine.low %v525_v54, %v533_v58 }
 0x141   :  { %2856 = vmatpush1.bf16.msra.mxu0 %v5474_v62  ;;  %2962 = vmatpush1.bf16.msra.mxu1 %v5476_v63  ;;  %v5588_v62 = vcombine.low %v510_v45, %v518_v46  ;;  %v5603_v63 = vcombine.high %v525_v54, %v533_v58  ;;  %v248_v45 = vld [vmem:[#allocation7 + $0x68] sm:$0xff]  ;;  %v263_v54 = vld [vmem:[#allocation7 + $0xe0] sm:$0xff] }
 0x142   :  { %2857 = vmatprep.subr.bf16.mxu0 %v5491_v1  ;;  %2963 = vmatprep.subr.bf16.mxu1 %v5493_v2  ;;  %v5605_v1 = vcombine.high %v526_v59, %v534_v60  ;;  %v541_v2 = vld [vmem:[#allocation7 + $0x990] sm:$0xff]  ;;  %v256_v58 = vld [vmem:[#allocation7 + $0xa8] sm:$0xff] }
 0x143   :  { %v5618_v14 = vcombine.low %v541_v2, %v549_v3 }
 0x145   :  { %2858 = vmatpush1.bf16.msra.mxu0 %v5490_v7  ;;  %2964 = vmatpush1.bf16.msra.mxu1 %v5492_v8  ;;  %v5604_v7 = vcombine.low %v526_v59, %v534_v60  ;;  %v5619_v8 = vcombine.high %v541_v2, %v549_v3  ;;  %v264_v59 = vld [vmem:[#allocation7 + $0xe8] sm:$0xff]  ;;  %v279_v2 = vld [vmem:[#allocation7 + $0x160] sm:$0xff] }
 0x146   :  { %2859 = vmatprep.subr.bf16.mxu0 %v5507_v9  ;;  %2965 = vmatprep.subr.bf16.mxu1 %v5509_v10  ;;  %v5621_v9 = vcombine.high %v542_v4, %v550_v5  ;;  %v557_v10 = vld [vmem:[#allocation7 + $0xa10] sm:$0xff]  ;;  %v272_v3 = vld [vmem:[#allocation7 + $0x128] sm:$0xff] }
 0x147   :  { %v5634_v36 = vcombine.low %v557_v10, %v565_v11 }
 0x149   :  { %2860 = vmatpush1.bf16.msra.mxu0 %v5506_v15  ;;  %2966 = vmatpush1.bf16.msra.mxu1 %v5508_v16  ;;  %v5620_v15 = vcombine.low %v542_v4, %v550_v5  ;;  %v5635_v16 = vcombine.high %v557_v10, %v565_v11  ;;  %v280_v4 = vld [vmem:[#allocation7 + $0x168] sm:$0xff]  ;;  %v295_v10 = vld [vmem:[#allocation7 + $0x1e0] sm:$0xff] }
 0x14a   :  { %2861 = vmatprep.subr.bf16.mxu0 %v5523_v19  ;;  %2967 = vmatprep.subr.bf16.mxu1 %v5525_v20  ;;  %v5637_v19 = vcombine.high %v558_v12, %v566_v13  ;;  %v573_v20 = vld [vmem:[#allocation7 + $0xa90] sm:$0xff]  ;;  %v288_v11 = vld [vmem:[#allocation7 + $0x1a8] sm:$0xff] }
 0x14b   :  { %v5650_v49 = vcombine.low %v573_v20, %v581_v21 }
 0x14d   :  { %2862 = vmatpush1.bf16.msra.mxu0 %v5522_v27  ;;  %2968 = vmatpush1.bf16.msra.mxu1 %v5524_v30  ;;  %v5636_v27 = vcombine.low %v558_v12, %v566_v13  ;;  %v5651_v30 = vcombine.high %v573_v20, %v581_v21  ;;  %v296_v12 = vld [vmem:[#allocation7 + $0x1e8] sm:$0xff]  ;;  %v311_v20 = vld [vmem:[#allocation7 + $0x260] sm:$0xff] }
 0x14e   :  { %2863 = vmatprep.subr.bf16.mxu0 %v5539_v31  ;;  %2969 = vmatprep.subr.bf16.mxu1 %v5541_v48  ;;  %v5653_v31 = vcombine.high %v574_v22, %v582_v25  ;;  %v589_v48 = vld [vmem:[#allocation7 + $0xb10] sm:$0xff]  ;;  %v304_v21 = vld [vmem:[#allocation7 + $0x228] sm:$0xff] }
 0x14f   :  { %v5666_v29 = vcombine.low %v589_v48, %v597_v32 }
 0x151   :  { %2864 = vmatpush1.bf16.msra.mxu0 %v5538_v55  ;;  %2970 = vmatpush1.bf16.msra.mxu1 %v5540_v35  ;;  %v5652_v55 = vcombine.low %v574_v22, %v582_v25  ;;  %v5667_v35 = vcombine.high %v589_v48, %v597_v32  ;;  %v312_v22 = vld [vmem:[#allocation7 + $0x268] sm:$0xff]  ;;  %v327_v48 = vld [vmem:[#allocation7 + $0x2e0] sm:$0xff] }
 0x152   :  { %2865 = vmatprep.subr.bf16.mxu0 %v5555_v56  ;;  %2971 = vmatprep.subr.bf16.mxu1 %v5557_v39  ;;  %v5669_v56 = vcombine.high %v590_v33, %v598_v44  ;;  %v605_v39 = vld [vmem:[#allocation7 + $0xb90] sm:$0xff]  ;;  %v320_v32 = vld [vmem:[#allocation7 + $0x2a8] sm:$0xff] }
 0x153   :  { %v5682_v46 = vcombine.low %v605_v39, %v613_v41 }
 0x155   :  { %2866 = vmatpush1.bf16.msra.mxu0 %v5554_v43  ;;  %2972 = vmatpush1.bf16.msra.mxu1 %v5556_v23  ;;  %v5668_v43 = vcombine.low %v590_v33, %v598_v44  ;;  %v5683_v23 = vcombine.high %v605_v39, %v613_v41  ;;  %v328_v33 = vld [vmem:[#allocation7 + $0x2e8] sm:$0xff]  ;;  %v343_v39 = vld [vmem:[#allocation7 + $0x360] sm:$0xff] }
 0x156   :  { %2888 = vmatprep.subr.bf16.mxu0 %v5571_v24  ;;  %2994 = vmatprep.subr.bf16.mxu1 %v5573_v34  ;;  %v5685_v24 = vcombine.high %v606_v17, %v614_v18  ;;  %v239_v34 = vld [vmem:[#allocation7 + $0x20] sm:$0xff]  ;;  %v336_v41 = vld [vmem:[#allocation7 + $0x328] sm:$0xff] }
 0x157   :  { %v5318_v60 = vcombine.low %v239_v34, %v247_v38 }
 0x158   :  { %2868 = vmatmul.mubr.bf16.vlgmr.msra.gmra.mrb[8].mxu0 %v6706_v28  ;;  %2974 = vmatmul.mubr.bf16.vlgmr.msra.gmra.mrb[8].mxu1 %v6706_v28 }
 0x159   :  { %2889 = vmatpush1.bf16.msra.mxu0 %v5570_v50  ;;  %2995 = vmatpush1.bf16.msra.mxu1 %v5572_v52  ;;  %v5684_v50 = vcombine.low %v606_v17, %v614_v18  ;;  %v5319_v52 = vcombine.high %v239_v34, %v247_v38  ;;  %v344_v17 = vld [vmem:[#allocation7 + $0x368] sm:$0xff]  ;;  %v359_v34 = vld [vmem:[#allocation7 + $0x3e0] sm:$0xff] }
 0x15a   :  { %2890 = vmatprep.subr.bf16.mxu0 %v5587_v53  ;;  %2996 = vmatprep.subr.bf16.mxu1 %v5589_v57  ;;  %v5321_v53 = vcombine.high %v240_v51, %v248_v45  ;;  %v255_v57 = vld [vmem:[#allocation7 + $0xa0] sm:$0xff]  ;;  %v352_v38 = vld [vmem:[#allocation7 + $0x3a8] sm:$0xff] }
 0x15b   :  { %2877 = vmatprep.mubr.bf16.mxu0 %v6666_v42  ;;  %2983 = vmatprep.mubr.bf16.mxu1 %v6666_v42  ;;  %v5334_v5 = vcombine.low %v255_v57, %v263_v54 }
 0x15d   :  { %2891 = vmatpush1.bf16.msra.mxu0 %v5586_v61  ;;  %2997 = vmatpush1.bf16.msra.mxu1 %v5588_v62  ;;  %v5320_v61 = vcombine.low %v240_v51, %v248_v45  ;;  %v5335_v62 = vcombine.high %v255_v57, %v263_v54  ;;  %v360_v51 = vld [vmem:[#allocation7 + $0x3e8] sm:$0xff]  ;;  %v375_v57 = vld [vmem:[#allocation7 + $0x460] sm:$0xff] }
 0x15e   :  { %2892 = vmatprep.subr.bf16.mxu0 %v5603_v63  ;;  %2998 = vmatprep.subr.bf16.mxu1 %v5605_v1  ;;  %v5337_v63 = vcombine.high %v256_v58, %v264_v59  ;;  %v271_v1 = vld [vmem:[#allocation7 + $0x120] sm:$0xff]  ;;  %v368_v54 = vld [vmem:[#allocation7 + $0x428] sm:$0xff] }
 0x15f   :  { %v5350_v13 = vcombine.low %v271_v1, %v279_v2 }
 0x160   :  { %2878 = vmatmul.mubr.bf16.gmra.mrb[12].mxu0 %v6704_v26  ;;  %2984 = vmatmul.mubr.bf16.gmra.mrb[12].mxu1 %v6704_v26 }
 0x161   :  { %2893 = vmatpush1.bf16.msra.mxu0 %v5602_v6  ;;  %2999 = vmatpush1.bf16.msra.mxu1 %v5604_v7  ;;  %v5336_v6 = vcombine.low %v256_v58, %v264_v59  ;;  %v5351_v7 = vcombine.high %v271_v1, %v279_v2  ;;  %v376_v58 = vld [vmem:[#allocation7 + $0x468] sm:$0xff]  ;;  %v391_v1 = vld [vmem:[#allocation7 + $0x4e0] sm:$0xff] }
 0x162   :  { %2894 = vmatprep.subr.bf16.mxu0 %v5619_v8  ;;  %3000 = vmatprep.subr.bf16.mxu1 %v5621_v9  ;;  %v5353_v8 = vcombine.high %v272_v3, %v280_v4  ;;  %v287_v9 = vld [vmem:[#allocation7 + $0x1a0] sm:$0xff]  ;;  %v384_v2 = vld [vmem:[#allocation7 + $0x4a8] sm:$0xff] }
 0x163   :  { %2920 = vmatprep.mubr.bf16.mxu0 %v6463_v0  ;;  %3026 = vmatprep.mubr.bf16.mxu1 %v6463_v0  ;;  %v5366_v25 = vcombine.low %v287_v9, %v295_v10 }
 0x165   :  { %2895 = vmatpush1.bf16.msra.mxu0 %v5618_v14  ;;  %3001 = vmatpush1.bf16.msra.mxu1 %v5620_v15  ;;  %v5352_v14 = vcombine.low %v272_v3, %v280_v4  ;;  %v5367_v15 = vcombine.high %v287_v9, %v295_v10  ;;  %v392_v3 = vld [vmem:[#allocation7 + $0x4e8] sm:$0xff]  ;;  %v407_v9 = vld [vmem:[#allocation7 + $0x560] sm:$0xff] }
 0x166   :  { %2896 = vmatprep.subr.bf16.mxu0 %v5635_v16  ;;  %3002 = vmatprep.subr.bf16.mxu1 %v5637_v19  ;;  %v5369_v16 = vcombine.high %v288_v11, %v296_v12  ;;  %v303_v19 = vld [vmem:[#allocation7 + $0x220] sm:$0xff]  ;;  %v400_v10 = vld [vmem:[#allocation7 + $0x528] sm:$0xff] }
 0x167   :  { %v5382_v44 = vcombine.low %v303_v19, %v311_v20 }
 0x169   :  { %2897 = vmatpush1.bf16.msra.mxu0 %v5634_v36  ;;  %3003 = vmatpush1.bf16.msra.mxu1 %v5636_v27  ;;  %v5368_v36 = vcombine.low %v288_v11, %v296_v12  ;;  %v5383_v27 = vcombine.high %v303_v19, %v311_v20  ;;  %v408_v11 = vld [vmem:[#allocation7 + $0x568] sm:$0xff]  ;;  %v423_v19 = vld [vmem:[#allocation7 + $0x5e0] sm:$0xff] }
 0x16a   :  { %2898 = vmatprep.subr.bf16.mxu0 %v5651_v30  ;;  %3004 = vmatprep.subr.bf16.mxu1 %v5653_v31  ;;  %v5385_v30 = vcombine.high %v304_v21, %v312_v22  ;;  %v319_v31 = vld [vmem:[#allocation7 + $0x2a0] sm:$0xff]  ;;  %v416_v20 = vld [vmem:[#allocation7 + $0x5a8] sm:$0xff] }
 0x16b   :  { %v5398_v18 = vcombine.low %v319_v31, %v327_v48 }
 0x16d   :  { %2899 = vmatpush1.bf16.msra.mxu0 %v5650_v49  ;;  %3005 = vmatpush1.bf16.msra.mxu1 %v5652_v55  ;;  %v5384_v49 = vcombine.low %v304_v21, %v312_v22  ;;  %v5399_v55 = vcombine.high %v319_v31, %v327_v48  ;;  %v424_v21 = vld [vmem:[#allocation7 + $0x5e8] sm:$0xff]  ;;  %v439_v31 = vld [vmem:[#allocation7 + $0x660] sm:$0xff] }
 0x16e   :  { %2900 = vmatprep.subr.bf16.mxu0 %v5667_v35  ;;  %3006 = vmatprep.subr.bf16.mxu1 %v5669_v56  ;;  %v5401_v35 = vcombine.high %v320_v32, %v328_v33  ;;  %v335_v56 = vld [vmem:[#allocation7 + $0x320] sm:$0xff]  ;;  %v432_v48 = vld [vmem:[#allocation7 + $0x628] sm:$0xff] }
 0x16f   :  { %v5414_v45 = vcombine.low %v335_v56, %v343_v39 }
 0x171   :  { %2901 = vmatpush1.bf16.msra.mxu0 %v5666_v29  ;;  %3007 = vmatpush1.bf16.msra.mxu1 %v5668_v43  ;;  %v5400_v29 = vcombine.low %v320_v32, %v328_v33  ;;  %v5415_v43 = vcombine.high %v335_v56, %v343_v39  ;;  %v440_v32 = vld [vmem:[#allocation7 + $0x668] sm:$0xff]  ;;  %v455_v56 = vld [vmem:[#allocation7 + $0x6e0] sm:$0xff] }
 0x172   :  { %2902 = vmatprep.subr.bf16.mxu0 %v5683_v23  ;;  %3008 = vmatprep.subr.bf16.mxu1 %v5685_v24  ;;  %v5417_v23 = vcombine.high %v336_v41, %v344_v17  ;;  %v351_v24 = vld [vmem:[#allocation7 + $0x3a0] sm:$0xff]  ;;  %v448_v39 = vld [vmem:[#allocation7 + $0x6a8] sm:$0xff] }
 0x173   :  { %v5430_v59 = vcombine.low %v351_v24, %v359_v34 }
 0x175   :  { %2903 = vmatpush1.bf16.msra.mxu0 %v5682_v46  ;;  %3009 = vmatpush1.bf16.msra.mxu1 %v5684_v50  ;;  %v5416_v46 = vcombine.low %v336_v41, %v344_v17  ;;  %v5431_v50 = vcombine.high %v351_v24, %v359_v34  ;;  %v456_v41 = vld [vmem:[#allocation7 + $0x6e8] sm:$0xff]  ;;  %v471_v24 = vld [vmem:[#allocation7 + $0x760] sm:$0xff] }
 0x176   :  { %3047 = vmatprep.subr.bf16.mxu0 %v5319_v52  ;;  %3153 = vmatprep.subr.bf16.mxu1 %v5321_v53  ;;  %v5433_v52 = vcombine.high %v352_v38, %v360_v51  ;;  %v367_v53 = vld [vmem:[#allocation7 + $0x420] sm:$0xff]  ;;  %v464_v34 = vld [vmem:[#allocation7 + $0x728] sm:$0xff] }
 0x177   :  { %v5446_v4 = vcombine.low %v367_v53, %v375_v57 }
 0x178   :  { %2921 = vmatmul.mubr.bf16.vlgmr.msra.gmra.mrb[8].mxu0 %v6721_v40  ;;  %3027 = vmatmul.mubr.bf16.vlgmr.msra.gmra.mrb[8].mxu1 %v6721_v40 }
 0x179   :  { %3048 = vmatpush1.bf16.msra.mxu0 %v5318_v60  ;;  %3154 = vmatpush1.bf16.msra.mxu1 %v5320_v61  ;;  %v5432_v60 = vcombine.low %v352_v38, %v360_v51  ;;  %v5447_v61 = vcombine.high %v367_v53, %v375_v57  ;;  %v472_v38 = vld [vmem:[#allocation7 + $0x768] sm:$0xff]  ;;  %v487_v53 = vld [vmem:[#allocation7 + $0x7e0] sm:$0xff] }
 0x17a   :  { %3049 = vmatprep.subr.bf16.mxu0 %v5335_v62  ;;  %3155 = vmatprep.subr.bf16.mxu1 %v5337_v63  ;;  %v5449_v62 = vcombine.high %v368_v54, %v376_v58  ;;  %v383_v63 = vld [vmem:[#allocation7 + $0x4a0] sm:$0xff]  ;;  %v480_v57 = vld [vmem:[#allocation7 + $0x7a8] sm:$0xff] }
 0x17b   :  { %2930 = vmatprep.mubr.bf16.mxu0 %v6463_v0  ;;  %3036 = vmatprep.mubr.bf16.mxu1 %v6463_v0  ;;  %v5462_v12 = vcombine.low %v383_v63, %v391_v1 }
 0x17d   :  { %3050 = vmatpush1.bf16.msra.mxu0 %v5334_v5  ;;  %3156 = vmatpush1.bf16.msra.mxu1 %v5336_v6  ;;  %v5448_v5 = vcombine.low %v368_v54, %v376_v58  ;;  %v5463_v6 = vcombine.high %v383_v63, %v391_v1  ;;  %v488_v54 = vld [vmem:[#allocation7 + $0x7e8] sm:$0xff]  ;;  %v503_v63 = vld [vmem:[#allocation7 + $0x860] sm:$0xff] }
 0x17e   :  { %3051 = vmatprep.subr.bf16.mxu0 %v5351_v7  ;;  %3157 = vmatprep.subr.bf16.mxu1 %v5353_v8  ;;  %v5465_v7 = vcombine.high %v384_v2, %v392_v3  ;;  %v399_v8 = vld [vmem:[#allocation7 + $0x520] sm:$0xff]  ;;  %v496_v1 = vld [vmem:[#allocation7 + $0x828] sm:$0xff] }
 0x17f   :  { %v5478_v22 = vcombine.low %v399_v8, %v407_v9 }
 0x180   :  { %2931 = vmatmul.mubr.bf16.gmra.mrb[12].mxu0 %v6726_v47  ;;  %3037 = vmatmul.mubr.bf16.gmra.mrb[12].mxu1 %v6726_v47 }
 0x181   :  { %3052 = vmatpush1.bf16.msra.mxu0 %v5350_v13  ;;  %3158 = vmatpush1.bf16.msra.mxu1 %v5352_v14  ;;  %v5464_v13 = vcombine.low %v384_v2, %v392_v3  ;;  %v5479_v14 = vcombine.high %v399_v8, %v407_v9  ;;  %v504_v2 = vld [vmem:[#allocation7 + $0x868] sm:$0xff]  ;;  %v519_v8 = vld [vmem:[#allocation7 + $0x8e0] sm:$0xff] }
 0x182   :  { %3053 = vmatprep.subr.bf16.mxu0 %v5367_v15  ;;  %3159 = vmatprep.subr.bf16.mxu1 %v5369_v16  ;;  %v5481_v15 = vcombine.high %v400_v10, %v408_v11  ;;  %v415_v16 = vld [vmem:[#allocation7 + $0x5a0] sm:$0xff]  ;;  %v512_v9 = vld [vmem:[#allocation7 + $0x8a8] sm:$0xff] }
 0x183   :  { %3079 = vmatprep.mubr.bf16.mxu0 %v6660_v37  ;;  %3185 = vmatprep.mubr.bf16.mxu1 %v6660_v37  ;;  %v5494_v33 = vcombine.low %v415_v16, %v423_v19 }
 0x185   :  { %3054 = vmatpush1.bf16.msra.mxu0 %v5366_v25  ;;  %3160 = vmatpush1.bf16.msra.mxu1 %v5368_v36  ;;  %v5480_v25 = vcombine.low %v400_v10, %v408_v11  ;;  %v5495_v36 = vcombine.high %v415_v16, %v423_v19  ;;  %v520_v10 = vld [vmem:[#allocation7 + $0x8e8] sm:$0xff]  ;;  %v535_v16 = vld [vmem:[#allocation7 + $0x960] sm:$0xff] }
 0x186   :  { %3055 = vmatprep.subr.bf16.mxu0 %v5383_v27  ;;  %3161 = vmatprep.subr.bf16.mxu1 %v5385_v30  ;;  %v5497_v27 = vcombine.high %v416_v20, %v424_v21  ;;  %v431_v30 = vld [vmem:[#allocation7 + $0x620] sm:$0xff]  ;;  %v528_v19 = vld [vmem:[#allocation7 + $0x928] sm:$0xff] }
 0x187   :  { %v5510_v17 = vcombine.low %v431_v30, %v439_v31 }
 0x189   :  { %3056 = vmatpush1.bf16.msra.mxu0 %v5382_v44  ;;  %3162 = vmatpush1.bf16.msra.mxu1 %v5384_v49  ;;  %v5496_v44 = vcombine.low %v416_v20, %v424_v21  ;;  %v5511_v49 = vcombine.high %v431_v30, %v439_v31  ;;  %v536_v20 = vld [vmem:[#allocation7 + $0x968] sm:$0xff]  ;;  %v551_v30 = vld [vmem:[#allocation7 + $0x9e0] sm:$0xff] }
 0x18a   :  { %3057 = vmatprep.subr.bf16.mxu0 %v5399_v55  ;;  %3163 = vmatprep.subr.bf16.mxu1 %v5401_v35  ;;  %v5513_v55 = vcombine.high %v432_v48, %v440_v32  ;;  %v447_v35 = vld [vmem:[#allocation7 + $0x6a0] sm:$0xff]  ;;  %v544_v31 = vld [vmem:[#allocation7 + $0x9a8] sm:$0xff] }
 0x18b   :  { %v5526_v51 = vcombine.low %v447_v35, %v455_v56 }
 0x18d   :  { %3058 = vmatpush1.bf16.msra.mxu0 %v5398_v18  ;;  %3164 = vmatpush1.bf16.msra.mxu1 %v5400_v29  ;;  %v5512_v18 = vcombine.low %v432_v48, %v440_v32  ;;  %v5527_v29 = vcombine.high %v447_v35, %v455_v56  ;;  %v552_v48 = vld [vmem:[#allocation7 + $0x9e8] sm:$0xff]  ;;  %v567_v35 = vld [vmem:[#allocation7 + $0xa60] sm:$0xff] }
 0x18e   :  { %3059 = vmatprep.subr.bf16.mxu0 %v5415_v43  ;;  %3165 = vmatprep.subr.bf16.mxu1 %v5417_v23  ;;  %v5529_v43 = vcombine.high %v448_v39, %v456_v41  ;;  %v463_v23 = vld [vmem:[#allocation7 + $0x720] sm:$0xff]  ;;  %v560_v56 = vld [vmem:[#allocation7 + $0xa28] sm:$0xff] }
 0x18f   :  { %v5542_v58 = vcombine.low %v463_v23, %v471_v24 }
 0x191   :  { %3060 = vmatpush1.bf16.msra.mxu0 %v5414_v45  ;;  %3166 = vmatpush1.bf16.msra.mxu1 %v5416_v46  ;;  %v5528_v45 = vcombine.low %v448_v39, %v456_v41  ;;  %v5543_v46 = vcombine.high %v463_v23, %v471_v24  ;;  %v568_v39 = vld [vmem:[#allocation7 + $0xa68] sm:$0xff]  ;;  %v583_v23 = vld [vmem:[#allocation7 + $0xae0] sm:$0xff] }
 0x192   :  { %3061 = vmatprep.subr.bf16.mxu0 %v5431_v50  ;;  %3167 = vmatprep.subr.bf16.mxu1 %v5433_v52  ;;  %v5545_v50 = vcombine.high %v464_v34, %v472_v38  ;;  %v479_v52 = vld [vmem:[#allocation7 + $0x7a0] sm:$0xff]  ;;  %v576_v24 = vld [vmem:[#allocation7 + $0xaa8] sm:$0xff] }
 0x193   :  { %v5558_v3 = vcombine.low %v479_v52, %v487_v53 }
 0x195   :  { %3062 = vmatpush1.bf16.msra.mxu0 %v5430_v59  ;;  %3168 = vmatpush1.bf16.msra.mxu1 %v5432_v60  ;;  %v5544_v59 = vcombine.low %v464_v34, %v472_v38  ;;  %v5559_v60 = vcombine.high %v479_v52, %v487_v53  ;;  %v584_v34 = vld [vmem:[#allocation7 + $0xae8] sm:$0xff]  ;;  %v599_v52 = vld [vmem:[#allocation7 + $0xb60] sm:$0xff] }
 0x196   :  { %3063 = vmatprep.subr.bf16.mxu0 %v5447_v61  ;;  %3169 = vmatprep.subr.bf16.mxu1 %v5449_v62  ;;  %v5561_v61 = vcombine.high %v480_v57, %v488_v54  ;;  %v495_v62 = vld [vmem:[#allocation7 + $0x820] sm:$0xff]  ;;  %v592_v53 = vld [vmem:[#allocation7 + $0xb28] sm:$0xff] }
 0x197   :  { %v5574_v11 = vcombine.low %v495_v62, %v503_v63 }
 0x199   :  { %3064 = vmatpush1.bf16.msra.mxu0 %v5446_v4  ;;  %3170 = vmatpush1.bf16.msra.mxu1 %v5448_v5  ;;  %v5560_v4 = vcombine.low %v480_v57, %v488_v54  ;;  %v5575_v5 = vcombine.high %v495_v62, %v503_v63  ;;  %v600_v57 = vld [vmem:[#allocation7 + $0xb68] sm:$0xff]  ;;  %v615_v62 = vld [vmem:[#allocation7 + $0xbe0] sm:$0xff] }
 0x19a   :  { %3065 = vmatprep.subr.bf16.mxu0 %v5463_v6  ;;  %3171 = vmatprep.subr.bf16.mxu1 %v5465_v7  ;;  %v5577_v6 = vcombine.high %v496_v1, %v504_v2  ;;  %v511_v7 = vld [vmem:[#allocation7 + $0x8a0] sm:$0xff]  ;;  %v608_v63 = vld [vmem:[#allocation7 + $0xba8] sm:$0xff] }
 0x19b   :  { %v5590_v21 = vcombine.low %v511_v7, %v519_v8 }
 0x19d   :  { %3066 = vmatpush1.bf16.msra.mxu0 %v5462_v12  ;;  %3172 = vmatpush1.bf16.msra.mxu1 %v5464_v13  ;;  %v5576_v12 = vcombine.low %v496_v1, %v504_v2  ;;  %v5591_v13 = vcombine.high %v511_v7, %v519_v8  ;;  %v616_v1 = vld [vmem:[#allocation7 + $0xbe8] sm:$0xff]  ;;  %v249_v7 = vld [vmem:[#allocation7 + $0x70] sm:$0xff]  ;;  %v242_v8 = vld [vmem:[#allocation7 + $0x38] sm:$0xff] }
 0x19e   :  { %3067 = vmatprep.subr.bf16.mxu0 %v5479_v14  ;;  %3173 = vmatprep.subr.bf16.mxu1 %v5481_v15  ;;  %v5593_v14 = vcombine.high %v512_v9, %v520_v10  ;;  %v527_v15 = vld [vmem:[#allocation7 + $0x920] sm:$0xff] }
 0x19f   :  { %v5606_v32 = vcombine.low %v527_v15, %v535_v16 }
 0x1a1   :  { %3068 = vmatpush1.bf16.msra.mxu0 %v5478_v22  ;;  %3174 = vmatpush1.bf16.msra.mxu1 %v5480_v25  ;;  %v5592_v22 = vcombine.low %v512_v9, %v520_v10  ;;  %v5607_v25 = vcombine.high %v527_v15, %v535_v16  ;;  %v250_v9 = vld [vmem:[#allocation7 + $0x78] sm:$0xff]  ;;  %v265_v15 = vld [vmem:[#allocation7 + $0xf0] sm:$0xff] }
 0x1a2   :  { %3069 = vmatprep.subr.bf16.mxu0 %v5495_v36  ;;  %3175 = vmatprep.subr.bf16.mxu1 %v5497_v27  ;;  %v5609_v36 = vcombine.high %v528_v19, %v536_v20  ;;  %v543_v27 = vld [vmem:[#allocation7 + $0x9a0] sm:$0xff]  ;;  %v258_v16 = vld [vmem:[#allocation7 + $0xb8] sm:$0xff] }
 0x1a3   :  { %v5622_v41 = vcombine.low %v543_v27, %v551_v30 }
 0x1a5   :  { %3070 = vmatpush1.bf16.msra.mxu0 %v5494_v33  ;;  %3176 = vmatpush1.bf16.msra.mxu1 %v5496_v44  ;;  %v5608_v33 = vcombine.low %v528_v19, %v536_v20  ;;  %v5623_v44 = vcombine.high %v543_v27, %v551_v30  ;;  %v266_v19 = vld [vmem:[#allocation7 + $0xf8] sm:$0xff]  ;;  %v281_v27 = vld [vmem:[#allocation7 + $0x170] sm:$0xff] }
 0x1a6   :  { %3071 = vmatprep.subr.bf16.mxu0 %v5511_v49  ;;  %3177 = vmatprep.subr.bf16.mxu1 %v5513_v55  ;;  %v5625_v49 = vcombine.high %v544_v31, %v552_v48  ;;  %v559_v55 = vld [vmem:[#allocation7 + $0xa20] sm:$0xff]  ;;  %v274_v30 = vld [vmem:[#allocation7 + $0x138] sm:$0xff] }
 0x1a7   :  { %v5638_v38 = vcombine.low %v559_v55, %v567_v35 }
 0x1a9   :  { %3072 = vmatpush1.bf16.msra.mxu0 %v5510_v17  ;;  %3178 = vmatpush1.bf16.msra.mxu1 %v5512_v18  ;;  %v5624_v17 = vcombine.low %v544_v31, %v552_v48  ;;  %v5639_v18 = vcombine.high %v559_v55, %v567_v35  ;;  %v282_v31 = vld [vmem:[#allocation7 + $0x178] sm:$0xff]  ;;  %v297_v55 = vld [vmem:[#allocation7 + $0x1f0] sm:$0xff] }
 0x1aa   :  { %3073 = vmatprep.subr.bf16.mxu0 %v5527_v29  ;;  %3179 = vmatprep.subr.bf16.mxu1 %v5529_v43  ;;  %v5641_v29 = vcombine.high %v560_v56, %v568_v39  ;;  %v575_v43 = vld [vmem:[#allocation7 + $0xaa0] sm:$0xff]  ;;  %v290_v35 = vld [vmem:[#allocation7 + $0x1b8] sm:$0xff] }
 0x1ab   :  { %v5654_v54 = vcombine.low %v575_v43, %v583_v23 }
 0x1ad   :  { %3074 = vmatpush1.bf16.msra.mxu0 %v5526_v51  ;;  %3180 = vmatpush1.bf16.msra.mxu1 %v5528_v45  ;;  %v5640_v51 = vcombine.low %v560_v56, %v568_v39  ;;  %v5655_v45 = vcombine.high %v575_v43, %v583_v23  ;;  %v298_v56 = vld [vmem:[#allocation7 + $0x1f8] sm:$0xff]  ;;  %v623_v39 = vlaneseq  ;;  %v305_v43 = vld [vmem:[#allocation7 + $0x230] sm:$0xff] }
 0x1ae   :  { %3075 = vmatprep.subr.bf16.mxu0 %v5543_v46  ;;  %3181 = vmatprep.subr.bf16.mxu1 %v5545_v50  ;;  %v5657_v46 = vcombine.high %v576_v24, %v584_v34  ;;  %v591_v50 = vld [vmem:[#allocation7 + $0xb20] sm:$0xff]  ;;  %v313_v23 = vld [vmem:[#allocation7 + $0x270] sm:$0xff] }
 0x1af   :  { %v5670_v2 = vcombine.low %v591_v50, %v599_v52 }
 0x1b1   :  { %3076 = vmatpush1.bf16.msra.mxu0 %v5542_v58  ;;  %3182 = vmatpush1.bf16.msra.mxu1 %v5544_v59  ;;  %v5656_v58 = vcombine.low %v576_v24, %v584_v34  ;;  %v5671_v59 = vcombine.high %v591_v50, %v599_v52  ;;  %v306_v24 = vld [vmem:[#allocation7 + $0x238] sm:$0xff]  ;;  %v321_v52 = vld [vmem:[#allocation7 + $0x2b0] sm:$0xff] }
 0x1b2   :  { %3077 = vmatprep.subr.bf16.mxu0 %v5559_v60  ;;  %3183 = vmatprep.subr.bf16.mxu1 %v5561_v61  ;;  %v5673_v60 = vcombine.high %v592_v53, %v600_v57  ;;  %v607_v61 = vld [vmem:[#allocation7 + $0xba0] sm:$0xff]  ;;  %v314_v34 = vld [vmem:[#allocation7 + $0x278] sm:$0xff] }
 0x1b3   :  { %v5686_v10 = vcombine.low %v607_v61, %v615_v62  ;;  %v5389_v50 = vcombine.high %v306_v24, %v314_v34 }
 0x1b5   :  { %3078 = vmatpush1.bf16.msra.mxu0 %v5558_v3  ;;  %3184 = vmatpush1.bf16.msra.mxu1 %v5560_v4  ;;  %v5672_v3 = vcombine.low %v592_v53, %v600_v57  ;;  %v5687_v4 = vcombine.high %v607_v61, %v615_v62  ;;  %v329_v53 = vld [vmem:[#allocation7 + $0x2f0] sm:$0xff]  ;;  %v322_v57 = vld [vmem:[#allocation7 + $0x2b8] sm:$0xff]  ;;  %v5386_v61 = vcombine.low %v305_v43, %v313_v23 }
 0x1b6   :  { %3100 = vmatprep.subr.bf16.mxu0 %v5575_v5  ;;  %3206 = vmatprep.subr.bf16.mxu1 %v5577_v6  ;;  %v5689_v5 = vcombine.high %v608_v63, %v616_v1  ;;  %v241_v6 = vld [vmem:[#allocation7 + $0x30] sm:$0xff]  ;;  %v5388_v62 = vcombine.low %v306_v24, %v314_v34 }
 0x1b7   :  { %v5322_v20 = vcombine.low %v241_v6, %v249_v7 }
 0x1b8   :  { %3080 = vmatmul.mubr.bf16.vlgmr.msra.gmra.mrb[16].mxu0 %v6706_v28  ;;  %3186 = vmatmul.mubr.bf16.vlgmr.msra.gmra.mrb[16].mxu1 %v6706_v28 }
 0x1b9   :  { %3101 = vmatpush1.bf16.msra.mxu0 %v5574_v11  ;;  %3207 = vmatpush1.bf16.msra.mxu1 %v5576_v12  ;;  %v5688_v11 = vcombine.low %v608_v63, %v616_v1  ;;  %v5323_v12 = vcombine.high %v241_v6, %v249_v7  ;;  %v6777_v63 = vld [vmem:[#allocation8] sm:$0xff]  ;;  %v346_v6 = vld [vmem:[#allocation7 + $0x378] sm:$0xff] }
 0x1ba   :  { %3102 = vmatprep.subr.bf16.mxu0 %v5591_v13  ;;  %3208 = vmatprep.subr.bf16.mxu1 %v5593_v14  ;;  %v5325_v13 = vcombine.high %v242_v8, %v250_v9  ;;  %v257_v14 = vld [vmem:[#allocation7 + $0xb0] sm:$0xff] }
 0x1bb   :  { %3089 = vmatprep.mubr.bf16.mxu0 %v6666_v42  ;;  %3195 = vmatprep.mubr.bf16.mxu1 %v6666_v42  ;;  %v5338_v48 = vcombine.low %v257_v14, %v265_v15 }
 0x1bd   :  { %3103 = vmatpush1.bf16.msra.mxu0 %v5590_v21  ;;  %3209 = vmatpush1.bf16.msra.mxu1 %v5592_v22  ;;  %v5324_v21 = vcombine.low %v242_v8, %v250_v9  ;;  %v5339_v22 = vcombine.high %v257_v14, %v265_v15  ;;  %v6802_v14 = vld [vmem:[#allocation7 + $0x3f0] sm:$0xff] }
 0x1be   :  { %3104 = vmatprep.subr.bf16.mxu0 %v5607_v25  ;;  %3210 = vmatprep.subr.bf16.mxu1 %v5609_v36  ;;  %v5341_v25 = vcombine.high %v258_v16, %v266_v19  ;;  %v273_v36 = vld [vmem:[#allocation7 + $0x130] sm:$0xff] }
 0x1c0   :  { %3090 = vmatmul.mubr.bf16.gmra.mrb[20].mxu0 %v6704_v26  ;;  %3196 = vmatmul.mubr.bf16.gmra.mrb[20].mxu1 %v6704_v26 }
 0x1c1   :  { %3105 = vmatpush1.bf16.msra.mxu0 %v5606_v32  ;;  %3211 = vmatpush1.bf16.msra.mxu1 %v5608_v33  ;;  %v5340_v32 = vcombine.low %v258_v16, %v266_v19  ;;  %v5355_v33 = vcombine.high %v273_v36, %v281_v27 }
 0x1c2   :  { %3106 = vmatprep.subr.bf16.mxu0 %v5623_v44  ;;  %3212 = vmatprep.subr.bf16.mxu1 %v5625_v49  ;;  %v5357_v44 = vcombine.high %v274_v30, %v282_v31  ;;  %v289_v49 = vld [vmem:[#allocation7 + $0x1b0] sm:$0xff] }
 0x1c3   :  { %3132 = vmatprep.mubr.bf16.mxu0 %v6463_v0  ;;  %3238 = vmatprep.mubr.bf16.mxu1 %v6463_v0 }
 0x1c5   :  { %3107 = vmatpush1.bf16.msra.mxu0 %v5622_v41  ;;  %3213 = vmatpush1.bf16.msra.mxu1 %v5624_v17  ;;  %v5354_v41 = vcombine.low %v273_v36, %v281_v27  ;;  %v5356_v17 = vcombine.low %v274_v30, %v282_v31 }
 0x1c6   :  { %3108 = vmatprep.subr.bf16.mxu0 %v5639_v18  ;;  %3214 = vmatprep.subr.bf16.mxu1 %v5641_v29  ;;  %v5371_v18 = vcombine.high %v289_v49, %v297_v55  ;;  %v5373_v29 = vcombine.high %v290_v35, %v298_v56 }
 0x1c9   :  { %3109 = vmatpush1.bf16.msra.mxu0 %v5638_v38  ;;  %3215 = vmatpush1.bf16.msra.mxu1 %v5640_v51  ;;  %v6770_v38 = vshrl.u32 %v623_v39, 7  ;;  %v5370_v51 = vcombine.low %v289_v49, %v297_v55 }
 0x1ca   :  { %3110 = vmatprep.subr.bf16.mxu0 %v5655_v45  ;;  %3216 = vmatprep.subr.bf16.mxu1 %v5657_v46  ;;  %v5372_v45 = vcombine.low %v290_v35, %v298_v56  ;;  %v5387_v46 = vcombine.high %v305_v43, %v313_v23 }
 0x1cb   :  { %v637_v1 = vsub.s32 3, %v6770_v38 }
 0x1cd   :  { %3111 = vmatpush1.bf16.msra.mxu0 %v5654_v54  ;;  %3217 = vmatpush1.bf16.msra.mxu1 %v5656_v58  ;;  %v330_v54 = vld [vmem:[#allocation7 + $0x2f8] sm:$0xff]  ;;  %v625_v58 = vsub.s32 0, %v6770_v38 }
 0x1ce   :  { %3112 = vmatprep.subr.bf16.mxu0 %v5671_v59  ;;  %3218 = vmatprep.subr.bf16.mxu1 %v5673_v60  ;;  %v633_v59 = vsub.s32 2, %v6770_v38  ;;  %v629_v60 = vsub.s32 1, %v6770_v38 }
 0x1cf   :  { %v6783_v7 = vrot.slane %v6777_v63, %v625_v58 }
 0x1d0   :  { %v6788_v8 = vrot.slane %v6777_v63, %v633_v59  ;;  %v6793_v9 = vrot.slane %v6777_v63, %v629_v60 }
 0x1d1   :  { %3113 = vmatpush1.bf16.msra.mxu0 %v5670_v2  ;;  %3219 = vmatpush1.bf16.msra.mxu1 %v5672_v3  ;;  %v5403_v2 = vcombine.high %v321_v52, %v329_v53  ;;  %v5405_v3 = vcombine.high %v322_v57, %v330_v54 }
 0x1d2   :  { %3114 = vmatprep.subr.bf16.mxu0 %v5687_v4  ;;  %3220 = vmatprep.subr.bf16.mxu1 %v5689_v5  ;;  %v337_v4 = vld [vmem:[#allocation7 + $0x330] sm:$0xff]  ;;  %v338_v5 = vld [vmem:[#allocation7 + $0x338] sm:$0xff] }
 0x1d3   :  { %v5421_v16 = vcombine.high %v338_v5, %v346_v6 }
 0x1d5   :  { %3115 = vmatpush1.bf16.msra.mxu0 %v5686_v10  ;;  %3221 = vmatpush1.bf16.msra.mxu1 %v5688_v11  ;;  %v6798_v10 = vrot.slane %v6777_v63, %v637_v1  ;;  %v5402_v11 = vcombine.low %v321_v52, %v329_v53 }
 0x1d6   :  { %3259 = vmatprep.subr.bf16.mxu0 %v5323_v12  ;;  %3365 = vmatprep.subr.bf16.mxu1 %v5325_v13  ;;  %v5404_v12 = vcombine.low %v322_v57, %v330_v54  ;;  %v6800_v13 = vld [vmem:[#allocation7 + $0x3b0] sm:$0xff] }
 0x1d7   :  { %v5434_v39 = vcombine.low %v6800_v13, %v6802_v14 }
 0x1d8   :  { %3133 = vmatmul.mubr.bf16.vlgmr.msra.gmra.mrb[16].mxu0 %v6721_v40  ;;  %3239 = vmatmul.mubr.bf16.vlgmr.msra.gmra.mrb[16].mxu1 %v6721_v40 }
 0x1d9   :  { %3260 = vmatpush1.bf16.msra.mxu0 %v5322_v20  ;;  %3366 = vmatpush1.bf16.msra.mxu1 %v5324_v21 }
 0x1da   :  { %3261 = vmatprep.subr.bf16.mxu0 %v5339_v22  ;;  %3367 = vmatprep.subr.bf16.mxu1 %v5341_v25  ;;  %v6804_v22 = vld [vmem:[#allocation7 + $0x3b8] sm:$0xff] }
 0x1db   :  { %3142 = vmatprep.mubr.bf16.mxu0 %v6463_v0  ;;  %3248 = vmatprep.mubr.bf16.mxu1 %v6463_v0  ;;  %v6806_v25 = vld [vmem:[#allocation7 + $0x3f8] sm:$0xff] }
 0x1dc   :  { %v5437_v43 = vcombine.high %v6804_v22, %v6806_v25  ;;  %v5436_v34 = vcombine.low %v6804_v22, %v6806_v25 }
 0x1dd   :  { %3262 = vmatpush1.bf16.msra.mxu0 %v5338_v48  ;;  %3368 = vmatpush1.bf16.msra.mxu1 %v5340_v32  ;;  %v5420_v48 = vcombine.low %v338_v5, %v346_v6  ;;  %v5435_v32 = vcombine.high %v6800_v13, %v6802_v14 }
 0x1de   :  { %3263 = vmatprep.subr.bf16.mxu0 %v5355_v33  ;;  %3369 = vmatprep.subr.bf16.mxu1 %v5357_v44  ;;  %v6812_v33 = vld [vmem:[#allocation7 + $0x430] sm:$0xff] }
 0x1df   :  { %v6814_v44 = vld [vmem:[#allocation7 + $0x470] sm:$0xff] }
 0x1e0   :  { %3143 = vmatmul.mubr.bf16.gmra.mrb[20].mxu0 %v6726_v47  ;;  %3249 = vmatmul.mubr.bf16.gmra.mrb[20].mxu1 %v6726_v47 }
 0x1e1   :  { %3264 = vmatpush1.bf16.msra.mxu0 %v5354_v41  ;;  %3370 = vmatpush1.bf16.msra.mxu1 %v5356_v17 }
 0x1e2   :  { %3265 = vmatprep.subr.bf16.mxu0 %v5371_v18  ;;  %3371 = vmatprep.subr.bf16.mxu1 %v5373_v29 }
 0x1e3   :  { %3291 = vmatprep.mubr.bf16.mxu0 %v6660_v37  ;;  %3397 = vmatprep.mubr.bf16.mxu1 %v6660_v37  ;;  %v345_v37 = vld [vmem:[#allocation7 + $0x370] sm:$0xff] }
 0x1e4   :  { %v5419_v15 = vcombine.high %v337_v4, %v345_v37  ;;  %v5418_v21 = vcombine.low %v337_v4, %v345_v37  ;;  %v393_v4 = vld [vmem:[#allocation7 + $0x4f0] sm:$0xff] }
 0x1e5   :  { %3266 = vmatpush1.bf16.msra.mxu0 %v5370_v51  ;;  %3372 = vmatpush1.bf16.msra.mxu1 %v5372_v45  ;;  %v5451_v51 = vcombine.high %v6812_v33, %v6814_v44  ;;  %v6830_v45 = vld [vmem:[#allocation7 + $0x438] sm:$0xff] }
 0x1e6   :  { %3267 = vmatprep.subr.bf16.mxu0 %v5387_v46  ;;  %3373 = vmatprep.subr.bf16.mxu1 %v5389_v50  ;;  %v378_v46 = vld [vmem:[#allocation7 + $0x478] sm:$0xff] }
 0x1e7   :  { %v5453_v6 = vcombine.high %v6830_v45, %v378_v46 }
 0x1e9   :  { %3268 = vmatpush1.bf16.msra.mxu0 %v5386_v61  ;;  %3374 = vmatpush1.bf16.msra.mxu1 %v5388_v62 }
 0x1ea   :  { %3269 = vmatprep.subr.bf16.mxu0 %v5403_v2  ;;  %3375 = vmatprep.subr.bf16.mxu1 %v5405_v3  ;;  %v6832_v3 = vld [vmem:[#allocation7 + $0x4b0] sm:$0xff] }
 0x1eb   :  { %v2710_v19 = vpop.f32.mrb[0].mxu0  ;;  %v2816_v20 = vpop.f32.mrb[0].mxu1 }
 0x1ec   :  { %v6017_v36 = vadd.f32 %v2710_v19, %v6783_v7  ;;  %v6025_v27 = vadd.f32 %v2816_v20, %v6788_v8  ;;  %v2712_v30 = vpop.f32.mrb[1].mxu0  ;;  %v2818_v31 = vpop.f32.mrb[1].mxu1  ;;  %v394_v19 = vld [vmem:[#allocation7 + $0x4f8] sm:$0xff] }
 0x1ed   :  { %v6018_v49 = vadd.f32 %v2712_v30, %v6793_v9  ;;  %v6026_v55 = vadd.f32 %v2818_v31, %v6798_v10  ;;  %v2714_v35 = vpop.f32.mrb[2].mxu0  ;;  %v2820_v56 = vpop.f32.mrb[2].mxu1  ;;  %3270 = vmatpush1.bf16.msra.mxu0 %v5402_v11  ;;  %3376 = vmatpush1.bf16.msra.mxu1 %v5404_v12  ;;  %v401_v30 = vld [vmem:[#allocation7 + $0x530] sm:$0xff] }
 0x1ee   :  { %v6019_v41 = vadd.f32 %v2714_v35, %v6783_v7  ;;  %v6027_v17 = vadd.f32 %v2820_v56, %v6788_v8  ;;  %v2716_v18 = vpop.f32.mrb[3].mxu0  ;;  %v2822_v29 = vpop.f32.mrb[3].mxu1  ;;  %3271 = vmatprep.subr.bf16.mxu0 %v5419_v15  ;;  %3377 = vmatprep.subr.bf16.mxu1 %v5421_v16  ;;  %v3471_v50 = vmax.f32 %v6017_v36, 0.0  ;;  %v3473_v52 = vmax.f32 %v6025_v27, 0.0  ;;  %v386_v16 = vld [vmem:[#allocation7 + $0x4b8] sm:$0xff]  ;;  %v409_v31 = vld [vmem:[#allocation7 + $0x570] sm:$0xff] }
 0x1ef   :  { %v6020_v23 = vadd.f32 %v2716_v18, %v6793_v9  ;;  %v6028_v24 = vadd.f32 %v2822_v29, %v6798_v10  ;;  %v3472_v54 = vmax.f32 %v6018_v49, 0.0  ;;  %v3474_v61 = vmax.f32 %v6026_v55, 0.0 }
 0x1f0   :  { %v3487_v53 = vmax.f32 %v6019_v41, 0.0  ;;  %v3489_v57 = vmax.f32 %v6027_v17, 0.0  ;;  %v5450_v15 = vcombine.low %v6812_v33, %v6814_v44  ;;  %v5452_v36 = vcombine.low %v6830_v45, %v378_v46 }
 0x1f1   :  { %v3488_v62 = vmax.f32 %v6020_v23, 0.0  ;;  %v3490_v2 = vmax.f32 %v6028_v24, 0.0  ;;  %3272 = vmatpush1.bf16.msra.mxu0 %v5418_v21  ;;  %3378 = vmatpush1.bf16.msra.mxu1 %v5420_v48  ;;  %v5467_v27 = vcombine.high %v6832_v3, %v393_v4  ;;  %v5466_v44 = vcombine.low %v6832_v3, %v393_v4  ;;  %v402_v24 = vld [vmem:[#allocation7 + $0x538] sm:$0xff] }
 0x1f2   :  { %v6834_v37 = vpack.c.bf16 %v3487_v53, %v3471_v50  ;;  %v6836_v5 = vpack.c.bf16 %v3489_v57, %v3473_v52  ;;  %3273 = vmatprep.subr.bf16.mxu0 %v5435_v32  ;;  %3379 = vmatprep.subr.bf16.mxu1 %v5437_v43  ;;  %v5469_v17 = vcombine.high %v386_v16, %v394_v19  ;;  %v426_v3 = vld [vmem:[#allocation7 + $0x5f8] sm:$0xff] }
 0x1f3   :  { %v6839_v11 = vpack.c.bf16 %v3488_v62, %v3472_v54  ;;  %v6841_v12 = vpack.c.bf16 %v3490_v2, %v3474_v61  ;;  %v2720_v13 = vpop.f32.mrb[4].mxu0  ;;  %v2826_v14 = vpop.f32.mrb[4].mxu1  ;;  %v5468_v43 = vcombine.low %v386_v16, %v394_v19  ;;  %v5483_v23 = vcombine.high %v401_v30, %v409_v31  ;;  %v425_v62 = vld [vmem:[#allocation7 + $0x5f0] sm:$0xff]  ;;  %v418_v2 = vld [vmem:[#allocation7 + $0x5b8] sm:$0xff] }
 0x1f4   :  { %v6021_v20 = vadd.f32 %v2720_v13, %v6783_v7  ;;  %v6029_v21 = vadd.f32 %v2826_v14, %v6788_v8  ;;  %v2722_v22 = vpop.f32.mrb[5].mxu0  ;;  %v2828_v25 = vpop.f32.mrb[5].mxu1  ;;  %v5482_v4 = vcombine.low %v401_v30, %v409_v31  ;;  %v5501_v14 = vcombine.high %v418_v2, %v426_v3  ;;  %v441_v16 = vld [vmem:[#allocation7 + $0x670] sm:$0xff]  ;;  %v434_v19 = vld [vmem:[#allocation7 + $0x638] sm:$0xff] }
 0x1f5   :  { %v6022_v48 = vadd.f32 %v2722_v22, %v6793_v9  ;;  %v6030_v32 = vadd.f32 %v2828_v25, %v6798_v10  ;;  %v2724_v49 = vpop.f32.mrb[6].mxu0  ;;  %v2830_v33 = vpop.f32.mrb[6].mxu1  ;;  %3274 = vmatpush1.bf16.msra.mxu0 %v5434_v39  ;;  %3380 = vmatpush1.bf16.msra.mxu1 %v5436_v34  ;;  %v410_v39 = vld [vmem:[#allocation7 + $0x578] sm:$0xff]  ;;  %v5500_v22 = vcombine.low %v418_v2, %v426_v3 }
 0x1f6   :  { %v6023_v55 = vadd.f32 %v2724_v49, %v6783_v7  ;;  %v6031_v35 = vadd.f32 %v2830_v33, %v6788_v8  ;;  %v2726_v56 = vpop.f32.mrb[7].mxu0  ;;  %v2832_v41 = vpop.f32.mrb[7].mxu1  ;;  %3275 = vmatprep.subr.bf16.mxu0 %v5451_v51  ;;  %3381 = vmatprep.subr.bf16.mxu1 %v5453_v6  ;;  %v3503_v34 = vmax.f32 %v6021_v20, 0.0  ;;  %v3505_v45 = vmax.f32 %v6029_v21, 0.0  ;;  %v442_v20 = vld [vmem:[#allocation7 + $0x678] sm:$0xff] }
 0x1f7   :  { %v6024_v18 = vadd.f32 %v2726_v56, %v6793_v9  ;;  %v6032_v29 = vadd.f32 %v2832_v41, %v6798_v10  ;;  %v3504_v7 = vmax.f32 %v6022_v48, 0.0  ;;  %v3506_v52 = vmax.f32 %v6030_v32, 0.0  ;;  %v417_v10 = vld [vmem:[#allocation7 + $0x5b0] sm:$0xff]  ;;  %v450_v30 = vld [vmem:[#allocation7 + $0x6b8] sm:$0xff] }
 0x1f8   :  { %v3519_v46 = vmax.f32 %v6023_v55, 0.0  ;;  %v3521_v50 = vmax.f32 %v6031_v35, 0.0  ;;  %v5485_v9 = vcombine.high %v402_v24, %v410_v39  ;;  %v5484_v6 = vcombine.low %v402_v24, %v410_v39  ;;  %v457_v48 = vld [vmem:[#allocation7 + $0x6f0] sm:$0xff]  ;;  %v458_v31 = vld [vmem:[#allocation7 + $0x6f8] sm:$0xff] }
 0x1f9   :  { %v3520_v8 = vmax.f32 %v6024_v18, 0.0  ;;  %v3522_v53 = vmax.f32 %v6032_v29, 0.0  ;;  %3276 = vmatpush1.bf16.msra.mxu0 %v5450_v15  ;;  %3382 = vmatpush1.bf16.msra.mxu1 %v5452_v36  ;;  %v5499_v13 = vcombine.high %v417_v10, %v425_v62  ;;  %v433_v15 = vld [vmem:[#allocation7 + $0x630] sm:$0xff]  ;;  %v5498_v21 = vcombine.low %v417_v10, %v425_v62  ;;  %v466_v56 = vld [vmem:[#allocation7 + $0x738] sm:$0xff] }
 0x1fa   :  { %v6856_v51 = vpack.c.bf16 %v3519_v46, %v3503_v34  ;;  %v6858_v57 = vpack.c.bf16 %v3521_v50, %v3505_v45  ;;  %3277 = vmatprep.subr.bf16.mxu0 %v5467_v27  ;;  %3383 = vmatprep.subr.bf16.mxu1 %v5469_v17  ;;  %v5515_v25 = vcombine.high %v433_v15, %v441_v16  ;;  %v449_v27 = vld [vmem:[#allocation7 + $0x6b0] sm:$0xff]  ;;  %v474_v41 = vld [vmem:[#allocation7 + $0x778] sm:$0xff] }
 0x1fb   :  { %v6860_v54 = vpack.c.bf16 %v3520_v8, %v3504_v7  ;;  %v6862_v61 = vpack.c.bf16 %v3522_v53, %v3506_v52  ;;  %v5517_v36 = vcombine.high %v434_v19, %v442_v20  ;;  %v5514_v32 = vcombine.low %v433_v15, %v441_v16  ;;  %v465_v55 = vld [vmem:[#allocation7 + $0x730] sm:$0xff]  ;;  %v482_v39 = vld [vmem:[#allocation7 + $0x7b8] sm:$0xff] }
 0x1fc   :  { %v5516_v49 = vcombine.low %v434_v19, %v442_v20  ;;  %v5531_v33 = vcombine.high %v449_v27, %v457_v48  ;;  %v473_v35 = vld [vmem:[#allocation7 + $0x770] sm:$0xff]  ;;  %v5530_v17 = vcombine.low %v449_v27, %v457_v48  ;;  %v5532_v18 = vcombine.low %v450_v30, %v458_v31  ;;  %v490_v34 = vld [vmem:[#allocation7 + $0x7f8] sm:$0xff] }
 0x1fd   :  { %3278 = vmatpush1.bf16.msra.mxu0 %v5466_v44  ;;  %3384 = vmatpush1.bf16.msra.mxu1 %v5468_v43  ;;  %v5533_v44 = vcombine.high %v450_v30, %v458_v31  ;;  %v5547_v29 = vcombine.high %v465_v55, %v473_v35  ;;  %v5549_v43 = vcombine.high %v466_v56, %v474_v41  ;;  %v489_v24 = vld [vmem:[#allocation7 + $0x7f0] sm:$0xff]  ;;  %v498_v53 = vld [vmem:[#allocation7 + $0x838] sm:$0xff] }
 0x1fe   :  { %3279 = vmatprep.subr.bf16.mxu0 %v5483_v23  ;;  %3385 = vmatprep.subr.bf16.mxu1 %v5485_v9  ;;  %v481_v23 = vld [vmem:[#allocation7 + $0x7b0] sm:$0xff]  ;;  %v5546_v45 = vcombine.low %v465_v55, %v473_v35  ;;  %v5548_v46 = vcombine.low %v466_v56, %v474_v41  ;;  %v5565_v7 = vcombine.high %v482_v39, %v490_v34  ;;  %v506_v9 = vld [vmem:[#allocation7 + $0x878] sm:$0xff] }
 0x1ff   :  { %v5563_v50 = vcombine.high %v481_v23, %v489_v24  ;;  %v497_v52 = vld [vmem:[#allocation7 + $0x830] sm:$0xff]  ;;  %v5562_v10 = vcombine.low %v481_v23, %v489_v24  ;;  %v5564_v62 = vcombine.low %v482_v39, %v490_v34  ;;  %v5581_v3 = vcombine.high %v498_v53, %v506_v9 }
 0x200   :  { %v505_v8 = vld [vmem:[#allocation7 + $0x870] sm:$0xff]  ;;  %v5580_v16 = vcombine.low %v498_v53, %v506_v9  ;;  %v594_v9 = vld [vmem:[#allocation7 + $0xb38] sm:$0xff] }
 0x201   :  { %3280 = vmatpush1.bf16.msra.mxu0 %v5482_v4  ;;  %3386 = vmatpush1.bf16.msra.mxu1 %v5484_v6  ;;  %v5579_v2 = vcombine.high %v497_v52, %v505_v8  ;;  %v513_v4 = vld [vmem:[#allocation7 + $0x8b0] sm:$0xff]  ;;  %v5578_v15 = vcombine.low %v497_v52, %v505_v8 }
 0x202   :  { %3281 = vmatprep.subr.bf16.mxu0 %v5499_v13  ;;  %3387 = vmatprep.subr.bf16.mxu1 %v5501_v14  ;;  %v521_v6 = vld [vmem:[#allocation7 + $0x8f0] sm:$0xff]  ;;  %v514_v13 = vld [vmem:[#allocation7 + $0x8b8] sm:$0xff] }
 0x203   :  { %v522_v14 = vld [vmem:[#allocation7 + $0x8f8] sm:$0xff]  ;;  %v5595_v19 = vcombine.high %v513_v4, %v521_v6  ;;  %v5594_v27 = vcombine.low %v513_v4, %v521_v6  ;;  %v561_v41 = vld [vmem:[#allocation7 + $0xa30] sm:$0xff] }
 0x204   :  { %v5597_v20 = vcombine.high %v514_v13, %v522_v14  ;;  %v5596_v48 = vcombine.low %v514_v13, %v522_v14  ;;  %v577_v39 = vld [vmem:[#allocation7 + $0xab0] sm:$0xff]  ;;  %v610_v14 = vld [vmem:[#allocation7 + $0xbb8] sm:$0xff] }
 0x205   :  { %3282 = vmatpush1.bf16.msra.mxu0 %v5498_v21  ;;  %3388 = vmatpush1.bf16.msra.mxu1 %v5500_v22  ;;  %v529_v21 = vld [vmem:[#allocation7 + $0x930] sm:$0xff] }
 0x206   :  { %3283 = vmatprep.subr.bf16.mxu0 %v5515_v25  ;;  %3389 = vmatprep.subr.bf16.mxu1 %v5517_v36  ;;  %v537_v22 = vld [vmem:[#allocation7 + $0x970] sm:$0xff]  ;;  %v530_v25 = vld [vmem:[#allocation7 + $0x938] sm:$0xff] }
 0x207   :  { %v538_v36 = vld [vmem:[#allocation7 + $0x978] sm:$0xff]  ;;  %v5611_v30 = vcombine.high %v529_v21, %v537_v22  ;;  %v5610_v55 = vcombine.low %v529_v21, %v537_v22  ;;  %v585_v34 = vld [vmem:[#allocation7 + $0xaf0] sm:$0xff] }
 0x208   :  { %v5613_v31 = vcombine.high %v530_v25, %v538_v36  ;;  %v593_v8 = vld [vmem:[#allocation7 + $0xb30] sm:$0xff] }
 0x209   :  { %3284 = vmatpush1.bf16.msra.mxu0 %v5514_v32  ;;  %3390 = vmatpush1.bf16.msra.mxu1 %v5516_v49  ;;  %v545_v32 = vld [vmem:[#allocation7 + $0x9b0] sm:$0xff] }
 0x20a   :  { %3285 = vmatprep.subr.bf16.mxu0 %v5531_v33  ;;  %3391 = vmatprep.subr.bf16.mxu1 %v5533_v44  ;;  %v553_v49 = vld [vmem:[#allocation7 + $0x9f0] sm:$0xff]  ;;  %v546_v33 = vld [vmem:[#allocation7 + $0x9b8] sm:$0xff] }
 0x20b   :  { %v554_v44 = vld [vmem:[#allocation7 + $0x9f8] sm:$0xff]  ;;  %v5627_v35 = vcombine.high %v545_v32, %v553_v49  ;;  %v601_v53 = vld [vmem:[#allocation7 + $0xb70] sm:$0xff] }
 0x20c   :  { %v5629_v56 = vcombine.high %v546_v33, %v554_v44  ;;  %v609_v6 = vld [vmem:[#allocation7 + $0xbb0] sm:$0xff] }
 0x20d   :  { %3286 = vmatpush1.bf16.msra.mxu0 %v5530_v17  ;;  %3392 = vmatpush1.bf16.msra.mxu1 %v5532_v18  ;;  %v569_v17 = vld [vmem:[#allocation7 + $0xa70] sm:$0xff]  ;;  %v562_v18 = vld [vmem:[#allocation7 + $0xa38] sm:$0xff] }
 0x20e   :  { %3287 = vmatprep.subr.bf16.mxu0 %v5547_v29  ;;  %3393 = vmatprep.subr.bf16.mxu1 %v5549_v43  ;;  %v570_v29 = vld [vmem:[#allocation7 + $0xa78] sm:$0xff]  ;;  %v5628_v43 = vcombine.low %v546_v33, %v554_v44  ;;  %v5643_v23 = vcombine.high %v561_v41, %v569_v17  ;;  %v617_v13 = vld [vmem:[#allocation7 + $0xbf0] sm:$0xff] }
 0x20f   :  { %v5645_v24 = vcombine.high %v562_v18, %v570_v29  ;;  %v5690_v22 = vcombine.low %v609_v6, %v617_v13 }
 0x211   :  { %3288 = vmatpush1.bf16.msra.mxu0 %v5546_v45  ;;  %3394 = vmatpush1.bf16.msra.mxu1 %v5548_v46  ;;  %v578_v45 = vld [vmem:[#allocation7 + $0xab8] sm:$0xff] }
 0x212   :  { %3289 = vmatprep.subr.bf16.mxu0 %v5563_v50  ;;  %3395 = vmatprep.subr.bf16.mxu1 %v5565_v7  ;;  %v586_v46 = vld [vmem:[#allocation7 + $0xaf8] sm:$0xff]  ;;  %v5642_v50 = vcombine.low %v561_v41, %v569_v17  ;;  %v5659_v7 = vcombine.high %v577_v39, %v585_v34 }
 0x213   :  { %v5661_v52 = vcombine.high %v578_v45, %v586_v46 }
 0x215   :  { %3290 = vmatpush1.bf16.msra.mxu0 %v5562_v10  ;;  %3396 = vmatpush1.bf16.msra.mxu1 %v5564_v62  ;;  %v602_v10 = vld [vmem:[#allocation7 + $0xb78] sm:$0xff]  ;;  %v5658_v62 = vcombine.low %v577_v39, %v585_v34 }
 0x216   :  { %3312 = vmatprep.subr.bf16.mxu0 %v5579_v2  ;;  %3418 = vmatprep.subr.bf16.mxu1 %v5581_v3  ;;  %v5660_v2 = vcombine.low %v578_v45, %v586_v46  ;;  %v5675_v3 = vcombine.high %v593_v8, %v601_v53  ;;  %v5677_v4 = vcombine.high %v594_v9, %v602_v10 }
 0x218   :  { %3292 = vmatmul.mubr.bf16.vlgmr.msra.gmra.mrb[24].mxu0 %v6706_v28  ;;  %3398 = vmatmul.mubr.bf16.vlgmr.msra.gmra.mrb[24].mxu1 %v6706_v28  ;;  %v5612_v28 = vcombine.low %v530_v25, %v538_v36 }
 0x219   :  { %3313 = vmatpush1.bf16.msra.mxu0 %v5578_v15  ;;  %3419 = vmatpush1.bf16.msra.mxu1 %v5580_v16  ;;  %v618_v15 = vld [vmem:[#allocation7 + $0xbf8] sm:$0xff]  ;;  %v5674_v16 = vcombine.low %v593_v8, %v601_v53 }
 0x21a   :  { %3314 = vmatprep.subr.bf16.mxu0 %v5595_v19  ;;  %3420 = vmatprep.subr.bf16.mxu1 %v5597_v20  ;;  %v5676_v19 = vcombine.low %v594_v9, %v602_v10  ;;  %v5691_v20 = vcombine.high %v609_v6, %v617_v13  ;;  %v5693_v21 = vcombine.high %v610_v14, %v618_v15 }
 0x21b   :  { %3301 = vmatprep.mubr.bf16.mxu0 %v6666_v42  ;;  %3407 = vmatprep.mubr.bf16.mxu1 %v6666_v42  ;;  %v5626_v42 = vcombine.low %v545_v32, %v553_v49  ;;  %v5692_v25 = vcombine.low %v610_v14, %v618_v15 }
 0x21d   :  { %3315 = vmatpush1.bf16.msra.mxu0 %v5594_v27  ;;  %3421 = vmatpush1.bf16.msra.mxu1 %v5596_v48 }
 0x21e   :  { %3316 = vmatprep.subr.bf16.mxu0 %v5611_v30  ;;  %3422 = vmatprep.subr.bf16.mxu1 %v5613_v31 }
 0x220   :  { %3302 = vmatmul.mubr.bf16.gmra.mrb[28].mxu0 %v6704_v26  ;;  %3408 = vmatmul.mubr.bf16.gmra.mrb[28].mxu1 %v6704_v26  ;;  %v5644_v26 = vcombine.low %v562_v18, %v570_v29 }
 0x221   :  { %3317 = vmatpush1.bf16.msra.mxu0 %v5610_v55  ;;  %3423 = vmatpush1.bf16.msra.mxu1 %v5612_v28 }
 0x222   :  { %3318 = vmatprep.subr.bf16.mxu0 %v5627_v35  ;;  %3424 = vmatprep.subr.bf16.mxu1 %v5629_v56 }
 0x223   :  { %3344 = vmatprep.mubr.bf16.mxu0 %v6463_v0  ;;  %3450 = vmatprep.mubr.bf16.mxu1 %v6463_v0 }
 0x225   :  { %3319 = vmatpush1.bf16.msra.mxu0 %v5626_v42  ;;  %3425 = vmatpush1.bf16.msra.mxu1 %v5628_v43 }
 0x226   :  { %3320 = vmatprep.subr.bf16.mxu0 %v5643_v23  ;;  %3426 = vmatprep.subr.bf16.mxu1 %v5645_v24 }
 0x229   :  { %3321 = vmatpush1.bf16.msra.mxu0 %v5642_v50  ;;  %3427 = vmatpush1.bf16.msra.mxu1 %v5644_v26 }
 0x22a   :  { %3322 = vmatprep.subr.bf16.mxu0 %v5659_v7  ;;  %3428 = vmatprep.subr.bf16.mxu1 %v5661_v52 }
 0x22d   :  { %3323 = vmatpush1.bf16.msra.mxu0 %v5658_v62  ;;  %3429 = vmatpush1.bf16.msra.mxu1 %v5660_v2 }
 0x22e   :  { %3324 = vmatprep.subr.bf16.mxu0 %v5675_v3  ;;  %3430 = vmatprep.subr.bf16.mxu1 %v5677_v4 }
 0x231   :  { %3325 = vmatpush1.bf16.msra.mxu0 %v5674_v16  ;;  %3431 = vmatpush1.bf16.msra.mxu1 %v5676_v19 }
 0x232   :  { %3326 = vmatprep.subr.bf16.mxu0 %v5691_v20  ;;  %3432 = vmatprep.subr.bf16.mxu1 %v5693_v21 }
 0x235   :  { %3327 = vmatpush1.bf16.msra.mxu0 %v5690_v22  ;;  %3433 = vmatpush1.bf16.msra.mxu1 %v5692_v25 }
 0x236   :  { %3572 = vmatprep.subr.bf16.mxu0 %v6839_v11  ;;  %3613 = vmatprep.subr.bf16.mxu1 %v6841_v12  ;;  %v653_v11 = vsub.s32 7, %v6770_v38  ;;  %v6895_v12 = vld [vmem:[%s6984_s3] sm:$0x1]  ;;  %s6464_s3 = smov [#allocation13]  }
 0x237   :  { %s5296_s14 = sshll.u32 %s6464_s3, 4  ;;  %s5297_s14 = int_to_ptr.vmem [resolvable:$true] %s5296_s14 }
 0x238   :  { %3345 = vmatmul.mubr.bf16.vlgmr.msra.gmra.mrb[24].mxu0 %v6721_v40  ;;  %3451 = vmatmul.mubr.bf16.vlgmr.msra.gmra.mrb[24].mxu1 %v6721_v40  ;;  %v641_v40 = vsub.s32 4, %v6770_v38  ;;  %s6422_s18 = scalar_lea.vmem %s5297_s14, 32  ;;  %p6427_p7 = scmp.lt.s32.totalorder %s5297_s14, %s5297_s14 }
 0x239   :  { %3573 = vmatpush1.bf16.msra.mxu0 %v6834_v37  ;;  %3614 = vmatpush1.bf16.msra.mxu1 %v6836_v5  ;;  %v649_v37 = vsub.s32 6, %v6770_v38  ;;  %v645_v5 = vsub.s32 5, %v6770_v38  ;;  %p6423_p6 = scmp.ne.s32.totalorder %s5297_s14, %s6422_s18  ;;  %p6428_p8 = scmp.lt.s32.totalorder %s6422_s18, %s6422_s18 }
 0x23a   :  { %3574 = vmatprep.subr.bf16.mxu0 %v6860_v54  ;;  %3615 = vmatprep.subr.bf16.mxu1 %v6862_v61  ;;  %v654_v54 = vrot.slane %v6777_v63, %v653_v11 }
 0x23b   :  { %3354 = vmatprep.mubr.bf16.mxu0 %v6463_v0  ;;  %3460 = vmatprep.mubr.bf16.mxu1 %v6463_v0  ;;  %p6429_p9 = por %p6428_p8, %p6427_p7 }
 0x23d   :  { %3575 = vmatpush1.bf16.msra.mxu0 %v6856_v51  ;;  %3616 = vmatpush1.bf16.msra.mxu1 %v6858_v57  ;;  %v650_v51 = vrot.slane %v6777_v63, %v649_v37  ;;  %v646_v57 = vrot.slane %v6777_v63, %v645_v5  ;;  %p6430_p10 = pnand %p6429_p9, %p6423_p6 }
 0x240   :  { %3355 = vmatmul.mubr.bf16.gmra.mrb[28].mxu0 %v6726_v47  ;;  %3461 = vmatmul.mubr.bf16.gmra.mrb[28].mxu1 %v6726_v47  ;;  %v642_v47 = vrot.slane %v6777_v63, %v641_v40 }
 0x241   :  { %3604 = vmatprep.mubr.bf16.mxu0 %v6463_v0  ;;  %3645 = vmatprep.mubr.bf16.mxu1 %v6463_v0 }
 0x248   :  { %5694 = vmatmul.mubr.msk.bf16.vlgmr.msra.gmra.mrb[32].mxu0 %vm3568_vm2, %v6895_v12  ;;  %5695 = vmatmul.mubr.msk.bf16.vlgmr.msra.gmra.mrb[32].mxu1 %vm3568_vm2, %v6895_v12 }
 0x249   :  { %3686 = vmatprep.mubr.bf16.mxu0 %v6463_v0  ;;  %3727 = vmatprep.mubr.bf16.mxu1 %v6463_v0 }
 0x24b   :  { %v2922_v61 = vpop.f32.mrb[8].mxu0  ;;  %v3028_v36 = vpop.f32.mrb[8].mxu1 }
 0x24c   :  { %v6033_v27 = vadd.f32 %v2922_v61, %v642_v47  ;;  %v6041_v48 = vadd.f32 %v3028_v36, %v650_v51  ;;  %v2924_v30 = vpop.f32.mrb[9].mxu0  ;;  %v3030_v31 = vpop.f32.mrb[9].mxu1 }
 0x24d   :  { %v6034_v32 = vadd.f32 %v2924_v30, %v646_v57  ;;  %v6042_v49 = vadd.f32 %v3030_v31, %v654_v54  ;;  %v2926_v33 = vpop.f32.mrb[10].mxu0  ;;  %v3032_v44 = vpop.f32.mrb[10].mxu1 }
 0x24e   :  { %v6035_v55 = vadd.f32 %v2926_v33, %v642_v47  ;;  %v6043_v28 = vadd.f32 %v3032_v44, %v650_v51  ;;  %v2928_v35 = vpop.f32.mrb[11].mxu0  ;;  %v3034_v56 = vpop.f32.mrb[11].mxu1  ;;  %v3475_v17 = vmax.f32 %v6033_v27, 0.0  ;;  %v3477_v18 = vmax.f32 %v6041_v48, 0.0 }
 0x24f   :  { %v6036_v41 = vadd.f32 %v2928_v35, %v646_v57  ;;  %v6044_v63 = vadd.f32 %v3034_v56, %v654_v54  ;;  %v3476_v43 = vmax.f32 %v6034_v32, 0.0  ;;  %v3478_v23 = vmax.f32 %v6042_v49, 0.0 }
 0x250   :  { %v3491_v29 = vmax.f32 %v6035_v55, 0.0  ;;  %v3493_v42 = vmax.f32 %v6043_v28, 0.0 }
 0x251   :  { %v3492_v24 = vmax.f32 %v6036_v41, 0.0  ;;  %v3494_v39 = vmax.f32 %v6044_v63, 0.0 }
 0x252   :  { %v3540_v34 = vpack.c.bf16 %v3491_v29, %v3475_v17  ;;  %v3542_v45 = vpack.c.bf16 %v3493_v42, %v3477_v18 }
 0x253   :  { %v3541_v46 = vpack.c.bf16 %v3492_v24, %v3476_v43  ;;  %v3543_v50 = vpack.c.bf16 %v3494_v39, %v3478_v23  ;;  %v2932_v26 = vpop.f32.mrb[12].mxu0  ;;  %v3038_v7 = vpop.f32.mrb[12].mxu1 }
 0x254   :  { %v6037_v52 = vadd.f32 %v2932_v26, %v642_v47  ;;  %v6045_v8 = vadd.f32 %v3038_v7, %v650_v51  ;;  %v2934_v53 = vpop.f32.mrb[13].mxu0  ;;  %v3040_v9 = vpop.f32.mrb[13].mxu1 }
 0x255   :  { %v6038_v10 = vadd.f32 %v2934_v53, %v646_v57  ;;  %v6046_v62 = vadd.f32 %v3040_v9, %v654_v54  ;;  %v2936_v2 = vpop.f32.mrb[14].mxu0  ;;  %v3042_v3 = vpop.f32.mrb[14].mxu1  ;;  %3654 = vmatprep.subr.bf16.mxu0 %v3541_v46  ;;  %3695 = vmatprep.subr.bf16.mxu1 %v3543_v50 }
 0x256   :  { %v6039_v4 = vadd.f32 %v2936_v2, %v642_v47  ;;  %v6047_v6 = vadd.f32 %v3042_v3, %v650_v51  ;;  %v2938_v13 = vpop.f32.mrb[15].mxu0  ;;  %v3044_v14 = vpop.f32.mrb[15].mxu1  ;;  %3655 = vmatpush1.bf16.msra.mxu0 %v3540_v34  ;;  %3696 = vmatpush1.bf16.msra.mxu1 %v3542_v45  ;;  %v3507_v19 = vmax.f32 %v6037_v52, 0.0  ;;  %v3509_v20 = vmax.f32 %v6045_v8, 0.0  ;;  %v6921_v47 = vld [vmem:[#allocation8 + $0x8] sm:$0xff] }
 0x257   :  { %v6040_v15 = vadd.f32 %v2938_v13, %v646_v57  ;;  %v6048_v16 = vadd.f32 %v3044_v14, %v654_v54  ;;  %v3508_v25 = vmax.f32 %v6038_v10, 0.0  ;;  %v3510_v61 = vmax.f32 %v6046_v62, 0.0 }
 0x258   :  { %v3523_v21 = vmax.f32 %v6039_v4, 0.0  ;;  %v3525_v22 = vmax.f32 %v6047_v6, 0.0  ;;  %v658_v51 = vrot.slane %v6921_v47, %v625_v58  ;;  %v666_v57 = vrot.slane %v6921_v47, %v633_v59 }
 0x259   :  { %v3524_v36 = vmax.f32 %v6040_v15, 0.0  ;;  %v3526_v27 = vmax.f32 %v6048_v16, 0.0  ;;  %v662_v54 = vrot.slane %v6921_v47, %v629_v60  ;;  %v670_v49 = vrot.slane %v6921_v47, %v637_v1 }
 0x25a   :  { %v3556_v48 = vpack.c.bf16 %v3523_v21, %v3507_v19  ;;  %v3558_v30 = vpack.c.bf16 %v3525_v22, %v3509_v20 }
 0x25b   :  { %v3557_v31 = vpack.c.bf16 %v3524_v36, %v3508_v25  ;;  %v3559_v32 = vpack.c.bf16 %v3526_v27, %v3510_v61 }
 0x25d   :  { %3656 = vmatprep.subr.bf16.mxu0 %v3557_v31  ;;  %3697 = vmatprep.subr.bf16.mxu1 %v3559_v32 }
 0x25e   :  { %3657 = vmatpush1.bf16.msra.mxu0 %v3556_v48  ;;  %3698 = vmatpush1.bf16.msra.mxu1 %v3558_v30 }
 0x261   :  { %5696 = vmatmul.mubr.msk.bf16.vlgmr.msra.gmra.mrb[36].mxu0 %vm3568_vm2, %v6895_v12  ;;  %5697 = vmatmul.mubr.msk.bf16.vlgmr.msra.gmra.mrb[36].mxu1 %vm3568_vm2, %v6895_v12 }
 0x262   :  { %3768 = vmatprep.mubr.bf16.mxu0 %v6463_v0  ;;  %3809 = vmatprep.mubr.bf16.mxu1 %v6463_v0 }
 0x2ab   :  { %v3134_v33 = vpop.f32.mrb[16].mxu0  ;;  %v3240_v44 = vpop.f32.mrb[16].mxu1 }
 0x2ac   :  { %v6049_v55 = vadd.f32 %v3134_v33, %v658_v51  ;;  %v6057_v28 = vadd.f32 %v3240_v44, %v666_v57  ;;  %v3136_v35 = vpop.f32.mrb[17].mxu0  ;;  %v3242_v56 = vpop.f32.mrb[17].mxu1 }
 0x2ad   :  { %v6050_v41 = vadd.f32 %v3136_v35, %v662_v54  ;;  %v6058_v58 = vadd.f32 %v3242_v56, %v670_v49  ;;  %v3138_v63 = vpop.f32.mrb[18].mxu0  ;;  %v3244_v17 = vpop.f32.mrb[18].mxu1 }
 0x2ae   :  { %v6051_v18 = vadd.f32 %v3138_v63, %v658_v51  ;;  %v6059_v59 = vadd.f32 %v3244_v17, %v666_v57  ;;  %v3140_v29 = vpop.f32.mrb[19].mxu0  ;;  %v3246_v42 = vpop.f32.mrb[19].mxu1  ;;  %v3479_v23 = vmax.f32 %v6049_v55, 0.0  ;;  %v3481_v24 = vmax.f32 %v6057_v28, 0.0 }
 0x2af   :  { %v6052_v43 = vadd.f32 %v3140_v29, %v662_v54  ;;  %v6060_v60 = vadd.f32 %v3246_v42, %v670_v49  ;;  %v3480_v34 = vmax.f32 %v6050_v41, 0.0  ;;  %v3482_v45 = vmax.f32 %v6058_v58, 0.0 }
 0x2b0   :  { %v3495_v39 = vmax.f32 %v6051_v18, 0.0  ;;  %v3497_v1 = vmax.f32 %v6059_v59, 0.0 }
 0x2b1   :  { %v3496_v46 = vmax.f32 %v6052_v43, 0.0  ;;  %v3498_v50 = vmax.f32 %v6060_v60, 0.0 }
 0x2b2   :  { %v3544_v26 = vpack.c.bf16 %v3495_v39, %v3479_v23  ;;  %v3546_v7 = vpack.c.bf16 %v3497_v1, %v3481_v24 }
 0x2b3   :  { %v3545_v52 = vpack.c.bf16 %v3496_v46, %v3480_v34  ;;  %v3547_v8 = vpack.c.bf16 %v3498_v50, %v3482_v45  ;;  %v3144_v53 = vpop.f32.mrb[20].mxu0  ;;  %v3250_v9 = vpop.f32.mrb[20].mxu1 }
 0x2b4   :  { %v6053_v10 = vadd.f32 %v3144_v53, %v658_v51  ;;  %v6061_v62 = vadd.f32 %v3250_v9, %v666_v57  ;;  %v3146_v2 = vpop.f32.mrb[21].mxu0  ;;  %v3252_v3 = vpop.f32.mrb[21].mxu1 }
 0x2b5   :  { %v6054_v4 = vadd.f32 %v3146_v2, %v662_v54  ;;  %v6062_v6 = vadd.f32 %v3252_v3, %v670_v49  ;;  %v3148_v13 = vpop.f32.mrb[22].mxu0  ;;  %v3254_v14 = vpop.f32.mrb[22].mxu1  ;;  %3736 = vmatprep.subr.bf16.mxu0 %v3545_v52  ;;  %3777 = vmatprep.subr.bf16.mxu1 %v3547_v8 }
 0x2b6   :  { %v6055_v15 = vadd.f32 %v3148_v13, %v658_v51  ;;  %v6063_v16 = vadd.f32 %v3254_v14, %v666_v57  ;;  %v3150_v19 = vpop.f32.mrb[23].mxu0  ;;  %v3256_v20 = vpop.f32.mrb[23].mxu1  ;;  %3737 = vmatpush1.bf16.msra.mxu0 %v3544_v26  ;;  %3778 = vmatpush1.bf16.msra.mxu1 %v3546_v7  ;;  %v3511_v25 = vmax.f32 %v6053_v10, 0.0  ;;  %v3513_v61 = vmax.f32 %v6061_v62, 0.0 }
 0x2b7   :  { %v6056_v21 = vadd.f32 %v3150_v19, %v662_v54  ;;  %v6064_v22 = vadd.f32 %v3256_v20, %v670_v49  ;;  %v3512_v48 = vmax.f32 %v6054_v4, 0.0  ;;  %v3514_v30 = vmax.f32 %v6062_v6, 0.0 }
 0x2b8   :  { %v3527_v36 = vmax.f32 %v6055_v15, 0.0  ;;  %v3529_v27 = vmax.f32 %v6063_v16, 0.0  ;;  %v674_v51 = vrot.slane %v6921_v47, %v641_v40  ;;  %v682_v57 = vrot.slane %v6921_v47, %v649_v37 }
 0x2b9   :  { %v3528_v31 = vmax.f32 %v6056_v21, 0.0  ;;  %v3530_v32 = vmax.f32 %v6064_v22, 0.0  ;;  %v678_v54 = vrot.slane %v6921_v47, %v645_v5  ;;  %v686_v49 = vrot.slane %v6921_v47, %v653_v11 }
 0x2ba   :  { %v3560_v33 = vpack.c.bf16 %v3527_v36, %v3511_v25  ;;  %v3562_v44 = vpack.c.bf16 %v3529_v27, %v3513_v61 }
 0x2bb   :  { %v3561_v55 = vpack.c.bf16 %v3528_v31, %v3512_v48  ;;  %v3563_v28 = vpack.c.bf16 %v3530_v32, %v3514_v30 }
 0x2bd   :  { %3738 = vmatprep.subr.bf16.mxu0 %v3561_v55  ;;  %3779 = vmatprep.subr.bf16.mxu1 %v3563_v28  ;;  %v6160_v55 = vld [vmem:[#allocation10 + $0xc0] sm:$0xff]  }
 0x2be   :  { %3739 = vmatpush1.bf16.msra.mxu0 %v3560_v33  ;;  %3780 = vmatpush1.bf16.msra.mxu1 %v3562_v44  ;;  %v6158_v44 = vld [vmem:[#allocation10 + $0x40] sm:$0xff]  }
 0x2c1   :  { %5698 = vmatmul.mubr.msk.bf16.vlgmr.msra.gmra.mrb[40].mxu0 %vm3568_vm2, %v6895_v12  ;;  %5699 = vmatmul.mubr.msk.bf16.vlgmr.msra.gmra.mrb[40].mxu1 %vm3568_vm2, %v6895_v12 }
 0x2c2   :  { %3850 = vmatprep.mubr.bf16.mxu0 %v6463_v0  ;;  %3891 = vmatprep.mubr.bf16.mxu1 %v6463_v0 }
 0x30b   :  { %v3346_v35 = vpop.f32.mrb[24].mxu0  ;;  %v3452_v56 = vpop.f32.mrb[24].mxu1 }
 0x30c   :  { %v6065_v41 = vadd.f32 %v3346_v35, %v674_v51  ;;  %v6073_v0 = vadd.f32 %v3452_v56, %v682_v57  ;;  %v3348_v58 = vpop.f32.mrb[25].mxu0  ;;  %v3454_v63 = vpop.f32.mrb[25].mxu1 }
 0x30d   :  { %v6066_v17 = vadd.f32 %v3348_v58, %v678_v54  ;;  %v6074_v40 = vadd.f32 %v3454_v63, %v686_v49  ;;  %v3350_v18 = vpop.f32.mrb[26].mxu0  ;;  %v3456_v59 = vpop.f32.mrb[26].mxu1  ;;  %v6161_v58 = vld [vmem:[#allocation10 + $0x80] sm:$0xff]  }
 0x30e   :  { %v6067_v29 = vadd.f32 %v3350_v18, %v674_v51  ;;  %v6075_v37 = vadd.f32 %v3456_v59, %v682_v57  ;;  %v3352_v42 = vpop.f32.mrb[27].mxu0  ;;  %v3458_v43 = vpop.f32.mrb[27].mxu1  ;;  %v3483_v23 = vmax.f32 %v6065_v41, 0.0  ;;  %v3485_v38 = vmax.f32 %v6073_v0, 0.0  ;;  %v6159_v0 = vld [vmem:[#allocation10] sm:$0xff]   ;;  %v6164_v18 = vld [vmem:[#allocation10 + $0xc8] sm:$0xff]  }
 0x30f   :  { %v6068_v60 = vadd.f32 %v3352_v42, %v678_v54  ;;  %v6076_v5 = vadd.f32 %v3458_v43, %v686_v49  ;;  %v3484_v47 = vmax.f32 %v6066_v17, 0.0  ;;  %v3486_v39 = vmax.f32 %v6074_v40, 0.0  ;;  %v6162_v40 = vld [vmem:[#allocation10 + $0x48] sm:$0xff]   ;;  %v6166_v43 = vld [vmem:[#allocation10 + $0x50] sm:$0xff]  }
 0x310   :  { %v3499_v24 = vmax.f32 %v6067_v29, 0.0  ;;  %v3501_v11 = vmax.f32 %v6075_v37, 0.0  ;;  %v6163_v37 = vld [vmem:[#allocation10 + $0x8] sm:$0xff]  }
 0x311   :  { %v3500_v1 = vmax.f32 %v6068_v60, 0.0  ;;  %v3502_v34 = vmax.f32 %v6076_v5, 0.0  ;;  %v6165_v42 = vld [vmem:[#allocation10 + $0x88] sm:$0xff]   ;;  %v6168_v60 = vld [vmem:[#allocation10 + $0xd0] sm:$0xff]  }
 0x312   :  { %v3548_v45 = vpack.c.bf16 %v3499_v24, %v3483_v23  ;;  %v3550_v46 = vpack.c.bf16 %v3501_v11, %v3485_v38  ;;  %v6167_v5 = vld [vmem:[#allocation10 + $0x10] sm:$0xff]   ;;  %v6170_v38 = vld [vmem:[#allocation10 + $0x58] sm:$0xff]  }
 0x313   :  { %v3549_v50 = vpack.c.bf16 %v3500_v1, %v3484_v47  ;;  %v3551_v26 = vpack.c.bf16 %v3502_v34, %v3486_v39  ;;  %v3356_v7 = vpop.f32.mrb[28].mxu0  ;;  %v3462_v52 = vpop.f32.mrb[28].mxu1  ;;  %v6169_v23 = vld [vmem:[#allocation10 + $0x90] sm:$0xff]   ;;  %v6172_v24 = vld [vmem:[#allocation10 + $0xd8] sm:$0xff]   ;;  %v6174_v47 = vld [vmem:[#allocation10 + $0x60] sm:$0xff]  }
 0x314   :  { %v6069_v8 = vadd.f32 %v3356_v7, %v674_v51  ;;  %v6077_v53 = vadd.f32 %v3462_v52, %v682_v57  ;;  %v3358_v9 = vpop.f32.mrb[29].mxu0  ;;  %v3464_v10 = vpop.f32.mrb[29].mxu1  ;;  %v6173_v11 = vld [vmem:[#allocation10 + $0x98] sm:$0xff]   ;;  %v6176_v39 = vld [vmem:[#allocation10 + $0xe0] sm:$0xff]   ;;  %v6182_v7 = vld [vmem:[#allocation10 + $0x70] sm:$0xff]  }
 0x315   :  { %v6070_v62 = vadd.f32 %v3358_v9, %v678_v54  ;;  %v6078_v2 = vadd.f32 %v3464_v10, %v686_v49  ;;  %v3360_v3 = vpop.f32.mrb[30].mxu0  ;;  %v3466_v4 = vpop.f32.mrb[30].mxu1  ;;  %3818 = vmatprep.subr.bf16.mxu0 %v3549_v50  ;;  %3859 = vmatprep.subr.bf16.mxu1 %v3551_v26  ;;  %v6175_v1 = vld [vmem:[#allocation10 + $0x20] sm:$0xff]   ;;  %v6179_v50 = vld [vmem:[#allocation10 + $0x28] sm:$0xff]   ;;  %v6184_v52 = vld [vmem:[#allocation10 + $0xf0] sm:$0xff]  }
 0x316   :  { %v6071_v6 = vadd.f32 %v3360_v3, %v674_v51  ;;  %v6079_v13 = vadd.f32 %v3466_v4, %v682_v57  ;;  %v3362_v14 = vpop.f32.mrb[31].mxu0  ;;  %v3468_v15 = vpop.f32.mrb[31].mxu1  ;;  %3819 = vmatpush1.bf16.msra.mxu0 %v3548_v45  ;;  %3860 = vmatpush1.bf16.msra.mxu1 %v3550_v46  ;;  %v3515_v20 = vmax.f32 %v6069_v8, 0.0  ;;  %v3517_v21 = vmax.f32 %v6077_v53, 0.0  ;;  %v6177_v34 = vld [vmem:[#allocation10 + $0xa0] sm:$0xff]   ;;  %v6178_v45 = vld [vmem:[#allocation10 + $0x68] sm:$0xff]  }
 0x317   :  { %v6072_v16 = vadd.f32 %v3362_v14, %v678_v54  ;;  %v6080_v19 = vadd.f32 %v3468_v15, %v686_v49  ;;  %v3516_v61 = vmax.f32 %v6070_v62, 0.0  ;;  %v3518_v36 = vmax.f32 %v6078_v2, 0.0  ;;  %v6180_v46 = vld [vmem:[#allocation10 + $0xe8] sm:$0xff]   ;;  %v6183_v62 = vld [vmem:[#allocation10 + $0x30] sm:$0xff]  }
 0x318   :  { %v3531_v22 = vmax.f32 %v6071_v6, 0.0  ;;  %v3533_v25 = vmax.f32 %v6079_v13, 0.0  ;;  %v6181_v26 = vld [vmem:[#allocation10 + $0xa8] sm:$0xff]   ;;  %v6185_v2 = vld [vmem:[#allocation10 + $0xb0] sm:$0xff]   ;;  %v6186_v6 = vld [vmem:[#allocation10 + $0x78] sm:$0xff]  }
 0x319   :  { %v3532_v27 = vmax.f32 %v6072_v16, 0.0  ;;  %v3534_v48 = vmax.f32 %v6080_v19, 0.0  ;;  %v6188_v13 = vld [vmem:[#allocation10 + $0xf8] sm:$0xff]  }
 0x31a   :  { %v3564_v30 = vpack.c.bf16 %v3531_v22, %v3515_v20  ;;  %v3566_v31 = vpack.c.bf16 %v3533_v25, %v3517_v21  ;;  %v6187_v20 = vld [vmem:[#allocation10 + $0x38] sm:$0xff]   ;;  %v6190_v22 = vld [vmem:[#allocation10 + $0x140] sm:$0xff]  }
 0x31b   :  { %v3565_v32 = vpack.c.bf16 %v3532_v27, %v3516_v61  ;;  %v3567_v33 = vpack.c.bf16 %v3534_v48, %v3518_v36  ;;  %v6953_v28 = vpop.f32.mrb[32].mxu0  ;;  %v6955_v51 = vpop.f32.mrb[32].mxu1  ;;  %v6189_v21 = vld [vmem:[#allocation10 + $0xb8] sm:$0xff]   ;;  %v6192_v25 = vld [vmem:[#allocation10 + $0x1c0] sm:$0xff]  }
 0x31c   :  { %v3608_v57 = vpop.f32.mrb[33].mxu0  ;;  %v3649_v54 = vpop.f32.mrb[33].mxu1  ;;  %v3900_v16 = vmul.f32 0.0014204546, %v6953_v28  ;;  %v3902_v19 = vmul.f32 0.0014204546, %v6955_v51 }
 0x31d   :  { %3820 = vmatprep.subr.bf16.mxu0 %v3565_v32  ;;  %3861 = vmatprep.subr.bf16.mxu1 %v3567_v33  ;;  %v3901_v49 = vmul.f32 0.0014204546, %v3608_v57  ;;  %v3903_v35 = vmul.f32 0.0014204546, %v3649_v54  ;;  %v3610_v56 = vpop.f32.mrb[34].mxu0  ;;  %v3651_v41 = vpop.f32.mrb[34].mxu1 }
 0x31e   :  { %3821 = vmatpush1.bf16.msra.mxu0 %v3564_v30  ;;  %3862 = vmatpush1.bf16.msra.mxu1 %v3566_v31  ;;  %v3611_v63 = vpop.f32.mrb[35].mxu0  ;;  %v3652_v17 = vpop.f32.mrb[35].mxu1  ;;  %v3916_v27 = vpack.c.bf16 %v3900_v16, %v3900_v16  ;;  %v3918_v48 = vpack.c.bf16 %v3902_v19, %v3902_v19  ;;  %v6191_v30 = vld [vmem:[#allocation10 + $0x100] sm:$0xff]   ;;  %v6194_v32 = vld [vmem:[#allocation10 + $0x148] sm:$0xff]   ;;  %v6198_v57 = vld [vmem:[#allocation10 + $0x150] sm:$0xff]  }
 0x31f   :  { %5841 = vmatprep.subr.bf16.mxu0 %v6158_v44  ;;  %5863 = vmatprep.subr.bf16.mxu1 %v6160_v55  ;;  %v3917_v59 = vpack.c.bf16 %v3901_v49, %v3901_v49  ;;  %v3919_v29 = vpack.c.bf16 %v3903_v35, %v3903_v35  ;;  %v6193_v31 = vld [vmem:[#allocation10 + $0x180] sm:$0xff]   ;;  %v6196_v33 = vld [vmem:[#allocation10 + $0x1c8] sm:$0xff]   ;;  %v6200_v54 = vld [vmem:[#allocation10 + $0x1d0] sm:$0xff]  }
 0x320   :  { %v6195_v28 = vld [vmem:[#allocation10 + $0x108] sm:$0xff]   ;;  %v6199_v49 = vld [vmem:[#allocation10 + $0x110] sm:$0xff]   ;;  %v6202_v56 = vld [vmem:[#allocation10 + $0x158] sm:$0xff]  }
 0x321   :  { %5700 = vmatmul.mubr.msk.bf16.vlgmr.msra.gmra.mrb[44].mxu0 %vm3568_vm2, %v6895_v12  ;;  %5701 = vmatmul.mubr.msk.bf16.vlgmr.msra.gmra.mrb[44].mxu1 %vm3568_vm2, %v6895_v12  ;;  %v6171_v12 = vld [vmem:[#allocation10 + $0x18] sm:$0xff]   ;;  %v6197_v51 = vld [vmem:[#allocation10 + $0x188] sm:$0xff]   ;;  %v6201_v35 = vld [vmem:[#allocation10 + $0x190] sm:$0xff]  }
 0x322   :  { %5842 = vmatpush3.bf16.msra.mxu0 %v6159_v0  ;;  %5864 = vmatpush3.bf16.msra.mxu1 %v6161_v58  ;;  %v6204_v41 = vld [vmem:[#allocation10 + $0x1d8] sm:$0xff]   ;;  %v6206_v63 = vld [vmem:[#allocation10 + $0x160] sm:$0xff]  }
 0x323   :  { %5843 = vmatprep.subr.bf16.mxu0 %v6162_v40  ;;  %5865 = vmatprep.subr.bf16.mxu1 %v6164_v18  ;;  %v6203_v0 = vld [vmem:[#allocation10 + $0x118] sm:$0xff]   ;;  %v6208_v17 = vld [vmem:[#allocation10 + $0x1e0] sm:$0xff]  }
 0x324   :  { %4995 = vmatprep.mubr.bf16.mxu0 %v3917_v59  ;;  %5035 = vmatprep.mubr.bf16.mxu1 %v3919_v29  ;;  %v6205_v58 = vld [vmem:[#allocation10 + $0x198] sm:$0xff]   ;;  %v6207_v40 = vld [vmem:[#allocation10 + $0x120] sm:$0xff]   ;;  %v6210_v59 = vld [vmem:[#allocation10 + $0x168] sm:$0xff]  }
 0x325   :  { %v6209_v18 = vld [vmem:[#allocation10 + $0x1a0] sm:$0xff]   ;;  %v6212_v29 = vld [vmem:[#allocation10 + $0x1e8] sm:$0xff]  }
 0x326   :  { %5844 = vmatpush3.bf16.msra.mxu0 %v6163_v37  ;;  %5866 = vmatpush3.bf16.msra.mxu1 %v6165_v42  ;;  %v6211_v37 = vld [vmem:[#allocation10 + $0x128] sm:$0xff]   ;;  %v6239_v16 = vld [vmem:[#allocation10 + $0x220] sm:$0xff]  }
 0x327   :  { %5845 = vmatprep.subr.bf16.mxu0 %v6166_v43  ;;  %5867 = vmatprep.subr.bf16.mxu1 %v6168_v60  ;;  %v6213_v42 = vld [vmem:[#allocation10 + $0x1a8] sm:$0xff]   ;;  %v6214_v43 = vld [vmem:[#allocation10 + $0x170] sm:$0xff]   ;;  %v6241_v19 = vld [vmem:[#allocation10 + $0x2a0] sm:$0xff]  }
 0x328   :  { %v6216_v60 = vld [vmem:[#allocation10 + $0x1f0] sm:$0xff]  }
 0x32a   :  { %5846 = vmatpush3.bf16.msra.mxu0 %v6167_v5  ;;  %5868 = vmatpush3.bf16.msra.mxu1 %v6169_v23  ;;  %v6215_v5 = vld [vmem:[#allocation10 + $0x130] sm:$0xff]  }
 0x32b   :  { %5847 = vmatprep.subr.bf16.mxu0 %v6170_v38  ;;  %5869 = vmatprep.subr.bf16.mxu1 %v6172_v24  ;;  %v6217_v23 = vld [vmem:[#allocation10 + $0x1b0] sm:$0xff]   ;;  %v6218_v38 = vld [vmem:[#allocation10 + $0x178] sm:$0xff]  }
 0x32c   :  { %v6220_v24 = vld [vmem:[#allocation10 + $0x1f8] sm:$0xff]  }
 0x32e   :  { %5848 = vmatpush3.bf16.msra.mxu0 %v6171_v12  ;;  %5870 = vmatpush3.bf16.msra.mxu1 %v6173_v11 }
 0x32f   :  { %5849 = vmatprep.subr.bf16.mxu0 %v6174_v47  ;;  %5871 = vmatprep.subr.bf16.mxu1 %v6176_v39  ;;  %v6219_v47 = vld [vmem:[#allocation10 + $0x138] sm:$0xff]  }
 0x330   :  { %v6221_v39 = vld [vmem:[#allocation10 + $0x1b8] sm:$0xff]  }
 0x332   :  { %5850 = vmatpush3.bf16.msra.mxu0 %v6175_v1  ;;  %5872 = vmatpush3.bf16.msra.mxu1 %v6177_v34  ;;  %v6222_v1 = vld [vmem:[#allocation10 + $0x240] sm:$0xff]  }
 0x333   :  { %5851 = vmatprep.subr.bf16.mxu0 %v6178_v45  ;;  %5873 = vmatprep.subr.bf16.mxu1 %v6180_v46  ;;  %v6224_v34 = vld [vmem:[#allocation10 + $0x2c0] sm:$0xff]  }
 0x334   :  { %v6961_v8 = vpop.f32.mrb[36].mxu0  ;;  %v6963_v53 = vpop.f32.mrb[36].mxu1 }
 0x335   :  { %v3690_v9 = vpop.f32.mrb[37].mxu0  ;;  %v3731_v10 = vpop.f32.mrb[37].mxu1  ;;  %v3904_v12 = vmul.f32 0.0014204546, %v6961_v8  ;;  %v3906_v11 = vmul.f32 0.0014204546, %v6963_v53 }
 0x336   :  { %5852 = vmatpush3.bf16.msra.mxu0 %v6179_v50  ;;  %5874 = vmatpush3.bf16.msra.mxu1 %v6181_v26  ;;  %v3692_v3 = vpop.f32.mrb[38].mxu0  ;;  %v3733_v4 = vpop.f32.mrb[38].mxu1  ;;  %v3905_v61 = vmul.f32 0.0014204546, %v3690_v9  ;;  %v3907_v36 = vmul.f32 0.0014204546, %v3731_v10 }
 0x337   :  { %5853 = vmatprep.subr.bf16.mxu0 %v6182_v7  ;;  %5875 = vmatprep.subr.bf16.mxu1 %v6184_v52  ;;  %v3693_v14 = vpop.f32.mrb[39].mxu0  ;;  %v3734_v15 = vpop.f32.mrb[39].mxu1  ;;  %v3920_v45 = vpack.c.bf16 %v3904_v12, %v3904_v12  ;;  %v3922_v46 = vpack.c.bf16 %v3906_v11, %v3906_v11  ;;  %v6223_v50 = vld [vmem:[#allocation10 + $0x200] sm:$0xff]   ;;  %v6226_v7 = vld [vmem:[#allocation10 + $0x248] sm:$0xff]   ;;  %v6230_v9 = vld [vmem:[#allocation10 + $0x250] sm:$0xff]  }
 0x338   :  { %v3921_v44 = vpack.c.bf16 %v3905_v61, %v3905_v61  ;;  %v3923_v55 = vpack.c.bf16 %v3907_v36, %v3907_v36  ;;  %v6225_v26 = vld [vmem:[#allocation10 + $0x280] sm:$0xff]   ;;  %v6228_v52 = vld [vmem:[#allocation10 + $0x2c8] sm:$0xff]   ;;  %v6232_v10 = vld [vmem:[#allocation10 + $0x2d0] sm:$0xff]  }
 0x339   :  { %v6227_v8 = vld [vmem:[#allocation10 + $0x208] sm:$0xff]   ;;  %v6234_v3 = vld [vmem:[#allocation10 + $0x258] sm:$0xff]   ;;  %v6238_v14 = vld [vmem:[#allocation10 + $0x260] sm:$0xff]  }
 0x33a   :  { %5854 = vmatpush3.bf16.msra.mxu0 %v6183_v62  ;;  %5876 = vmatpush3.bf16.msra.mxu1 %v6185_v2  ;;  %v6229_v53 = vld [vmem:[#allocation10 + $0x288] sm:$0xff]   ;;  %v6231_v62 = vld [vmem:[#allocation10 + $0x210] sm:$0xff]   ;;  %v6236_v4 = vld [vmem:[#allocation10 + $0x2d8] sm:$0xff]  }
 0x33b   :  { %5855 = vmatprep.subr.bf16.mxu0 %v6186_v6  ;;  %5877 = vmatprep.subr.bf16.mxu1 %v6188_v13  ;;  %v6233_v2 = vld [vmem:[#allocation10 + $0x290] sm:$0xff]   ;;  %v6235_v6 = vld [vmem:[#allocation10 + $0x218] sm:$0xff]   ;;  %v6240_v15 = vld [vmem:[#allocation10 + $0x2e0] sm:$0xff]  }
 0x33c   :  { %v6237_v13 = vld [vmem:[#allocation10 + $0x298] sm:$0xff]   ;;  %v6246_v61 = vld [vmem:[#allocation10 + $0x270] sm:$0xff]  }
 0x33d   :  { %v6248_v36 = vld [vmem:[#allocation10 + $0x2f0] sm:$0xff]  }
 0x33e   :  { %5856 = vmatpush3.bf16.msra.mxu0 %v6187_v20  ;;  %5878 = vmatpush3.bf16.msra.mxu1 %v6189_v21  ;;  %v6242_v20 = vld [vmem:[#allocation10 + $0x268] sm:$0xff]   ;;  %v6264_v12 = vld [vmem:[#allocation10 + $0x310] sm:$0xff]  }
 0x33f   :  { %5885 = vmatprep.subr.bf16.mxu0 %v6190_v22  ;;  %5907 = vmatprep.subr.bf16.mxu1 %v6192_v25  ;;  %v6244_v21 = vld [vmem:[#allocation10 + $0x2e8] sm:$0xff]   ;;  %v6265_v11 = vld [vmem:[#allocation10 + $0x390] sm:$0xff]  }
 0x340   :  { %v6243_v22 = vld [vmem:[#allocation10 + $0x228] sm:$0xff]  }
 0x341   :  { %4996 = vmatmul.mubr.bf16.vlgmr.msra.gmra.mrb[48].mxu0 %v3916_v27  ;;  %5036 = vmatmul.mubr.bf16.vlgmr.msra.gmra.mrb[48].mxu1 %v3918_v48  ;;  %v6245_v25 = vld [vmem:[#allocation10 + $0x2a8] sm:$0xff]   ;;  %v6247_v27 = vld [vmem:[#allocation10 + $0x230] sm:$0xff]  }
 0x342   :  { %5886 = vmatpush3.bf16.msra.mxu0 %v6191_v30  ;;  %5908 = vmatpush3.bf16.msra.mxu1 %v6193_v31  ;;  %v6249_v48 = vld [vmem:[#allocation10 + $0x2b0] sm:$0xff]   ;;  %v6250_v30 = vld [vmem:[#allocation10 + $0x278] sm:$0xff]  }
 0x343   :  { %5887 = vmatprep.subr.bf16.mxu0 %v6194_v32  ;;  %5909 = vmatprep.subr.bf16.mxu1 %v6196_v33  ;;  %v6252_v31 = vld [vmem:[#allocation10 + $0x2f8] sm:$0xff]  }
 0x344   :  { %5075 = vmatprep.mubr.bf16.mxu0 %v3921_v44  ;;  %5115 = vmatprep.mubr.bf16.mxu1 %v3923_v55  ;;  %v6251_v32 = vld [vmem:[#allocation10 + $0x238] sm:$0xff]   ;;  %v6254_v44 = vld [vmem:[#allocation10 + $0x340] sm:$0xff]  }
 0x345   :  { %v6253_v33 = vld [vmem:[#allocation10 + $0x2b8] sm:$0xff]   ;;  %v6255_v55 = vld [vmem:[#allocation10 + $0x3c0] sm:$0xff]  }
 0x346   :  { %5888 = vmatpush3.bf16.msra.mxu0 %v6195_v28  ;;  %5910 = vmatpush3.bf16.msra.mxu1 %v6197_v51 }
 0x347   :  { %5889 = vmatprep.subr.bf16.mxu0 %v6198_v57  ;;  %5911 = vmatprep.subr.bf16.mxu1 %v6200_v54 }
 0x34a   :  { %5890 = vmatpush3.bf16.msra.mxu0 %v6199_v49  ;;  %5912 = vmatpush3.bf16.msra.mxu1 %v6201_v35 }
 0x34b   :  { %5891 = vmatprep.subr.bf16.mxu0 %v6202_v56  ;;  %5913 = vmatprep.subr.bf16.mxu1 %v6204_v41 }
 0x34e   :  { %5892 = vmatpush3.bf16.msra.mxu0 %v6203_v0  ;;  %5914 = vmatpush3.bf16.msra.mxu1 %v6205_v58 }
 0x34f   :  { %5893 = vmatprep.subr.bf16.mxu0 %v6206_v63  ;;  %5915 = vmatprep.subr.bf16.mxu1 %v6208_v17 }
 0x352   :  { %5894 = vmatpush3.bf16.msra.mxu0 %v6207_v40  ;;  %5916 = vmatpush3.bf16.msra.mxu1 %v6209_v18 }
 0x353   :  { %5895 = vmatprep.subr.bf16.mxu0 %v6210_v59  ;;  %5917 = vmatprep.subr.bf16.mxu1 %v6212_v29 }
 0x356   :  { %5896 = vmatpush3.bf16.msra.mxu0 %v6211_v37  ;;  %5918 = vmatpush3.bf16.msra.mxu1 %v6213_v42  ;;  %v6256_v37 = vld [vmem:[#allocation10 + $0x300] sm:$0xff]  }
 0x357   :  { %5897 = vmatprep.subr.bf16.mxu0 %v6214_v43  ;;  %5919 = vmatprep.subr.bf16.mxu1 %v6216_v60  ;;  %v6257_v42 = vld [vmem:[#allocation10 + $0x380] sm:$0xff]   ;;  %v6258_v43 = vld [vmem:[#allocation10 + $0x348] sm:$0xff]  }
 0x358   :  { %v6259_v60 = vld [vmem:[#allocation10 + $0x3c8] sm:$0xff]  }
 0x35a   :  { %5898 = vmatpush3.bf16.msra.mxu0 %v6215_v5  ;;  %5920 = vmatpush3.bf16.msra.mxu1 %v6217_v23  ;;  %v6260_v5 = vld [vmem:[#allocation10 + $0x308] sm:$0xff]  }
 0x35b   :  { %5899 = vmatprep.subr.bf16.mxu0 %v6218_v38  ;;  %5921 = vmatprep.subr.bf16.mxu1 %v6220_v24  ;;  %v6261_v23 = vld [vmem:[#allocation10 + $0x388] sm:$0xff]   ;;  %v6262_v38 = vld [vmem:[#allocation10 + $0x350] sm:$0xff]  }
 0x35c   :  { %v6263_v24 = vld [vmem:[#allocation10 + $0x3d0] sm:$0xff]  }
 0x35e   :  { %5900 = vmatpush3.bf16.msra.mxu0 %v6219_v47  ;;  %5922 = vmatpush3.bf16.msra.mxu1 %v6221_v39  ;;  %v6266_v47 = vld [vmem:[#allocation10 + $0x358] sm:$0xff]  }
 0x35f   :  { %5929 = vmatprep.subr.bf16.mxu0 %v6222_v1  ;;  %5951 = vmatprep.subr.bf16.mxu1 %v6224_v34  ;;  %v6267_v39 = vld [vmem:[#allocation10 + $0x3d8] sm:$0xff]  }
 0x360   :  { %v6268_v1 = vld [vmem:[#allocation10 + $0x318] sm:$0xff]  }
 0x361   :  { %5076 = vmatmul.mubr.bf16.vlgmr.msra.gmra.mrb[52].mxu0 %v3920_v45  ;;  %5116 = vmatmul.mubr.bf16.vlgmr.msra.gmra.mrb[52].mxu1 %v3922_v46  ;;  %v6269_v34 = vld [vmem:[#allocation10 + $0x398] sm:$0xff]   ;;  %v6270_v45 = vld [vmem:[#allocation10 + $0x360] sm:$0xff]  }
 0x362   :  { %5930 = vmatpush3.bf16.msra.mxu0 %v6223_v50  ;;  %5952 = vmatpush3.bf16.msra.mxu1 %v6225_v26  ;;  %v6271_v46 = vld [vmem:[#allocation10 + $0x3e0] sm:$0xff]  }
 0x363   :  { %5931 = vmatprep.subr.bf16.mxu0 %v6226_v7  ;;  %5953 = vmatprep.subr.bf16.mxu1 %v6228_v52  ;;  %v6272_v50 = vld [vmem:[#allocation10 + $0x320] sm:$0xff]   ;;  %v6274_v7 = vld [vmem:[#allocation10 + $0x368] sm:$0xff]  }
 0x364   :  { %v6273_v26 = vld [vmem:[#allocation10 + $0x3a0] sm:$0xff]   ;;  %v6275_v52 = vld [vmem:[#allocation10 + $0x3e8] sm:$0xff]  }
 0x366   :  { %5932 = vmatpush3.bf16.msra.mxu0 %v6227_v8  ;;  %5954 = vmatpush3.bf16.msra.mxu1 %v6229_v53  ;;  %v6276_v8 = vld [vmem:[#allocation10 + $0x328] sm:$0xff]  }
 0x367   :  { %5933 = vmatprep.subr.bf16.mxu0 %v6230_v9  ;;  %5955 = vmatprep.subr.bf16.mxu1 %v6232_v10  ;;  %v6277_v53 = vld [vmem:[#allocation10 + $0x3a8] sm:$0xff]   ;;  %v6278_v9 = vld [vmem:[#allocation10 + $0x370] sm:$0xff]  }
 0x368   :  { %v6279_v10 = vld [vmem:[#allocation10 + $0x3f0] sm:$0xff]  }
 0x36a   :  { %5934 = vmatpush3.bf16.msra.mxu0 %v6231_v62  ;;  %5956 = vmatpush3.bf16.msra.mxu1 %v6233_v2  ;;  %v6280_v62 = vld [vmem:[#allocation10 + $0x330] sm:$0xff]  }
 0x36b   :  { %5935 = vmatprep.subr.bf16.mxu0 %v6234_v3  ;;  %5957 = vmatprep.subr.bf16.mxu1 %v6236_v4  ;;  %v6281_v2 = vld [vmem:[#allocation10 + $0x3b0] sm:$0xff]   ;;  %v6282_v3 = vld [vmem:[#allocation10 + $0x378] sm:$0xff]  }
 0x36c   :  { %v6283_v4 = vld [vmem:[#allocation10 + $0x3f8] sm:$0xff]  }
 0x36e   :  { %5936 = vmatpush3.bf16.msra.mxu0 %v6235_v6  ;;  %5958 = vmatpush3.bf16.msra.mxu1 %v6237_v13  ;;  %v6284_v6 = vld [vmem:[#allocation10 + $0x338] sm:$0xff]  }
 0x36f   :  { %5937 = vmatprep.subr.bf16.mxu0 %v6238_v14  ;;  %5959 = vmatprep.subr.bf16.mxu1 %v6240_v15  ;;  %v6285_v13 = vld [vmem:[#allocation10 + $0x3b8] sm:$0xff]  }
 0x372   :  { %5938 = vmatpush3.bf16.msra.mxu0 %v6239_v16  ;;  %5960 = vmatpush3.bf16.msra.mxu1 %v6241_v19 }
 0x373   :  { %5939 = vmatprep.subr.bf16.mxu0 %v6242_v20  ;;  %5961 = vmatprep.subr.bf16.mxu1 %v6244_v21 }
 0x376   :  { %5940 = vmatpush3.bf16.msra.mxu0 %v6243_v22  ;;  %5962 = vmatpush3.bf16.msra.mxu1 %v6245_v25 }
 0x377   :  { %5941 = vmatprep.subr.bf16.mxu0 %v6246_v61  ;;  %5963 = vmatprep.subr.bf16.mxu1 %v6248_v36 }
 0x37a   :  { %5942 = vmatpush3.bf16.msra.mxu0 %v6247_v27  ;;  %5964 = vmatpush3.bf16.msra.mxu1 %v6249_v48 }
 0x37b   :  { %5943 = vmatprep.subr.bf16.mxu0 %v6250_v30  ;;  %5965 = vmatprep.subr.bf16.mxu1 %v6252_v31 }
 0x37e   :  { %5944 = vmatpush3.bf16.msra.mxu0 %v6251_v32  ;;  %5966 = vmatpush3.bf16.msra.mxu1 %v6253_v33 }
 0x37f   :  { %5973 = vmatprep.subr.bf16.mxu0 %v6254_v44  ;;  %5995 = vmatprep.subr.bf16.mxu1 %v6255_v55 }
 0x394   :  { %v3770_v28 = vpop.f32.mrb[40].mxu0  ;;  %v3811_v51 = vpop.f32.mrb[40].mxu1 }
 0x395   :  { %v3908_v57 = vmul.f32 0.0014204546, %v3770_v28  ;;  %v3772_v54 = vpop.f32.mrb[41].mxu0  ;;  %v3910_v49 = vmul.f32 0.0014204546, %v3811_v51  ;;  %v3813_v35 = vpop.f32.mrb[41].mxu1 }
 0x396   :  { %v3909_v56 = vmul.f32 0.0014204546, %v3772_v54  ;;  %v3911_v41 = vmul.f32 0.0014204546, %v3813_v35  ;;  %v3774_v0 = vpop.f32.mrb[42].mxu0  ;;  %v3815_v58 = vpop.f32.mrb[42].mxu1 }
 0x397   :  { %v3924_v63 = vpack.c.bf16 %v3908_v57, %v3908_v57  ;;  %v3926_v17 = vpack.c.bf16 %v3910_v49, %v3910_v49  ;;  %v3775_v40 = vpop.f32.mrb[43].mxu0  ;;  %v3816_v18 = vpop.f32.mrb[43].mxu1  ;;  %v5702_v28 = vld [vmem:[#allocation11] ss:$0 sm:$0xff] }
 0x398   :  { %v3925_v59 = vpack.c.bf16 %v3909_v56, %v3909_v56  ;;  %v3927_v29 = vpack.c.bf16 %v3911_v41, %v3911_v41 }
 0x39a   :  { %5155 = vmatprep.mubr.bf16.mxu0 %v3925_v59  ;;  %5195 = vmatprep.mubr.bf16.mxu1 %v3927_v29 }
 0x39b   :  { %5156 = vmatmul.mubr.bf16.vlgmr.msra.gmra.mrb[56].mxu0 %v3924_v63  ;;  %5196 = vmatmul.mubr.bf16.vlgmr.msra.gmra.mrb[56].mxu1 %v3926_v17 }
 0x39c   :  { %5974 = vmatpush3.bf16.msra.mxu0 %v6256_v37  ;;  %5996 = vmatpush3.bf16.msra.mxu1 %v6257_v42 }
 0x39d   :  { %5975 = vmatprep.subr.bf16.mxu0 %v6258_v43  ;;  %5997 = vmatprep.subr.bf16.mxu1 %v6259_v60 }
 0x3a0   :  { %5976 = vmatpush3.bf16.msra.mxu0 %v6260_v5  ;;  %5998 = vmatpush3.bf16.msra.mxu1 %v6261_v23 }
 0x3a1   :  { %5977 = vmatprep.subr.bf16.mxu0 %v6262_v38  ;;  %5999 = vmatprep.subr.bf16.mxu1 %v6263_v24 }
 0x3a4   :  { %5978 = vmatpush3.bf16.msra.mxu0 %v6264_v12  ;;  %6000 = vmatpush3.bf16.msra.mxu1 %v6265_v11 }
 0x3a5   :  { %5979 = vmatprep.subr.bf16.mxu0 %v6266_v47  ;;  %6001 = vmatprep.subr.bf16.mxu1 %v6267_v39 }
 0x3a8   :  { %5980 = vmatpush3.bf16.msra.mxu0 %v6268_v1  ;;  %6002 = vmatpush3.bf16.msra.mxu1 %v6269_v34 }
 0x3a9   :  { %5981 = vmatprep.subr.bf16.mxu0 %v6270_v45  ;;  %6003 = vmatprep.subr.bf16.mxu1 %v6271_v46 }
 0x3ac   :  { %5982 = vmatpush3.bf16.msra.mxu0 %v6272_v50  ;;  %6004 = vmatpush3.bf16.msra.mxu1 %v6273_v26 }
 0x3ad   :  { %5983 = vmatprep.subr.bf16.mxu0 %v6274_v7  ;;  %6005 = vmatprep.subr.bf16.mxu1 %v6275_v52 }
 0x3b0   :  { %5984 = vmatpush3.bf16.msra.mxu0 %v6276_v8  ;;  %6006 = vmatpush3.bf16.msra.mxu1 %v6277_v53 }
 0x3b1   :  { %5985 = vmatprep.subr.bf16.mxu0 %v6278_v9  ;;  %6007 = vmatprep.subr.bf16.mxu1 %v6279_v10 }
 0x3b4   :  { %5986 = vmatpush3.bf16.msra.mxu0 %v6280_v62  ;;  %6008 = vmatpush3.bf16.msra.mxu1 %v6281_v2 }
 0x3b5   :  { %5987 = vmatprep.subr.bf16.mxu0 %v6282_v3  ;;  %6009 = vmatprep.subr.bf16.mxu1 %v6283_v4 }
 0x3b8   :  { %5988 = vmatpush3.bf16.msra.mxu0 %v6284_v6  ;;  %6010 = vmatpush3.bf16.msra.mxu1 %v6285_v13 }
 0x3f4   :  { %v3852_v14 = vpop.f32.mrb[44].mxu0  ;;  %v3893_v15 = vpop.f32.mrb[44].mxu1 }
 0x3f5   :  { %v3912_v16 = vmul.f32 0.0014204546, %v3852_v14  ;;  %v3914_v19 = vmul.f32 0.0014204546, %v3893_v15  ;;  %v3854_v20 = vpop.f32.mrb[45].mxu0  ;;  %v3895_v21 = vpop.f32.mrb[45].mxu1 }
 0x3f6   :  { %v3913_v22 = vmul.f32 0.0014204546, %v3854_v20  ;;  %v3915_v25 = vmul.f32 0.0014204546, %v3895_v21  ;;  %v3856_v61 = vpop.f32.mrb[46].mxu0  ;;  %v3897_v36 = vpop.f32.mrb[46].mxu1 }
 0x3f7   :  { %v3930_v27 = vpack.c.bf16 %v3914_v19, %v3914_v19  ;;  %v3857_v48 = vpop.f32.mrb[47].mxu0  ;;  %v3898_v30 = vpop.f32.mrb[47].mxu1  ;;  %v3928_v33 = vpack.c.bf16 %v3912_v16, %v3912_v16 }
 0x3f8   :  { %v3929_v31 = vpack.c.bf16 %v3913_v22, %v3913_v22  ;;  %v3931_v32 = vpack.c.bf16 %v3915_v25, %v3915_v25 }
 0x3fa   :  { %5235 = vmatprep.mubr.bf16.mxu0 %v3929_v31  ;;  %5275 = vmatprep.mubr.bf16.mxu1 %v3931_v32 }
 0x3fb   :  { %5236 = vmatmul.mubr.bf16.vlgmr.msra.gmra.mrb[60].mxu0 %v3928_v33  ;;  %5276 = vmatmul.mubr.bf16.vlgmr.msra.gmra.mrb[60].mxu1 %v3930_v27 }
 0x414   :  { %v5857_v44 = vpop.f32.mrb[48].mxu0  ;;  %v5879_v55 = vpop.f32.mrb[48].mxu1 }
 0x415   :  { %v5858_v51 = vpop.f32.mrb[49].mxu0  ;;  %v5880_v57 = vpop.f32.mrb[49].mxu1 }
 0x416   :  { %v5859_v54 = vadd.f32 %v5858_v51, %v5857_v44  ;;  %v5860_v49 = vpop.f32.mrb[50].mxu0  ;;  %v5881_v35 = vadd.f32 %v5880_v57, %v5879_v55  ;;  %v5882_v56 = vpop.f32.mrb[50].mxu1 }
 0x417   :  { %v5861_v41 = vpop.f32.mrb[51].mxu0  ;;  %v5883_v0 = vpop.f32.mrb[51].mxu1 }
 0x418   :  { %v4998_v58 = vadd.f32 %v5859_v54, %v5702_v28 }
 0x41a   :  { %v5038_v63 = vadd.f32 %v5881_v35, %v4998_v58 }
 0x434   :  { %v5901_v17 = vpop.f32.mrb[52].mxu0  ;;  %v5923_v40 = vpop.f32.mrb[52].mxu1 }
 0x435   :  { %v5902_v18 = vpop.f32.mrb[53].mxu0  ;;  %v5924_v59 = vpop.f32.mrb[53].mxu1 }
 0x436   :  { %v5903_v29 = vadd.f32 %v5902_v18, %v5901_v17  ;;  %v5904_v37 = vpop.f32.mrb[54].mxu0  ;;  %v5925_v42 = vadd.f32 %v5924_v59, %v5923_v40  ;;  %v5926_v43 = vpop.f32.mrb[54].mxu1 }
 0x437   :  { %v5905_v60 = vpop.f32.mrb[55].mxu0  ;;  %v5927_v5 = vpop.f32.mrb[55].mxu1 }
 0x438   :  { %v5078_v23 = vadd.f32 %v5903_v29, %v5038_v63 }
 0x43a   :  { %v5118_v38 = vadd.f32 %v5925_v42, %v5078_v23 }
 0x46e   :  { %v5945_v24 = vpop.f32.mrb[56].mxu0  ;;  %v5967_v12 = vpop.f32.mrb[56].mxu1 }
 0x46f   :  { %v5946_v11 = vpop.f32.mrb[57].mxu0  ;;  %v5968_v47 = vpop.f32.mrb[57].mxu1 }
 0x470   :  { %v5947_v39 = vadd.f32 %v5946_v11, %v5945_v24  ;;  %v5969_v1 = vadd.f32 %v5968_v47, %v5967_v12  ;;  %v5948_v34 = vpop.f32.mrb[58].mxu0  ;;  %v5970_v45 = vpop.f32.mrb[58].mxu1 }
 0x471   :  { %v5949_v46 = vpop.f32.mrb[59].mxu0  ;;  %v5971_v50 = vpop.f32.mrb[59].mxu1 }
 0x472   :  { %v5158_v26 = vadd.f32 %v5947_v39, %v5118_v38 }
 0x474   :  { %v5198_v7 = vadd.f32 %v5969_v1, %v5158_v26 }
 0x4ce   :  { %v5989_v52 = vpop.f32.mrb[60].mxu0  ;;  %v6011_v8 = vpop.f32.mrb[60].mxu1 }
 0x4cf   :  { %v5990_v53 = vpop.f32.mrb[61].mxu0  ;;  %v6012_v9 = vpop.f32.mrb[61].mxu1 }
 0x4d0   :  { %v5991_v10 = vadd.f32 %v5990_v53, %v5989_v52  ;;  %v6013_v62 = vadd.f32 %v6012_v9, %v6011_v8  ;;  %v5992_v2 = vpop.f32.mrb[62].mxu0  ;;  %v6014_v3 = vpop.f32.mrb[62].mxu1 }
 0x4d1   :  { %v5993_v4 = vpop.f32.mrb[63].mxu0  ;;  %v6015_v6 = vpop.f32.mrb[63].mxu1 }
 0x4d2   :  { %v5238_v13 = vadd.f32 %v5991_v10, %v5198_v7 }
 0x4d4   :  { %v5278_v14 = vadd.f32 %v6013_v62, %v5238_v13 }
 0x4d6   :  { %v5831_v15 = vmul.f32 -1.442695, %v5278_v14 }
 0x4d8   :  { %6286 = vpow2.f32 %v5831_v15 }
 0x4e2   :  { %v6287_v16 = vpop.eup %6286 }
 0x4e3   :  { %v5286_v19 = vadd.f32 1.0, %v6287_v16 }
 0x4e5   :  { %6288 = vrcp.f32 %v5286_v19 }
 0x4ef   :  { %v6289_v20 = vpop.eup %6288 }
 0x4f0   :  { %5289 = vst [vmem:[#allocation13] sm:$0x3] %v6289_v20 }
 0x4f1   :  { %6433 = shalt.err (!%p6430_p10)
}
 0x4f2   :  { %s6434_s19 = scalar_lea.hbm %s6991_s10, 32 }
 0x4f3   :  { %p6435_p11 = scmp.ne.s32.totalorder %s6991_s10, %s6434_s19  ;;  %p6438_p12 = scmp.lt.u32.totalorder %s6434_s19, %s6991_s10 }
 0x4f5   :  { %p6440_p13 = pnand %p6438_p12, %p6435_p11 }
 0x4f7   :  { %6443 = shalt.err (!%p6440_p13)
}
 0x4f8   :  { %5299 = dma.vmem_to_hbm [thread:$0]  %s5297_s14, 32, %s6991_s10, [#allocation4]  }
 0x4f9   :  { %6452 = dma.done.wait [#allocation4], 32  }
 0x4fa   :  { %6453 = vsyncadd [#allocation4], 4294967264 }
 0x4fb   :  { %5303 = vsyncpa [#allocation3], 1 }
 0x4fc   :  { %5304 = vsyncpa [#allocation6], 1 }
 0x4fd   :  { %5305 = vsyncpa [#allocation9], 1 }
 0x4fe   :  { %5306 = vsyncpa [#allocation12], 1 }
 0x4ff   :  { %5307 = vsyncpa [#allocation4], 1 }

</bundles_post_ra>
